<compile_context>
chip_gen: v7x
topology: tpu7x:2x2x1
jax: 0.10.0
libtpu: 0.0.40
codegen_flags: <defaults>
</compile_context>

<pallas_src>
import functools
import math

import jax
import jax.numpy as jnp
from jax import lax
from jax.experimental import pallas as pl
from jax.experimental.pallas import tpu as pltpu

# ----------------------------- model dimensions -----------------------------
DEPTH_POINTS = 80
STELLAR_DIM = 4
STELLAR_EMBED = 128
TAU_EMBED = 64
COMBINED = STELLAR_EMBED + TAU_EMBED        # 192
HIDDEN = COMBINED * 2                       # 384
OUTPUT_SIZE = 6
OUT_PAD = 128                               # lane-dense padded output width
LN_EPS = 1e-5

_SQRT2 = math.sqrt(2.0)


def _gelu_exact(x):
    # exact GELU (matches torch.nn.GELU() default) — used on the XLA-hoisted encoders
    return 0.5 * x * (1.0 + lax.erf(x / _SQRT2))


def _layernorm(x, gamma, beta):
    mu = jnp.mean(x, axis=-1, keepdims=True)
    var = jnp.mean((x - mu) * (x - mu), axis=-1, keepdims=True)
    return (x - mu) * lax.rsqrt(var + LN_EPS) * gamma + beta


def _dot(a, b):
    return jnp.dot(a, b, precision=lax.Precision.HIGHEST)


# --------------------------------- kernel -----------------------------------
def _predictor_kernel(te_ref, rb_ref, wp1t_ref, wp2_ref, bp2_ref,
                      wp3_ref, bp3_ref, out_ref):
    # te_ref : (R, 64)  bf16   R = tb * DEPTH_POINTS flattened rows (tau embedding)
    # rb_ref : (1, tb, 384) f32   per-sample bias = stellar_emb @ Wp1[:128] + b_p1
    # out_ref: (R, 128) f32       lane-padded output; columns >= 6 are zero
    tb = rb_ref.shape[1]
    r = te_ref.shape[0]
    d = r // tb
    rb = rb_ref[0]                                            # (tb, 384) f32

    # predictor layer 1: tau half on the MXU (bf16 operands, f32 accumulate),
    # stellar half is the pre-reduced f32 row bias broadcast across depth.
    h1 = jnp.dot(te_ref[...], wp1t_ref[...], preferred_element_type=jnp.float32)
    h1 = h1.reshape(tb, d, HIDDEN) + rb[:, None, :]
    h1 = jax.nn.gelu(h1, approximate=True)                    # tanh GELU -> EUP slot
    h1 = h1.reshape(r, HIDDEN).astype(jnp.bfloat16)
    # TODO(synk): nn.Dropout(0.01) is identity here (eval-mode forward).

    # predictor layer 2 (bf16 MXU, f32 accumulate)
    h2 = jnp.dot(h1, wp2_ref[...], preferred_element_type=jnp.float32) + bp2_ref[...]
    h2 = jax.nn.gelu(h2, approximate=True).astype(jnp.bfloat16)

    # predictor layer 3 (zero-padded to 128 lanes for dense stores)
    out = jnp.dot(h2, wp3_ref[...], preferred_element_type=jnp.float32) + bp3_ref[...]
    out_ref[...] = out.astype(out_ref.dtype)


# ---------------------------- hoisted XLA encoders ----------------------------
def _encode(x, p):
    """Stellar encoder -> per-sample predictor row bias; tau position encoder."""
    B = x.shape[0]
    stellar = x[:, :STELLAR_DIM]                              # (B, 4)
    tau = x[:, STELLAR_DIM:]                                  # (B, 80)

    h = _dot(stellar, p["ws1"]) + p["bs1"]
    h = _gelu_exact(_layernorm(h, p["g1"], p["be1"]))
    h = _dot(h, p["ws2"]) + p["bs2"]
    se = _gelu_exact(_layernorm(h, p["g2"], p["be2"]))        # (B, 128)
    rb = _dot(se, p["wp1s"]) + p["bp1"]                       # (B, 384) f32

    t = tau.reshape(B * DEPTH_POINTS, 1)
    th = _gelu_exact(_dot(t, p["wt1"]) + p["bt1"])            # (B*D, 32)
    te = _gelu_exact(_dot(th, p["wt2"]) + p["bt2"])           # (B*D, 64)
    return rb, te


# -------------------------------- wrapper ------------------------------------
@functools.partial(jax.jit, static_argnames=("block_b",))
def atmosphere_forward(x, kparams, block_b=32):
    """x: (B, 4 + DEPTH_POINTS) float32 -> (B, DEPTH_POINTS, OUTPUT_SIZE) float32."""
    B = x.shape[0]
    rb, te = _encode(x, kparams)
    te = te.astype(jnp.bfloat16)                 # bf16 MXU operand (halves te DMA)

    # ---- batch tiling: tb samples (= tb*80 rows) per grid step ----
    tb = max(1, min(block_b, B))
    n_blocks = -(-B // tb)
    if n_blocks == 1 and B > 1:
        # keep >= 2 grid steps so v7x's two TensorCores both get work
        tb = -(-B // 2)
        n_blocks = -(-B // tb)
    Bp = n_blocks * tb
    if Bp != B:
        te = jnp.pad(te, ((0, (Bp - B) * DEPTH_POINTS), (0, 0)))
        rb = jnp.pad(rb, ((0, Bp - B), (0, 0)))
    rb = rb.reshape(n_blocks, tb, HIDDEN)        # sublane-dense per-block tile
    R = tb * DEPTH_POINTS

    # ---- VMEM limit sized from real footprint (te/out double-buffered,
    #      h1/h2 f32 accumulators + bf16 copies, single-buffered weights) ----
    per_row = (2 * TAU_EMBED * 2          # te  bf16, double-buffered
               + 2 * OUT_PAD * 4          # out f32,  double-buffered
               + 2 * HIDDEN * (4 + 2))    # h1, h2: f32 acc + bf16 copy
    vmem_bytes = R * per_row + 2 * tb * HIDDEN * 4 + (2 << 20)
    vmem_limit = int(min(56 << 20, max(32 << 20, 2 * vmem_bytes)))

    wspec = dict(pipeline_mode=pl.Buffered(1))   # constant blocks: single buffer

    out = pl.pallas_call(
        _predictor_kernel,
        out_shape=jax.ShapeDtypeStruct((Bp * DEPTH_POINTS, OUT_PAD), jnp.float32),
        grid_spec=pltpu.PrefetchScalarGridSpec(
            num_scalar_prefetch=0,
            grid=(n_blocks,),
            in_specs=[
                pl.BlockSpec((R, TAU_EMBED), lambda i: (i, 0)),              # te (bf16)
                pl.BlockSpec((1, tb, HIDDEN), lambda i: (i, 0, 0)),          # rb (f32)
                pl.BlockSpec((TAU_EMBED, HIDDEN), lambda i: (0, 0), **wspec),  # Wp1_tau
                pl.BlockSpec((HIDDEN, HIDDEN), lambda i: (0, 0), **wspec),     # Wp2
                pl.BlockSpec((1, HIDDEN), lambda i: (0, 0), **wspec),          # bp2
                pl.BlockSpec((HIDDEN, OUT_PAD), lambda i: (0, 0), **wspec),    # Wp3 (padded)
                pl.BlockSpec((1, OUT_PAD), lambda i: (0, 0), **wspec),         # bp3 (padded)
            ],
            out_specs=pl.BlockSpec((R, OUT_PAD), lambda i: (i, 0)),
        ),
        compiler_params=pltpu.CompilerParams(
            dimension_semantics=("parallel",),
            vmem_limit_bytes=vmem_limit,
        ),
    )(te, rb, kparams["wp1t_bf16"], kparams["wp2_bf16"], kparams["bp2"],
      kparams["wp3p_bf16"], kparams["bp3p"])

    out = out.reshape(Bp, DEPTH_POINTS, OUT_PAD)
    return out[:B, :, :OUTPUT_SIZE]


# --------------------------- parameter construction --------------------------
def init_params(key):
    """Raw (torch-faithful) parameters."""
    def linear(k, fan_in, fan_out):
        k1, k2 = jax.random.split(k)
        bound = 1.0 / math.sqrt(fan_in)
        w = jax.random.uniform(k1, (fan_in, fan_out), jnp.float32, -bound, bound)
        b = jax.random.uniform(k2, (1, fan_out), jnp.float32, -bound, bound)
        return w, b

    keys = jax.random.split(key, 7)
    ws1, bs1 = linear(keys[0], STELLAR_DIM, STELLAR_EMBED)
    ws2, bs2 = linear(keys[1], STELLAR_EMBED, STELLAR_EMBED)
    wt1, bt1 = linear(keys[2], 1, TAU_EMBED // 2)
    wt2, bt2 = linear(keys[3], TAU_EMBED // 2, TAU_EMBED)
    wp1, bp1 = linear(keys[4], COMBINED, HIDDEN)
    wp2, bp2 = linear(keys[5], HIDDEN, HIDDEN)
    wp3, bp3 = linear(keys[6], HIDDEN, OUTPUT_SIZE)

    return {
        "ws1": ws1, "bs1": bs1,
        "g1": jnp.ones((1, STELLAR_EMBED), jnp.float32),
        "be1": jnp.zeros((1, STELLAR_EMBED), jnp.float32),
        "ws2": ws2, "bs2": bs2,
        "g2": jnp.ones((1, STELLAR_EMBED), jnp.float32),
        "be2": jnp.zeros((1, STELLAR_EMBED), jnp.float32),
        "wt1": wt1, "bt1": bt1, "wt2": wt2, "bt2": bt2,
        "wp1": wp1, "bp1": bp1, "wp2": wp2, "bp2": bp2,
        "wp3": wp3, "bp3": bp3,
    }


def prepare_params(p):
    """Hoisted once: split Wp1 (concat layout), pad Wp3 to 128 lanes, bf16 weights."""
    kp = dict(p)
    kp["wp1s"] = p["wp1"][:STELLAR_EMBED, :]                           # f32, XLA side
    kp["wp1t_bf16"] = p["wp1"][STELLAR_EMBED:, :].astype(jnp.bfloat16)
    kp["wp2_bf16"] = p["wp2"].astype(jnp.bfloat16)
    kp["wp3p_bf16"] = jnp.pad(
        p["wp3"], ((0, 0), (0, OUT_PAD - OUTPUT_SIZE))).astype(jnp.bfloat16)
    kp["bp3p"] = jnp.pad(p["bp3"], ((0, 0), (0, OUT_PAD - OUTPUT_SIZE)))
    return kp


# ------------------------------ references -----------------------------------
def reference_forward(x, params):
    """Torch-faithful pure-JAX reference (f32 everywhere, exact-erf GELU)."""
    B = x.shape[0]
    s = x[:, :STELLAR_DIM]
    tau = x[:, STELLAR_DIM:].reshape(B * DEPTH_POINTS, 1)

    h = _dot(s, params["ws1"]) + params["bs1"]
    h = _gelu_exact(_layernorm(h, params["g1"], params["be1"]))
    h = _dot(h, params["ws2"]) + params["bs2"]
    se = _gelu_exact(_layernorm(h, params["g2"], params["be2"]))      # (B, 128)

    th = _gelu_exact(_dot(tau, params["wt1"]) + params["bt1"])
    te = _gelu_exact(_dot(th, params["wt2"]) + params["bt2"]).reshape(
        B, DEPTH_POINTS, TAU_EMBED)

    se_b = jnp.broadcast_to(se[:, None, :], (B, DEPTH_POINTS, STELLAR_EMBED))
    comb = jnp.concatenate([se_b, te], axis=2).reshape(B * DEPTH_POINTS, COMBINED)

    h1 = _gelu_exact(_dot(comb, params["wp1"]) + params["bp1"])
    h2 = _gelu_exact(_dot(h1, params["wp2"]) + params["bp2"])
    out = _dot(h2, params["wp3"]) + params["bp3"]
    return out.reshape(B, DEPTH_POINTS, OUTPUT_SIZE)


def matched_reference(x, kp):
    """Pure-JAX mirror of the kernel math (bf16 MXU operands, tanh GELU)."""
    B = x.shape[0]
    rb, te = _encode(x, kp)
    h1 = jnp.dot(te.astype(jnp.bfloat16), kp["wp1t_bf16"],
                 preferred_element_type=jnp.float32)
    h1 = h1.reshape(B, DEPTH_POINTS, HIDDEN) + rb[:, None, :]
    h1 = jax.nn.gelu(h1, approximate=True).reshape(
        B * DEPTH_POINTS, HIDDEN).astype(jnp.bfloat16)
    h2 = jnp.dot(h1, kp["wp2_bf16"], preferred_element_type=jnp.float32) + kp["bp2"]
    h2 = jax.nn.gelu(h2, approximate=True).astype(jnp.bfloat16)
    out = jnp.dot(h2, kp["wp3p_bf16"], preferred_element_type=jnp.float32) + kp["bp3p"]
    return out.reshape(B, DEPTH_POINTS, OUT_PAD)[:, :, :OUTPUT_SIZE]


# ----------------------------------- main ------------------------------------
if __name__ == "__main__":
    B = 6
    key = jax.random.PRNGKey(0)
    kx, kp_key = jax.random.split(key)
    x = jax.random.normal(kx, (B, STELLAR_DIM + DEPTH_POINTS), jnp.float32)
    raw_params = init_params(kp_key)
    kparams = prepare_params(raw_params)

    # block_b=4 -> 2 grid steps, exercises batch-tile padding (B=6 -> Bp=8)
    out = atmosphere_forward(x, kparams, block_b=4)
    out = jax.block_until_ready(out)
    assert out.shape == (B, DEPTH_POINTS, OUTPUT_SIZE)

    # structural check: kernel vs pure-JAX mirror with matching numerics
    matched = matched_reference(x, kparams)
    assert jnp.allclose(out, matched, atol=1e-2, rtol=1e-2), "mismatch vs matched ref"

    # semantic check vs the torch-faithful f32/erf reference (looser tolerance:
    # bf16 MXU operands + tanh-approximate GELU intentionally change numerics)
    ref = reference_forward(x, raw_params)
    assert jnp.allclose(out, ref, atol=1e-1, rtol=1e-1), "mismatch vs exact ref"

    print("KERNEL_OK")
</pallas_src>

<mosaic_0001>
module attributes {stable_mosaic.version = 11 : i64} {
  func.func @_predictor_kernel(%arg0: i32, %arg1: memref<320x64xbf16, #tpu.memory_space<vmem>>, %arg2: memref<1x4x384xf32, #tpu.memory_space<vmem>>, %arg3: memref<64x384xbf16, #tpu.memory_space<vmem>>, %arg4: memref<384x384xbf16, #tpu.memory_space<vmem>>, %arg5: memref<1x384xf32, #tpu.memory_space<vmem>>, %arg6: memref<384x128xbf16, #tpu.memory_space<vmem>>, %arg7: memref<1x128xf32, #tpu.memory_space<vmem>>, %arg8: memref<320x128xf32, #tpu.memory_space<vmem>>) attributes {dimension_semantics = [#tpu.dimension_semantics<parallel>], iteration_bounds = array<i64: 2>, scalar_prefetch = 0 : i64, scratch_operands = 0 : i64, tpu.core_type = #tpu.core_type<tc>, window_params = [{transform_indices = @transform_0, window_bounds = array<i64: 320, 64>}, {transform_indices = @transform_1, window_bounds = array<i64: 1, 4, 384>}, {pipeline_mode = #tpu.pipeline_mode<synchronous>, transform_indices = @transform_2, window_bounds = array<i64: 64, 384>}, {pipeline_mode = #tpu.pipeline_mode<synchronous>, transform_indices = @transform_3, window_bounds = array<i64: 384, 384>}, {pipeline_mode = #tpu.pipeline_mode<synchronous>, transform_indices = @transform_4, window_bounds = array<i64: 1, 384>}, {pipeline_mode = #tpu.pipeline_mode<synchronous>, transform_indices = @transform_5, window_bounds = array<i64: 384, 128>}, {pipeline_mode = #tpu.pipeline_mode<synchronous>, transform_indices = @transform_6, window_bounds = array<i64: 1, 128>}, {transform_indices = @transform_7, window_bounds = array<i64: 320, 128>}]} {
    %c0 = arith.constant 0 : index
    %c0_0 = arith.constant 0 : index
    %c0_1 = arith.constant 0 : index
    %0 = vector.load %arg2[%c0, %c0_0, %c0_1] : memref<1x4x384xf32, #tpu.memory_space<vmem>>, vector<1x4x384xf32>
    %1 = vector.shape_cast %0 : vector<1x4x384xf32> to vector<4x384xf32>
    %c0_2 = arith.constant 0 : index
    %c0_3 = arith.constant 0 : index
    %2 = vector.load %arg1[%c0_2, %c0_3] : memref<320x64xbf16, #tpu.memory_space<vmem>>, vector<320x64xbf16>
    %c0_4 = arith.constant 0 : index
    %c0_5 = arith.constant 0 : index
    %3 = vector.load %arg3[%c0_4, %c0_5] : memref<64x384xbf16, #tpu.memory_space<vmem>>, vector<64x384xbf16>
    %cst = arith.constant dense<0.000000e+00> : vector<320x384xf32>
    %4 = tpu.matmul %2, %3, %cst {dimension_numbers = #tpu.dot_dimension_numbers<[1], [0], [0], [1], [0, 0, 1, 1], [], []>} : vector<320x64xbf16>, vector<64x384xbf16>, vector<320x384xf32> -> vector<320x384xf32>
    %5 = vector.shape_cast %4 : vector<320x384xf32> to vector<4x80x384xf32>
    %6 = vector.shape_cast %1 : vector<4x384xf32> to vector<4x1x384xf32>
    %7 = vector.broadcast %6 : vector<4x1x384xf32> to vector<4x80x384xf32>
    %8 = arith.addf %5, %7 : vector<4x80x384xf32>
    %9 = arith.mulf %8, %8 : vector<4x80x384xf32>
    %10 = arith.mulf %8, %9 : vector<4x80x384xf32>
    %cst_6 = arith.constant 4.471500e-02 : f32
    %11 = vector.broadcast %cst_6 : f32 to vector<4x80x384xf32>
    %12 = arith.mulf %11, %10 : vector<4x80x384xf32>
    %13 = arith.addf %8, %12 : vector<4x80x384xf32>
    %cst_7 = arith.constant 0.797884583 : f32
    %14 = vector.broadcast %cst_7 : f32 to vector<4x80x384xf32>
    %15 = arith.mulf %14, %13 : vector<4x80x384xf32>
    %16 = math.tanh %15 : vector<4x80x384xf32>
    %cst_8 = arith.constant 1.000000e+00 : f32
    %17 = vector.broadcast %cst_8 : f32 to vector<4x80x384xf32>
    %18 = arith.addf %17, %16 : vector<4x80x384xf32>
    %cst_9 = arith.constant 5.000000e-01 : f32
    %19 = vector.broadcast %cst_9 : f32 to vector<4x80x384xf32>
    %20 = arith.mulf %19, %18 : vector<4x80x384xf32>
    %21 = arith.mulf %8, %20 : vector<4x80x384xf32>
    %22 = vector.shape_cast %21 : vector<4x80x384xf32> to vector<320x384xf32>
    %23 = arith.truncf %22 : vector<320x384xf32> to vector<320x384xbf16>
    %c0_10 = arith.constant 0 : index
    %c0_11 = arith.constant 0 : index
    %24 = vector.load %arg4[%c0_10, %c0_11] : memref<384x384xbf16, #tpu.memory_space<vmem>>, vector<384x384xbf16>
    %cst_12 = arith.constant dense<0.000000e+00> : vector<320x384xf32>
    %25 = tpu.matmul %23, %24, %cst_12 {dimension_numbers = #tpu.dot_dimension_numbers<[1], [0], [0], [1], [0, 0, 1, 1], [], []>} : vector<320x384xbf16>, vector<384x384xbf16>, vector<320x384xf32> -> vector<320x384xf32>
    %c0_13 = arith.constant 0 : index
    %c0_14 = arith.constant 0 : index
    %26 = vector.load %arg5[%c0_13, %c0_14] : memref<1x384xf32, #tpu.memory_space<vmem>>, vector<1x384xf32>
    %27 = vector.broadcast %26 : vector<1x384xf32> to vector<320x384xf32>
    %28 = arith.addf %25, %27 : vector<320x384xf32>
    %29 = arith.mulf %28, %28 : vector<320x384xf32>
    %30 = arith.mulf %28, %29 : vector<320x384xf32>
    %cst_15 = arith.constant 4.471500e-02 : f32
    %31 = vector.broadcast %cst_15 : f32 to vector<320x384xf32>
    %32 = arith.mulf %31, %30 : vector<320x384xf32>
    %33 = arith.addf %28, %32 : vector<320x384xf32>
    %cst_16 = arith.constant 0.797884583 : f32
    %34 = vector.broadcast %cst_16 : f32 to vector<320x384xf32>
    %35 = arith.mulf %34, %33 : vector<320x384xf32>
    %36 = math.tanh %35 : vector<320x384xf32>
    %cst_17 = arith.constant 1.000000e+00 : f32
    %37 = vector.broadcast %cst_17 : f32 to vector<320x384xf32>
    %38 = arith.addf %37, %36 : vector<320x384xf32>
    %cst_18 = arith.constant 5.000000e-01 : f32
    %39 = vector.broadcast %cst_18 : f32 to vector<320x384xf32>
    %40 = arith.mulf %39, %38 : vector<320x384xf32>
    %41 = arith.mulf %28, %40 : vector<320x384xf32>
    %42 = arith.truncf %41 : vector<320x384xf32> to vector<320x384xbf16>
    %c0_19 = arith.constant 0 : index
    %c0_20 = arith.constant 0 : index
    %43 = vector.load %arg6[%c0_19, %c0_20] : memref<384x128xbf16, #tpu.memory_space<vmem>>, vector<384x128xbf16>
    %cst_21 = arith.constant dense<0.000000e+00> : vector<320x128xf32>
    %44 = tpu.matmul %42, %43, %cst_21 {dimension_numbers = #tpu.dot_dimension_numbers<[1], [0], [0], [1], [0, 0, 1, 1], [], []>} : vector<320x384xbf16>, vector<384x128xbf16>, vector<320x128xf32> -> vector<320x128xf32>
    %c0_22 = arith.constant 0 : index
    %c0_23 = arith.constant 0 : index
    %45 = vector.load %arg7[%c0_22, %c0_23] : memref<1x128xf32, #tpu.memory_space<vmem>>, vector<1x128xf32>
    %46 = vector.broadcast %45 : vector<1x128xf32> to vector<320x128xf32>
    %47 = arith.addf %44, %46 : vector<320x128xf32>
    %c0_24 = arith.constant 0 : index
    %c0_25 = arith.constant 0 : index
    %48 = vector.load %arg8[%c0_24, %c0_25] : memref<320x128xf32, #tpu.memory_space<vmem>>, vector<320x128xf32>
    tpu.vector_store %arg8[%c0_24, %c0_25], %47 {strides = array<i32>} : memref<320x128xf32, #tpu.memory_space<vmem>>, vector<320x128xf32>,
    return
  }
  func.func @transform_0(%arg0: i32) -> (i32, i32) {
    %c0_i32 = arith.constant 0 : i32
    %c0_i32_0 = arith.constant 0 : i32
    return %arg0, %c0_i32 : i32, i32
  }
  func.func @transform_1(%arg0: i32) -> (i32, i32, i32) {
    %c0_i32 = arith.constant 0 : i32
    %c0_i32_0 = arith.constant 0 : i32
    %c0_i32_1 = arith.constant 0 : i32
    return %arg0, %c0_i32, %c0_i32_0 : i32, i32, i32
  }
  func.func @transform_2(%arg0: i32) -> (i32, i32) {
    %c0_i32 = arith.constant 0 : i32
    %c0_i32_0 = arith.constant 0 : i32
    %c0_i32_1 = arith.constant 0 : i32
    return %c0_i32, %c0_i32_0 : i32, i32
  }
  func.func @transform_3(%arg0: i32) -> (i32, i32) {
    %c0_i32 = arith.constant 0 : i32
    %c0_i32_0 = arith.constant 0 : i32
    %c0_i32_1 = arith.constant 0 : i32
    return %c0_i32, %c0_i32_0 : i32, i32
  }
  func.func @transform_4(%arg0: i32) -> (i32, i32) {
    %c0_i32 = arith.constant 0 : i32
    %c0_i32_0 = arith.constant 0 : i32
    %c0_i32_1 = arith.constant 0 : i32
    return %c0_i32, %c0_i32_0 : i32, i32
  }
  func.func @transform_5(%arg0: i32) -> (i32, i32) {
    %c0_i32 = arith.constant 0 : i32
    %c0_i32_0 = arith.constant 0 : i32
    %c0_i32_1 = arith.constant 0 : i32
    return %c0_i32, %c0_i32_0 : i32, i32
  }
  func.func @transform_6(%arg0: i32) -> (i32, i32) {
    %c0_i32 = arith.constant 0 : i32
    %c0_i32_0 = arith.constant 0 : i32
    %c0_i32_1 = arith.constant 0 : i32
    return %c0_i32, %c0_i32_0 : i32, i32
  }
  func.func @transform_7(%arg0: i32) -> (i32, i32) {
    %c0_i32 = arith.constant 0 : i32
    %c0_i32_0 = arith.constant 0 : i32
    return %arg0, %c0_i32 : i32, i32
  }
}

</mosaic_0001>

<bundles_post_ra>
// kernel: atmosphere_forward.1
= control target key start
LH: loop header
LB: loop body
LE: loop exit
PB: predicated region body
PF: predicated region fallthrough
CT: control target
= control target key end

     0   :  { %s6834_s24 = smov 0   ;;  %s10980_s0 = inlined_call_operand.vmem [shape: bf16[640,64], index: 0, kind: input, shape index: {}]   ;;  %s10981_s1 = inlined_call_operand.vmem [shape: f32[2,4,384], index: 1, kind: input, shape index: {}]   ;;  %s10982_s2 = inlined_call_operand.vmem [shape: bf16[64,384], index: 2, kind: input, shape index: {}]   ;;  %s10983_s3 = inlined_call_operand.vmem [shape: bf16[384,384], index: 3, kind: input, shape index: {}]   ;;  %s10984_s4 = inlined_call_operand.vmem [shape: f32[1,384], index: 4, kind: input, shape index: {}]   ;;  %s10985_s5 = inlined_call_operand.vmem [shape: bf16[384,128], index: 5, kind: input, shape index: {}]   ;;  %s10986_s6 = inlined_call_operand.vmem [shape: f32[1,128], index: 6, kind: input, shape index: {}]   ;;  %s10987_s7 = inlined_call_operand.vmem [shape: f32[640,128], index: 7, kind: output, shape index: {}]  }
   0x1 LB: > { %s6840_s25 = sadd.s32 4294967295, %s6790_s24   ;;  %p5552_p0 = scmp.ge.s32.totalorder %s6790_s24, 1  ;;  %s6790_s24 = sphi %s6834_s24, %s17_s24  }
   0x2   : > { %p248_p1 = scmp.lt.s32.totalorder %s6790_s24, 3 }
   0x4   : > { %p249_p2 = pnand %p5552_p0, %p248_p1 }
   0x6   : > { %252 = sbr.rel (%p249_p2) target bundleno = 1288 (0x508), region = 48 }
   0xd   : > { %v6148_v0 = vld [vmem:[%s10982_s2 + $0x4] ss:$12 sps:$4 sm:$0xff]   ;;  %s285_s28 = smul.u32 40, %s6840_s25  ;;  %v6150_v1 = vld [vmem:[%s10982_s2] ss:$12 sps:$4 sm:$0xff]   ;;  %v10988_v2 = vmov 0  }
   0xe   : > { %618 = vmatprep.mubr.bf16.mxu0 %v10988_v2  ;;  %768 = vmatprep.mubr.bf16.mxu1 %v10988_v2  ;;  %v6151_v3 = vld [vmem:[%s10982_s2 + $0x1c] ss:$12 sps:$4 sm:$0xff]   ;;  %v6153_v4 = vld [vmem:[%s10982_s2 + $0x18] ss:$12 sps:$4 sm:$0xff]   ;;  %v6154_v5 = vld [vmem:[%s10982_s2 + $0x34] ss:$12 sps:$4 sm:$0xff]  }
   0xf   : > { %586 = vmatprep.subr.bf16.mxu0 %v6148_v0  ;;  %p286_p3 = scmp.lt.s32.totalorder %s285_s28, 79  ;;  %5969 = vmatprep.subr.bf16.mxu1 %v6148_v0  ;;  %v6156_v6 = vld [vmem:[%s10982_s2 + $0x30] ss:$12 sps:$4 sm:$0xff]   ;;  %v6157_v7 = vld [vmem:[%s10982_s2 + $0x4c] ss:$12 sps:$4 sm:$0xff]   ;;  %vm525_vm0 = vcmask 523264  }
  0x10   : > { %587 = vmatpush1.bf16.msra.mxu0 %v6150_v1  ;;  %5973 = vmatpush1.bf16.msra.mxu1 %v6150_v1  ;;  %v6159_v8 = vld [vmem:[%s10982_s2 + $0x48] ss:$12 sps:$4 sm:$0xff]   ;;  %v6180_v11 = vld [vmem:[%s10982_s2 + $0x20] ss:$12 sps:$4 sm:$0xff]   ;;  %v6182_v15 = vld [vmem:[%s10982_s2 + $0x38] ss:$12 sps:$4 sm:$0xff]  }
  0x11   : > { %588 = vmatprep.subr.bf16.mxu0 %v6151_v3  ;;  %s11567_s28 = smov (!%p286_p3, %s285_s28), 79  ;;  %5970 = vmatprep.subr.bf16.mxu1 %v6151_v3  ;;  %v6179_v9 = vld [vmem:[%s10982_s2 + $0x8] ss:$12 sps:$4 sm:$0xff]   ;;  %v6183_v16 = vld [vmem:[%s10982_s2 + $0x50] ss:$12 sps:$4 sm:$0xff]   ;;  %p291_p4 = scmp.lt.s32.totalorder %s6840_s25, 1 }
  0x12   : > { %s5553_s14 = sshll.u32 %s11567_s28, 2  ;;  %v6186_v18 = vld [vmem:[%s10983_s3 + $0x4] ss:$12 sps:$4 sm:$0xff]   ;;  %v6196_v20 = vld [vmem:[%s10983_s3 + $0x8] ss:$12 sps:$4 sm:$0xff]   ;;  %s5555_s10 = sshll.u32 %s11567_s28, 3 }
  0x13   : > { %s6871_s19 = scalar_lea.vmem %s10980_s0, %s5553_s14  ;;  %v6200_v21 = vld [vmem:[%s10983_s3 + $0x20] ss:$12 sps:$4 sm:$0xff]   ;;  %v6204_v23 = vld [vmem:[%s10983_s3 + $0x38] ss:$12 sps:$4 sm:$0xff]   ;;  %v6208_v25 = vld [vmem:[%s10983_s3 + $0x50] ss:$12 sps:$4 sm:$0xff]   ;;  %s10820_s28 = scalar_lea.vmem %s10987_s7, %s5555_s10 }
  0x14   : > { %589 = vmatpush1.bf16.msra.mxu0 %v6153_v4  ;;  %5974 = vmatpush1.bf16.msra.mxu1 %v6153_v4  ;;  %v6883_v10 = vld [vmem:[%s6871_s19] sm:$0xff]   ;;  %v6893_v12 = vld [vmem:[%s6871_s19 + $0x78] sm:$0xff]   ;;  %v6896_v13 = vld [vmem:[%s6871_s19 + $0x8] sm:$0xff]   ;;  %s11569_s25 = smov (!%p291_p4, %s6840_s25), 1 }
  0x15   : > { %590 = vmatprep.subr.bf16.mxu0 %v6154_v5  ;;  %5971 = vmatprep.subr.bf16.mxu1 %v6154_v5  ;;  %v6904_v14 = vld [vmem:[%s6871_s19 + $0x80] sm:$0xff]   ;;  %v6162_v17 = vld [vmem:[%s6871_s19 + $0x10] sm:$0xff]   ;;  %v6922_v19 = vld [vmem:[%s6871_s19 + $0x88] sm:$0xff]   ;;  %s6137_s13 = smul.u32 12, %s11569_s25 }
  0x16   : > { %v6163_v22 = vld [vmem:[%s6871_s19 + $0x18] sm:$0xff]   ;;  %v6941_v24 = vld [vmem:[%s6871_s19 + $0x90] sm:$0xff]   ;;  %v6164_v26 = vld [vmem:[%s6871_s19 + $0x20] sm:$0xff]  }
  0x17   : > { %v6954_v27 = vld [vmem:[%s6871_s19 + $0x98] sm:$0xff]   ;;  %v6209_v28 = vld [vmem:[%s10983_s3 + $0x68] ss:$12 sps:$4 sm:$0xff]   ;;  %v6213_v29 = vld [vmem:[%s10983_s3 + $0x80] ss:$12 sps:$4 sm:$0xff]   ;;  %s295_s16 = scalar_lea.vmem %s10981_s1, %s6137_s13 }
  0x18   : > { %591 = vmatpush1.bf16.msra.mxu0 %v6156_v6  ;;  %5975 = vmatpush1.bf16.msra.mxu1 %v6156_v6  ;;  %v6165_v30 = vld [vmem:[%s6871_s19 + $0x28] sm:$0xff]   ;;  %v6217_v31 = vld [vmem:[%s10983_s3 + $0x98] ss:$12 sps:$4 sm:$0xff]   ;;  %v6166_v34 = vld [vmem:[%s6871_s19 + $0x30] sm:$0xff]  }
  0x19   : > { %592 = vmatprep.subr.bf16.mxu0 %v6157_v7  ;;  %5972 = vmatprep.subr.bf16.mxu1 %v6157_v7  ;;  %v6184_v32 = vld [vmem:[%s10983_s3] ss:$12 sps:$4 sm:$0xff]   ;;  %v6189_v33 = vld [vmem:[%s10983_s3 + $0x1c] ss:$12 sps:$4 sm:$0xff]   ;;  %v6187_v35 = vld [vmem:[%s10983_s3 + $0x18] ss:$12 sps:$4 sm:$0xff]  }
  0x1a   : > { %v6192_v36 = vld [vmem:[%s10983_s3 + $0x34] ss:$12 sps:$4 sm:$0xff]   ;;  %v6190_v37 = vld [vmem:[%s10983_s3 + $0x30] ss:$12 sps:$4 sm:$0xff]   ;;  %v6195_v38 = vld [vmem:[%s10983_s3 + $0x4c] ss:$12 sps:$4 sm:$0xff]  }
  0x1b   : > { %v6167_v39 = vld [vmem:[%s6871_s19 + $0x38] sm:$0xff]   ;;  %v6193_v40 = vld [vmem:[%s10983_s3 + $0x48] ss:$12 sps:$4 sm:$0xff]   ;;  %v6199_v41 = vld [vmem:[%s10983_s3 + $0x64] ss:$12 sps:$4 sm:$0xff]  }
  0x1c   : > { %593 = vmatpush1.bf16.msra.mxu0 %v6159_v8  ;;  %5976 = vmatpush1.bf16.msra.mxu1 %v6159_v8  ;;  %v6197_v42 = vld [vmem:[%s10983_s3 + $0x60] ss:$12 sps:$4 sm:$0xff]   ;;  %v6203_v43 = vld [vmem:[%s10983_s3 + $0x7c] ss:$12 sps:$4 sm:$0xff]   ;;  %v6201_v45 = vld [vmem:[%s10983_s3 + $0x78] ss:$12 sps:$4 sm:$0xff]  }
  0x1d   : > { %5809 = vmatprep.subr.bf16.mxu1 %v6179_v9  ;;  %3329 = vmatprep.subr.bf16.mxu0 %v10988_v2  ;;  %v6168_v44 = vld [vmem:[%s6871_s19 + $0x40] sm:$0xff]   ;;  %v6205_v47 = vld [vmem:[%s10983_s3 + $0x90] ss:$12 sps:$4 sm:$0xff]   ;;  %v6212_v48 = vld [vmem:[%s10983_s3 + $0xac] ss:$12 sps:$4 sm:$0xff]  }
  0x1e   : > { %v6207_v46 = vld [vmem:[%s10983_s3 + $0x94] ss:$12 sps:$4 sm:$0xff]   ;;  %v6169_v49 = vld [vmem:[%s6871_s19 + $0x48] sm:$0xff]   ;;  %v6216_v51 = vld [vmem:[%s10983_s3 + $0xc4] ss:$12 sps:$4 sm:$0xff]  }
  0x1f   : > { %5588 = vmatmul.mubr.msk.bf16.vlgmr.msra.gmra.mrb[0].mxu0 %vm525_vm0, %v6883_v10  ;;  %5603 = vmatmul.mubr.msk.bf16.vlgmr.msra.gmra.mrb[0].mxu1 %vm525_vm0, %v6893_v12  ;;  %v6210_v50 = vld [vmem:[%s10983_s3 + $0xa8] ss:$12 sps:$4 sm:$0xff]   ;;  %v6214_v52 = vld [vmem:[%s10983_s3 + $0xc0] ss:$12 sps:$4 sm:$0xff]   ;;  %v6171_v54 = vld [vmem:[%s6871_s19 + $0x58] sm:$0xff]  }
  0x20   : > { %628 = vmatprep.mubr.bf16.mxu0 %v10988_v2  ;;  %778 = vmatprep.mubr.bf16.mxu1 %v10988_v2  ;;  %v6170_v53 = vld [vmem:[%s6871_s19 + $0x50] sm:$0xff]   ;;  %v6173_v56 = vld [vmem:[%s6871_s19 + $0x60] sm:$0xff]   ;;  %v6220_v58 = vld [vmem:[%s10983_s3 + $0xdc] ss:$12 sps:$4 sm:$0xff]  }
  0x21   : > { %5810 = vmatpush3.bf16.msra.mxu1 %v6179_v9  ;;  %3330 = vmatpush1.bf16.msra.mxu0 %v6196_v20  ;;  %v6221_v55 = vld [vmem:[%s10983_s3 + $0xb0] ss:$12 sps:$4 sm:$0xff]   ;;  %v6225_v57 = vld [vmem:[%s10983_s3 + $0xc8] ss:$12 sps:$4 sm:$0xff]   ;;  %v6218_v60 = vld [vmem:[%s10983_s3 + $0xd8] ss:$12 sps:$4 sm:$0xff]  }
  0x22   : > { %5811 = vmatprep.subr.bf16.mxu1 %v6180_v11  ;;  %3331 = vmatprep.subr.bf16.mxu0 %v10988_v2  ;;  %v6175_v59 = vld [vmem:[%s6871_s19 + $0x68] sm:$0xff]   ;;  %v6177_v62 = vld [vmem:[%s6871_s19 + $0x70] sm:$0xff]   ;;  %v6230_v1 = vld [vmem:[%s10983_s3 + $0xf8] ss:$12 sps:$4 sm:$0xff]  }
  0x23   : > { %v6226_v61 = vld [vmem:[%s10983_s3 + $0xe0] ss:$12 sps:$4 sm:$0xff]   ;;  %v6222_v0 = vld [vmem:[%s10983_s3 + $0xf0] ss:$12 sps:$4 sm:$0xff]   ;;  %v6227_v4 = vld [vmem:[%s10983_s3 + $0x108] ss:$12 sps:$4 sm:$0xff]  }
  0x24   : > { %v6224_v63 = vld [vmem:[%s10983_s3 + $0xf4] ss:$12 sps:$4 sm:$0xff]   ;;  %v6229_v3 = vld [vmem:[%s10983_s3 + $0x10c] ss:$12 sps:$4 sm:$0xff]   ;;  %v6234_v5 = vld [vmem:[%s10983_s3 + $0x110] ss:$12 sps:$4 sm:$0xff]  }
  0x25   : > { %5812 = vmatpush3.bf16.msra.mxu1 %v6180_v11  ;;  %3332 = vmatpush1.bf16.msra.mxu0 %v6200_v21  ;;  %v6233_v6 = vld [vmem:[%s10983_s3 + $0x124] ss:$12 sps:$4 sm:$0xff]   ;;  %v6231_v7 = vld [vmem:[%s10983_s3 + $0x120] ss:$12 sps:$4 sm:$0xff]   ;;  %v6238_v8 = vld [vmem:[%s10983_s3 + $0x128] ss:$12 sps:$4 sm:$0xff]   ;;  %v1033_v21 = vlaneseq }
  0x26   : > { %5813 = vmatprep.subr.bf16.mxu1 %v6182_v15  ;;  %3333 = vmatprep.subr.bf16.mxu0 %v10988_v2  ;;  %v6237_v9 = vld [vmem:[%s10983_s3 + $0x13c] ss:$12 sps:$4 sm:$0xff]   ;;  %v6242_v11 = vld [vmem:[%s10983_s3 + $0x140] ss:$12 sps:$4 sm:$0xff]  }
  0x27   : > { %5589 = vmatmul.mubr.msk.bf16.gmra.mrb[4].mxu0 %vm525_vm0, %v6896_v13  ;;  %5604 = vmatmul.mubr.msk.bf16.gmra.mrb[4].mxu1 %vm525_vm0, %v6904_v14 }
  0x28   : > { %638 = vmatprep.mubr.bf16.mxu0 %v10988_v2  ;;  %788 = vmatprep.mubr.bf16.mxu1 %v10988_v2 }
  0x29   : > { %5814 = vmatpush3.bf16.msra.mxu1 %v6182_v15  ;;  %3334 = vmatpush1.bf16.msra.mxu0 %v6204_v23  ;;  %v6246_v15 = vld [vmem:[%s10983_s3 + $0x16c] ss:$12 sps:$4 sm:$0xff]  }
  0x2a   : > { %5815 = vmatprep.subr.bf16.mxu1 %v6183_v16  ;;  %3335 = vmatprep.subr.bf16.mxu0 %v10988_v2 }
  0x2d   : > { %5816 = vmatpush3.bf16.msra.mxu1 %v6183_v16  ;;  %3336 = vmatpush1.bf16.msra.mxu0 %v6208_v25  ;;  %v6244_v16 = vld [vmem:[%s10983_s3 + $0x168] ss:$12 sps:$4 sm:$0xff]  }
  0x2e   : > { %2863 = vmatprep.subr.bf16.mxu1 %v6186_v18  ;;  %3337 = vmatprep.subr.bf16.mxu0 %v10988_v2  ;;  %v6250_v18 = vld [vmem:[%s10983_s3 + $0x184] ss:$12 sps:$4 sm:$0xff]   ;;  %v5629_v25 = vld.sshfl [vmem:[%s295_s16 + $0x8] sm:$0x33 pattern:$0x75316420] }
  0x2f   : > { %5590 = vmatmul.mubr.msk.bf16.gmra.mrb[8].mxu0 %vm525_vm0, %v6162_v17  ;;  %5605 = vmatmul.mubr.msk.bf16.gmra.mrb[8].mxu1 %vm525_vm0, %v6922_v19 }
  0x30   : > { %648 = vmatprep.mubr.bf16.mxu0 %v10988_v2  ;;  %798 = vmatprep.mubr.bf16.mxu1 %v10988_v2 }
  0x31   : > { %3338 = vmatpush1.bf16.msra.mxu0 %v6209_v28 }
  0x32   : > { %3339 = vmatprep.subr.bf16.mxu0 %v10988_v2 }
  0x35   : > { %3340 = vmatpush1.bf16.msra.mxu0 %v6213_v29 }
  0x36   : > { %3341 = vmatprep.subr.bf16.mxu0 %v10988_v2 }
  0x37   : > { %5591 = vmatmul.mubr.msk.bf16.gmra.mrb[12].mxu0 %vm525_vm0, %v6163_v22  ;;  %5606 = vmatmul.mubr.msk.bf16.gmra.mrb[12].mxu1 %vm525_vm0, %v6941_v24 }
  0x38   : > { %658 = vmatprep.mubr.bf16.mxu0 %v10988_v2  ;;  %808 = vmatprep.mubr.bf16.mxu1 %v10988_v2 }
  0x39   : > { %3342 = vmatpush1.bf16.msra.mxu0 %v6217_v31 }
  0x3a   : > { %3343 = vmatprep.subr.bf16.mxu0 %v10988_v2 }
  0x3d   : > { %3344 = vmatpush1.bf16.msra.mxu0 %v6221_v55 }
  0x3e   : > { %3345 = vmatprep.subr.bf16.mxu0 %v10988_v2 }
  0x3f   : > { %5592 = vmatmul.mubr.msk.bf16.gmra.mrb[16].mxu0 %vm525_vm0, %v6164_v26  ;;  %5607 = vmatmul.mubr.msk.bf16.gmra.mrb[16].mxu1 %vm525_vm0, %v6954_v27 }
  0x40   : > { %668 = vmatprep.mubr.bf16.mxu0 %v10988_v2  ;;  %5817 = vmatprep.mubr.msk.bf16.mxu1 %vm525_vm0, %v6883_v10  ;;  %v6235_v10 = vld [vmem:[%s10983_s3 + $0x138] ss:$12 sps:$4 sm:$0xff]  }
  0x41   : > { %3346 = vmatpush1.bf16.msra.mxu0 %v6225_v57 }
  0x42   : > { %3347 = vmatprep.subr.bf16.mxu0 %v10988_v2 }
  0x45   : > { %3348 = vmatpush1.bf16.msra.mxu0 %v6226_v61 }
  0x46   : > { %3349 = vmatprep.subr.bf16.mxu0 %v10988_v2 }
  0x47   : > { %5593 = vmatmul.mubr.msk.bf16.gmra.mrb[20].mxu0 %vm525_vm0, %v6165_v30  ;;  %5818 = vmatmul.mubr.msk.bf16.vlgmr.msra.gmra.mrb[20].mxu1 %vm525_vm0, %v6896_v13  ;;  %v6239_v13 = vld [vmem:[%s10983_s3 + $0x150] ss:$12 sps:$4 sm:$0xff]  }
  0x48   : > { %678 = vmatprep.mubr.bf16.mxu0 %v10988_v2  ;;  %5821 = vmatprep.mubr.msk.bf16.mxu1 %vm525_vm0, %v6162_v17  ;;  %v6247_v17 = vld [vmem:[%s10983_s3 + $0x170] ss:$12 sps:$4 sm:$0xff]  }
  0x49   : > { %2864 = vmatpush1.bf16.msra.mxu1 %v6184_v32  ;;  %3350 = vmatpush1.bf16.msra.mxu0 %v6230_v1 }
  0x4a   : > { %2865 = vmatprep.subr.bf16.mxu1 %v6189_v33  ;;  %3351 = vmatprep.subr.bf16.mxu0 %v10988_v2 }
  0x4d   : > { %2866 = vmatpush1.bf16.msra.mxu1 %v6187_v35  ;;  %3352 = vmatpush1.bf16.msra.mxu0 %v6234_v5 }
  0x4e   : > { %2867 = vmatprep.subr.bf16.mxu1 %v6192_v36  ;;  %3353 = vmatprep.subr.bf16.mxu0 %v10988_v2 }
  0x4f   : > { %5594 = vmatmul.mubr.msk.bf16.gmra.mrb[24].mxu0 %vm525_vm0, %v6166_v34  ;;  %5822 = vmatmul.mubr.msk.bf16.gmra.mrb[24].mxu1 %vm525_vm0, %v6163_v22  ;;  %v5628_v22 = vld.sshfl [vmem:[%s295_s16] sm:$0xff pattern:$0x75316420] }
  0x50   : > { %688 = vmatprep.mubr.bf16.mxu0 %v10988_v2  ;;  %5825 = vmatprep.mubr.msk.bf16.mxu1 %vm525_vm0, %v6164_v26  ;;  %v1028_v26 = vcombine.low %v5628_v22, %v5629_v25  ;;  %v1029_v28 = vcombine.high %v5628_v22, %v5629_v25 }
  0x51   : > { %2868 = vmatpush1.bf16.msra.mxu1 %v6190_v37  ;;  %3354 = vmatpush1.bf16.msra.mxu0 %v6238_v8 }
  0x52   : > { %2869 = vmatprep.subr.bf16.mxu1 %v6195_v38  ;;  %3355 = vmatprep.subr.bf16.mxu0 %v10988_v2 }
  0x55   : > { %2870 = vmatpush1.bf16.msra.mxu1 %v6193_v40  ;;  %3356 = vmatpush1.bf16.msra.mxu0 %v6242_v11 }
  0x56   : > { %2871 = vmatprep.subr.bf16.mxu1 %v6199_v41  ;;  %3357 = vmatprep.subr.bf16.mxu0 %v10988_v2 }
  0x57   : > { %5595 = vmatmul.mubr.msk.bf16.gmra.mrb[28].mxu0 %vm525_vm0, %v6167_v39  ;;  %5826 = vmatmul.mubr.msk.bf16.gmra.mrb[28].mxu1 %vm525_vm0, %v6165_v30 }
  0x58   : > { %698 = vmatprep.mubr.bf16.mxu0 %v10988_v2  ;;  %5829 = vmatprep.mubr.msk.bf16.mxu1 %vm525_vm0, %v6166_v34 }
  0x59   : > { %2872 = vmatpush1.bf16.msra.mxu1 %v6197_v42 }
  0x5a   : > { %2873 = vmatprep.subr.bf16.mxu1 %v6203_v43 }
  0x5d   : > { %2874 = vmatpush1.bf16.msra.mxu1 %v6201_v45 }
  0x5e   : > { %2875 = vmatprep.subr.bf16.mxu1 %v6207_v46 }
  0x5f   : > { %5596 = vmatmul.mubr.msk.bf16.gmra.mrb[32].mxu0 %vm525_vm0, %v6168_v44  ;;  %5830 = vmatmul.mubr.msk.bf16.gmra.mrb[32].mxu1 %vm525_vm0, %v6167_v39 }
  0x60   : > { %708 = vmatprep.mubr.bf16.mxu0 %v10988_v2  ;;  %5833 = vmatprep.mubr.msk.bf16.mxu1 %vm525_vm0, %v6168_v44 }
  0x61   : > { %2876 = vmatpush1.bf16.msra.mxu1 %v6205_v47 }
  0x62   : > { %2877 = vmatprep.subr.bf16.mxu1 %v6212_v48 }
  0x65   : > { %2878 = vmatpush1.bf16.msra.mxu1 %v6210_v50 }
  0x66   : > { %2879 = vmatprep.subr.bf16.mxu1 %v6216_v51 }
  0x67   : > { %5597 = vmatmul.mubr.msk.bf16.gmra.mrb[36].mxu0 %vm525_vm0, %v6169_v49  ;;  %5834 = vmatmul.mubr.msk.bf16.gmra.mrb[36].mxu1 %vm525_vm0, %v6169_v49 }
  0x68   : > { %718 = vmatprep.mubr.bf16.mxu0 %v10988_v2  ;;  %5837 = vmatprep.mubr.msk.bf16.mxu1 %vm525_vm0, %v6170_v53 }
  0x69   : > { %2880 = vmatpush1.bf16.msra.mxu1 %v6214_v52 }
  0x6a   : > { %2881 = vmatprep.subr.bf16.mxu1 %v6220_v58 }
  0x6d   : > { %2882 = vmatpush1.bf16.msra.mxu1 %v6218_v60 }
  0x6e   : > { %2883 = vmatprep.subr.bf16.mxu1 %v6224_v63 }
  0x6f   : > { %5598 = vmatmul.mubr.msk.bf16.gmra.mrb[40].mxu0 %vm525_vm0, %v6170_v53  ;;  %5838 = vmatmul.mubr.msk.bf16.gmra.mrb[40].mxu1 %vm525_vm0, %v6171_v54 }
  0x70   : > { %728 = vmatprep.mubr.bf16.mxu0 %v10988_v2  ;;  %5841 = vmatprep.mubr.msk.bf16.mxu1 %vm525_vm0, %v6173_v56 }
  0x71   : > { %2884 = vmatpush1.bf16.msra.mxu1 %v6222_v0 }
  0x72   : > { %2885 = vmatprep.subr.bf16.mxu1 %v6229_v3 }
  0x75   : > { %2886 = vmatpush1.bf16.msra.mxu1 %v6227_v4 }
  0x76   : > { %2887 = vmatprep.subr.bf16.mxu1 %v6233_v6 }
  0x77   : > { %5599 = vmatmul.mubr.msk.bf16.gmra.mrb[44].mxu0 %vm525_vm0, %v6171_v54  ;;  %5842 = vmatmul.mubr.msk.bf16.gmra.mrb[44].mxu1 %vm525_vm0, %v6175_v59 }
  0x78   : > { %738 = vmatprep.mubr.bf16.mxu0 %v10988_v2  ;;  %5845 = vmatprep.mubr.msk.bf16.mxu1 %vm525_vm0, %v6177_v62 }
  0x79   : > { %2888 = vmatpush1.bf16.msra.mxu1 %v6231_v7 }
  0x7a   : > { %2889 = vmatprep.subr.bf16.mxu1 %v6237_v9 }
  0x7d   : > { %2890 = vmatpush1.bf16.msra.mxu1 %v6235_v10 }
  0x7f   : > { %5600 = vmatmul.mubr.msk.bf16.gmra.mrb[48].mxu0 %vm525_vm0, %v6173_v56  ;;  %5846 = vmatmul.mubr.msk.bf16.gmra.mrb[48].mxu1 %vm525_vm0, %v6893_v12  ;;  %v6241_v12 = vld [vmem:[%s10983_s3 + $0x154] ss:$12 sps:$4 sm:$0xff]  }
  0x80   : > { %748 = vmatprep.mubr.bf16.mxu0 %v10988_v2  ;;  %5849 = vmatprep.mubr.msk.bf16.mxu1 %vm525_vm0, %v6904_v14  ;;  %v6243_v14 = vld [vmem:[%s10983_s3 + $0x158] ss:$12 sps:$4 sm:$0xff]  }
  0x81   : > { %2891 = vmatprep.subr.bf16.mxu1 %v6241_v12  ;;  %3358 = vmatpush1.bf16.msra.mxu0 %v6243_v14 }
  0x82   : > { %2892 = vmatpush1.bf16.msra.mxu1 %v6239_v13  ;;  %3359 = vmatprep.subr.bf16.mxu0 %v10988_v2 }
  0x83   : > { %2893 = vmatprep.subr.bf16.mxu1 %v6246_v15 }
  0x85   : > { %3360 = vmatpush1.bf16.msra.mxu0 %v6247_v17 }
  0x86   : > { %2894 = vmatpush1.bf16.msra.mxu1 %v6244_v16 }
  0x87   : > { %5601 = vmatmul.mubr.msk.bf16.gmra.mrb[52].mxu0 %vm525_vm0, %v6175_v59  ;;  %5850 = vmatmul.mubr.msk.bf16.gmra.mrb[52].mxu1 %vm525_vm0, %v6922_v19  ;;  %v6793_v19 = vmov 1966171168  }
  0x88   : > { %758 = vmatprep.mubr.bf16.mxu0 %v10988_v2  ;;  %5853 = vmatprep.mubr.msk.bf16.mxu1 %vm525_vm0, %v6941_v24  ;;  %v1031_v20 = vunpack.c.l.s4 %v6793_v19  ;;  %v7165_v24 = vshrl.u32 %v1033_v21, 7 }
  0x89   : > { %3096 = vmatprep.subr.bf16.mxu1 %v6250_v18 }
  0x8a   : > { %v1032_v23 = vunpack.c.0.s8 %v1031_v20  ;;  %11078 = vst [vmem:[#allocation2_spill] sm:$0xff] %v7165_v24  ;;  %v7171_v30 = vsub.s32 0, %v7165_v24  ;;  %v7174_v31 = vsub.s32 1, %v7165_v24 }
  0x8c   : > { %11080 = vst [vmem:[#allocation4_spill] sm:$0xff] %v7171_v30  ;;  %11081 = vst [vmem:[#allocation5_spill] sm:$0xff] %v7174_v31 }
  0x8f   : > { %5602 = vmatmul.mubr.msk.bf16.gmra.mrb[56].mxu0 %vm525_vm0, %v6177_v62  ;;  %5854 = vmatmul.mubr.msk.bf16.gmra.mrb[56].mxu1 %vm525_vm0, %v6954_v27  ;;  %v1035_v27 = vsub.s32 %v1032_v23, %v7165_v24 }
  0x91   : > { %v7168_v29 = vrot.slane %v1028_v26, %v1035_v27  ;;  %v7176_v32 = vrot.slane %v1029_v28, %v1035_v27 }
  0x93   : > { %11079 = vst [vmem:[#allocation3_spill] sm:$0xff] %v7168_v29  ;;  %11082 = vst [vmem:[#allocation6_spill] sm:$0xff] %v7176_v32  ;;  %v7180_v33 = vrot.slane %v7168_v29, %v7171_v30  ;;  %v7184_v34 = vcombine.high %v7176_v32, %v7176_v32  ;;  %v7188_v35 = vrot.slane %v7168_v29, %v7174_v31 }
  0x94   : > { %v7195_v39 = vcombine.high %v7168_v29, %v7168_v29  ;;  %v7220_v49 = vrot.slane %v7176_v32, %v7171_v30  ;;  %v7224_v50 = vrot.slane %v7176_v32, %v7174_v31 }
  0x95   : > { %11083 = vst [vmem:[#allocation7_spill] sm:$0xff] %v7184_v34  ;;  %v7199_v40 = vrot.slane %v7184_v34, %v7171_v30  ;;  %v7206_v43 = vrot.slane %v7184_v34, %v7174_v31 }
  0x96   : > { %11084 = vst [vmem:[#allocation8_spill] sm:$0xff] %v7195_v39  ;;  %v7231_v54 = vrot.slane %v7195_v39, %v7171_v30  ;;  %v7241_v59 = vrot.slane %v7195_v39, %v7174_v31 }
  0x97   : > { %11085 = vst [vmem:[#allocation9_spill] sm:$0xff] %v7199_v40  ;;  %11086 = vst [vmem:[#allocation10_spill] sm:$0xff] %v7206_v43 }
  0xf2   : > { %v620_v36 = vpop.f32.mrb[0].mxu0  ;;  %v770_v51 = vpop.f32.mrb[0].mxu1 }
  0xf3   : > { %v7191_v37 = vadd.f32 %v7180_v33, %v620_v36  ;;  %v622_v38 = vpop.f32.mrb[1].mxu0  ;;  %v7234_v55 = vadd.f32 %v7199_v40, %v770_v51  ;;  %v772_v56 = vpop.f32.mrb[1].mxu1 }
  0xf4   : > { %v7202_v41 = vadd.f32 %v7188_v35, %v622_v38  ;;  %v624_v42 = vpop.f32.mrb[2].mxu0  ;;  %v7244_v60 = vadd.f32 %v7206_v43, %v772_v56  ;;  %v774_v61 = vpop.f32.mrb[2].mxu1 }
  0xf5   : > { %v1226_v44 = vmul.f32 %v7191_v37, %v7191_v37  ;;  %v7211_v45 = vadd.f32 %v7180_v33, %v624_v42  ;;  %v626_v46 = vpop.f32.mrb[3].mxu0  ;;  %11087 = vst [vmem:[#allocation11_spill] sm:$0xff] %v7234_v55  ;;  %v1316_v0 = vmul.f32 %v7234_v55, %v7234_v55  ;;  %v7250_v1 = vadd.f32 %v7199_v40, %v774_v61  ;;  %v776_v3 = vpop.f32.mrb[3].mxu1 }
  0xf6   : > { %v1227_v47 = vmul.f32 %v7202_v41, %v7202_v41  ;;  %v7216_v48 = vadd.f32 %v7188_v35, %v626_v46  ;;  %11088 = vst [vmem:[#allocation12_spill] sm:$0xff] %v7244_v60  ;;  %v1317_v7 = vmul.f32 %v7244_v60, %v7244_v60  ;;  %v7256_v8 = vadd.f32 %v7206_v43, %v776_v3 }
  0xf7   : > { %v1346_v52 = vmul.f32 %v1226_v44, %v7191_v37  ;;  %v1229_v53 = vmul.f32 %v7211_v45, %v7211_v45  ;;  %11089 = vst [vmem:[#allocation13_spill] sm:$0xff] %v7250_v1  ;;  %v1436_v13 = vmul.f32 %v1316_v0, %v7234_v55 }
  0xf8   : > { %v1347_v57 = vmul.f32 %v1227_v47, %v7202_v41  ;;  %v1230_v58 = vmul.f32 %v7216_v48, %v7216_v48  ;;  %v1437_v18 = vmul.f32 %v1317_v7, %v7244_v60 }
  0xf9   : > { %v1466_v62 = vmul.f32 0.044715, %v1346_v52  ;;  %v1349_v63 = vmul.f32 %v1229_v53, %v7211_v45 }
  0xfa   : > { %v1467_v4 = vmul.f32 0.044715, %v1347_v57  ;;  %v1350_v5 = vmul.f32 %v1230_v58, %v7216_v48  ;;  %v630_v6 = vpop.f32.mrb[4].mxu0  ;;  %v7280_v36 = vpop.f32.mrb[4].mxu1  ;;  %v1556_v57 = vmul.f32 0.044715, %v1436_v13 }
  0xfb   : > { %v1586_v9 = vadd.f32 %v1466_v62, %v7191_v37  ;;  %v1469_v10 = vmul.f32 0.044715, %v1349_v63  ;;  %v7260_v11 = vadd.f32 %v7180_v33, %v630_v6  ;;  %v632_v12 = vpop.f32.mrb[5].mxu0  ;;  %v7285_v46 = vpop.f32.mrb[5].mxu1  ;;  %v1557_v0 = vmul.f32 0.044715, %v1437_v18 }
  0xfc   : > { %v1587_v14 = vadd.f32 %v1467_v4, %v7202_v41  ;;  %v1470_v15 = vmul.f32 0.044715, %v1350_v5  ;;  %v7265_v16 = vadd.f32 %v7188_v35, %v632_v12  ;;  %v634_v17 = vpop.f32.mrb[6].mxu0  ;;  %11090 = vst [vmem:[#allocation14_spill] sm:$0xff] %v7285_v46  ;;  %v7291_v58 = vpop.f32.mrb[6].mxu1  ;;  %v1676_v7 = vadd.f32 %v1556_v57, %v7234_v55 }
  0xfd   : > { %v1706_v19 = vmul.f32 0.7978846, %v1586_v9  ;;  %v1589_v20 = vadd.f32 %v1469_v10, %v7211_v45  ;;  %v1232_v21 = vmul.f32 %v7260_v11, %v7260_v11  ;;  %v7272_v22 = vadd.f32 %v7180_v33, %v634_v17  ;;  %v636_v23 = vpop.f32.mrb[7].mxu0  ;;  %11091 = vst [vmem:[#allocation15_spill] sm:$0xff] %v7291_v58  ;;  %v7299_v9 = vpop.f32.mrb[7].mxu1 }
  0xfe   : > { %v1590_v25 = vadd.f32 %v1470_v15, %v7216_v48  ;;  %v1233_v26 = vmul.f32 %v7265_v16, %v7265_v16  ;;  %v7278_v27 = vadd.f32 %v7188_v35, %v636_v23  ;;  %v1707_v28 = vmul.f32 0.7978846, %v1587_v14  ;;  %11092 = vst [vmem:[#allocation16_spill] sm:$0xff] %v7299_v9 }
  0xff   : > { %6304 = vtanh.f32 %v1706_v19  ;;  %v1709_v38 = vmul.f32 0.7978846, %v1589_v20  ;;  %v1352_v42 = vmul.f32 %v1232_v21, %v7260_v11  ;;  %v1235_v44 = vmul.f32 %v7272_v22, %v7272_v22 }
 0x100   : > { %v1353_v47 = vmul.f32 %v1233_v26, %v7265_v16  ;;  %v1236_v51 = vmul.f32 %v7278_v27, %v7278_v27  ;;  %v1710_v52 = vmul.f32 0.7978846, %v1590_v25  ;;  %6306 = vtanh.f32 %v1707_v28 }
 0x101   : > { %6308 = vtanh.f32 %v1709_v38  ;;  %v1472_v53 = vmul.f32 0.044715, %v1352_v42  ;;  %v1355_v56 = vmul.f32 %v1235_v44, %v7272_v22  ;;  %v7306_v15 = vadd.f32 %v1557_v0, %v7244_v60 }
 0x102   : > { %v1473_v61 = vmul.f32 0.044715, %v1353_v47  ;;  %v1356_v62 = vmul.f32 %v1236_v51, %v7278_v27  ;;  %v640_v63 = vpop.f32.mrb[8].mxu0  ;;  %6310 = vtanh.f32 %v1710_v52 }
 0x103   : > { %v1592_v3 = vadd.f32 %v1472_v53, %v7260_v11  ;;  %v1475_v4 = vmul.f32 0.044715, %v1355_v56  ;;  %v7296_v5 = vadd.f32 %v7180_v33, %v640_v63  ;;  %v642_v6 = vpop.f32.mrb[9].mxu0 }
 0x104   : > { %v1593_v10 = vadd.f32 %v1473_v61, %v7265_v16  ;;  %v1476_v12 = vmul.f32 0.044715, %v1356_v62  ;;  %v7303_v13 = vadd.f32 %v7188_v35, %v642_v6  ;;  %v644_v14 = vpop.f32.mrb[10].mxu0  ;;  %v7327_v61 = vmul.f32 0.7978846, %v1676_v7  ;;  %v7330_v6 = vpop.f32.mrb[8].mxu1 }
 0x105   : > { %v1712_v17 = vmul.f32 0.7978846, %v1592_v3  ;;  %v1595_v18 = vadd.f32 %v1475_v4, %v7272_v22  ;;  %v1238_v19 = vmul.f32 %v7296_v5, %v7296_v5  ;;  %v7312_v20 = vadd.f32 %v7180_v33, %v644_v14  ;;  %v646_v21 = vpop.f32.mrb[11].mxu0  ;;  %11093 = vst [vmem:[#allocation17_spill] sm:$0xff] %v7330_v6 }
 0x106   : > { %v1713_v23 = vmul.f32 0.7978846, %v1593_v10  ;;  %v1596_v25 = vadd.f32 %v1476_v12, %v7278_v27  ;;  %v1239_v26 = vmul.f32 %v7303_v13, %v7303_v13  ;;  %v7318_v28 = vadd.f32 %v7188_v35, %v646_v21 }
 0x107   : > { %6312 = vtanh.f32 %v1712_v17  ;;  %v1715_v38 = vmul.f32 0.7978846, %v1595_v18  ;;  %v1358_v42 = vmul.f32 %v1238_v19, %v7296_v5  ;;  %v1241_v44 = vmul.f32 %v7312_v20, %v7312_v20 }
 0x108   : > { %6314 = vtanh.f32 %v1713_v23  ;;  %v1716_v47 = vmul.f32 0.7978846, %v1596_v25  ;;  %v1359_v51 = vmul.f32 %v1239_v26, %v7303_v13  ;;  %v1242_v52 = vmul.f32 %v7318_v28, %v7318_v28 }
 0x109   : > { %v6305_v53 = vpop.eup %6304  ;;  %6316 = vtanh.f32 %v1715_v38  ;;  %v1478_v56 = vmul.f32 0.044715, %v1358_v42  ;;  %v1361_v57 = vmul.f32 %v1241_v44, %v7312_v20 }
 0x10a   : > { %v6307_v62 = vpop.eup %6306  ;;  %v1946_v63 = vadd.f32 1.0, %v6305_v53  ;;  %6318 = vtanh.f32 %v1716_v47  ;;  %v1479_v0 = vmul.f32 0.044715, %v1359_v51  ;;  %v1362_v3 = vmul.f32 %v1242_v52, %v7318_v28  ;;  %v650_v4 = vpop.f32.mrb[12].mxu0 }
 0x10b   : > { %v6309_v10 = vpop.eup %6308  ;;  %v1598_v12 = vadd.f32 %v1478_v56, %v7296_v5  ;;  %v1481_v14 = vmul.f32 0.044715, %v1361_v57  ;;  %v7334_v17 = vadd.f32 %v7180_v33, %v650_v4  ;;  %v652_v18 = vpop.f32.mrb[13].mxu0  ;;  %v1947_v19 = vadd.f32 1.0, %v6307_v62 }
 0x10c   : > { %v6311_v7 = vpop.eup %6310  ;;  %v2066_v21 = vmul.f32 0.5, %v1946_v63  ;;  %v1949_v23 = vadd.f32 1.0, %v6309_v10  ;;  %v1599_v25 = vadd.f32 %v1479_v0, %v7303_v13  ;;  %v1482_v26 = vmul.f32 0.044715, %v1362_v3  ;;  %v654_v38 = vpop.f32.mrb[14].mxu0 }
 0x10d   : > { %v1718_v42 = vmul.f32 0.7978846, %v1598_v12  ;;  %v1601_v44 = vadd.f32 %v1481_v14, %v7312_v20  ;;  %v1244_v47 = vmul.f32 %v7334_v17, %v7334_v17  ;;  %v7341_v51 = vadd.f32 %v7188_v35, %v652_v18  ;;  %v656_v52 = vpop.f32.mrb[15].mxu0 }
 0x10e   : > { %v7344_v53 = vmul.f32 %v2066_v21, %v7191_v37  ;;  %v2069_v56 = vmul.f32 0.5, %v1949_v23  ;;  %v1719_v57 = vmul.f32 0.7978846, %v1599_v25  ;;  %v1602_v62 = vadd.f32 %v1482_v26, %v7318_v28  ;;  %v7362_v23 = vpop.f32.mrb[9].mxu1 }
 0x10f   : > { %6320 = vtanh.f32 %v1718_v42  ;;  %v1721_v63 = vmul.f32 0.7978846, %v1601_v44  ;;  %v1364_v0 = vmul.f32 %v1244_v47, %v7334_v17  ;;  %v1245_v3 = vmul.f32 %v7341_v51, %v7341_v51  ;;  %11094 = vst [vmem:[#allocation18_spill] sm:$0xff] %v7362_v23 }
 0x110   : > { %v7351_v4 = vmul.f32 %v2069_v56, %v7211_v45  ;;  %6322 = vtanh.f32 %v1719_v57  ;;  %v1722_v10 = vmul.f32 0.7978846, %v1602_v62  ;;  %v7354_v12 = vadd.f32 %v7180_v33, %v654_v38 }
 0x111   : > { %v7356_v37 = vpop.eup %6312  ;;  %6324 = vtanh.f32 %v1721_v63  ;;  %v1484_v14 = vmul.f32 0.044715, %v1364_v0  ;;  %v1365_v18 = vmul.f32 %v1245_v3, %v7341_v51  ;;  %v7360_v21 = vadd.f32 %v7188_v35, %v656_v52  ;;  %v7376_v63 = vpop.f32.mrb[10].mxu1 }
 0x112   : > { %v7364_v25 = vpop.eup %6314  ;;  %6326 = vtanh.f32 %v1722_v10  ;;  %v1247_v45 = vmul.f32 %v7354_v12, %v7354_v12  ;;  %v660_v26 = vpop.f32.mrb[16].mxu0  ;;  %v1950_v38 = vadd.f32 1.0, %v6311_v7  ;;  %v2067_v42 = vmul.f32 0.5, %v1947_v19  ;;  %11095 = vst [vmem:[#allocation19_spill] sm:$0xff] %v7376_v63 }
 0x113   : > { %v7368_v44 = vpop.eup %6316  ;;  %v1604_v47 = vadd.f32 %v1484_v14, %v7334_v17  ;;  %v1485_v56 = vmul.f32 0.044715, %v1365_v18  ;;  %v1248_v52 = vmul.f32 %v7360_v21, %v7360_v21  ;;  %v7374_v57 = vadd.f32 %v7180_v33, %v660_v26  ;;  %v662_v62 = vpop.f32.mrb[17].mxu0 }
 0x114   : > { %v7378_v0 = vpop.eup %6318  ;;  %v1367_v3 = vmul.f32 %v1247_v45, %v7354_v12  ;;  %v7382_v19 = vadd.f32 %v7188_v35, %v662_v62  ;;  %v664_v7 = vpop.f32.mrb[18].mxu0  ;;  %v2070_v10 = vmul.f32 0.5, %v1950_v38  ;;  %v2187_v14 = vmul.f32 %v2067_v42, %v7202_v41 }
 0x115   : > { %v7385_v18 = vpop.f32.mrb[11].mxu1  ;;  %v1724_v2 = vmul.f32 0.7978846, %v1604_v47  ;;  %v1605_v26 = vadd.f32 %v1485_v56, %v7341_v51  ;;  %v1368_v31 = vmul.f32 %v1248_v52, %v7360_v21  ;;  %v1250_v30 = vmul.f32 %v7374_v57, %v7374_v57  ;;  %v666_v34 = vpop.f32.mrb[19].mxu0 }
 0x116   : > { %11096 = vst [vmem:[#allocation20_spill] sm:$0xff] %v7385_v18  ;;  %v1487_v39 = vmul.f32 0.044715, %v1367_v3  ;;  %v1251_v45 = vmul.f32 %v7382_v19, %v7382_v19  ;;  %v7394_v62 = vadd.f32 %v7180_v33, %v664_v7  ;;  %v7397_v41 = vadd.f32 %v7188_v35, %v666_v34 }
 0x117   : > { %6328 = vtanh.f32 %v1724_v2  ;;  %v1725_v38 = vmul.f32 0.7978846, %v1605_v26  ;;  %v1488_v42 = vmul.f32 0.044715, %v1368_v31  ;;  %v1370_v47 = vmul.f32 %v1250_v30, %v7374_v57  ;;  %v6248_v30 = vld [vmem:[%s10983_s3 + $0x180] ss:$12 sps:$4 sm:$0xff]  }
 0x118   : > { %v1607_v56 = vadd.f32 %v1487_v39, %v7354_v12  ;;  %v1371_v52 = vmul.f32 %v1251_v45, %v7382_v19  ;;  %v1253_v3 = vmul.f32 %v7394_v62, %v7394_v62  ;;  %v1254_v55 = vmul.f32 %v7397_v41, %v7397_v41 }
 0x119   : > { %v7406_v33 = vpop.eup %6320  ;;  %6330 = vtanh.f32 %v1725_v38  ;;  %v1608_v34 = vadd.f32 %v1488_v42, %v7360_v21  ;;  %v1490_v2 = vmul.f32 0.044715, %v1370_v47  ;;  %v2190_v31 = vmul.f32 %v2070_v10, %v7216_v48 }
 0x11a   : > { %v7413_v35 = vpop.eup %6322  ;;  %v1727_v39 = vmul.f32 0.7978846, %v1607_v56  ;;  %v1491_v7 = vmul.f32 0.044715, %v1371_v52  ;;  %v1373_v26 = vmul.f32 %v1253_v3, %v7394_v62  ;;  %v1374_v45 = vmul.f32 %v1254_v55, %v7397_v41  ;;  %v670_v60 = vpop.f32.mrb[20].mxu0 }
 0x11b   : > { %v7417_v32 = vpop.eup %6324  ;;  %v1728_v38 = vmul.f32 0.7978846, %v1608_v34  ;;  %v1610_v42 = vadd.f32 %v1490_v2, %v7374_v57  ;;  %v2307_v47 = vpack.c.bf16 %v2190_v31, %v2187_v14  ;;  %v2306_v48 = vpack.c.bf16 %v7351_v4, %v7344_v53  ;;  %v672_v10 = vpop.f32.mrb[21].mxu0  ;;  %v6253_v56 = vld [vmem:[%s10983_s3 + $0x19c] ss:$12 sps:$4 sm:$0xff]  }
 0x11c   : > { %v7425_v52 = vpop.f32.mrb[12].mxu1  ;;  %v7427_v3 = vpop.eup %6326  ;;  %6332 = vtanh.f32 %v1727_v39  ;;  %v1611_v55 = vadd.f32 %v1491_v7, %v7382_v19  ;;  %v1493_v29 = vmul.f32 0.044715, %v1373_v26  ;;  %v1494_v34 = vmul.f32 0.044715, %v1374_v45 }
 0x11d   : > { %11097 = vst [vmem:[#allocation21_spill] sm:$0xff] %v7425_v52  ;;  %v674_v24 = vpop.f32.mrb[22].mxu0  ;;  %6334 = vtanh.f32 %v1728_v38  ;;  %v1730_v14 = vmul.f32 0.7978846, %v1610_v42  ;;  %2895 = vmatprep.mubr.bf16.mxu1 %v2307_v47  ;;  %3361 = vmatprep.mubr.bf16.mxu0 %v2307_v47  ;;  %v7431_v53 = vadd.f32 %v7220_v49, %v670_v60  ;;  %v7434_v4 = vadd.f32 %v7224_v50, %v672_v10 }
 0x11e   : > { %v676_v2 = vpop.f32.mrb[23].mxu0  ;;  %v1731_v31 = vmul.f32 0.7978846, %v1611_v55  ;;  %v1613_v52 = vadd.f32 %v1493_v29, %v7394_v62  ;;  %v1614_v39 = vadd.f32 %v1494_v34, %v7397_v41  ;;  %2896 = vmatmul.mubr.bf16.vlgmr.msra.gmra.mrb[60].mxu1 %v2306_v48  ;;  %3362 = vmatmul.mubr.bf16.vlgmr.msra.gmra.mrb[60].mxu0 %v2306_v48  ;;  %v7439_v7 = vadd.f32 %v7220_v49, %v674_v24  ;;  %v6251_v29 = vld [vmem:[%s10983_s3 + $0x198] ss:$12 sps:$4 sm:$0xff]  }
 0x11f   : > { %6336 = vtanh.f32 %v1730_v14  ;;  %3097 = vmatpush1.bf16.msra.mxu1 %v6248_v30  ;;  %v1256_v60 = vmul.f32 %v7431_v53, %v7431_v53  ;;  %v1257_v26 = vmul.f32 %v7434_v4, %v7434_v4  ;;  %v7446_v45 = vadd.f32 %v7224_v50, %v676_v2  ;;  %v6256_v30 = vld [vmem:[%s10983_s3 + $0x1b4] ss:$12 sps:$4 sm:$0xff]   ;;  %v6254_v34 = vld [vmem:[%s10983_s3 + $0x1b0] ss:$12 sps:$4 sm:$0xff]  }
 0x120   : > { %6338 = vtanh.f32 %v1731_v31  ;;  %v1733_v38 = vmul.f32 0.7978846, %v1613_v52  ;;  %v1734_v42 = vmul.f32 0.7978846, %v1614_v39  ;;  %v1259_v24 = vmul.f32 %v7439_v7, %v7439_v7  ;;  %3098 = vmatprep.subr.bf16.mxu1 %v6253_v56  ;;  %v6259_v39 = vld [vmem:[%s10983_s3 + $0x1cc] ss:$12 sps:$4 sm:$0xff]  }
 0x121   : > { %v7456_v47 = vpop.eup %6328  ;;  %v1376_v48 = vmul.f32 %v1256_v60, %v7431_v53  ;;  %v1377_v10 = vmul.f32 %v1257_v26, %v7434_v4  ;;  %v1260_v55 = vmul.f32 %v7446_v45, %v7446_v45  ;;  %v1953_v52 = vadd.f32 1.0, %v7364_v25  ;;  %v6263_v25 = vld [vmem:[%s10983_s3 + $0x188] ss:$12 sps:$4 sm:$0xff]   ;;  %v7475_v60 = vpop.f32.mrb[13].mxu1 }
 0x122   : > { %6340 = vtanh.f32 %v1733_v38  ;;  %v1379_v56 = vmul.f32 %v1259_v24, %v7439_v7  ;;  %v1956_v14 = vadd.f32 1.0, %v7378_v0  ;;  %v1952_v2 = vadd.f32 1.0, %v7356_v37  ;;  %v680_v31 = vpop.f32.mrb[24].mxu0  ;;  %11098 = vst [vmem:[#allocation22_spill] sm:$0xff] %v7475_v60  ;;  %5857 = vmatprep.subr.bf16.mxu0 %v6263_v25 }
 0x123   : > { %v7477_v26 = vpop.eup %6330  ;;  %6342 = vtanh.f32 %v1734_v42  ;;  %v1496_v38 = vmul.f32 0.044715, %v1376_v48  ;;  %v1497_v24 = vmul.f32 0.044715, %v1377_v10  ;;  %v1380_v0 = vmul.f32 %v1260_v55, %v7446_v45  ;;  %v682_v18 = vpop.f32.mrb[25].mxu0  ;;  %3099 = vmatpush1.bf16.msra.mxu1 %v6251_v29  ;;  %5858 = vmatpush3.bf16.msra.mxu0 %v6263_v25 }
 0x124   : > { %v1499_v37 = vmul.f32 0.044715, %v1379_v56  ;;  %v2073_v63 = vmul.f32 0.5, %v1953_v52  ;;  %v2076_v23 = vmul.f32 0.5, %v1956_v14  ;;  %v1955_v6 = vadd.f32 1.0, %v7368_v44  ;;  %v684_v9 = vpop.f32.mrb[26].mxu0  ;;  %3100 = vmatprep.subr.bf16.mxu1 %v6256_v30 }
 0x125   : > { %v1616_v58 = vadd.f32 %v1496_v38, %v7431_v53  ;;  %v1617_v60 = vadd.f32 %v1497_v24, %v7434_v4  ;;  %v1500_v43 = vmul.f32 0.044715, %v1380_v0  ;;  %v2072_v42 = vmul.f32 0.5, %v1952_v2  ;;  %v686_v48 = vpop.f32.mrb[27].mxu0  ;;  %v7483_v10 = vpop.f32.mrb[14].mxu1 }
 0x126   : > { %11099 = vst [vmem:[#allocation23_spill] sm:$0xff] %v7483_v10  ;;  %v7485_v55 = vpop.eup %6332  ;;  %v1619_v29 = vadd.f32 %v1499_v37, %v7439_v7  ;;  %v2193_v52 = vmul.f32 %v2073_v63, %v7265_v16  ;;  %v2196_v44 = vmul.f32 %v2076_v23, %v7278_v27  ;;  %v2075_v30 = vmul.f32 0.5, %v1955_v6  ;;  %v6257_v56 = vld [vmem:[%s10983_s3 + $0x1c8] ss:$12 sps:$4 sm:$0xff]   ;;  %v7493_v14 = vpop.f32.mrb[15].mxu1 }
 0x127   : > { %11100 = vst [vmem:[#allocation24_spill] sm:$0xff] %v7493_v14  ;;  %v7495_v2 = vpop.eup %6334  ;;  %v1736_v25 = vmul.f32 0.7978846, %v1616_v58  ;;  %v1737_v38 = vmul.f32 0.7978846, %v1617_v60  ;;  %v1620_v24 = vadd.f32 %v1500_v43, %v7446_v45  ;;  %v2192_v0 = vmul.f32 %v2072_v42, %v7260_v11  ;;  %3101 = vmatpush1.bf16.msra.mxu1 %v6254_v34  ;;  %v7499_v37 = vpop.f32.mrb[16].mxu1 }
 0x128   : > { %11101 = vst [vmem:[#allocation25_spill] sm:$0xff] %v7499_v37  ;;  %v1739_v16 = vmul.f32 0.7978846, %v1619_v29  ;;  %v2310_v27 = vpack.c.bf16 %v2196_v44, %v2193_v52  ;;  %v2195_v6 = vmul.f32 %v2075_v30, %v7272_v22  ;;  %v7503_v23 = vadd.f32 %v7220_v49, %v680_v31  ;;  %3102 = vmatprep.subr.bf16.mxu1 %v6259_v39  ;;  %v6262_v11 = vld [vmem:[%s10983_s3 + $0x1e4] ss:$12 sps:$4 sm:$0xff]   ;;  %v7516_v34 = vpop.f32.mrb[17].mxu1 }
 0x129   : > { %v7505_v63 = vpop.eup %6336  ;;  %6344 = vtanh.f32 %v1736_v25  ;;  %v1740_v58 = vmul.f32 0.7978846, %v1620_v24  ;;  %v7508_v60 = vadd.f32 %v7224_v50, %v682_v18  ;;  %v7511_v43 = vadd.f32 %v7220_v49, %v684_v9  ;;  %11102 = vst [vmem:[#allocation26_spill] sm:$0xff] %v7516_v34  ;;  %v6260_v30 = vld [vmem:[%s10983_s3 + $0x1e0] ss:$12 sps:$4 sm:$0xff]   ;;  %v7546_v14 = vpop.f32.mrb[18].mxu1 }
 0x12a   : > { %v7518_v22 = vpop.eup %6338  ;;  %6346 = vtanh.f32 %v1737_v38  ;;  %2905 = vmatprep.mubr.bf16.mxu1 %v2310_v27  ;;  %3369 = vmatprep.mubr.bf16.mxu0 %v2310_v27  ;;  %v2309_v31 = vpack.c.bf16 %v2195_v6, %v2192_v0  ;;  %v1262_v39 = vmul.f32 %v7503_v23, %v7503_v23  ;;  %v7523_v18 = vadd.f32 %v7224_v50, %v686_v48  ;;  %v690_v9 = vpop.f32.mrb[28].mxu0 }
 0x12b   : > { %6348 = vtanh.f32 %v1739_v16  ;;  %v1263_v42 = vmul.f32 %v7508_v60, %v7508_v60  ;;  %v1265_v29 = vmul.f32 %v7511_v43, %v7511_v43  ;;  %v1959_v52 = vadd.f32 1.0, %v7413_v35  ;;  %v692_v44 = vpop.f32.mrb[29].mxu0  ;;  %3103 = vmatpush1.bf16.msra.mxu1 %v6257_v56  ;;  %11103 = vst [vmem:[#allocation27_spill] sm:$0xff] %v7546_v14 }
 0x12c   : > { %v7533_v25 = vpop.eup %6340  ;;  %6350 = vtanh.f32 %v1740_v58  ;;  %2906 = vmatmul.mubr.bf16.gmra.mrb[64].mxu1 %v2309_v31  ;;  %3370 = vmatmul.mubr.bf16.gmra.mrb[64].mxu0 %v2309_v31  ;;  %v1382_v48 = vmul.f32 %v1262_v39, %v7503_v23  ;;  %v1266_v38 = vmul.f32 %v7523_v18, %v7523_v18  ;;  %v1962_v24 = vadd.f32 1.0, %v7427_v3  ;;  %v694_v0 = vpop.f32.mrb[30].mxu0 }
 0x12d   : > { %v7539_v35 = vpop.eup %6342  ;;  %v1383_v56 = vmul.f32 %v1263_v42, %v7508_v60  ;;  %v1385_v16 = vmul.f32 %v1265_v29, %v7511_v43  ;;  %v2079_v27 = vmul.f32 0.5, %v1959_v52  ;;  %v1958_v6 = vadd.f32 1.0, %v7406_v33  ;;  %v696_v58 = vpop.f32.mrb[31].mxu0  ;;  %3104 = vmatprep.subr.bf16.mxu1 %v6262_v11 }
 0x12e   : > { %v1502_v31 = vmul.f32 0.044715, %v1382_v48  ;;  %v1386_v39 = vmul.f32 %v1266_v38, %v7523_v18  ;;  %v2082_v34 = vmul.f32 0.5, %v1962_v24  ;;  %v1961_v37 = vadd.f32 1.0, %v7417_v32  ;;  %v7549_v29 = vpop.f32.mrb[19].mxu1 }
 0x12f   : > { %v1503_v3 = vmul.f32 0.044715, %v1383_v56  ;;  %v1505_v10 = vmul.f32 0.044715, %v1385_v16  ;;  %v2199_v46 = vmul.f32 %v2079_v27, %v7303_v13  ;;  %v2078_v42 = vmul.f32 0.5, %v1958_v6  ;;  %3105 = vmatpush1.bf16.msra.mxu1 %v6260_v30  ;;  %11104 = vst [vmem:[#allocation28_spill] sm:$0xff] %v7549_v29 }
 0x130   : > { %v1622_v33 = vadd.f32 %v1502_v31, %v7503_v23  ;;  %v1506_v52 = vmul.f32 0.044715, %v1386_v39  ;;  %v2202_v11 = vmul.f32 %v2082_v34, %v7318_v28  ;;  %v2081_v48 = vmul.f32 0.5, %v1961_v37  ;;  %v7561_v31 = vpop.f32.mrb[20].mxu1 }
 0x131   : > { %v1623_v38 = vadd.f32 %v1503_v3, %v7508_v60  ;;  %v1625_v32 = vadd.f32 %v1505_v10, %v7511_v43  ;;  %v2198_v24 = vmul.f32 %v2078_v42, %v7296_v5  ;;  %v7557_v56 = vadd.f32 %v7220_v49, %v690_v9  ;;  %11105 = vst [vmem:[#allocation29_spill] sm:$0xff] %v7561_v31 }
 0x132   : > { %v1742_v13 = vmul.f32 0.7978846, %v1622_v33  ;;  %v1626_v30 = vadd.f32 %v1506_v52, %v7523_v18  ;;  %v2313_v16 = vpack.c.bf16 %v2202_v11, %v2199_v46  ;;  %v2201_v27 = vmul.f32 %v2081_v48, %v7312_v20  ;;  %v700_v6 = vpop.f32.mrb[32].mxu0 }
 0x133   : > { %v7563_v28 = vpop.eup %6344  ;;  %v1743_v37 = vmul.f32 0.7978846, %v1623_v38  ;;  %v1745_v34 = vmul.f32 0.7978846, %v1625_v32  ;;  %v1268_v10 = vmul.f32 %v7557_v56, %v7557_v56  ;;  %v7568_v5 = vadd.f32 %v7224_v50, %v692_v44  ;;  %v702_v9 = vpop.f32.mrb[33].mxu0 }
 0x134   : > { %v7570_v39 = vpop.eup %6346  ;;  %6352 = vtanh.f32 %v1742_v13  ;;  %v1746_v46 = vmul.f32 0.7978846, %v1626_v30  ;;  %2915 = vmatprep.mubr.bf16.mxu1 %v2313_v16  ;;  %3377 = vmatprep.mubr.bf16.mxu0 %v2313_v16  ;;  %v2312_v20 = vpack.c.bf16 %v2201_v27, %v2198_v24  ;;  %v7573_v3 = vadd.f32 %v7220_v49, %v694_v0  ;;  %v704_v42 = vpop.f32.mrb[34].mxu0 }
 0x135   : > { %v7575_v33 = vpop.eup %6348  ;;  %6354 = vtanh.f32 %v1743_v37  ;;  %v1388_v52 = vmul.f32 %v1268_v10, %v7557_v56  ;;  %v1269_v44 = vmul.f32 %v7568_v5, %v7568_v5  ;;  %v7581_v11 = vadd.f32 %v7224_v50, %v696_v58  ;;  %v706_v48 = vpop.f32.mrb[35].mxu0 }
 0x136   : > { %v7583_v38 = vpop.eup %6350  ;;  %6356 = vtanh.f32 %v1745_v34  ;;  %2916 = vmatmul.mubr.bf16.gmra.mrb[68].mxu1 %v2312_v20  ;;  %3378 = vmatmul.mubr.bf16.gmra.mrb[68].mxu0 %v2312_v20  ;;  %v1271_v0 = vmul.f32 %v7573_v3, %v7573_v3  ;;  %v1965_v32 = vadd.f32 1.0, %v7477_v26  ;;  %v1968_v24 = vadd.f32 1.0, %v7495_v2  ;;  %v7592_v16 = vpop.f32.mrb[21].mxu1 }
 0x137   : > { %6358 = vtanh.f32 %v1746_v46  ;;  %v1508_v13 = vmul.f32 0.044715, %v1388_v52  ;;  %v1389_v30 = vmul.f32 %v1269_v44, %v7568_v5  ;;  %v1272_v58 = vmul.f32 %v7581_v11, %v7581_v11  ;;  %11106 = vst [vmem:[#allocation30_spill] sm:$0xff] %v7592_v16  ;;  %v7596_v20 = vpop.f32.mrb[22].mxu1 }
 0x138   : > { %v1391_v27 = vmul.f32 %v1271_v0, %v7573_v3  ;;  %v2085_v37 = vmul.f32 0.5, %v1965_v32  ;;  %v2088_v34 = vmul.f32 0.5, %v1968_v24  ;;  %v1964_v10 = vadd.f32 1.0, %v7456_v47  ;;  %11107 = vst [vmem:[#allocation31_spill] sm:$0xff] %v7596_v20  ;;  %v7601_v44 = vpop.f32.mrb[23].mxu1 }
 0x139   : > { %v1628_v26 = vadd.f32 %v1508_v13, %v7557_v56  ;;  %v1509_v2 = vmul.f32 0.044715, %v1389_v30  ;;  %v1392_v46 = vmul.f32 %v1272_v58, %v7581_v11  ;;  %v1967_v52 = vadd.f32 1.0, %v7485_v55  ;;  %11108 = vst [vmem:[#allocation32_spill] sm:$0xff] %v7601_v44 }
 0x13a   : > { %v1511_v31 = vmul.f32 0.044715, %v1391_v27  ;;  %v2205_v16 = vmul.f32 %v2085_v37, %v7341_v51  ;;  %v2208_v0 = vmul.f32 %v2088_v34, %v7360_v21  ;;  %v2084_v32 = vmul.f32 0.5, %v1964_v10  ;;  %v7605_v24 = vpop.f32.mrb[36].mxu0 }
 0x13b   : > { %v1748_v47 = vmul.f32 0.7978846, %v1628_v26  ;;  %v1629_v20 = vadd.f32 %v1509_v2, %v7568_v5  ;;  %v1512_v29 = vmul.f32 0.044715, %v1392_v46  ;;  %v2087_v13 = vmul.f32 0.5, %v1967_v52  ;;  %v7608_v30 = vpop.f32.mrb[37].mxu0 }
 0x13c   : > { %v1631_v58 = vadd.f32 %v1511_v31, %v7573_v3  ;;  %v2316_v55 = vpack.c.bf16 %v2208_v0, %v2205_v16  ;;  %v2204_v44 = vmul.f32 %v2084_v32, %v7334_v17  ;;  %v7613_v27 = vadd.f32 %v7220_v49, %v700_v6  ;;  %v7615_v51 = vpop.f32.mrb[38].mxu0 }
 0x13d   : > { %6360 = vtanh.f32 %v1748_v47  ;;  %v1749_v21 = vmul.f32 0.7978846, %v1629_v20  ;;  %v1632_v37 = vadd.f32 %v1512_v29, %v7581_v11  ;;  %v2207_v34 = vmul.f32 %v2087_v13, %v7354_v12  ;;  %v7619_v10 = vpop.f32.mrb[39].mxu0 }
 0x13e   : > { %v7621_v26 = vpop.eup %6352  ;;  %v1751_v2 = vmul.f32 0.7978846, %v1631_v58  ;;  %2925 = vmatprep.mubr.bf16.mxu1 %v2316_v55  ;;  %3385 = vmatprep.mubr.bf16.mxu0 %v2316_v55  ;;  %v1274_v17 = vmul.f32 %v7613_v27, %v7613_v27  ;;  %v7626_v6 = vadd.f32 %v7224_v50, %v702_v9  ;;  %v7629_v31 = vadd.f32 %v7220_v49, %v704_v42 }
 0x13f   : > { %v7631_v16 = vpop.eup %6354  ;;  %6362 = vtanh.f32 %v1749_v21  ;;  %v1752_v12 = vmul.f32 0.7978846, %v1632_v37  ;;  %v2315_v29 = vpack.c.bf16 %v2207_v34, %v2204_v44  ;;  %v7634_v20 = vadd.f32 %v7224_v50, %v706_v48 }
 0x140   : > { %v7636_v46 = vpop.eup %6356  ;;  %6364 = vtanh.f32 %v1751_v2  ;;  %v1394_v52 = vmul.f32 %v1274_v17, %v7613_v27  ;;  %v1275_v9 = vmul.f32 %v7626_v6, %v7626_v6  ;;  %v1277_v42 = vmul.f32 %v7629_v31, %v7629_v31 }
 0x141   : > { %v7643_v0 = vpop.eup %6358  ;;  %6366 = vtanh.f32 %v1752_v12  ;;  %2926 = vmatmul.mubr.bf16.gmra.mrb[72].mxu1 %v2315_v29  ;;  %3386 = vmatmul.mubr.bf16.gmra.mrb[72].mxu0 %v2315_v29  ;;  %v1278_v48 = vmul.f32 %v7634_v20, %v7634_v20  ;;  %v1971_v44 = vadd.f32 1.0, %v7518_v22  ;;  %v1974_v32 = vadd.f32 1.0, %v7539_v35 }
 0x142   : > { %v1514_v47 = vmul.f32 0.044715, %v1394_v52  ;;  %v1395_v13 = vmul.f32 %v1275_v9, %v7626_v6  ;;  %v1397_v58 = vmul.f32 %v1277_v42, %v7629_v31  ;;  %v1970_v55 = vadd.f32 1.0, %v7505_v63  ;;  %v7652_v21 = vpop.f32.mrb[40].mxu0 }
 0x143   : > { %v1398_v37 = vmul.f32 %v1278_v48, %v7634_v20  ;;  %v2091_v34 = vmul.f32 0.5, %v1971_v44  ;;  %v2094_v2 = vmul.f32 0.5, %v1974_v32  ;;  %v1973_v17 = vadd.f32 1.0, %v7533_v25  ;;  %v7656_v12 = vpop.f32.mrb[41].mxu0 }
 0x144   : > { %v1634_v22 = vadd.f32 %v1514_v47, %v7613_v27  ;;  %v1515_v35 = vmul.f32 0.044715, %v1395_v13  ;;  %v1517_v29 = vmul.f32 0.044715, %v1397_v58  ;;  %v2090_v52 = vmul.f32 0.5, %v1970_v55  ;;  %v7659_v9 = vpop.f32.mrb[42].mxu0 }
 0x145   : > { %v1518_v42 = vmul.f32 0.044715, %v1398_v37  ;;  %v2211_v63 = vmul.f32 %v2091_v34, %v7382_v19  ;;  %v2214_v14 = vmul.f32 %v2094_v2, %v7397_v41  ;;  %v2093_v40 = vmul.f32 0.5, %v1973_v17  ;;  %v7663_v48 = vpop.f32.mrb[43].mxu0  ;;  %v7676_v41 = vpop.f32.mrb[24].mxu1 }
 0x146   : > { %v1754_v44 = vmul.f32 0.7978846, %v1634_v22  ;;  %v1635_v25 = vadd.f32 %v1515_v35, %v7626_v6  ;;  %v1637_v32 = vadd.f32 %v1517_v29, %v7629_v31  ;;  %v2210_v47 = vmul.f32 %v2090_v52, %v7374_v57  ;;  %11110 = vst [vmem:[#allocation34_spill] sm:$0xff] %v7676_v41  ;;  %v7682_v57 = vpop.f32.mrb[25].mxu1 }
 0x147   : > { %v7668_v13 = vpop.eup %6360  ;;  %v1638_v58 = vadd.f32 %v1518_v42, %v7634_v20  ;;  %v2319_v55 = vpack.c.bf16 %v2214_v14, %v2211_v63  ;;  %v2213_v37 = vmul.f32 %v2093_v40, %v7394_v62  ;;  %v7674_v19 = vadd.f32 %v7220_v49, %v7605_v24  ;;  %11111 = vst [vmem:[#allocation35_spill] sm:$0xff] %v7682_v57  ;;  %v7692_v35 = vpop.f32.mrb[26].mxu1 }
 0x148   : > { %6368 = vtanh.f32 %v1754_v44  ;;  %v1755_v34 = vmul.f32 0.7978846, %v1635_v25  ;;  %v1757_v2 = vmul.f32 0.7978846, %v1637_v32  ;;  %v7680_v17 = vadd.f32 %v7224_v50, %v7608_v30  ;;  %11113 = vst [vmem:[#allocation37_spill] sm:$0xff] %v7692_v35 }
 0x149   : > { %11109 = vst [vmem:[#allocation33_spill] sm:$0xff] %v7674_v19  ;;  %v7684_v22 = vpop.eup %6362  ;;  %v1758_v14 = vmul.f32 0.7978846, %v1638_v58  ;;  %2935 = vmatprep.mubr.bf16.mxu1 %v2319_v55  ;;  %3393 = vmatprep.mubr.bf16.mxu0 %v2319_v55  ;;  %v2318_v40 = vpack.c.bf16 %v2213_v37, %v2210_v47  ;;  %v1280_v62 = vmul.f32 %v7674_v19, %v7674_v19  ;;  %v1977_v42 = vadd.f32 1.0, %v7570_v39 }
 0x14a   : > { %v7690_v24 = vadd.f32 %v7220_v49, %v7615_v51  ;;  %v7694_v29 = vpop.eup %6364  ;;  %6370 = vtanh.f32 %v1755_v34  ;;  %v1281_v30 = vmul.f32 %v7680_v17, %v7680_v17  ;;  %v7700_v52 = vadd.f32 %v7224_v50, %v7619_v10  ;;  %v7703_v63 = vpop.f32.mrb[44].mxu0 }
 0x14b   : > { %v7705_v44 = vpop.eup %6366  ;;  %6372 = vtanh.f32 %v1757_v2  ;;  %2936 = vmatmul.mubr.bf16.gmra.mrb[76].mxu1 %v2318_v40  ;;  %3394 = vmatmul.mubr.bf16.gmra.mrb[76].mxu0 %v2318_v40  ;;  %v1400_v49 = vmul.f32 %v1280_v62, %v7674_v19  ;;  %v1980_v25 = vadd.f32 1.0, %v7583_v38  ;;  %v7711_v32 = vpop.f32.mrb[45].mxu0  ;;  %v2097_v10 = vmul.f32 0.5, %v1977_v42 }
 0x14c   : > { %11112 = vst [vmem:[#allocation36_spill] sm:$0xff] %v7690_v24  ;;  %v1283_v51 = vmul.f32 %v7690_v24, %v7690_v24  ;;  %6374 = vtanh.f32 %v1758_v14  ;;  %v1401_v50 = vmul.f32 %v1281_v30, %v7680_v17  ;;  %v1284_v39 = vmul.f32 %v7700_v52, %v7700_v52  ;;  %v7716_v47 = vpop.f32.mrb[46].mxu0  ;;  %v6264_v30 = vld [vmem:[%s10983_s3 + $0x1f8] ss:$12 sps:$4 sm:$0xff]   ;;  %v7728_v42 = vpop.f32.mrb[27].mxu1 }
 0x14d   : > { %v1520_v58 = vmul.f32 0.044715, %v1400_v49  ;;  %v2100_v37 = vmul.f32 0.5, %v1980_v25  ;;  %v1976_v34 = vadd.f32 1.0, %v7563_v28  ;;  %v7720_v2 = vpop.f32.mrb[47].mxu0  ;;  %v2217_v14 = vmul.f32 %v2097_v10, %v7434_v4  ;;  %11114 = vst [vmem:[#allocation38_spill] sm:$0xff] %v7728_v42 }
 0x14e   : > { %v1403_v55 = vmul.f32 %v1283_v51, %v7690_v24  ;;  %v1521_v38 = vmul.f32 0.044715, %v1401_v50  ;;  %v1404_v40 = vmul.f32 %v1284_v39, %v7700_v52  ;;  %v1979_v62 = vadd.f32 1.0, %v7575_v33  ;;  %v6266_v50 = vld [vmem:[%s10983_s3 + $0x1fc] ss:$12 sps:$4 sm:$0xff]   ;;  %v7735_v39 = vpop.f32.mrb[28].mxu1 }
 0x14f   : > { %v1640_v49 = vadd.f32 %v1520_v58, %v7674_v19  ;;  %v2220_v28 = vmul.f32 %v2100_v37, %v7446_v45  ;;  %v2096_v25 = vmul.f32 0.5, %v1976_v34  ;;  %11115 = vst [vmem:[#allocation39_spill] sm:$0xff] %v7735_v39  ;;  %v7740_v35 = vadd.f32 %v7231_v54, %v7652_v21  ;;  %v6267_v58 = vld [vmem:[%s10983_s3 + $0x1a0] ss:$12 sps:$4 sm:$0xff]   ;;  %v7745_v45 = vpop.f32.mrb[29].mxu1  ;;  %3106 = vmatprep.subr.bf16.mxu1 %v6266_v50 }
 0x150   : > { %v1523_v51 = vmul.f32 0.044715, %v1403_v55  ;;  %v1641_v4 = vadd.f32 %v1521_v38, %v7680_v17  ;;  %v1524_v33 = vmul.f32 0.044715, %v1404_v40  ;;  %v2099_v10 = vmul.f32 0.5, %v1979_v62  ;;  %11116 = vst [vmem:[#allocation40_spill] sm:$0xff] %v7745_v45  ;;  %3107 = vmatpush1.bf16.msra.mxu1 %v6264_v30  ;;  %5859 = vmatprep.subr.bf16.mxu0 %v6267_v58 }
 0x151   : > { %v1760_v55 = vmul.f32 0.7978846, %v1640_v49  ;;  %v2322_v34 = vpack.c.bf16 %v2220_v28, %v2217_v14  ;;  %v2216_v39 = vmul.f32 %v2096_v25, %v7431_v53  ;;  %v6270_v38 = vld [vmem:[%s10983_s3 + $0x214] ss:$12 sps:$4 sm:$0xff]   ;;  %v1286_v49 = vmul.f32 %v7740_v35, %v7740_v35  ;;  %v6271_v53 = vld [vmem:[%s10983_s3 + $0x1b8] ss:$12 sps:$4 sm:$0xff]   ;;  %5860 = vmatpush3.bf16.msra.mxu0 %v6267_v58 }
 0x152   : > { %v1643_v37 = vadd.f32 %v1523_v51, %v7690_v24  ;;  %v7752_v40 = vpop.eup %6368  ;;  %v1761_v21 = vmul.f32 0.7978846, %v1641_v4  ;;  %v1644_v62 = vadd.f32 %v1524_v33, %v7700_v52  ;;  %v2219_v42 = vmul.f32 %v2099_v10, %v7439_v7  ;;  %v7758_v45 = vpop.f32.mrb[48].mxu0  ;;  %v6268_v25 = vld [vmem:[%s10983_s3 + $0x210] ss:$12 sps:$4 sm:$0xff]   ;;  %3108 = vmatprep.subr.bf16.mxu1 %v6270_v38  ;;  %5861 = vmatprep.subr.bf16.mxu0 %v6271_v53 }
 0x153   : > { %v7763_v14 = vpop.f32.mrb[30].mxu1  ;;  %6376 = vtanh.f32 %v1760_v55  ;;  %2945 = vmatprep.mubr.bf16.mxu1 %v2322_v34  ;;  %3401 = vmatprep.mubr.bf16.mxu0 %v2322_v34  ;;  %v7767_v7 = vadd.f32 %v7241_v59, %v7656_v12  ;;  %v7771_v28 = vadd.f32 %v7231_v54, %v7659_v9  ;;  %v7773_v30 = vpop.f32.mrb[49].mxu0  ;;  %v1406_v10 = vmul.f32 %v1286_v49, %v7740_v35 }
 0x154   : > { %11117 = vst [vmem:[#allocation41_spill] sm:$0xff] %v7763_v14  ;;  %v1763_v51 = vmul.f32 0.7978846, %v1643_v37  ;;  %v7778_v50 = vpop.eup %6370  ;;  %6378 = vtanh.f32 %v1761_v21  ;;  %v1764_v4 = vmul.f32 0.7978846, %v1644_v62  ;;  %v2321_v33 = vpack.c.bf16 %v2219_v42, %v2216_v39  ;;  %v7781_v55 = vpop.f32.mrb[50].mxu0  ;;  %3109 = vmatpush1.bf16.msra.mxu1 %v6268_v25 }
 0x155   : > { %v7783_v12 = vpop.eup %6372  ;;  %v1287_v9 = vmul.f32 %v7767_v7, %v7767_v7  ;;  %v1289_v37 = vmul.f32 %v7771_v28, %v7771_v28  ;;  %v7791_v34 = vadd.f32 %v7241_v59, %v7663_v48  ;;  %v7793_v42 = vpop.f32.mrb[51].mxu0  ;;  %v1526_v58 = vmul.f32 0.044715, %v1406_v10  ;;  %5862 = vmatpush3.bf16.msra.mxu0 %v6271_v53 }
 0x156   : > { %6380 = vtanh.f32 %v1763_v51  ;;  %v7795_v39 = vpop.eup %6374  ;;  %2946 = vmatmul.mubr.bf16.gmra.mrb[80].mxu1 %v2321_v33  ;;  %3402 = vmatmul.mubr.bf16.gmra.mrb[80].mxu0 %v2321_v33  ;;  %v1983_v38 = vadd.f32 1.0, %v7631_v16  ;;  %v1986_v21 = vadd.f32 1.0, %v7643_v0  ;;  %v1982_v51 = vadd.f32 1.0, %v7621_v26  ;;  %v7806_v16 = vpop.f32.mrb[31].mxu1 }
 0x157   : > { %6382 = vtanh.f32 %v1764_v4  ;;  %v1407_v62 = vmul.f32 %v1287_v9, %v7767_v7  ;;  %v1409_v49 = vmul.f32 %v1289_v37, %v7771_v28  ;;  %v1290_v48 = vmul.f32 %v7791_v34, %v7791_v34  ;;  %11118 = vst [vmem:[#allocation42_spill] sm:$0xff] %v7806_v16 }
 0x158   : > { %v1646_v14 = vadd.f32 %v1526_v58, %v7740_v35  ;;  %v2103_v4 = vmul.f32 0.5, %v1983_v38  ;;  %v2106_v57 = vmul.f32 0.5, %v1986_v21  ;;  %v1985_v33 = vadd.f32 1.0, %v7636_v46 }
 0x159   : > { %v1527_v0 = vmul.f32 0.044715, %v1407_v62  ;;  %v1529_v10 = vmul.f32 0.044715, %v1409_v49  ;;  %v1410_v9 = vmul.f32 %v1290_v48, %v7791_v34  ;;  %v2102_v37 = vmul.f32 0.5, %v1982_v51  ;;  %v7818_v62 = vpop.f32.mrb[32].mxu1 }
 0x15a   : > { %v1766_v41 = vmul.f32 0.7978846, %v1646_v14  ;;  %v2223_v24 = vmul.f32 %v2103_v4, %v7508_v60  ;;  %v2226_v26 = vmul.f32 %v2106_v57, %v7523_v18  ;;  %v2105_v25 = vmul.f32 0.5, %v1985_v33  ;;  %v7811_v19 = vpop.f32.mrb[52].mxu0  ;;  %11119 = vst [vmem:[#allocation43_spill] sm:$0xff] %v7818_v62  ;;  %v7827_v49 = vpop.f32.mrb[33].mxu1 }
 0x15b   : > { %v1647_v58 = vadd.f32 %v1527_v0, %v7767_v7  ;;  %v1649_v46 = vadd.f32 %v1529_v10, %v7771_v28  ;;  %v1530_v53 = vmul.f32 0.044715, %v1410_v9  ;;  %v2222_v38 = vmul.f32 %v2102_v37, %v7503_v23  ;;  %v7816_v21 = vpop.f32.mrb[53].mxu0  ;;  %11120 = vst [vmem:[#allocation44_spill] sm:$0xff] %v7827_v49 }
 0x15c   : > { %6384 = vtanh.f32 %v1766_v41  ;;  %v2325_v14 = vpack.c.bf16 %v2226_v26, %v2223_v24  ;;  %v2225_v60 = vmul.f32 %v2105_v25, %v7511_v43  ;;  %v7823_v18 = vadd.f32 %v7231_v54, %v7703_v63  ;;  %v7825_v57 = vpop.f32.mrb[54].mxu0  ;;  %v7838_v43 = vpop.f32.mrb[34].mxu1 }
 0x15d   : > { %v7829_v48 = vpop.eup %6376  ;;  %v1767_v51 = vmul.f32 0.7978846, %v1647_v58  ;;  %v1769_v23 = vmul.f32 0.7978846, %v1649_v46  ;;  %v1650_v4 = vadd.f32 %v1530_v53, %v7791_v34  ;;  %v7834_v41 = vadd.f32 %v7241_v59, %v7711_v32  ;;  %v7836_v24 = vpop.f32.mrb[55].mxu0  ;;  %11121 = vst [vmem:[#allocation45_spill] sm:$0xff] %v7838_v43 }
 0x15e   : > { %v7840_v63 = vpop.eup %6378  ;;  %2955 = vmatprep.mubr.bf16.mxu1 %v2325_v14  ;;  %3409 = vmatprep.mubr.bf16.mxu0 %v2325_v14  ;;  %v2324_v33 = vpack.c.bf16 %v2225_v60, %v2222_v38  ;;  %v1292_v0 = vmul.f32 %v7823_v18, %v7823_v18  ;;  %v7846_v10 = vadd.f32 %v7231_v54, %v7716_v47  ;;  %v1989_v9 = vadd.f32 1.0, %v7684_v22  ;;  %v7857_v58 = vpop.f32.mrb[35].mxu1 }
 0x15f   : > { %6386 = vtanh.f32 %v1767_v51  ;;  %v1770_v37 = vmul.f32 0.7978846, %v1650_v4  ;;  %v1293_v26 = vmul.f32 %v7834_v41, %v7834_v41  ;;  %v7855_v25 = vadd.f32 %v7241_v59, %v7720_v2  ;;  %11122 = vst [vmem:[#allocation46_spill] sm:$0xff] %v7857_v58 }
 0x160   : > { %v7849_v32 = vpop.eup %6380  ;;  %6388 = vtanh.f32 %v1769_v23  ;;  %2956 = vmatmul.mubr.bf16.gmra.mrb[84].mxu1 %v2324_v33  ;;  %3410 = vmatmul.mubr.bf16.gmra.mrb[84].mxu0 %v2324_v33  ;;  %v1412_v22 = vmul.f32 %v1292_v0, %v7823_v18  ;;  %v1295_v47 = vmul.f32 %v7846_v10, %v7846_v10  ;;  %v1992_v53 = vadd.f32 1.0, %v7705_v44 }
 0x161   : > { %v7859_v46 = vpop.eup %6382  ;;  %6390 = vtanh.f32 %v1770_v37  ;;  %v1413_v38 = vmul.f32 %v1293_v26, %v7834_v41  ;;  %v1296_v2 = vmul.f32 %v7855_v25, %v7855_v25  ;;  %v2109_v14 = vmul.f32 0.5, %v1989_v9 }
 0x162   : > { %v1532_v60 = vmul.f32 0.044715, %v1412_v22  ;;  %v1415_v51 = vmul.f32 %v1295_v47, %v7846_v10  ;;  %v2112_v23 = vmul.f32 0.5, %v1992_v53  ;;  %6392 = vtanh.f32 %v7327_v61  ;;  %v7870_v4 = vpop.f32.mrb[56].mxu0 }
 0x163   : > { %v1533_v33 = vmul.f32 0.044715, %v1413_v38  ;;  %v1416_v0 = vmul.f32 %v1296_v2, %v7855_v25  ;;  %v2229_v44 = vmul.f32 %v2109_v14, %v7568_v5  ;;  %v1988_v37 = vadd.f32 1.0, %v7668_v13  ;;  %v7875_v26 = vpop.f32.mrb[57].mxu0 }
 0x164   : > { %v1652_v58 = vadd.f32 %v1532_v60, %v7823_v18  ;;  %v1535_v9 = vmul.f32 0.044715, %v1415_v51  ;;  %v2232_v22 = vmul.f32 %v2112_v23, %v7581_v11  ;;  %v1991_v47 = vadd.f32 1.0, %v7694_v29  ;;  %v7880_v53 = vpop.f32.mrb[58].mxu0  ;;  %v7889_v11 = vpop.f32.mrb[36].mxu1 }
 0x165   : > { %v1653_v61 = vadd.f32 %v1533_v33, %v7834_v41  ;;  %v1536_v38 = vmul.f32 0.044715, %v1416_v0  ;;  %v2108_v43 = vmul.f32 0.5, %v1988_v37  ;;  %v1797_v2 = vmul.f32 0.7978846, %v7306_v15  ;;  %v7884_v5 = vpop.f32.mrb[59].mxu0 }
 0x166   : > { %v7886_v13 = vpop.eup %6384  ;;  %v1772_v14 = vmul.f32 0.7978846, %v1652_v58  ;;  %v1655_v60 = vadd.f32 %v1535_v9, %v7846_v10  ;;  %v2328_v51 = vpack.c.bf16 %v2232_v22, %v2229_v44  ;;  %v2111_v49 = vmul.f32 0.5, %v1991_v47  ;;  %11123 = vst [vmem:[#allocation47_spill] sm:$0xff] %v7889_v11  ;;  %v7893_v0 = vpop.f32.mrb[37].mxu1 }
 0x167   : > { %v1773_v29 = vmul.f32 0.7978846, %v1653_v61  ;;  %v1656_v23 = vadd.f32 %v1536_v38, %v7855_v25  ;;  %v2228_v33 = vmul.f32 %v2108_v43, %v7557_v56  ;;  %6394 = vtanh.f32 %v1797_v2  ;;  %11124 = vst [vmem:[#allocation48_spill] sm:$0xff] %v7893_v0  ;;  %v7898_v37 = vpop.f32.mrb[38].mxu1 }
 0x168   : > { %6396 = vtanh.f32 %v1772_v14  ;;  %v1775_v15 = vmul.f32 0.7978846, %v1655_v60  ;;  %2965 = vmatprep.mubr.bf16.mxu1 %v2328_v51  ;;  %3417 = vmatprep.mubr.bf16.mxu0 %v2328_v51  ;;  %v2231_v58 = vmul.f32 %v2111_v49, %v7573_v3  ;;  %v1319_v44 = vmul.f32 %v7250_v1, %v7250_v1  ;;  %11125 = vst [vmem:[#allocation49_spill] sm:$0xff] %v7898_v37  ;;  %v7924_v60 = vpop.f32.mrb[39].mxu1 }
 0x169   : > { %v7900_v9 = vpop.eup %6386  ;;  %6398 = vtanh.f32 %v1773_v29  ;;  %v1776_v22 = vmul.f32 0.7978846, %v1656_v23  ;;  %v1320_v56 = vmul.f32 %v7256_v8, %v7256_v8  ;;  %v7906_v43 = vadd.f32 %v7231_v54, %v7758_v45  ;;  %11126 = vst [vmem:[#allocation50_spill] sm:$0xff] %v7924_v60 }
 0x16a   : > { %v7908_v47 = vpop.eup %6388  ;;  %6400 = vtanh.f32 %v1775_v15  ;;  %v2327_v3 = vpack.c.bf16 %v2231_v58, %v2228_v33  ;;  %v1439_v49 = vmul.f32 %v1319_v44, %v7250_v1  ;;  %v7913_v61 = vadd.f32 %v7241_v59, %v7773_v30 }
 0x16b   : > { %v7915_v38 = vpop.eup %6390  ;;  %6402 = vtanh.f32 %v1776_v22  ;;  %v1440_v2 = vmul.f32 %v1320_v56, %v7256_v8  ;;  %v1298_v14 = vmul.f32 %v7906_v43, %v7906_v43  ;;  %v7922_v45 = vadd.f32 %v7231_v54, %v7781_v55 }
 0x16c   : > { %v7926_v51 = vpop.eup %6392  ;;  %2966 = vmatmul.mubr.bf16.gmra.mrb[88].mxu1 %v2327_v3  ;;  %3418 = vmatmul.mubr.bf16.gmra.mrb[88].mxu0 %v2327_v3  ;;  %v1559_v30 = vmul.f32 0.044715, %v1439_v49  ;;  %v1299_v29 = vmul.f32 %v7913_v61, %v7913_v61  ;;  %v7932_v23 = vadd.f32 %v7241_v59, %v7793_v42  ;;  %v1995_v33 = vadd.f32 1.0, %v7778_v50  ;;  %v6272_v50 = vld [vmem:[%s10983_s3 + $0x228] ss:$12 sps:$4 sm:$0xff]  }
 0x16d   : > { %v1560_v15 = vmul.f32 0.044715, %v1440_v2  ;;  %v1418_v55 = vmul.f32 %v1298_v14, %v7906_v43  ;;  %v1301_v58 = vmul.f32 %v7922_v45, %v7922_v45  ;;  %v1998_v44 = vadd.f32 1.0, %v7795_v39  ;;  %v6274_v42 = vld [vmem:[%s10983_s3 + $0x22c] ss:$12 sps:$4 sm:$0xff]   ;;  %v7949_v2 = vpop.f32.mrb[40].mxu1 }
 0x16e   : > { %v1679_v22 = vadd.f32 %v1559_v30, %v7250_v1  ;;  %v1419_v56 = vmul.f32 %v1299_v29, %v7913_v61  ;;  %v1302_v3 = vmul.f32 %v7932_v23, %v7932_v23  ;;  %v2115_v49 = vmul.f32 0.5, %v1995_v33  ;;  %11127 = vst [vmem:[#allocation51_spill] sm:$0xff] %v7949_v2  ;;  %v6275_v33 = vld [vmem:[%s10983_s3 + $0x1d0] ss:$12 sps:$4 sm:$0xff]   ;;  %3110 = vmatprep.subr.bf16.mxu1 %v6274_v42 }
 0x16f   : > { %v1680_v39 = vadd.f32 %v1560_v15, %v7256_v8  ;;  %v1538_v14 = vmul.f32 0.044715, %v1418_v55  ;;  %v1421_v30 = vmul.f32 %v1301_v58, %v7922_v45  ;;  %v2118_v29 = vmul.f32 0.5, %v1998_v44  ;;  %3111 = vmatpush1.bf16.msra.mxu1 %v6272_v50  ;;  %5863 = vmatprep.subr.bf16.mxu0 %v6275_v33  ;;  %v7972_v50 = vpop.f32.mrb[41].mxu1 }
 0x170   : > { %v1799_v60 = vmul.f32 0.7978846, %v1679_v22  ;;  %v1539_v37 = vmul.f32 0.044715, %v1419_v56  ;;  %v1422_v0 = vmul.f32 %v1302_v3, %v7932_v23  ;;  %v2235_v11 = vmul.f32 %v2115_v49, %v7626_v6  ;;  %v11128_v3 = vld [vmem:[#allocation9_spill] sm:$0xff]  ;;  %5864 = vmatpush3.bf16.msra.mxu0 %v6275_v33  ;;  %11130 = vst [vmem:[#allocation52_spill] sm:$0xff] %v7972_v50 }
 0x171   : > { %v7958_v62 = vpop.eup %6394  ;;  %v1800_v2 = vmul.f32 0.7978846, %v1680_v39  ;;  %v1658_v15 = vadd.f32 %v1538_v14, %v7906_v43  ;;  %v1541_v55 = vmul.f32 0.044715, %v1421_v30  ;;  %v2238_v58 = vmul.f32 %v2118_v29, %v7634_v20  ;;  %v7983_v30 = vpop.f32.mrb[42].mxu1 }
 0x172   : > { %v7962_v44 = vpop.eup %6396  ;;  %6404 = vtanh.f32 %v1799_v60  ;;  %v1659_v22 = vadd.f32 %v1539_v37, %v7913_v61  ;;  %v1542_v56 = vmul.f32 0.044715, %v1422_v0  ;;  %v7967_v6 = vadd.f32 %v11128_v3, %v7280_v36  ;;  %11131 = vst [vmem:[#allocation53_spill] sm:$0xff] %v7983_v30 }
 0x173   : > { %v7969_v49 = vpop.eup %6398  ;;  %6406 = vtanh.f32 %v1800_v2  ;;  %v1778_v42 = vmul.f32 0.7978846, %v1658_v15  ;;  %v1661_v39 = vadd.f32 %v1541_v55, %v7922_v45  ;;  %v2331_v20 = vpack.c.bf16 %v2238_v58, %v2235_v11  ;;  %v6276_v2 = vld [vmem:[%s10983_s3 + $0x1e8] ss:$12 sps:$4 sm:$0xff]   ;;  %v11132_v15 = vld [vmem:[#allocation14_spill] sm:$0xff] }
 0x174   : > { %11129 = vst [vmem:[#allocation9_spill] sm:$0xff] %v7967_v6  ;;  %v7974_v14 = vpop.eup %6400  ;;  %v1779_v60 = vmul.f32 0.7978846, %v1659_v22  ;;  %v1662_v37 = vadd.f32 %v1542_v56, %v7932_v23  ;;  %v1322_v0 = vmul.f32 %v7967_v6, %v7967_v6  ;;  %v1994_v36 = vadd.f32 1.0, %v7752_v40  ;;  %v11133_v55 = vld [vmem:[#allocation10_spill] sm:$0xff]  ;;  %v7992_v22 = vpop.f32.mrb[43].mxu1  ;;  %5865 = vmatprep.subr.bf16.mxu0 %v6276_v2 }
 0x175   : > { %v7985_v29 = vpop.eup %6402  ;;  %6408 = vtanh.f32 %v1778_v42  ;;  %v1781_v11 = vmul.f32 0.7978846, %v1661_v39  ;;  %2975 = vmatprep.mubr.bf16.mxu1 %v2331_v20  ;;  %3425 = vmatprep.mubr.bf16.mxu0 %v2331_v20  ;;  %v1997_v33 = vadd.f32 1.0, %v7783_v12  ;;  %v7990_v58 = vadd.f32 %v11133_v55, %v11132_v15  ;;  %11135 = vst [vmem:[#allocation10_spill] sm:$0xff] %v7992_v22  ;;  %v11136_v39 = vld [vmem:[#allocation15_spill] sm:$0xff] }
 0x176   : > { %6410 = vtanh.f32 %v1779_v60  ;;  %v1782_v40 = vmul.f32 0.7978846, %v1662_v37  ;;  %v1442_v56 = vmul.f32 %v1322_v0, %v7967_v6  ;;  %v2114_v50 = vmul.f32 0.5, %v1994_v36  ;;  %5866 = vmatpush3.bf16.msra.mxu0 %v6276_v2  ;;  %v11138_v60 = vld [vmem:[#allocation16_spill] sm:$0xff]  ;;  %v6277_v2 = vld [vmem:[%s10983_s3 + $0x200] ss:$12 sps:$4 sm:$0xff]  }
 0x177   : > { %11134 = vst [vmem:[#allocation14_spill] sm:$0xff] %v7990_v58  ;;  %6412 = vtanh.f32 %v1781_v11  ;;  %v2117_v30 = vmul.f32 0.5, %v1997_v33  ;;  %v1323_v42 = vmul.f32 %v7990_v58, %v7990_v58  ;;  %v7999_v12 = vadd.f32 %v11128_v3, %v11136_v39  ;;  %5867 = vmatprep.subr.bf16.mxu0 %v6277_v2 }
 0x178   : > { %6414 = vtanh.f32 %v1782_v40  ;;  %v1562_v20 = vmul.f32 0.044715, %v1442_v56  ;;  %v2234_v15 = vmul.f32 %v2114_v50, %v7613_v27  ;;  %v8004_v37 = vadd.f32 %v11133_v55, %v11138_v60  ;;  %v8017_v27 = vpop.f32.mrb[44].mxu1 }
 0x179   : > { %11137 = vst [vmem:[#allocation15_spill] sm:$0xff] %v7999_v12  ;;  %v2237_v0 = vmul.f32 %v2117_v30, %v7629_v31  ;;  %v1443_v36 = vmul.f32 %v1323_v42, %v7990_v58  ;;  %v1325_v11 = vmul.f32 %v7999_v12, %v7999_v12  ;;  %v8012_v33 = vadd.f32 %v7231_v54, %v7811_v19  ;;  %v8030_v19 = vpop.f32.mrb[45].mxu1 }
 0x17a   : > { %11139 = vst [vmem:[#allocation16_spill] sm:$0xff] %v8004_v37  ;;  %11140 = vst [vmem:[#allocation54_spill] sm:$0xff] %v8017_v27  ;;  %v1682_v50 = vadd.f32 %v1562_v20, %v7967_v6  ;;  %v1326_v31 = vmul.f32 %v8004_v37, %v8004_v37  ;;  %v8024_v30 = vadd.f32 %v7241_v59, %v7816_v21  ;;  %5868 = vmatpush3.bf16.msra.mxu0 %v6277_v2 }
 0x17b   : > { %v8028_v40 = vadd.f32 %v7231_v54, %v7825_v57  ;;  %11141 = vst [vmem:[#allocation55_spill] sm:$0xff] %v8030_v19  ;;  %v2330_v56 = vpack.c.bf16 %v2237_v0, %v2234_v15  ;;  %v1563_v42 = vmul.f32 0.044715, %v1443_v36  ;;  %v1445_v39 = vmul.f32 %v1325_v11, %v7999_v12  ;;  %v6278_v15 = vld [vmem:[%s10983_s3 + $0x218] ss:$12 sps:$4 sm:$0xff]   ;;  %v8045_v0 = vpop.f32.mrb[46].mxu1 }
 0x17c   : > { %v1304_v20 = vmul.f32 %v8012_v33, %v8012_v33  ;;  %v8035_v60 = vpop.eup %6404  ;;  %v1802_v27 = vmul.f32 0.7978846, %v1682_v50  ;;  %v1446_v21 = vmul.f32 %v1326_v31, %v8004_v37  ;;  %v1305_v22 = vmul.f32 %v8024_v30, %v8024_v30  ;;  %11143 = vst [vmem:[#allocation57_spill] sm:$0xff] %v8045_v0  ;;  %5869 = vmatprep.subr.bf16.mxu0 %v6278_v15 }
 0x17d   : > { %11142 = vst [vmem:[#allocation56_spill] sm:$0xff] %v8035_v60  ;;  %v1307_v57 = vmul.f32 %v8028_v40, %v8028_v40  ;;  %v8047_v36 = vpop.eup %6406  ;;  %2976 = vmatmul.mubr.bf16.gmra.mrb[92].mxu1 %v2330_v56  ;;  %3426 = vmatmul.mubr.bf16.gmra.mrb[92].mxu0 %v2330_v56  ;;  %v1683_v11 = vadd.f32 %v1563_v42, %v7990_v58  ;;  %v1565_v50 = vmul.f32 0.044715, %v1445_v39 }
 0x17e   : > { %v1424_v31 = vmul.f32 %v1304_v20, %v8012_v33  ;;  %v8053_v19 = vadd.f32 %v7241_v59, %v7836_v24  ;;  %6416 = vtanh.f32 %v1802_v27  ;;  %v1566_v2 = vmul.f32 0.044715, %v1446_v21  ;;  %5870 = vmatpush3.bf16.msra.mxu0 %v6278_v15 }
 0x17f   : > { %v1425_v6 = vmul.f32 %v1305_v22, %v8024_v30  ;;  %v1427_v16 = vmul.f32 %v1307_v57, %v8028_v40  ;;  %v8057_v0 = vpop.eup %6408  ;;  %v1803_v1 = vmul.f32 0.7978846, %v1683_v11  ;;  %v1685_v56 = vadd.f32 %v1565_v50, %v7999_v12 }
 0x180   : > { %v1544_v42 = vmul.f32 0.044715, %v1424_v31  ;;  %v1308_v39 = vmul.f32 %v8053_v19, %v8053_v19  ;;  %v8062_v20 = vpop.eup %6410  ;;  %v1686_v24 = vadd.f32 %v1566_v2, %v8004_v37  ;;  %v2001_v22 = vadd.f32 1.0, %v7840_v63  ;;  %v8070_v31 = vpop.f32.mrb[47].mxu1 }
 0x181   : > { %v1545_v27 = vmul.f32 0.044715, %v1425_v6  ;;  %v1547_v21 = vmul.f32 0.044715, %v1427_v16  ;;  %v8066_v57 = vpop.eup %6412  ;;  %6418 = vtanh.f32 %v1803_v1  ;;  %v1805_v58 = vmul.f32 0.7978846, %v1685_v56 }
 0x182   : > { %v1664_v11 = vadd.f32 %v1544_v42, %v8012_v33  ;;  %v1428_v50 = vmul.f32 %v1308_v39, %v8053_v19  ;;  %11144 = vst [vmem:[#allocation58_spill] sm:$0xff] %v8070_v31  ;;  %v8072_v12 = vpop.eup %6414  ;;  %v1806_v60 = vmul.f32 0.7978846, %v1686_v24  ;;  %v2004_v63 = vadd.f32 1.0, %v7859_v46  ;;  %v8077_v56 = vpop.f32.mrb[48].mxu1 }
 0x183   : > { %v1665_v2 = vadd.f32 %v1545_v27, %v8024_v30  ;;  %v1667_v16 = vadd.f32 %v1547_v21, %v8028_v40  ;;  %6420 = vtanh.f32 %v1805_v58  ;;  %v2121_v1 = vmul.f32 0.5, %v2001_v22  ;;  %11145 = vst [vmem:[#allocation59_spill] sm:$0xff] %v8077_v56  ;;  %v11146_v27 = vld [vmem:[#allocation17_spill] sm:$0xff] }
 0x184   : > { %v1784_v6 = vmul.f32 0.7978846, %v1664_v11  ;;  %v1548_v15 = vmul.f32 0.044715, %v1428_v50  ;;  %6422 = vtanh.f32 %v1806_v60  ;;  %v2124_v37 = vmul.f32 0.5, %v2004_v63  ;;  %v11148_v50 = vld [vmem:[#allocation18_spill] sm:$0xff] }
 0x185   : > { %v1785_v42 = vmul.f32 0.7978846, %v1665_v2  ;;  %v1787_v39 = vmul.f32 0.7978846, %v1667_v16  ;;  %v2241_v24 = vmul.f32 %v2121_v1, %v7680_v17  ;;  %v8083_v21 = vadd.f32 %v11128_v3, %v11146_v27  ;;  %v6279_v46 = vld [vmem:[%s10983_s3 + $0x230] ss:$12 sps:$4 sm:$0xff]  }
 0x186   : > { %6424 = vtanh.f32 %v1784_v6  ;;  %v1668_v31 = vadd.f32 %v1548_v15, %v8053_v19  ;;  %v2244_v58 = vmul.f32 %v2124_v37, %v7700_v52  ;;  %v2000_v60 = vadd.f32 1.0, %v7829_v48  ;;  %5871 = vmatprep.subr.bf16.mxu0 %v6279_v46  ;;  %v11150_v52 = vld [vmem:[#allocation19_spill] sm:$0xff]  ;;  %v11153_v1 = vld [vmem:[#allocation20_spill] sm:$0xff]  ;;  %v11157_v27 = vld [vmem:[#allocation33_spill] sm:$0xff] }
 0x187   : > { %11147 = vst [vmem:[#allocation17_spill] sm:$0xff] %v8083_v21  ;;  %6426 = vtanh.f32 %v1785_v42  ;;  %v2003_v22 = vadd.f32 1.0, %v7849_v32  ;;  %v1328_v17 = vmul.f32 %v8083_v21, %v8083_v21  ;;  %v8095_v2 = vadd.f32 %v11133_v55, %v11148_v50  ;;  %5872 = vmatpush3.bf16.msra.mxu0 %v6279_v46  ;;  %v8103_v32 = vpop.f32.mrb[49].mxu1 }
 0x188   : > { %6428 = vtanh.f32 %v1787_v39  ;;  %v1788_v11 = vmul.f32 0.7978846, %v1668_v31  ;;  %v8097_v16 = vpop.eup %6416  ;;  %v2334_v63 = vpack.c.bf16 %v2244_v58, %v2241_v24  ;;  %v2120_v6 = vmul.f32 0.5, %v2000_v60  ;;  %11152 = vst [vmem:[#allocation60_spill] sm:$0xff] %v8103_v32  ;;  %v8112_v39 = vpop.f32.mrb[50].mxu1  ;;  %v11158_v58 = vld [vmem:[#allocation36_spill] sm:$0xff] }
 0x189   : > { %11149 = vst [vmem:[#allocation18_spill] sm:$0xff] %v8095_v2  ;;  %v2123_v15 = vmul.f32 0.5, %v2003_v22  ;;  %v8101_v48 = vadd.f32 %v11128_v3, %v11150_v52  ;;  %v1448_v37 = vmul.f32 %v1328_v17, %v8083_v21  ;;  %v1329_v31 = vmul.f32 %v8095_v2, %v8095_v2  ;;  %11155 = vst [vmem:[#allocation61_spill] sm:$0xff] %v8112_v39  ;;  %v8120_v17 = vpop.f32.mrb[51].mxu1 }
 0x18a   : > { %6430 = vtanh.f32 %v1788_v11  ;;  %v8110_v42 = vadd.f32 %v11133_v55, %v11153_v1  ;;  %v11156_v24 = vmov 0   ;;  %2985 = vmatprep.mubr.bf16.mxu1 %v2334_v63  ;;  %3433 = vmatprep.mubr.bf16.mxu0 %v2334_v63  ;;  %v2240_v46 = vmul.f32 %v2120_v6, %v11157_v27  ;;  %11159 = vst [vmem:[#allocation33_spill] sm:$0xff] %v8120_v17  ;;  %v8131_v6 = vpop.f32.mrb[52].mxu1 }
 0x18b   : > { %11151 = vst [vmem:[#allocation19_spill] sm:$0xff] %v8101_v48  ;;  %5054 = vmatprep.subr.bf16.mxu0 %v11156_v24  ;;  %v2243_v60 = vmul.f32 %v2123_v15, %v11158_v58  ;;  %v1331_v22 = vmul.f32 %v8101_v48, %v8101_v48  ;;  %v2007_v11 = vadd.f32 1.0, %v7900_v9  ;;  %v8122_v50 = vpop.eup %6418  ;;  %v1568_v52 = vmul.f32 0.044715, %v1448_v37  ;;  %11160 = vst [vmem:[#allocation36_spill] sm:$0xff] %v8131_v6 }
 0x18c   : > { %11154 = vst [vmem:[#allocation20_spill] sm:$0xff] %v8110_v42  ;;  %v1449_v1 = vmul.f32 %v1329_v31, %v8095_v2  ;;  %v1332_v39 = vmul.f32 %v8110_v42, %v8110_v42  ;;  %v8129_v63 = vadd.f32 %v7231_v54, %v7870_v4  ;;  %v8136_v9 = vadd.f32 %v7241_v59, %v7875_v26 }
 0x18d   : > { %v2333_v15 = vpack.c.bf16 %v2243_v60, %v2240_v46  ;;  %v1451_v27 = vmul.f32 %v1331_v22, %v8101_v48  ;;  %v8140_v37 = vadd.f32 %v7231_v54, %v7880_v53  ;;  %v8142_v31 = vpop.eup %6420  ;;  %v1688_v58 = vadd.f32 %v1568_v52, %v8083_v21  ;;  %v8158_v52 = vpop.f32.mrb[53].mxu1 }
 0x18e   : > { %11161 = vst [vmem:[#allocation62_spill] sm:$0xff] %v8142_v31  ;;  %v1569_v17 = vmul.f32 0.044715, %v1449_v1  ;;  %v1452_v4 = vmul.f32 %v1332_v39, %v8110_v42  ;;  %v1310_v46 = vmul.f32 %v8129_v63, %v8129_v63  ;;  %v8148_v60 = vpop.eup %6422  ;;  %v1311_v22 = vmul.f32 %v8136_v9, %v8136_v9  ;;  %11162 = vst [vmem:[#allocation63_spill] sm:$0xff] %v8158_v52 }
 0x18f   : > { %2986 = vmatmul.mubr.bf16.gmra.mrb[96].mxu1 %v2333_v15  ;;  %3434 = vmatmul.mubr.bf16.gmra.mrb[96].mxu0 %v2333_v15  ;;  %v1571_v26 = vmul.f32 0.044715, %v1451_v27  ;;  %v1313_v54 = vmul.f32 %v8140_v37, %v8140_v37  ;;  %v8156_v53 = vadd.f32 %v7241_v59, %v7884_v5  ;;  %v1808_v1 = vmul.f32 0.7978846, %v1688_v58  ;;  %v8164_v27 = vpop.f32.mrb[54].mxu1 }
 0x190   : > { %v8160_v39 = vpop.eup %6424  ;;  %v1689_v6 = vadd.f32 %v1569_v17, %v8095_v2  ;;  %v1572_v56 = vmul.f32 0.044715, %v1452_v4  ;;  %v1430_v15 = vmul.f32 %v1310_v46, %v8129_v63  ;;  %11163 = vst [vmem:[#allocation64_spill] sm:$0xff] %v8164_v27  ;;  %v1431_v21 = vmul.f32 %v1311_v22, %v8136_v9 }
 0x191   : > { %v8166_v32 = vpop.eup %6426  ;;  %v1691_v24 = vadd.f32 %v1571_v26, %v8101_v48  ;;  %v1433_v59 = vmul.f32 %v1313_v54, %v8140_v37  ;;  %v1314_v5 = vmul.f32 %v8156_v53, %v8156_v53  ;;  %6432 = vtanh.f32 %v1808_v1 }
 0x192   : > { %v8173_v52 = vpop.eup %6428  ;;  %v1809_v17 = vmul.f32 0.7978846, %v1689_v6  ;;  %v1692_v58 = vadd.f32 %v1572_v56, %v8110_v42  ;;  %v1550_v4 = vmul.f32 0.044715, %v1430_v15  ;;  %v1551_v27 = vmul.f32 0.044715, %v1431_v21 }
 0x193   : > { %v1811_v46 = vmul.f32 0.7978846, %v1691_v24  ;;  %v1553_v2 = vmul.f32 0.044715, %v1433_v59  ;;  %v1434_v31 = vmul.f32 %v1314_v5, %v8156_v53  ;;  %v2010_v48 = vadd.f32 1.0, %v7915_v38  ;;  %v8183_v15 = vpop.f32.mrb[55].mxu1 }
 0x194   : > { %v8177_v26 = vpop.eup %6430  ;;  %6434 = vtanh.f32 %v1809_v17  ;;  %v1812_v22 = vmul.f32 0.7978846, %v1692_v58  ;;  %v1670_v54 = vadd.f32 %v1550_v4, %v8129_v63  ;;  %v1671_v1 = vadd.f32 %v1551_v27, %v8136_v9  ;;  %v11164_v58 = vld [vmem:[#allocation21_spill] sm:$0xff]  ;;  %v8193_v27 = vpop.f32.mrb[56].mxu1 }
 0x195   : > { %6436 = vtanh.f32 %v1811_v46  ;;  %v1673_v6 = vadd.f32 %v1553_v2, %v8140_v37  ;;  %v1554_v56 = vmul.f32 0.044715, %v1434_v31  ;;  %v2127_v24 = vmul.f32 0.5, %v2007_v11  ;;  %11165 = vst [vmem:[#allocation21_spill] sm:$0xff] %v8193_v27 }
 0x196   : > { %6438 = vtanh.f32 %v1812_v22  ;;  %v1790_v21 = vmul.f32 0.7978846, %v1670_v54  ;;  %v2130_v59 = vmul.f32 0.5, %v2010_v48  ;;  %v1791_v5 = vmul.f32 0.7978846, %v1671_v1  ;;  %v11166_v1 = vld [vmem:[#allocation22_spill] sm:$0xff] }
 0x197   : > { %v1793_v42 = vmul.f32 0.7978846, %v1673_v6  ;;  %v1674_v17 = vadd.f32 %v1554_v56, %v8156_v53  ;;  %v8188_v4 = vadd.f32 %v11128_v3, %v11164_v58  ;;  %v2247_v38 = vmul.f32 %v2127_v24, %v7767_v7  ;;  %v8202_v7 = vpop.f32.mrb[57].mxu1  ;;  %v11168_v56 = vld [vmem:[#allocation23_spill] sm:$0xff] }
 0x198   : > { %6440 = vtanh.f32 %v1790_v21  ;;  %v2250_v2 = vmul.f32 %v2130_v59, %v7791_v34  ;;  %v2006_v31 = vadd.f32 1.0, %v7886_v13  ;;  %v2009_v46 = vadd.f32 1.0, %v7908_v47  ;;  %11167 = vst [vmem:[#allocation22_spill] sm:$0xff] %v8202_v7  ;;  %v8209_v24 = vpop.f32.mrb[58].mxu1 }
 0x199   : > { %6442 = vtanh.f32 %v1791_v5  ;;  %v1794_v11 = vmul.f32 0.7978846, %v1674_v17  ;;  %v1334_v48 = vmul.f32 %v8188_v4, %v8188_v4  ;;  %v8200_v6 = vadd.f32 %v11133_v55, %v11166_v1  ;;  %11169 = vst [vmem:[#allocation23_spill] sm:$0xff] %v8209_v24  ;;  %v11170_v5 = vld [vmem:[#allocation24_spill] sm:$0xff] }
 0x19a   : > { %6444 = vtanh.f32 %v1793_v42  ;;  %v2337_v22 = vpack.c.bf16 %v2250_v2, %v2247_v38  ;;  %v2126_v54 = vmul.f32 0.5, %v2006_v31  ;;  %v2129_v13 = vmul.f32 0.5, %v2009_v46 }
 0x19b   : > { %6446 = vtanh.f32 %v1794_v11  ;;  %v1454_v34 = vmul.f32 %v1334_v48, %v8188_v4  ;;  %v8207_v21 = vadd.f32 %v11128_v3, %v11168_v56  ;;  %v8211_v47 = vpop.eup %6432  ;;  %v1335_v59 = vmul.f32 %v8200_v6, %v8200_v6 }
 0x19c   : > { %2995 = vmatprep.mubr.bf16.mxu1 %v2337_v22  ;;  %3441 = vmatprep.mubr.bf16.mxu0 %v2337_v22  ;;  %v2246_v42 = vmul.f32 %v2126_v54, %v7740_v35  ;;  %v8218_v17 = vadd.f32 %v11133_v55, %v11170_v5  ;;  %v2013_v58 = vadd.f32 1.0, %v7969_v49  ;;  %v2249_v2 = vmul.f32 %v2129_v13, %v7771_v28  ;;  %v11171_v54 = vld [vmem:[#allocation25_spill] sm:$0xff]  ;;  %v8234_v49 = vpop.f32.mrb[59].mxu1 }
 0x19d   : > { %v1574_v38 = vmul.f32 0.044715, %v1454_v34  ;;  %v1337_v31 = vmul.f32 %v8207_v21, %v8207_v21  ;;  %v2016_v11 = vadd.f32 1.0, %v7985_v29  ;;  %v1455_v35 = vmul.f32 %v1335_v59, %v8200_v6  ;;  %11172 = vst [vmem:[#allocation24_spill] sm:$0xff] %v8234_v49 }
 0x19e   : > { %v8225_v48 = vpop.eup %6434  ;;  %v1338_v46 = vmul.f32 %v8218_v17, %v8218_v17  ;;  %v2133_v22 = vmul.f32 0.5, %v2013_v58  ;;  %v8232_v1 = vadd.f32 %v11128_v3, %v11171_v54  ;;  %v2336_v13 = vpack.c.bf16 %v2249_v2, %v2246_v42 }
 0x19f   : > { %v8236_v28 = vpop.eup %6436  ;;  %v1694_v34 = vadd.f32 %v1574_v38, %v8188_v4  ;;  %v1457_v29 = vmul.f32 %v1337_v31, %v8207_v21  ;;  %v2136_v56 = vmul.f32 0.5, %v2016_v11  ;;  %v1575_v59 = vmul.f32 0.044715, %v1455_v35 }
 0x1a0   : > { %v8240_v5 = vpop.eup %6438  ;;  %v1458_v24 = vmul.f32 %v1338_v46, %v8218_v17  ;;  %v2253_v58 = vmul.f32 %v2133_v22, %v7834_v41  ;;  %v1340_v54 = vmul.f32 %v8232_v1, %v8232_v1  ;;  %2996 = vmatmul.mubr.bf16.gmra.mrb[100].mxu1 %v2336_v13  ;;  %3442 = vmatmul.mubr.bf16.gmra.mrb[100].mxu0 %v2336_v13  ;;  %v2012_v42 = vadd.f32 1.0, %v7962_v44 }
 0x1a1   : > { %v1814_v7 = vmul.f32 0.7978846, %v1694_v34  ;;  %v1577_v49 = vmul.f32 0.044715, %v1457_v29  ;;  %v2256_v38 = vmul.f32 %v2136_v56, %v7855_v25  ;;  %v1695_v31 = vadd.f32 %v1575_v59, %v8200_v6 }
 0x1a2   : > { %v8248_v2 = vpop.eup %6440  ;;  %v1578_v11 = vmul.f32 0.044715, %v1458_v24  ;;  %v1460_v35 = vmul.f32 %v1340_v54, %v8232_v1  ;;  %v2015_v41 = vadd.f32 1.0, %v7974_v14  ;;  %v2132_v13 = vmul.f32 0.5, %v2012_v42  ;;  %v11173_v54 = vld [vmem:[#allocation26_spill] sm:$0xff] }
 0x1a3   : > { %v8253_v46 = vpop.eup %6442  ;;  %6448 = vtanh.f32 %v1814_v7  ;;  %v1697_v22 = vadd.f32 %v1577_v49, %v8207_v21  ;;  %v2340_v34 = vpack.c.bf16 %v2256_v38, %v2253_v58  ;;  %v1815_v25 = vmul.f32 0.7978846, %v1695_v31  ;;  %v11174_v49 = vld [vmem:[#allocation27_spill] sm:$0xff] }
 0x1a4   : > { %v8256_v29 = vpop.eup %6444  ;;  %v1698_v44 = vadd.f32 %v1578_v11, %v8218_v17  ;;  %v1580_v56 = vmul.f32 0.044715, %v1460_v35  ;;  %v2135_v27 = vmul.f32 0.5, %v2015_v41  ;;  %v2252_v14 = vmul.f32 %v2132_v13, %v7823_v18  ;;  %v11175_v35 = vld [vmem:[#allocation28_spill] sm:$0xff] }
 0x1a5   : > { %v8259_v59 = vpop.eup %6446  ;;  %v1817_v24 = vmul.f32 0.7978846, %v1697_v22  ;;  %3005 = vmatprep.mubr.bf16.mxu1 %v2340_v34  ;;  %3449 = vmatprep.mubr.bf16.mxu0 %v2340_v34  ;;  %v8264_v7 = vadd.f32 %v11133_v55, %v11173_v54  ;;  %v8268_v58 = vadd.f32 %v11128_v3, %v11174_v49  ;;  %6450 = vtanh.f32 %v1815_v25 }
 0x1a6   : > { %v1818_v38 = vmul.f32 0.7978846, %v1698_v44  ;;  %v1700_v42 = vadd.f32 %v1580_v56, %v8232_v1  ;;  %v2255_v31 = vmul.f32 %v2135_v27, %v7846_v10  ;;  %v8278_v41 = vadd.f32 %v11133_v55, %v11175_v35 }
 0x1a7   : > { %6452 = vtanh.f32 %v1817_v24  ;;  %v1341_v11 = vmul.f32 %v8264_v7, %v8264_v7  ;;  %v1343_v18 = vmul.f32 %v8268_v58, %v8268_v58  ;;  %v2019_v22 = vadd.f32 1.0, %v8062_v20 }
 0x1a8   : > { %6454 = vtanh.f32 %v1818_v38  ;;  %v2339_v3 = vpack.c.bf16 %v2255_v31, %v2252_v14  ;;  %v1344_v10 = vmul.f32 %v8278_v41, %v8278_v41  ;;  %v2022_v27 = vadd.f32 1.0, %v8072_v12 }
 0x1a9   : > { %v1461_v34 = vmul.f32 %v1341_v11, %v8264_v7  ;;  %v1463_v13 = vmul.f32 %v1343_v18, %v8268_v58  ;;  %v1820_v25 = vmul.f32 0.7978846, %v1700_v42  ;;  %v2139_v44 = vmul.f32 0.5, %v2019_v22  ;;  %v11176_v11 = vld [vmem:[#allocation2_spill] sm:$0xff] }
 0x1aa   : > { %3006 = vmatmul.mubr.bf16.gmra.mrb[104].mxu1 %v2339_v3  ;;  %3450 = vmatmul.mubr.bf16.gmra.mrb[104].mxu0 %v2339_v3  ;;  %v2018_v55 = vadd.f32 1.0, %v8057_v0  ;;  %v2021_v56 = vadd.f32 1.0, %v8066_v57  ;;  %v1464_v20 = vmul.f32 %v1344_v10, %v8278_v41  ;;  %v2142_v54 = vmul.f32 0.5, %v2022_v27 }
 0x1ab   : > { %v1581_v24 = vmul.f32 0.044715, %v1461_v34  ;;  %v1583_v14 = vmul.f32 0.044715, %v1463_v13  ;;  %v2259_v49 = vmul.f32 %v2139_v44, %v7913_v61  ;;  %v8291_v18 = vsub.s32 2, %v11176_v11  ;;  %v11178_v61 = vld [vmem:[#allocation3_spill] sm:$0xff] }
 0x1ac   : > { %v2138_v38 = vmul.f32 0.5, %v2018_v55  ;;  %v2141_v31 = vmul.f32 0.5, %v2021_v56  ;;  %v1584_v35 = vmul.f32 0.044715, %v1464_v20  ;;  %v2262_v57 = vmul.f32 %v2142_v54, %v7932_v23 }
 0x1ad   : > { %11177 = vst [vmem:[#allocation25_spill] sm:$0xff] %v8291_v18  ;;  %v8293_v12 = vpop.eup %6448  ;;  %v1701_v42 = vadd.f32 %v1581_v24, %v8264_v7  ;;  %v1703_v0 = vadd.f32 %v1583_v14, %v8268_v58  ;;  %6456 = vtanh.f32 %v1820_v25  ;;  %v8302_v34 = vrot.slane %v11178_v61, %v8291_v18  ;;  %v11179_v24 = vld [vmem:[#allocation29_spill] sm:$0xff]  ;;  %v11180_v25 = vld [vmem:[#allocation30_spill] sm:$0xff] }
 0x1ae   : > { %v2258_v3 = vmul.f32 %v2138_v38, %v7906_v43  ;;  %v2261_v22 = vmul.f32 %v2141_v31, %v7922_v45  ;;  %v1704_v27 = vadd.f32 %v1584_v35, %v8278_v41  ;;  %v2343_v44 = vpack.c.bf16 %v2262_v57, %v2259_v49  ;;  %v11181_v45 = vld [vmem:[#allocation31_spill] sm:$0xff]  ;;  %v11182_v49 = vld [vmem:[#allocation32_spill] sm:$0xff] }
 0x1af   : > { %v1821_v13 = vmul.f32 0.7978846, %v1701_v42  ;;  %v1823_v10 = vmul.f32 0.7978846, %v1703_v0  ;;  %v8305_v55 = vpop.eup %6450  ;;  %v8309_v23 = vadd.f32 %v11179_v24, %v8302_v34  ;;  %v8313_v43 = vadd.f32 %v8302_v34, %v11180_v25 }
 0x1b0   : > { %v2342_v56 = vpack.c.bf16 %v2261_v22, %v2258_v3  ;;  %v8317_v14 = vadd.f32 %v11181_v45, %v8302_v34  ;;  %v1824_v54 = vmul.f32 0.7978846, %v1704_v27  ;;  %3015 = vmatprep.mubr.bf16.mxu1 %v2343_v44  ;;  %3457 = vmatprep.mubr.bf16.mxu0 %v2343_v44  ;;  %v8323_v38 = vadd.f32 %v8302_v34, %v11182_v49 }
 0x1b1   : > { %v8319_v20 = vpop.eup %6452  ;;  %6458 = vtanh.f32 %v1821_v13  ;;  %v2025_v31 = vadd.f32 1.0, %v8166_v32  ;;  %v1234_v42 = vmul.f32 %v8309_v23, %v8309_v23  ;;  %v1228_v0 = vmul.f32 %v8313_v43, %v8313_v43 }
 0x1b2   : > { %v8326_v11 = vpop.eup %6454  ;;  %6460 = vtanh.f32 %v1823_v10  ;;  %3016 = vmatmul.mubr.bf16.gmra.mrb[108].mxu1 %v2342_v56  ;;  %3458 = vmatmul.mubr.bf16.gmra.mrb[108].mxu0 %v2342_v56  ;;  %v1237_v35 = vmul.f32 %v8317_v14, %v8317_v14  ;;  %v1231_v57 = vmul.f32 %v8323_v38, %v8323_v38  ;;  %v2028_v32 = vadd.f32 1.0, %v8177_v26  ;;  %v11183_v26 = vld [vmem:[#allocation34_spill] sm:$0xff] }
 0x1b3   : > { %6462 = vtanh.f32 %v1824_v54  ;;  %v2145_v3 = vmul.f32 0.5, %v2025_v31  ;;  %v1354_v22 = vmul.f32 %v1234_v42, %v8309_v23  ;;  %v1348_v61 = vmul.f32 %v1228_v0, %v8313_v43 }
 0x1b4   : > { %v1357_v13 = vmul.f32 %v1237_v35, %v8317_v14  ;;  %v2024_v10 = vadd.f32 1.0, %v8160_v39  ;;  %v1351_v27 = vmul.f32 %v1231_v57, %v8323_v38  ;;  %v2148_v44 = vmul.f32 0.5, %v2028_v32 }
 0x1b5   : > { %v2265_v56 = vmul.f32 %v2145_v3, %v8024_v30  ;;  %v2027_v24 = vadd.f32 1.0, %v8173_v52  ;;  %v1474_v25 = vmul.f32 0.044715, %v1354_v22  ;;  %v1468_v45 = vmul.f32 0.044715, %v1348_v61 }
 0x1b6   : > { %v1477_v54 = vmul.f32 0.044715, %v1357_v13  ;;  %v8346_v49 = vadd.f32 %v11183_v26, %v8302_v34  ;;  %v1471_v31 = vmul.f32 0.044715, %v1351_v27  ;;  %v2268_v42 = vmul.f32 %v2148_v44, %v8053_v19 }
 0x1b7   : > { %v2144_v0 = vmul.f32 0.5, %v2024_v10  ;;  %v2147_v35 = vmul.f32 0.5, %v2027_v24  ;;  %v8349_v39 = vpop.eup %6456  ;;  %v1594_v57 = vadd.f32 %v1474_v25, %v8309_v23  ;;  %v1588_v30 = vadd.f32 %v1468_v45, %v8313_v43 }
 0x1b8   : > { %v1597_v52 = vadd.f32 %v1477_v54, %v8317_v14  ;;  %v1246_v32 = vmul.f32 %v8346_v49, %v8346_v49  ;;  %v1591_v3 = vadd.f32 %v1471_v31, %v8323_v38  ;;  %v2346_v22 = vpack.c.bf16 %v2268_v42, %v2265_v56 }
 0x1b9   : > { %v2264_v61 = vmul.f32 %v2144_v0, %v8012_v33  ;;  %v2267_v19 = vmul.f32 %v2147_v35, %v8028_v40  ;;  %v1714_v13 = vmul.f32 0.7978846, %v1594_v57  ;;  %v1708_v10 = vmul.f32 0.7978846, %v1588_v30  ;;  %v11184_v40 = vld [vmem:[#allocation35_spill] sm:$0xff] }
 0x1ba   : > { %v1717_v27 = vmul.f32 0.7978846, %v1597_v52  ;;  %v1366_v44 = vmul.f32 %v1246_v32, %v8346_v49  ;;  %v1711_v25 = vmul.f32 0.7978846, %v1591_v3  ;;  %3025 = vmatprep.mubr.bf16.mxu1 %v2346_v22  ;;  %3465 = vmatprep.mubr.bf16.mxu0 %v2346_v22  ;;  %v2031_v54 = vadd.f32 1.0, %v8253_v46 }
 0x1bb   : > { %v8360_v24 = vpop.eup %6458  ;;  %v2345_v45 = vpack.c.bf16 %v2267_v19, %v2264_v61  ;;  %v2034_v26 = vadd.f32 1.0, %v8259_v59  ;;  %6464 = vtanh.f32 %v1714_v13  ;;  %v8368_v31 = vadd.f32 %v8302_v34, %v11184_v40 }
 0x1bc   : > { %v8364_v56 = vpop.eup %6460  ;;  %v1486_v33 = vmul.f32 0.044715, %v1366_v44  ;;  %v2030_v42 = vadd.f32 1.0, %v8248_v2  ;;  %6466 = vtanh.f32 %v1708_v10  ;;  %v2151_v35 = vmul.f32 0.5, %v2031_v54 }
 0x1bd   : > { %v8371_v0 = vpop.eup %6462  ;;  %3026 = vmatmul.mubr.bf16.gmra.mrb[112].mxu1 %v2345_v45  ;;  %3466 = vmatmul.mubr.bf16.gmra.mrb[112].mxu0 %v2345_v45  ;;  %v2154_v57 = vmul.f32 0.5, %v2034_v26  ;;  %v2033_v46 = vadd.f32 1.0, %v8256_v29  ;;  %6468 = vtanh.f32 %v1717_v27  ;;  %v1240_v30 = vmul.f32 %v8368_v31, %v8368_v31  ;;  %v11185_v29 = vld [vmem:[#allocation37_spill] sm:$0xff]  ;;  %v11186_v45 = vld [vmem:[#allocation38_spill] sm:$0xff] }
 0x1be   : > { %v1606_v59 = vadd.f32 %v1486_v33, %v8346_v49  ;;  %v2150_v52 = vmul.f32 0.5, %v2030_v42  ;;  %6470 = vtanh.f32 %v1711_v25  ;;  %v2271_v32 = vmul.f32 %v2151_v35, %v8136_v9  ;;  %v11188_v35 = vld [vmem:[#allocation40_spill] sm:$0xff] }
 0x1bf   : > { %v2274_v2 = vmul.f32 %v2154_v57, %v8156_v53  ;;  %v2153_v3 = vmul.f32 0.5, %v2033_v46  ;;  %v1360_v61 = vmul.f32 %v1240_v30, %v8368_v31  ;;  %v8383_v13 = vadd.f32 %v11185_v29, %v8302_v34  ;;  %v11189_v46 = vld [vmem:[#allocation12_spill] sm:$0xff] }
 0x1c0   : > { %v1726_v22 = vmul.f32 0.7978846, %v1606_v59  ;;  %v2270_v19 = vmul.f32 %v2150_v52, %v8129_v63  ;;  %v2037_v44 = vadd.f32 1.0, %v7958_v62  ;;  %v2040_v25 = vadd.f32 1.0, %v8047_v36  ;;  %v11190_v52 = vld [vmem:[#allocation39_spill] sm:$0xff] }
 0x1c1   : > { %v2349_v10 = vpack.c.bf16 %v2274_v2, %v2271_v32  ;;  %v2273_v27 = vmul.f32 %v2153_v3, %v8140_v37  ;;  %v1480_v9 = vmul.f32 0.044715, %v1360_v61  ;;  %v1249_v53 = vmul.f32 %v8383_v13, %v8383_v13  ;;  %v11187_v37 = vld [vmem:[#allocation6_spill] sm:$0xff] }
 0x1c2   : > { %6472 = vtanh.f32 %v1726_v22  ;;  %v8392_v54 = vadd.f32 %v8302_v34, %v11186_v45  ;;  %v2157_v26 = vmul.f32 0.5, %v2037_v44  ;;  %v2160_v33 = vmul.f32 0.5, %v2040_v25  ;;  %v11191_v25 = vld [vmem:[#allocation56_spill] sm:$0xff] }
 0x1c3   : > { %3035 = vmatprep.mubr.bf16.mxu1 %v2349_v10  ;;  %3473 = vmatprep.mubr.bf16.mxu0 %v2349_v10  ;;  %v2348_v63 = vpack.c.bf16 %v2273_v27, %v2270_v19  ;;  %v8396_v40 = vrot.slane %v11187_v37, %v8291_v18  ;;  %v1600_v62 = vadd.f32 %v1480_v9, %v8368_v31  ;;  %v2036_v2 = vadd.f32 1.0, %v7926_v51 }
 0x1c4   : > { %v1369_v36 = vmul.f32 %v1249_v53, %v8383_v13  ;;  %v1243_v42 = vmul.f32 %v8392_v54, %v8392_v54  ;;  %v8404_v57 = vadd.f32 %v8302_v34, %v11188_v35  ;;  %v2277_v59 = vmul.f32 %v2157_v26, %v11189_v46 }
 0x1c5   : > { %3036 = vmatmul.mubr.bf16.gmra.mrb[116].mxu1 %v2348_v63  ;;  %3474 = vmatmul.mubr.bf16.gmra.mrb[116].mxu0 %v2348_v63  ;;  %v2280_v30 = vmul.f32 %v2160_v33, %v7256_v8  ;;  %v8410_v32 = vadd.f32 %v11190_v52, %v8396_v40  ;;  %v6465_v3 = vpop.eup %6464  ;;  %v1720_v22 = vmul.f32 0.7978846, %v1600_v62  ;;  %v2039_v9 = vadd.f32 1.0, %v11191_v25 }
 0x1c6   : > { %v1489_v61 = vmul.f32 0.044715, %v1369_v36  ;;  %v1363_v19 = vmul.f32 %v1243_v42, %v8392_v54  ;;  %v1252_v29 = vmul.f32 %v8404_v57, %v8404_v57  ;;  %v8416_v10 = vpop.eup %6466  ;;  %v1954_v27 = vadd.f32 1.0, %v6465_v3 }
 0x1c7   : > { %v2352_v44 = vpack.c.bf16 %v2280_v30, %v2277_v59  ;;  %v1258_v8 = vmul.f32 %v8410_v32, %v8410_v32  ;;  %v6469_v53 = vpop.eup %6468  ;;  %6474 = vtanh.f32 %v1720_v22  ;;  %v2156_v36 = vmul.f32 0.5, %v2036_v2  ;;  %v11192_v22 = vld [vmem:[#allocation11_spill] sm:$0xff] }
 0x1c8   : > { %v1609_v51 = vadd.f32 %v1489_v61, %v8383_v13  ;;  %v1483_v45 = vmul.f32 0.044715, %v1363_v19  ;;  %v1372_v63 = vmul.f32 %v1252_v29, %v8404_v57  ;;  %v8423_v26 = vpop.eup %6470  ;;  %v2074_v33 = vmul.f32 0.5, %v1954_v27 }
 0x1c9   : > { %v1957_v37 = vadd.f32 1.0, %v6469_v53  ;;  %3045 = vmatprep.mubr.bf16.mxu1 %v2352_v44  ;;  %3481 = vmatprep.mubr.bf16.mxu0 %v2352_v44  ;;  %v1378_v62 = vmul.f32 %v1258_v8, %v8410_v32  ;;  %v2159_v59 = vmul.f32 0.5, %v2039_v9  ;;  %v2276_v61 = vmul.f32 %v2156_v36, %v11192_v22  ;;  %v11193_v44 = vld [vmem:[#allocation13_spill] sm:$0xff] }
 0x1ca   : > { %v1729_v42 = vmul.f32 0.7978846, %v1609_v51  ;;  %v1603_v35 = vadd.f32 %v1483_v45, %v8392_v54  ;;  %v1492_v46 = vmul.f32 0.044715, %v1372_v63  ;;  %v2194_v30 = vmul.f32 %v2074_v33, %v8309_v23  ;;  %v11194_v9 = vld [vmem:[#allocation41_spill] sm:$0xff] }
 0x1cb   : > { %v2077_v52 = vmul.f32 0.5, %v1957_v37  ;;  %v1498_v3 = vmul.f32 0.044715, %v1378_v62  ;;  %v2279_v8 = vmul.f32 %v2159_v59, %v11193_v44  ;;  %v8437_v53 = vadd.f32 %v11194_v9, %v8396_v40  ;;  %v11197_v59 = vld [vmem:[#allocation14_spill] sm:$0xff] }
 0x1cc   : > { %v8429_v19 = vpop.eup %6472  ;;  %6476 = vtanh.f32 %v1729_v42  ;;  %v1723_v29 = vmul.f32 0.7978846, %v1603_v35  ;;  %v1612_v27 = vadd.f32 %v1492_v46, %v8404_v57  ;;  %v2043_v23 = vadd.f32 1.0, %v8122_v50  ;;  %v11195_v42 = vld [vmem:[#allocation42_spill] sm:$0xff]  ;;  %v11196_v50 = vld [vmem:[#allocation43_spill] sm:$0xff] }
 0x1cd   : > { %v2197_v2 = vmul.f32 %v2077_v52, %v8317_v14  ;;  %v1618_v25 = vadd.f32 %v1498_v3, %v8410_v32  ;;  %v2351_v45 = vpack.c.bf16 %v2279_v8, %v2276_v61  ;;  %v2046_v63 = vadd.f32 1.0, %v8148_v60  ;;  %v11198_v52 = vld [vmem:[#allocation44_spill] sm:$0xff] }
 0x1ce   : > { %6478 = vtanh.f32 %v1723_v29  ;;  %v1732_v51 = vmul.f32 0.7978846, %v1612_v27  ;;  %v1261_v62 = vmul.f32 %v8437_v53, %v8437_v53  ;;  %v2163_v14 = vmul.f32 0.5, %v2043_v23  ;;  %v11199_v61 = vld [vmem:[#allocation16_spill] sm:$0xff]  ;;  %v11201_v23 = vld [vmem:[#allocation45_spill] sm:$0xff] }
 0x1cf   : > { %v8441_v33 = vpack.c.bf16 %v2197_v2, %v2194_v30  ;;  %v1738_v37 = vmul.f32 0.7978846, %v1618_v25  ;;  %3046 = vmatmul.mubr.bf16.gmra.mrb[120].mxu1 %v2351_v45  ;;  %3482 = vmatmul.mubr.bf16.gmra.mrb[120].mxu0 %v2351_v45  ;;  %v2166_v36 = vmul.f32 0.5, %v2046_v63  ;;  %v8447_v35 = vadd.f32 %v8302_v34, %v11195_v42  ;;  %v11200_v25 = vld [vmem:[#allocation62_spill] sm:$0xff] }
 0x1d0   : > { %6480 = vtanh.f32 %v1732_v51  ;;  %v8451_v46 = vadd.f32 %v11196_v50, %v8396_v40  ;;  %v1381_v60 = vmul.f32 %v1261_v62, %v8437_v53  ;;  %v2283_v30 = vmul.f32 %v2163_v14, %v11197_v59 }
 0x1d1   : > { %6482 = vtanh.f32 %v1738_v37  ;;  %v8457_v3 = vadd.f32 %v8396_v40, %v11198_v52  ;;  %v8459_v22 = vpop.eup %6474  ;;  %v2286_v29 = vmul.f32 %v2166_v36, %v11199_v61  ;;  %v1255_v34 = vmul.f32 %v8447_v35, %v8447_v35 }
 0x1d2   : > { %v1270_v27 = vmul.f32 %v8451_v46, %v8451_v46  ;;  %v2042_v44 = vadd.f32 1.0, %v8097_v16  ;;  %v1501_v8 = vmul.f32 0.044715, %v1381_v60  ;;  %v2045_v9 = vadd.f32 1.0, %v11200_v25 }
 0x1d3   : > { %v1264_v2 = vmul.f32 %v8457_v3, %v8457_v3  ;;  %v8472_v51 = vadd.f32 %v11201_v23, %v8396_v40  ;;  %v2355_v45 = vpack.c.bf16 %v2286_v29, %v2283_v30  ;;  %v1375_v63 = vmul.f32 %v1255_v34, %v8447_v35  ;;  %v11202_v30 = vld [vmem:[#allocation9_spill] sm:$0xff] }
 0x1d4   : > { %v1390_v37 = vmul.f32 %v1270_v27, %v8451_v46  ;;  %v2162_v62 = vmul.f32 0.5, %v2042_v44  ;;  %v1621_v14 = vadd.f32 %v1501_v8, %v8437_v53  ;;  %v2165_v36 = vmul.f32 0.5, %v2045_v9  ;;  %v11203_v27 = vld [vmem:[#allocation15_spill] sm:$0xff] }
 0x1d5   : > { %v1384_v16 = vmul.f32 %v1264_v2, %v8457_v3  ;;  %v1273_v42 = vmul.f32 %v8472_v51, %v8472_v51  ;;  %3055 = vmatprep.mubr.bf16.mxu1 %v2355_v45  ;;  %3489 = vmatprep.mubr.bf16.mxu0 %v2355_v45  ;;  %v1495_v60 = vmul.f32 0.044715, %v1375_v63  ;;  %v2049_v61 = vadd.f32 1.0, %v8225_v48 }
 0x1d6   : > { %v8480_v50 = vpop.eup %6476  ;;  %v1510_v59 = vmul.f32 0.044715, %v1390_v37  ;;  %v2282_v52 = vmul.f32 %v2162_v62, %v11202_v30  ;;  %v1741_v29 = vmul.f32 0.7978846, %v1621_v14  ;;  %v2285_v44 = vmul.f32 %v2165_v36, %v11203_v27 }
 0x1d7   : > { %v1504_v34 = vmul.f32 0.044715, %v1384_v16  ;;  %v1393_v8 = vmul.f32 %v1273_v42, %v8472_v51  ;;  %v1615_v25 = vadd.f32 %v1495_v60, %v8447_v35  ;;  %v2052_v23 = vadd.f32 1.0, %v8240_v5  ;;  %v11204_v42 = vld [vmem:[#allocation18_spill] sm:$0xff] }
 0x1d8   : > { %v8486_v2 = vpop.eup %6478  ;;  %v1630_v9 = vadd.f32 %v1510_v59, %v8451_v46  ;;  %v2169_v45 = vmul.f32 0.5, %v2049_v61  ;;  %6484 = vtanh.f32 %v1741_v29  ;;  %v2354_v37 = vpack.c.bf16 %v2285_v44, %v2282_v52  ;;  %v11205_v59 = vld [vmem:[#allocation46_spill] sm:$0xff]  ;;  %v11206_v52 = vld [vmem:[#allocation47_spill] sm:$0xff] }
 0x1d9   : > { %v1624_v63 = vadd.f32 %v1504_v34, %v8457_v3  ;;  %v1513_v48 = vmul.f32 0.044715, %v1393_v8  ;;  %v1735_v14 = vmul.f32 0.7978846, %v1615_v25  ;;  %v2172_v36 = vmul.f32 0.5, %v2052_v23  ;;  %v11208_v34 = vld [vmem:[#allocation20_spill] sm:$0xff] }
 0x1da   : > { %v8492_v62 = vpop.eup %6480  ;;  %v1750_v16 = vmul.f32 0.7978846, %v1630_v9  ;;  %v2289_v30 = vmul.f32 %v2169_v45, %v11204_v42  ;;  %3056 = vmatmul.mubr.bf16.gmra.mrb[124].mxu1 %v2354_v37  ;;  %3490 = vmatmul.mubr.bf16.gmra.mrb[124].mxu0 %v2354_v37  ;;  %v8500_v61 = vadd.f32 %v8396_v40, %v11205_v59  ;;  %v8504_v29 = vadd.f32 %v11206_v52, %v8396_v40  ;;  %v11209_v8 = vld [vmem:[#allocation48_spill] sm:$0xff]  ;;  %v11210_v59 = vld [vmem:[#allocation49_spill] sm:$0xff] }
 0x1db   : > { %v8495_v27 = vpop.eup %6482  ;;  %v1744_v60 = vmul.f32 0.7978846, %v1624_v63  ;;  %v1633_v5 = vadd.f32 %v1513_v48, %v8472_v51  ;;  %6486 = vtanh.f32 %v1735_v14  ;;  %v2292_v44 = vmul.f32 %v2172_v36, %v11208_v34 }
 0x1dc   : > { %11207 = vst [vmem:[#allocation26_spill] sm:$0xff] %v8504_v29  ;;  %v8509_v25 = vadd.f32 %v8396_v40, %v11209_v8  ;;  %v2048_v9 = vadd.f32 1.0, %v8211_v47  ;;  %6488 = vtanh.f32 %v1750_v16  ;;  %v1267_v45 = vmul.f32 %v8500_v61, %v8500_v61 }
 0x1dd   : > { %v1753_v23 = vmul.f32 0.7978846, %v1633_v5  ;;  %v1282_v63 = vmul.f32 %v8504_v29, %v8504_v29  ;;  %6490 = vtanh.f32 %v1744_v60  ;;  %v2358_v37 = vpack.c.bf16 %v2292_v44, %v2289_v30 }
 0x1de   : > { %v1276_v48 = vmul.f32 %v8509_v25, %v8509_v25  ;;  %v2051_v14 = vadd.f32 1.0, %v8236_v28  ;;  %v1387_v36 = vmul.f32 %v1267_v45, %v8500_v61  ;;  %v2168_v16 = vmul.f32 0.5, %v2048_v9  ;;  %v11212_v28 = vld [vmem:[#allocation17_spill] sm:$0xff]  ;;  %v11213_v45 = vld [vmem:[#allocation19_spill] sm:$0xff] }
 0x1df   : > { %6492 = vtanh.f32 %v1753_v23  ;;  %v1402_v47 = vmul.f32 %v1282_v63, %v8504_v29  ;;  %3065 = vmatprep.mubr.bf16.mxu1 %v2358_v37  ;;  %3497 = vmatprep.mubr.bf16.mxu0 %v2358_v37  ;;  %v8524_v60 = vadd.f32 %v11210_v59, %v8396_v40  ;;  %v2055_v30 = vadd.f32 1.0, %v8305_v55 }
 0x1e0   : > { %v1396_v42 = vmul.f32 %v1276_v48, %v8509_v25  ;;  %v2171_v5 = vmul.f32 0.5, %v2051_v14  ;;  %v1507_v52 = vmul.f32 0.044715, %v1387_v36  ;;  %v2288_v44 = vmul.f32 %v2168_v16, %v11212_v28  ;;  %v11214_v36 = vld [vmem:[#allocation50_spill] sm:$0xff] }
 0x1e1   : > { %11211 = vst [vmem:[#allocation27_spill] sm:$0xff] %v8524_v60  ;;  %v1522_v34 = vmul.f32 0.044715, %v1402_v47  ;;  %v2058_v8 = vadd.f32 1.0, %v8326_v11  ;;  %v1285_v63 = vmul.f32 %v8524_v60, %v8524_v60  ;;  %v2175_v37 = vmul.f32 0.5, %v2055_v30 }
 0x1e2   : > { %v1516_v23 = vmul.f32 0.044715, %v1396_v42  ;;  %v2291_v9 = vmul.f32 %v2171_v5, %v11213_v45  ;;  %v8532_v48 = vpop.eup %6484  ;;  %v1627_v14 = vadd.f32 %v1507_v52, %v8500_v61  ;;  %v8538_v47 = vadd.f32 %v8396_v40, %v11214_v36 }
 0x1e3   : > { %v1642_v59 = vadd.f32 %v1522_v34, %v8504_v29  ;;  %v2178_v55 = vmul.f32 0.5, %v2058_v8  ;;  %v1405_v42 = vmul.f32 %v1285_v63, %v8524_v60  ;;  %v2295_v5 = vmul.f32 %v2175_v37, %v8200_v6 }
 0x1e4   : > { %v1636_v11 = vadd.f32 %v1516_v23, %v8509_v25  ;;  %v2357_v16 = vpack.c.bf16 %v2291_v9, %v2288_v44  ;;  %v1747_v28 = vmul.f32 0.7978846, %v1627_v14  ;;  %v1279_v52 = vmul.f32 %v8538_v47, %v8538_v47  ;;  %v11215_v23 = vld [vmem:[#allocation8_spill] sm:$0xff] }
 0x1e5   : > { %v1762_v30 = vmul.f32 0.7978846, %v1642_v59  ;;  %v2298_v45 = vmul.f32 %v2178_v55, %v8218_v17  ;;  %v8546_v34 = vpop.eup %6486  ;;  %v1525_v40 = vmul.f32 0.044715, %v1405_v42  ;;  %v8550_v44 = vrot.slane %v11215_v23, %v8291_v18  ;;  %v11216_v55 = vld [vmem:[#allocation51_spill] sm:$0xff] }
 0x1e6   : > { %v1756_v8 = vmul.f32 0.7978846, %v1636_v11  ;;  %3066 = vmatmul.mubr.bf16.gmra.mrb[128].mxu1 %v2357_v16  ;;  %3498 = vmatmul.mubr.bf16.gmra.mrb[128].mxu0 %v2357_v16  ;;  %v2054_v9 = vadd.f32 1.0, %v8293_v12  ;;  %v8553_v6 = vpop.eup %6488  ;;  %6494 = vtanh.f32 %v1747_v28  ;;  %v1399_v17 = vmul.f32 %v1279_v52, %v8538_v47  ;;  %v11217_v11 = vld [vmem:[#allocation52_spill] sm:$0xff]  ;;  %v11218_v52 = vld [vmem:[#allocation53_spill] sm:$0xff] }
 0x1e7   : > { %v2361_v63 = vpack.c.bf16 %v2298_v45, %v2295_v5  ;;  %v2057_v37 = vadd.f32 1.0, %v8319_v20  ;;  %v8557_v14 = vpop.eup %6490  ;;  %6496 = vtanh.f32 %v1762_v30  ;;  %v1645_v59 = vadd.f32 %v1525_v40, %v8524_v60 }
 0x1e8   : > { %v8562_v36 = vadd.f32 %v11216_v55, %v8550_v44  ;;  %v8566_v12 = vadd.f32 %v8550_v44, %v11217_v11  ;;  %6498 = vtanh.f32 %v1756_v8  ;;  %v1519_v42 = vmul.f32 0.044715, %v1399_v17 }
 0x1e9   : > { %v8568_v16 = vpop.eup %6492  ;;  %3075 = vmatprep.mubr.bf16.mxu1 %v2361_v63  ;;  %3505 = vmatprep.mubr.bf16.mxu0 %v2361_v63  ;;  %v2174_v20 = vmul.f32 0.5, %v2054_v9  ;;  %v2177_v5 = vmul.f32 0.5, %v2057_v37  ;;  %v1765_v28 = vmul.f32 0.7978846, %v1645_v59  ;;  %v8576_v40 = vadd.f32 %v11218_v52, %v8550_v44 }
 0x1ea   : > { %v1294_v30 = vmul.f32 %v8562_v36, %v8562_v36  ;;  %v1288_v45 = vmul.f32 %v8566_v12, %v8566_v12  ;;  %v1639_v23 = vadd.f32 %v1519_v42, %v8538_v47  ;;  %v2061_v9 = vadd.f32 1.0, %v8360_v24 }
 0x1eb   : > { %v2294_v8 = vmul.f32 %v2174_v20, %v8188_v4  ;;  %v2297_v63 = vmul.f32 %v2177_v5, %v8207_v21  ;;  %6500 = vtanh.f32 %v1765_v28  ;;  %v1297_v59 = vmul.f32 %v8576_v40, %v8576_v40  ;;  %v11219_v21 = vld [vmem:[#allocation10_spill] sm:$0xff] }
 0x1ec   : > { %v1414_v17 = vmul.f32 %v1294_v30, %v8562_v36  ;;  %v1408_v37 = vmul.f32 %v1288_v45, %v8566_v12  ;;  %v1759_v55 = vmul.f32 0.7978846, %v1639_v23  ;;  %v2064_v52 = vadd.f32 1.0, %v8371_v0  ;;  %v11220_v28 = vld [vmem:[#allocation54_spill] sm:$0xff] }
 0x1ed   : > { %v2360_v11 = vpack.c.bf16 %v2297_v63, %v2294_v8  ;;  %v2181_v60 = vmul.f32 0.5, %v2061_v9  ;;  %v1417_v4 = vmul.f32 %v1297_v59, %v8576_v40  ;;  %v8590_v24 = vadd.f32 %v8550_v44, %v11219_v21 }
 0x1ee   : > { %v1534_v42 = vmul.f32 0.044715, %v1414_v17  ;;  %v1528_v29 = vmul.f32 0.044715, %v1408_v37  ;;  %6502 = vtanh.f32 %v1759_v55  ;;  %v2184_v20 = vmul.f32 0.5, %v2064_v52 }
 0x1ef   : > { %3076 = vmatmul.mubr.bf16.gmra.mrb[132].mxu1 %v2360_v11  ;;  %3506 = vmatmul.mubr.bf16.gmra.mrb[132].mxu0 %v2360_v11  ;;  %v2301_v5 = vmul.f32 %v2181_v60, %v8264_v7  ;;  %v8595_v30 = vadd.f32 %v11220_v28, %v8550_v44  ;;  %v1537_v23 = vmul.f32 0.044715, %v1417_v4  ;;  %v1291_v8 = vmul.f32 %v8590_v24, %v8590_v24  ;;  %v11222_v7 = vld [vmem:[#allocation55_spill] sm:$0xff] }
 0x1f0   : > { %v1654_v0 = vadd.f32 %v1534_v42, %v8562_v36  ;;  %v1648_v45 = vadd.f32 %v1528_v29, %v8566_v12  ;;  %v8601_v63 = vpop.eup %6494  ;;  %v2304_v9 = vmul.f32 %v2184_v20, %v8278_v41  ;;  %v8608_v60 = vadd.f32 %v8550_v44, %v11222_v7 }
 0x1f1   : > { %11221 = vst [vmem:[#allocation28_spill] sm:$0xff] %v8595_v30  ;;  %v1306_v17 = vmul.f32 %v8595_v30, %v8595_v30  ;;  %v2060_v37 = vadd.f32 1.0, %v8349_v39  ;;  %v8611_v59 = vpop.eup %6496  ;;  %v1657_v11 = vadd.f32 %v1537_v23, %v8576_v40  ;;  %v1411_v52 = vmul.f32 %v1291_v8, %v8590_v24  ;;  %v8615_v42 = vpop.f32.mrb[60].mxu0 }
 0x1f2   : > { %11223 = vst [vmem:[#allocation2_spill] sm:$0xff] %v8608_v60  ;;  %v1774_v29 = vmul.f32 0.7978846, %v1654_v0  ;;  %v1768_v55 = vmul.f32 0.7978846, %v1648_v45  ;;  %11224 = vst [vmem:[#allocation3_spill] sm:$0xff] %v8615_v42  ;;  %v8617_v41 = vpop.eup %6498  ;;  %v2364_v4 = vpack.c.bf16 %v2304_v9, %v2301_v5  ;;  %v1300_v20 = vmul.f32 %v8608_v60, %v8608_v60 }
 0x1f3   : > { %v1426_v21 = vmul.f32 %v1306_v17, %v8595_v30  ;;  %v2063_v39 = vadd.f32 1.0, %v8364_v56  ;;  %v3365_v28 = vpop.f32.mrb[61].mxu0  ;;  %v1777_v0 = vmul.f32 0.7978846, %v1657_v11  ;;  %v1531_v45 = vmul.f32 0.044715, %v1411_v52 }
 0x1f4   : > { %6504 = vtanh.f32 %v1774_v29  ;;  %v2180_v7 = vmul.f32 0.5, %v2060_v37  ;;  %v8623_v23 = vpop.f32.mrb[62].mxu0  ;;  %3085 = vmatprep.mubr.bf16.mxu1 %v2364_v4  ;;  %3513 = vmatprep.mubr.bf16.mxu0 %v2364_v4  ;;  %v1420_v5 = vmul.f32 %v1300_v20, %v8608_v60  ;;  %v11226_v11 = vld [vmem:[#allocation57_spill] sm:$0xff]  ;;  %v1951_v28 = vadd.f32 1.0, %v8423_v26 }
 0x1f5   : > { %11225 = vst [vmem:[#allocation29_spill] sm:$0xff] %v8623_v23  ;;  %6506 = vtanh.f32 %v1768_v55  ;;  %v1546_v8 = vmul.f32 0.044715, %v1426_v21  ;;  %v2183_v9 = vmul.f32 0.5, %v2063_v39  ;;  %v3368_v17 = vpop.f32.mrb[63].mxu0  ;;  %v8626_v42 = vpop.eup %6500  ;;  %v1651_v56 = vadd.f32 %v1531_v45, %v8590_v24 }
 0x1f6   : > { %6508 = vtanh.f32 %v1777_v0  ;;  %v2300_v29 = vmul.f32 %v2180_v7, %v8232_v1  ;;  %v8632_v37 = vadd.f32 %v11226_v11, %v8550_v44  ;;  %v1540_v52 = vmul.f32 0.044715, %v1420_v5  ;;  %v11228_v0 = vld [vmem:[#allocation58_spill] sm:$0xff]  ;;  %v11229_v11 = vld [vmem:[#allocation7_spill] sm:$0xff] }
 0x1f7   : > { %v1666_v55 = vadd.f32 %v1546_v8, %v8595_v30  ;;  %v2303_v4 = vmul.f32 %v2183_v9, %v8268_v58  ;;  %v1948_v21 = vadd.f32 1.0, %v8416_v10  ;;  %v1771_v20 = vmul.f32 0.7978846, %v1651_v56 }
 0x1f8   : > { %11227 = vst [vmem:[#allocation30_spill] sm:$0xff] %v8632_v37  ;;  %v1309_v39 = vmul.f32 %v8632_v37, %v8632_v37  ;;  %v8642_v1 = vadd.f32 %v8550_v44, %v11228_v0  ;;  %v8644_v45 = vpop.eup %6502  ;;  %v1660_v8 = vadd.f32 %v1540_v52, %v8608_v60  ;;  %v2071_v10 = vmul.f32 0.5, %v1951_v28  ;;  %v11232_v28 = vld [vmem:[#allocation59_spill] sm:$0xff] }
 0x1f9   : > { %v1786_v7 = vmul.f32 0.7978846, %v1666_v55  ;;  %v2363_v5 = vpack.c.bf16 %v2303_v4, %v2300_v29  ;;  %v2068_v17 = vmul.f32 0.5, %v1948_v21  ;;  %6510 = vtanh.f32 %v1771_v20  ;;  %v11231_v20 = vld [vmem:[#allocation60_spill] sm:$0xff] }
 0x1fa   : > { %v1429_v58 = vmul.f32 %v1309_v39, %v8632_v37  ;;  %v1303_v9 = vmul.f32 %v8642_v1, %v8642_v1  ;;  %v1780_v26 = vmul.f32 0.7978846, %v1660_v8  ;;  %v8653_v55 = vrot.slane %v11229_v11, %v8291_v18 }
 0x1fb   : > { %6512 = vtanh.f32 %v1786_v7  ;;  %3086 = vmatmul.mubr.bf16.gmra.mrb[136].mxu1 %v2363_v5  ;;  %3514 = vmatmul.mubr.bf16.gmra.mrb[136].mxu0 %v2363_v5  ;;  %v2188_v56 = vmul.f32 %v2068_v17, %v8313_v43  ;;  %v2191_v29 = vmul.f32 %v2071_v10, %v8323_v38  ;;  %v11230_v21 = vmov 0   ;;  %v11234_v43 = vld [vmem:[#allocation61_spill] sm:$0xff] }
 0x1fc   : > { %v1549_v52 = vmul.f32 0.044715, %v1429_v58  ;;  %v1423_v4 = vmul.f32 %v1303_v9, %v8642_v1  ;;  %3128 = vmatprep.mubr.bf16.mxu1 %v11230_v21  ;;  %v8660_v39 = vadd.f32 %v8550_v44, %v11231_v20  ;;  %6514 = vtanh.f32 %v1780_v26 }
 0x1fd   : > { %v8664_v0 = vadd.f32 %v11232_v28, %v8653_v55  ;;  %v8668_v7 = vadd.f32 %v11234_v43, %v8653_v55  ;;  %v1960_v8 = vadd.f32 1.0, %v8459_v22  ;;  %v2308_v17 = vpack.c.bf16 %v2191_v29, %v2188_v56  ;;  %v11236_v29 = vld [vmem:[#allocation33_spill] sm:$0xff] }
 0x1fe   : > { %v8671_v38 = vpop.eup %6504  ;;  %v1669_v5 = vadd.f32 %v1549_v52, %v8632_v37  ;;  %v1543_v58 = vmul.f32 0.044715, %v1423_v4  ;;  %v1312_v10 = vmul.f32 %v8660_v39, %v8660_v39  ;;  %v1963_v20 = vadd.f32 1.0, %v8486_v2 }
 0x1ff   : > { %11233 = vst [vmem:[#allocation31_spill] sm:$0xff] %v8664_v0  ;;  %11235 = vst [vmem:[#allocation32_spill] sm:$0xff] %v8668_v7  ;;  %v8676_v9 = vpop.eup %6506  ;;  %v1318_v26 = vmul.f32 %v8664_v0, %v8664_v0  ;;  %v1321_v11 = vmul.f32 %v8668_v7, %v8668_v7  ;;  %v2080_v22 = vmul.f32 0.5, %v1960_v8  ;;  %5873 = vmatprep.mubr.bf16.mxu0 %v2308_v17  ;;  %v8691_v23 = vpop.f32.mrb[64].mxu0 }
 0x200   : > { %v8683_v28 = vpop.eup %6508  ;;  %v1789_v43 = vmul.f32 0.7978846, %v1669_v5  ;;  %v1663_v56 = vadd.f32 %v1543_v58, %v8642_v1  ;;  %v1432_v52 = vmul.f32 %v1312_v10, %v8660_v39  ;;  %v8689_v4 = vadd.f32 %v8550_v44, %v11236_v29  ;;  %11237 = vst [vmem:[#allocation34_spill] sm:$0xff] %v8691_v23  ;;  %v3373_v30 = vpop.f32.mrb[65].mxu0 }
 0x201   : > { %v1438_v18 = vmul.f32 %v1318_v26, %v8664_v0  ;;  %v1441_v37 = vmul.f32 %v1321_v11, %v8668_v7  ;;  %v2083_v2 = vmul.f32 0.5, %v1963_v20  ;;  %v2200_v8 = vmul.f32 %v2080_v22, %v8368_v31  ;;  %v8698_v10 = vpop.f32.mrb[66].mxu0  ;;  %v11239_v11 = vld [vmem:[#allocation36_spill] sm:$0xff] }
 0x202   : > { %6516 = vtanh.f32 %v1789_v43  ;;  %v1783_v5 = vmul.f32 0.7978846, %v1663_v56  ;;  %v1552_v60 = vmul.f32 0.044715, %v1432_v52  ;;  %v1315_v58 = vmul.f32 %v8689_v4, %v8689_v4  ;;  %11238 = vst [vmem:[#allocation35_spill] sm:$0xff] %v8698_v10  ;;  %v3376_v31 = vpop.f32.mrb[67].mxu0 }
 0x203   : > { %v1558_v44 = vmul.f32 0.044715, %v1438_v18  ;;  %3129 = vmatmul.mubr.bf16.vlgmr.msra.gmra.mrb[60].mxu1 %v2308_v17  ;;  %5874 = vmatmul.mubr.bf16.vlgmr.msra.gmra.mrb[140].mxu0 %v8441_v33  ;;  %v1561_v29 = vmul.f32 0.044715, %v1441_v37  ;;  %v2203_v26 = vmul.f32 %v2083_v2, %v8392_v54  ;;  %v8704_v20 = vadd.f32 %v11239_v11, %v8653_v55  ;;  %v8706_v30 = vpop.eup %6510  ;;  %v11240_v18 = vld [vmem:[#allocation63_spill] sm:$0xff] }
 0x204   : > { %6518 = vtanh.f32 %v1783_v5  ;;  %v1672_v22 = vadd.f32 %v1552_v60, %v8660_v39  ;;  %v1435_v43 = vmul.f32 %v1315_v58, %v8689_v4  ;;  %3138 = vmatprep.mubr.bf16.mxu1 %v11230_v21  ;;  %v8713_v17 = vadd.f32 %v8653_v55, %v11240_v18 }
 0x205   : > { %v8715_v37 = vpop.eup %6512  ;;  %v1678_v54 = vadd.f32 %v1558_v44, %v8664_v0  ;;  %v1681_v56 = vadd.f32 %v1561_v29, %v8668_v7  ;;  %v8719_v52 = vpack.c.bf16 %v2203_v26, %v2200_v8  ;;  %v1330_v2 = vmul.f32 %v8704_v20, %v8704_v20 }
 0x206   : > { %v1792_v60 = vmul.f32 0.7978846, %v1672_v22  ;;  %v1555_v5 = vmul.f32 0.044715, %v1435_v43  ;;  %v1324_v58 = vmul.f32 %v8713_v17, %v8713_v17  ;;  %v1966_v11 = vadd.f32 1.0, %v8429_v19  ;;  %v8726_v31 = vpop.eup %6514  ;;  %v11241_v19 = vld [vmem:[#allocation64_spill] sm:$0xff] }
 0x207   : > { %v1798_v18 = vmul.f32 0.7978846, %v1678_v54  ;;  %v1801_v10 = vmul.f32 0.7978846, %v1681_v56  ;;  %5877 = vmatprep.mubr.bf16.mxu0 %v8719_v52  ;;  %v1450_v44 = vmul.f32 %v1330_v2, %v8704_v20  ;;  %v1969_v8 = vadd.f32 1.0, %v8480_v50 }
 0x208   : > { %6520 = vtanh.f32 %v1792_v60  ;;  %v1675_v29 = vadd.f32 %v1555_v5, %v8689_v4  ;;  %v1444_v26 = vmul.f32 %v1324_v58, %v8713_v17  ;;  %v2086_v22 = vmul.f32 0.5, %v1966_v11 }
 0x209   : > { %6522 = vtanh.f32 %v1798_v18  ;;  %v1570_v43 = vmul.f32 0.044715, %v1450_v44  ;;  %v2089_v23 = vmul.f32 0.5, %v1969_v8  ;;  %v8735_v7 = vadd.f32 %v11241_v19, %v8653_v55  ;;  %v8738_v0 = vpop.f32.mrb[68].mxu0 }
 0x20a   : > { %6524 = vtanh.f32 %v1801_v10  ;;  %v1795_v54 = vmul.f32 0.7978846, %v1675_v29  ;;  %v1564_v56 = vmul.f32 0.044715, %v1444_v26  ;;  %v2206_v2 = vmul.f32 %v2086_v22, %v8346_v49  ;;  %v3381_v11 = vpop.f32.mrb[69].mxu0 }
 0x20b   : > { %v1690_v50 = vadd.f32 %v1570_v43, %v8704_v20  ;;  %3139 = vmatmul.mubr.bf16.gmra.mrb[64].mxu1 %v8441_v33  ;;  %v2209_v60 = vmul.f32 %v2089_v23, %v8383_v13  ;;  %v1333_v5 = vmul.f32 %v8735_v7, %v8735_v7  ;;  %v1972_v58 = vadd.f32 1.0, %v8492_v62  ;;  %v8755_v13 = vpop.f32.mrb[70].mxu0 }
 0x20c   : > { %v8746_v18 = vpop.eup %6516  ;;  %6526 = vtanh.f32 %v1795_v54  ;;  %v1684_v10 = vadd.f32 %v1564_v56, %v8713_v17  ;;  %v1975_v49 = vadd.f32 1.0, %v8546_v34  ;;  %v8752_v44 = vadd.f32 %v8653_v55, %v8183_v15  ;;  %3148 = vmatprep.mubr.bf16.mxu1 %v11230_v21  ;;  %11242 = vst [vmem:[#allocation37_spill] sm:$0xff] %v8755_v13  ;;  %v3384_v29 = vpop.f32.mrb[71].mxu0  ;;  %v11243_v15 = vld [vmem:[#allocation21_spill] sm:$0xff] }
 0x20d   : > { %v1810_v33 = vmul.f32 0.7978846, %v1690_v50  ;;  %v8757_v23 = vpack.c.bf16 %v2209_v60, %v2206_v2  ;;  %v1453_v62 = vmul.f32 %v1333_v5, %v8735_v7  ;;  %v2092_v8 = vmul.f32 0.5, %v1972_v58  ;;  %v11244_v2 = vld [vmem:[#allocation22_spill] sm:$0xff]  ;;  %v11245_v29 = vld [vmem:[#allocation23_spill] sm:$0xff] }
 0x20e   : > { %v8760_v26 = vpop.eup %6518  ;;  %v1804_v22 = vmul.f32 0.7978846, %v1684_v10  ;;  %v2095_v43 = vmul.f32 0.5, %v1975_v49  ;;  %v1327_v34 = vmul.f32 %v8752_v44, %v8752_v44  ;;  %v8766_v19 = vadd.f32 %v11243_v15, %v8653_v55 }
 0x20f   : > { %6528 = vtanh.f32 %v1810_v33  ;;  %5878 = vmatmul.mubr.bf16.gmra.mrb[144].mxu0 %v8757_v23  ;;  %v1573_v54 = vmul.f32 0.044715, %v1453_v62  ;;  %v2212_v56 = vmul.f32 %v2092_v8, %v8404_v57  ;;  %v8772_v50 = vadd.f32 %v8653_v55, %v11244_v2 }
 0x210   : > { %6530 = vtanh.f32 %v1804_v22  ;;  %v2215_v60 = vmul.f32 %v2095_v43, %v8447_v35  ;;  %v1447_v5 = vmul.f32 %v1327_v34, %v8752_v44  ;;  %v1342_v58 = vmul.f32 %v8766_v19, %v8766_v19 }
 0x211   : > { %v1693_v11 = vadd.f32 %v1573_v54, %v8735_v7  ;;  %v1336_v10 = vmul.f32 %v8772_v50, %v8772_v50  ;;  %v1978_v49 = vadd.f32 1.0, %v8495_v27  ;;  %v1981_v57 = vadd.f32 1.0, %v8532_v48 }
 0x212   : > { %v8783_v33 = vpop.eup %6520  ;;  %v8785_v62 = vpack.c.bf16 %v2215_v60, %v2212_v56  ;;  %v1567_v8 = vmul.f32 0.044715, %v1447_v5  ;;  %v1462_v35 = vmul.f32 %v1342_v58, %v8766_v19  ;;  %v8790_v22 = vadd.f32 %v11245_v29, %v8653_v55 }
 0x213   : > { %v8792_v43 = vpop.eup %6522  ;;  %v1813_v34 = vmul.f32 0.7978846, %v1693_v11  ;;  %v1456_v15 = vmul.f32 %v1336_v10, %v8772_v50  ;;  %3149 = vmatmul.mubr.bf16.gmra.mrb[68].mxu1 %v8719_v52  ;;  %v2098_v27 = vmul.f32 0.5, %v1978_v49  ;;  %v2101_v48 = vmul.f32 0.5, %v1981_v57 }
 0x214   : > { %v8796_v54 = vpop.eup %6524  ;;  %5881 = vmatprep.mubr.bf16.mxu0 %v8785_v62  ;;  %v1687_v56 = vadd.f32 %v1567_v8, %v8752_v44  ;;  %v1582_v2 = vmul.f32 0.044715, %v1462_v35  ;;  %v1345_v60 = vmul.f32 %v8790_v22, %v8790_v22  ;;  %v1984_v5 = vadd.f32 1.0, %v8557_v14  ;;  %3158 = vmatprep.mubr.bf16.mxu1 %v11230_v21  ;;  %v8806_v10 = vpop.f32.mrb[72].mxu0 }
 0x215   : > { %6532 = vtanh.f32 %v1813_v34  ;;  %v1576_v58 = vmul.f32 0.044715, %v1456_v15  ;;  %v2218_v52 = vmul.f32 %v2098_v27, %v8410_v32  ;;  %v2221_v11 = vmul.f32 %v2101_v48, %v8437_v53  ;;  %11246 = vst [vmem:[#allocation38_spill] sm:$0xff] %v8806_v10  ;;  %v3389_v14 = vpop.f32.mrb[73].mxu0  ;;  %v11247_v32 = vld [vmem:[#allocation24_spill] sm:$0xff] }
 0x216   : > { %v8808_v49 = vpop.eup %6526  ;;  %v1807_v57 = vmul.f32 0.7978846, %v1687_v56  ;;  %v1702_v8 = vadd.f32 %v1582_v2, %v8766_v19  ;;  %v1465_v35 = vmul.f32 %v1345_v60, %v8790_v22  ;;  %v1987_v29 = vadd.f32 1.0, %v8601_v63  ;;  %v8820_v27 = vpop.f32.mrb[74].mxu0 }
 0x217   : > { %v1696_v13 = vadd.f32 %v1576_v58, %v8772_v50  ;;  %v8814_v34 = vpack.c.bf16 %v2221_v11, %v2218_v52  ;;  %v2104_v15 = vmul.f32 0.5, %v1984_v5  ;;  %v8818_v53 = vadd.f32 %v8653_v55, %v11247_v32  ;;  %v3392_v10 = vpop.f32.mrb[75].mxu0 }
 0x218   : > { %6534 = vtanh.f32 %v1807_v57  ;;  %v1822_v48 = vmul.f32 0.7978846, %v1702_v8  ;;  %v1585_v56 = vmul.f32 0.044715, %v1465_v35  ;;  %v2107_v2 = vmul.f32 0.5, %v1987_v29  ;;  %v6281_v35 = vld [vmem:[%s10985_s5 + $0x80] sm:$0xff]  }
 0x219   : > { %v8822_v60 = vpop.eup %6528  ;;  %v1816_v63 = vmul.f32 0.7978846, %v1696_v13  ;;  %5882 = vmatmul.mubr.bf16.gmra.mrb[148].mxu0 %v8814_v34  ;;  %v2224_v58 = vmul.f32 %v2104_v15, %v8457_v3  ;;  %v1339_v5 = vmul.f32 %v8818_v53, %v8818_v53  ;;  %v1990_v55 = vadd.f32 1.0, %v8553_v6  ;;  %v6280_v6 = vld [vmem:[%s10985_s5] sm:$0xff]   ;;  %5913 = vmatprep.subr.bf16.mxu1 %v6281_v35 }
 0x21a   : > { %v8829_v52 = vpop.eup %6530  ;;  %6536 = vtanh.f32 %v1822_v48  ;;  %v1705_v11 = vadd.f32 %v1585_v56, %v8790_v22  ;;  %v2227_v57 = vmul.f32 %v2107_v2, %v8500_v61  ;;  %v1993_v10 = vadd.f32 1.0, %v8568_v16  ;;  %5055 = vmatpush1.bf16.msra.mxu0 %v6280_v6  ;;  %5914 = vmatpush3.bf16.msra.mxu1 %v6281_v35 }
 0x21b   : > { %6538 = vtanh.f32 %v1816_v63  ;;  %v1459_v13 = vmul.f32 %v1339_v5, %v8818_v53  ;;  %3159 = vmatmul.mubr.bf16.gmra.mrb[72].mxu1 %v8757_v23  ;;  %v2110_v3 = vmul.f32 0.5, %v1990_v55  ;;  %v1996_v8 = vadd.f32 1.0, %v8617_v41  ;;  %5056 = vmatprep.subr.bf16.mxu0 %v11230_v21 }
 0x21c   : > { %v1825_v29 = vmul.f32 0.7978846, %v1705_v11  ;;  %v8843_v61 = vpack.c.bf16 %v2227_v57, %v2224_v58  ;;  %v2113_v16 = vmul.f32 0.5, %v1993_v10  ;;  %v1999_v14 = vadd.f32 1.0, %v8644_v45  ;;  %3168 = vmatprep.mubr.bf16.mxu1 %v11230_v21 }
 0x21d   : > { %v1579_v23 = vmul.f32 0.044715, %v1459_v13  ;;  %v2230_v15 = vmul.f32 %v2110_v3, %v8451_v46  ;;  %v2116_v41 = vmul.f32 0.5, %v1996_v8  ;;  %v2002_v32 = vadd.f32 1.0, %v8611_v59  ;;  %v11248_v13 = vld [vmem:[#allocation26_spill] sm:$0xff] }
 0x21e   : > { %6540 = vtanh.f32 %v1825_v29  ;;  %5885 = vmatprep.mubr.bf16.mxu0 %v8843_v61  ;;  %v2233_v48 = vmul.f32 %v2113_v16, %v8472_v51  ;;  %v2119_v56 = vmul.f32 0.5, %v1999_v14  ;;  %v2005_v2 = vadd.f32 1.0, %v8626_v42  ;;  %v8857_v5 = vpop.f32.mrb[76].mxu0  ;;  %v11249_v29 = vld [vmem:[#allocation27_spill] sm:$0xff] }
 0x21f   : > { %v8852_v45 = vpop.eup %6532  ;;  %v1699_v63 = vadd.f32 %v1579_v23, %v8818_v53  ;;  %v2236_v46 = vmul.f32 %v2116_v41, %v8509_v25  ;;  %v2122_v58 = vmul.f32 0.5, %v2002_v32  ;;  %v2008_v59 = vadd.f32 1.0, %v8676_v9  ;;  %v3397_v57 = vpop.f32.mrb[77].mxu0 }
 0x220   : > { %v8860_v55 = vpack.c.bf16 %v2233_v48, %v2230_v15  ;;  %v2239_v51 = vmul.f32 %v2119_v56, %v8538_v47  ;;  %v2125_v11 = vmul.f32 0.5, %v2005_v2  ;;  %v2011_v42 = vadd.f32 1.0, %v8706_v30  ;;  %v8866_v6 = vpop.f32.mrb[78].mxu0 }
 0x221   : > { %v1819_v10 = vmul.f32 0.7978846, %v1699_v63  ;;  %v2242_v3 = vmul.f32 %v2122_v58, %v11248_v13  ;;  %v2128_v8 = vmul.f32 0.5, %v2008_v59  ;;  %v2014_v25 = vadd.f32 1.0, %v8671_v38  ;;  %v3400_v30 = vpop.f32.mrb[79].mxu0 }
 0x222   : > { %v6535_v9 = vpop.eup %6534  ;;  %5886 = vmatmul.mubr.bf16.gmra.mrb[152].mxu0 %v8860_v55  ;;  %v8869_v35 = vpack.c.bf16 %v2239_v51, %v2236_v46  ;;  %v2245_v16 = vmul.f32 %v2125_v11, %v11249_v29  ;;  %v2131_v47 = vmul.f32 0.5, %v2011_v42  ;;  %v2017_v14 = vadd.f32 1.0, %v8683_v28 }
 0x223   : > { %6542 = vtanh.f32 %v1819_v10  ;;  %3169 = vmatmul.mubr.bf16.gmra.mrb[76].mxu1 %v8785_v62  ;;  %v2248_v23 = vmul.f32 %v2128_v8, %v8566_v12  ;;  %v2134_v15 = vmul.f32 0.5, %v2014_v25  ;;  %v2020_v38 = vadd.f32 1.0, %v8726_v31  ;;  %v6282_v12 = vld [vmem:[%s10985_s5 + $0x8] sm:$0xff]   ;;  %v11252_v8 = vld [vmem:[#allocation30_spill] sm:$0xff] }
 0x224   : > { %v8876_v41 = vpop.eup %6536  ;;  %5889 = vmatprep.mubr.bf16.mxu0 %v8869_v35  ;;  %v8879_v32 = vpack.c.bf16 %v2245_v16, %v2242_v3  ;;  %v2251_v48 = vmul.f32 %v2131_v47, %v8590_v24  ;;  %3178 = vmatprep.mubr.bf16.mxu1 %v11230_v21  ;;  %v2137_v28 = vmul.f32 0.5, %v2017_v14  ;;  %v2023_v56 = vadd.f32 1.0, %v8760_v26  ;;  %v11250_v26 = vld [vmem:[#allocation2_spill] sm:$0xff] }
 0x225   : > { %v6539_v62 = vpop.eup %6538  ;;  %v2254_v31 = vmul.f32 %v2134_v15, %v8562_v36  ;;  %v2140_v2 = vmul.f32 0.5, %v2020_v38  ;;  %v2026_v63 = vadd.f32 1.0, %v8715_v37  ;;  %v2029_v46 = vadd.f32 1.0, %v8746_v18  ;;  %5057 = vmatpush1.bf16.msra.mxu0 %v6282_v12 }
 0x226   : > { %v8890_v58 = vpack.c.bf16 %v2251_v48, %v2248_v23  ;;  %v2257_v24 = vmul.f32 %v2137_v28, %v8576_v40  ;;  %v2143_v59 = vmul.f32 0.5, %v2023_v56  ;;  %v2032_v51 = vadd.f32 1.0, %v8783_v33  ;;  %5058 = vmatprep.subr.bf16.mxu0 %v11230_v21  ;;  %v6283_v40 = vld [vmem:[%s10985_s5 + $0x10] sm:$0xff]  }
 0x227   : > { %v2260_v11 = vmul.f32 %v2140_v2, %v11250_v26  ;;  %v2146_v42 = vmul.f32 0.5, %v2026_v63  ;;  %v2149_v57 = vmul.f32 0.5, %v2029_v46  ;;  %v2035_v10 = vadd.f32 1.0, %v8808_v49  ;;  %v11251_v33 = vld [vmem:[#allocation28_spill] sm:$0xff] }
 0x228   : > { %v6541_v36 = vpop.eup %6540  ;;  %v8897_v37 = vpack.c.bf16 %v2257_v24, %v2254_v31  ;;  %v2263_v18 = vmul.f32 %v2143_v59, %v8642_v1  ;;  %v2152_v13 = vmul.f32 0.5, %v2032_v51  ;;  %v2038_v47 = vadd.f32 1.0, %v8792_v43 }
 0x229   : > { %v2266_v3 = vmul.f32 %v2146_v42, %v11251_v33  ;;  %v2269_v25 = vmul.f32 %v2149_v57, %v11252_v8  ;;  %v2155_v29 = vmul.f32 0.5, %v2035_v10  ;;  %v2041_v1 = vadd.f32 1.0, %v8796_v54  ;;  %v8911_v14 = vpop.f32.mrb[80].mxu0  ;;  %5059 = vmatpush1.bf16.msra.mxu0 %v6283_v40 }
 0x22a   : > { %5890 = vmatmul.mubr.bf16.gmra.mrb[156].mxu0 %v8879_v32  ;;  %v8906_v49 = vpack.c.bf16 %v2263_v18, %v2260_v11  ;;  %v2272_v16 = vmul.f32 %v2152_v13, %v8660_v39  ;;  %v2044_v15 = vadd.f32 1.0, %v8829_v52  ;;  %v2047_v38 = vadd.f32 1.0, %v6535_v9  ;;  %v3405_v48 = vpop.f32.mrb[81].mxu0  ;;  %5060 = vmatprep.subr.bf16.mxu0 %v11230_v21  ;;  %v11254_v9 = vld [vmem:[#allocation32_spill] sm:$0xff] }
 0x22b   : > { %5893 = vmatprep.mubr.bf16.mxu0 %v8890_v58  ;;  %3179 = vmatmul.mubr.bf16.gmra.mrb[80].mxu1 %v8814_v34  ;;  %v8915_v30 = vpack.c.bf16 %v2269_v25, %v2266_v3  ;;  %v2275_v23 = vmul.f32 %v2155_v29, %v8689_v4  ;;  %v2158_v39 = vmul.f32 0.5, %v2038_v47  ;;  %v2161_v43 = vmul.f32 0.5, %v2041_v1  ;;  %v8920_v28 = vpop.f32.mrb[82].mxu0  ;;  %v11253_v4 = vld [vmem:[#allocation31_spill] sm:$0xff]  ;;  %v6290_v48 = vld [vmem:[%s10985_s5 + $0x40] sm:$0xff]  }
 0x22c   : > { %3188 = vmatprep.mubr.bf16.mxu1 %v11230_v21  ;;  %v2164_v12 = vmul.f32 0.5, %v2044_v15  ;;  %v2167_v34 = vmul.f32 0.5, %v2047_v38  ;;  %v2050_v31 = vadd.f32 1.0, %v8822_v60  ;;  %v3408_v2 = vpop.f32.mrb[83].mxu0  ;;  %v2053_v46 = vadd.f32 1.0, %v8852_v45  ;;  %v6284_v45 = vld [vmem:[%s10985_s5 + $0x18] sm:$0xff]  }
 0x22d   : > { %v6543_v54 = vpop.eup %6542  ;;  %v8922_v56 = vpack.c.bf16 %v2275_v23, %v2272_v16  ;;  %v2278_v52 = vmul.f32 %v2158_v39, %v11253_v4  ;;  %v2281_v63 = vmul.f32 %v2161_v43, %v11254_v9  ;;  %v2056_v24 = vadd.f32 1.0, %v6539_v62  ;;  %5061 = vmatpush1.bf16.msra.mxu0 %v6284_v45  ;;  %v6285_v16 = vld [vmem:[%s10985_s5 + $0x20] sm:$0xff]   ;;  %v6286_v47 = vld [vmem:[%s10985_s5 + $0x88] sm:$0xff]   ;;  %v6288_v15 = vld [vmem:[%s10985_s5 + $0x30] sm:$0xff]  }
 0x22e   : > { %v2284_v59 = vmul.f32 %v2164_v12, %v8713_v17  ;;  %v2287_v51 = vmul.f32 %v2167_v34, %v8752_v44  ;;  %v2170_v26 = vmul.f32 0.5, %v2050_v31  ;;  %v2059_v11 = vadd.f32 1.0, %v6543_v54  ;;  %5062 = vmatprep.subr.bf16.mxu0 %v11230_v21  ;;  %5915 = vmatprep.subr.bf16.mxu1 %v6286_v47  ;;  %v6289_v38 = vld [vmem:[%s10985_s5 + $0x38] sm:$0xff]   ;;  %v6291_v39 = vld [vmem:[%s10985_s5 + $0x90] sm:$0xff]  }
 0x22f   : > { %v8931_v42 = vpack.c.bf16 %v2281_v63, %v2278_v52  ;;  %v2173_v57 = vmul.f32 0.5, %v2053_v46  ;;  %v2176_v60 = vmul.f32 0.5, %v2056_v24  ;;  %v2062_v62 = vadd.f32 1.0, %v8876_v41  ;;  %5916 = vmatpush3.bf16.msra.mxu1 %v6286_v47  ;;  %v6300_v45 = vld [vmem:[%s10985_s5 + $0x70] sm:$0xff]  }
 0x230   : > { %v8933_v10 = vpack.c.bf16 %v2287_v51, %v2284_v59  ;;  %v2290_v18 = vmul.f32 %v2170_v26, %v8704_v20  ;;  %v2179_v13 = vmul.f32 0.5, %v2059_v11  ;;  %v2065_v40 = vadd.f32 1.0, %v6541_v36  ;;  %5917 = vmatprep.subr.bf16.mxu1 %v6291_v39  ;;  %v6295_v59 = vld [vmem:[%s10985_s5 + $0x60] sm:$0xff]   ;;  %v6296_v51 = vld [vmem:[%s10985_s5 + $0x98] sm:$0xff]  }
 0x231   : > { %v2293_v17 = vmul.f32 %v2173_v57, %v8735_v7  ;;  %v2296_v44 = vmul.f32 %v2176_v60, %v8772_v50  ;;  %v2182_v3 = vmul.f32 0.5, %v2062_v62  ;;  %5063 = vmatpush1.bf16.msra.mxu0 %v6285_v16  ;;  %v6297_v11 = vld [vmem:[%s10985_s5 + $0xa0] sm:$0xff]   ;;  %v6303_v62 = vld [vmem:[%s10985_s5 + $0xb8] sm:$0xff]  }
 0x232   : > { %5894 = vmatmul.mubr.bf16.gmra.mrb[160].mxu0 %v8897_v37  ;;  %v2299_v20 = vmul.f32 %v2179_v13, %v8818_v53  ;;  %v2185_v8 = vmul.f32 0.5, %v2065_v40  ;;  %5064 = vmatprep.subr.bf16.mxu0 %v11230_v21  ;;  %v6301_v13 = vld [vmem:[%s10985_s5 + $0xb0] sm:$0xff]  }
 0x233   : > { %5897 = vmatprep.mubr.bf16.mxu0 %v8906_v49  ;;  %3189 = vmatmul.mubr.bf16.gmra.mrb[84].mxu1 %v8843_v61  ;;  %v8947_v33 = vpack.c.bf16 %v2293_v17, %v2290_v18  ;;  %v8949_v25 = vpop.f32.mrb[84].mxu0  ;;  %v2302_v41 = vmul.f32 %v2182_v3, %v8766_v19  ;;  %v6287_v19 = vld [vmem:[%s10985_s5 + $0x28] sm:$0xff]  }
 0x234   : > { %3198 = vmatprep.mubr.bf16.mxu1 %v11230_v21  ;;  %v8951_v7 = vpack.c.bf16 %v2299_v20, %v2296_v44  ;;  %v3413_v50 = vpop.f32.mrb[85].mxu0  ;;  %v2305_v61 = vmul.f32 %v2185_v8, %v8790_v22  ;;  %5918 = vmatpush3.bf16.msra.mxu1 %v6291_v39  ;;  %v6298_v18 = vld [vmem:[%s10985_s5 + $0x68] sm:$0xff]   ;;  %v6302_v20 = vld [vmem:[%s10985_s5 + $0x78] sm:$0xff]  }
 0x235   : > { %v8956_v36 = vpop.f32.mrb[86].mxu0  ;;  %5065 = vmatpush1.bf16.msra.mxu0 %v6287_v19  ;;  %5919 = vmatprep.subr.bf16.mxu1 %v6296_v51 }
 0x236   : > { %v3416_v53 = vpop.f32.mrb[87].mxu0  ;;  %v8958_v29 = vpack.c.bf16 %v2305_v61, %v2302_v41  ;;  %5066 = vmatprep.subr.bf16.mxu0 %v11230_v21 }
 0x238   : > { %5920 = vmatpush3.bf16.msra.mxu1 %v6296_v51 }
 0x239   : > { %5067 = vmatpush1.bf16.msra.mxu0 %v6288_v15  ;;  %5921 = vmatprep.subr.bf16.mxu1 %v6297_v11 }
 0x23a   : > { %5898 = vmatmul.mubr.bf16.gmra.mrb[164].mxu0 %v8915_v30  ;;  %5068 = vmatprep.subr.bf16.mxu0 %v11230_v21 }
 0x23b   : > { %5901 = vmatprep.mubr.bf16.mxu0 %v8922_v56  ;;  %3199 = vmatmul.mubr.bf16.gmra.mrb[88].mxu1 %v8860_v55 }
 0x23c   : > { %3208 = vmatprep.mubr.bf16.mxu1 %v11230_v21  ;;  %5922 = vmatpush3.bf16.msra.mxu1 %v6297_v11 }
 0x23d   : > { %5069 = vmatpush1.bf16.msra.mxu0 %v6289_v38 }
 0x23e   : > { %5070 = vmatprep.subr.bf16.mxu0 %v11230_v21 }
 0x23f   : > { %v8974_v22 = vpop.f32.mrb[88].mxu0 }
 0x240   : > { %v3421_v1 = vpop.f32.mrb[89].mxu0 }
 0x241   : > { %v8978_v55 = vpop.f32.mrb[90].mxu0  ;;  %5071 = vmatpush1.bf16.msra.mxu0 %v6290_v48 }
 0x242   : > { %5902 = vmatmul.mubr.bf16.gmra.mrb[168].mxu0 %v8931_v42  ;;  %v3424_v23 = vpop.f32.mrb[91].mxu0  ;;  %5072 = vmatprep.subr.bf16.mxu0 %v11230_v21 }
 0x243   : > { %5905 = vmatprep.mubr.bf16.mxu0 %v8933_v10  ;;  %3209 = vmatmul.mubr.bf16.gmra.mrb[92].mxu1 %v8869_v35 }
 0x244   : > { %3218 = vmatprep.mubr.bf16.mxu1 %v11230_v21 }
 0x24a   : > { %5906 = vmatmul.mubr.bf16.gmra.mrb[172].mxu0 %v8947_v33 }
 0x24b   : > { %5909 = vmatprep.mubr.bf16.mxu0 %v8951_v7  ;;  %3219 = vmatmul.mubr.bf16.gmra.mrb[96].mxu1 %v8879_v32 }
 0x24c   : > { %3228 = vmatprep.mubr.bf16.mxu1 %v11230_v21 }
 0x250   : > { %v8995_v35 = vpop.f32.mrb[92].mxu0 }
 0x251   : > { %v3429_v43 = vpop.f32.mrb[93].mxu0 }
 0x252   : > { %5910 = vmatmul.mubr.bf16.gmra.mrb[176].mxu0 %v8958_v29  ;;  %v9005_v32 = vpop.f32.mrb[94].mxu0 }
 0x253   : > { %3229 = vmatmul.mubr.bf16.gmra.mrb[100].mxu1 %v8890_v58  ;;  %v3432_v54 = vpop.f32.mrb[95].mxu0 }
 0x254   : > { %3238 = vmatprep.mubr.bf16.mxu1 %v11230_v21 }
 0x25b   : > { %3239 = vmatmul.mubr.bf16.gmra.mrb[104].mxu1 %v8897_v37  ;;  %v6292_v37 = vld [vmem:[%s10985_s5 + $0x48] sm:$0xff]  }
 0x25c   : > { %3248 = vmatprep.mubr.bf16.mxu1 %v11230_v21  ;;  %5073 = vmatpush1.bf16.msra.mxu0 %v6292_v37 }
 0x25d   : > { %5074 = vmatprep.subr.bf16.mxu0 %v11230_v21 }
 0x262   : > { %v9011_v12 = vpop.f32.mrb[96].mxu0 }
 0x263   : > { %3249 = vmatmul.mubr.bf16.gmra.mrb[108].mxu1 %v8906_v49  ;;  %v3437_v34 = vpop.f32.mrb[97].mxu0 }
 0x264   : > { %3258 = vmatprep.mubr.bf16.mxu1 %v11230_v21  ;;  %v9015_v58 = vpop.f32.mrb[98].mxu0 }
 0x265   : > { %v3440_v31 = vpop.f32.mrb[99].mxu0 }
 0x266   : > { %v11255_v31 = vld [vmem:[#allocation25_spill] sm:$0xff] }
 0x26b   : > { %3259 = vmatmul.mubr.bf16.gmra.mrb[112].mxu1 %v8915_v30  ;;  %v6293_v30 = vld [vmem:[%s10985_s5 + $0x50] sm:$0xff]  }
 0x26c   : > { %3268 = vmatprep.mubr.bf16.mxu1 %v11230_v21  ;;  %5075 = vmatpush1.bf16.msra.mxu0 %v6293_v30  ;;  %v11257_v30 = vld [vmem:[#allocation29_spill] sm:$0xff] }
 0x26d   : > { %5076 = vmatprep.subr.bf16.mxu0 %v11230_v21 }
 0x273   : > { %3269 = vmatmul.mubr.bf16.gmra.mrb[116].mxu1 %v8922_v56  ;;  %v9024_v2 = vpop.f32.mrb[100].mxu0  ;;  %v6294_v56 = vld [vmem:[%s10985_s5 + $0x58] sm:$0xff]  }
 0x274   : > { %3278 = vmatprep.mubr.bf16.mxu1 %v11230_v21  ;;  %v3445_v49 = vpop.f32.mrb[101].mxu0  ;;  %5077 = vmatpush1.bf16.msra.mxu0 %v6294_v56 }
 0x275   : > { %v9026_v4 = vpop.f32.mrb[102].mxu0  ;;  %5078 = vmatprep.subr.bf16.mxu0 %v11230_v21  ;;  %v11256_v49 = vld [vmem:[#allocation3_spill] sm:$0xff] }
 0x276   : > { %v3448_v52 = vpop.f32.mrb[103].mxu0 }
 0x278   : > { %5079 = vmatpush1.bf16.msra.mxu0 %v6295_v59  ;;  %v11259_v59 = vld [vmem:[#allocation35_spill] sm:$0xff] }
 0x279   : > { %5080 = vmatprep.subr.bf16.mxu0 %v11230_v21 }
 0x27b   : > { %3279 = vmatmul.mubr.bf16.gmra.mrb[120].mxu1 %v8931_v42 }
 0x27c   : > { %3288 = vmatprep.mubr.bf16.mxu1 %v11230_v21  ;;  %5081 = vmatpush1.bf16.msra.mxu0 %v6298_v18  ;;  %v11261_v18 = vld [vmem:[#allocation38_spill] sm:$0xff] }
 0x27d   : > { %v9038_v9 = vpop.f32.mrb[104].mxu0  ;;  %5082 = vmatprep.subr.bf16.mxu0 %v11230_v21 }
 0x27e   : > { %v3453_v63 = vpop.f32.mrb[105].mxu0 }
 0x27f   : > { %v9040_v46 = vpop.f32.mrb[106].mxu0  ;;  %v11258_v63 = vld [vmem:[#allocation34_spill] sm:$0xff] }
 0x280   : > { %v3456_v24 = vpop.f32.mrb[107].mxu0  ;;  %5083 = vmatpush1.bf16.msra.mxu0 %v6300_v45 }
 0x281   : > { %5084 = vmatprep.subr.bf16.mxu0 %v11230_v21 }
 0x283   : > { %3289 = vmatmul.mubr.bf16.gmra.mrb[124].mxu1 %v8933_v10  ;;  %v6299_v10 = vld [vmem:[%s10985_s5 + $0xa8] sm:$0xff]  }
 0x284   : > { %3298 = vmatprep.mubr.bf16.mxu1 %v11230_v21  ;;  %5923 = vmatprep.subr.bf16.mxu1 %v6299_v10 }
 0x285   : > { %v9051_v26 = vpop.f32.mrb[108].mxu0  ;;  %5924 = vmatpush3.bf16.msra.mxu1 %v6299_v10  ;;  %5085 = vmatpush1.bf16.msra.mxu0 %v6302_v20 }
 0x286   : > { %v3461_v42 = vpop.f32.mrb[109].mxu0  ;;  %5925 = vmatprep.subr.bf16.mxu1 %v6301_v13 }
 0x287   : > { %v9057_v57 = vpop.f32.mrb[110].mxu0  ;;  %v11260_v42 = vld [vmem:[#allocation37_spill] sm:$0xff] }
 0x288   : > { %v3464_v60 = vpop.f32.mrb[111].mxu0 }
 0x289   : > { %5926 = vmatpush3.bf16.msra.mxu1 %v6301_v13 }
 0x28a   : > { %5927 = vmatprep.subr.bf16.mxu1 %v6303_v62 }
 0x28b   : > { %3299 = vmatmul.mubr.bf16.gmra.mrb[128].mxu1 %v8947_v33 }
 0x28c   : > { %3308 = vmatprep.mubr.bf16.mxu1 %v11230_v21 }
 0x28d   : > { %5928 = vmatpush3.bf16.msra.mxu1 %v6303_v62 }
 0x290   : > { %v9074_v17 = vpop.f32.mrb[112].mxu0 }
 0x291   : > { %v3469_v44 = vpop.f32.mrb[113].mxu0 }
 0x292   : > { %v9080_v40 = vpop.f32.mrb[114].mxu0 }
 0x293   : > { %3309 = vmatmul.mubr.bf16.gmra.mrb[132].mxu1 %v8951_v7  ;;  %v3472_v33 = vpop.f32.mrb[115].mxu0 }
 0x294   : > { %3318 = vmatprep.mubr.bf16.mxu1 %v11230_v21 }
 0x298   : > { %v3475_v3 = vpop.f32.mrb[116].mxu0 }
 0x299   : > { %v3477_v8 = vpop.f32.mrb[117].mxu0 }
 0x29a   : > { %v3478_v50 = vpop.f32.mrb[118].mxu0 }
 0x29b   : > { %3319 = vmatmul.mubr.bf16.gmra.mrb[136].mxu1 %v8958_v29  ;;  %v3480_v41 = vpop.f32.mrb[119].mxu0  ;;  %v2462_v29 = vld [vmem:[%s10984_s4] sm:$0x7] }
 0x29c   : > { %v2475_v37 = vrot.slane %v2462_v29, %v11255_v31 }
 0x29e   : > { %v3364_v52 = vadd.f32 %v11256_v49, %v2475_v37  ;;  %v9094_v56 = vadd.f32 %v11257_v30, %v2475_v37  ;;  %v3372_v24 = vadd.f32 %v11258_v63, %v2475_v37  ;;  %v3375_v51 = vadd.f32 %v11259_v59, %v2475_v37 }
 0x29f   : > { %v9099_v11 = vadd.f32 %v8738_v0, %v2475_v37  ;;  %v9102_v60 = vadd.f32 %v11260_v42, %v2475_v37  ;;  %v9105_v13 = vadd.f32 %v11261_v18, %v2475_v37  ;;  %v9108_v45 = vadd.f32 %v8820_v27, %v2475_v37 }
 0x2a0   : > { %v9111_v44 = vadd.f32 %v8857_v5, %v2475_v37  ;;  %v9114_v62 = vadd.f32 %v8866_v6, %v2475_v37  ;;  %v9117_v0 = vadd.f32 %v8911_v14, %v2475_v37  ;;  %v9120_v33 = vadd.f32 %v8920_v28, %v2475_v37 }
 0x2a1   : > { %v9123_v8 = vadd.f32 %v8949_v25, %v2475_v37  ;;  %v9126_v41 = vadd.f32 %v8956_v36, %v2475_v37  ;;  %v9129_v5 = vadd.f32 %v8974_v22, %v2475_v37  ;;  %v9132_v6 = vadd.f32 %v8978_v55, %v2475_v37  ;;  %v11263_v22 = vld [vmem:[#allocation5_spill] sm:$0xff] }
 0x2a2   : > { %v3483_v61 = vpop.f32.mrb[120].mxu0  ;;  %v9141_v25 = vadd.f32 %v9005_v32, %v2475_v37  ;;  %v9144_v36 = vadd.f32 %v9011_v12, %v2475_v37  ;;  %v9153_v55 = vadd.f32 %v9024_v2, %v2475_v37  ;;  %v9162_v32 = vadd.f32 %v9040_v46, %v2475_v37 }
 0x2a3   : > { %v3485_v53 = vpop.f32.mrb[121].mxu0  ;;  %v9165_v12 = vadd.f32 %v9051_v26, %v2475_v37  ;;  %v9174_v2 = vadd.f32 %v9080_v40, %v2475_v37 }
 0x2a4   : > { %v3486_v16 = vpop.f32.mrb[122].mxu0  ;;  %v9135_v53 = vadd.f32 %v8995_v35, %v2475_v37  ;;  %v9156_v35 = vadd.f32 %v9026_v4, %v2475_v37  ;;  %v9176_v4 = vadd.f32 %v3475_v3, %v2475_v37 }
 0x2a5   : > { %v3488_v47 = vpop.f32.mrb[123].mxu0  ;;  %11264 = vst [vmem:[#allocation6_spill] sm:$0xff] %v9165_v12  ;;  %11267 = vst [vmem:[#allocation39_spill] sm:$0xff] %v9174_v2  ;;  %v9182_v46 = vadd.f32 %v3486_v16, %v2475_v37 }
 0x2a6   : > { %v11262_v47 = vld [vmem:[#allocation4_spill] sm:$0xff]  ;;  %11268 = vst [vmem:[#allocation56_spill] sm:$0xff] %v9176_v4 }
 0x2a7   : > { %v9138_v28 = vrot.slane %v2462_v29, %v11262_v47  ;;  %11271 = vst [vmem:[#allocation41_spill] sm:$0xff] %v9182_v46 }
 0x2ad   : > { %v3491_v19 = vpop.f32.mrb[124].mxu0 }
 0x2ae   : > { %v3493_v1 = vpop.f32.mrb[125].mxu0 }
 0x2af   : > { %v3494_v23 = vpop.f32.mrb[126].mxu0  ;;  %v9147_v1 = vadd.f32 %v9015_v58, %v2475_v37  ;;  %v9168_v58 = vadd.f32 %v9057_v57, %v2475_v37 }
 0x2b0   : > { %v3496_v7 = vpop.f32.mrb[127].mxu0  ;;  %v9186_v26 = vadd.f32 %v3494_v23, %v2475_v37 }
 0x2b1   : > { %v9150_v7 = vrot.slane %v2462_v29, %v11263_v22  ;;  %11265 = vst [vmem:[#allocation40_spill] sm:$0xff] %v9168_v58 }
 0x2b2   : > { %11273 = vst [vmem:[#allocation43_spill] sm:$0xff] %v9186_v26 }
 0x2b9   : > { %v3499_v15 = vpop.f32.mrb[128].mxu0 }
 0x2ba   : > { %v3501_v38 = vpop.f32.mrb[129].mxu0  ;;  %v9188_v57 = vadd.f32 %v3499_v15, %v2475_v37 }
 0x2bb   : > { %v3502_v48 = vpop.f32.mrb[130].mxu0  ;;  %v9159_v38 = vadd.f32 %v9038_v9, %v2475_v37  ;;  %v9180_v9 = vadd.f32 %v3483_v61, %v2475_v37 }
 0x2bc   : > { %v3504_v21 = vpop.f32.mrb[131].mxu0  ;;  %11274 = vst [vmem:[#allocation14_spill] sm:$0xff] %v9188_v57  ;;  %v9190_v29 = vadd.f32 %v3502_v48, %v2475_v37 }
 0x2bd   : > { %v9171_v21 = vadd.f32 %v9074_v17, %v2475_v37  ;;  %11270 = vst [vmem:[#allocation13_spill] sm:$0xff] %v9180_v9 }
 0x2be   : > { %11275 = vst [vmem:[#allocation44_spill] sm:$0xff] %v9190_v29 }
 0x2bf   : > { %11266 = vst [vmem:[#allocation12_spill] sm:$0xff] %v9171_v21 }
 0x2c2   : > { %v3507_v39 = vpop.f32.mrb[132].mxu0 }
 0x2c3   : > { %v3509_v43 = vpop.f32.mrb[133].mxu0  ;;  %v9192_v40 = vadd.f32 %v3507_v39, %v2475_v37 }
 0x2c4   : > { %v3510_v54 = vpop.f32.mrb[134].mxu0  ;;  %v9178_v43 = vadd.f32 %v3478_v50, %v2475_v37 }
 0x2c5   : > { %v3512_v34 = vpop.f32.mrb[135].mxu0  ;;  %11276 = vst [vmem:[#allocation16_spill] sm:$0xff] %v9192_v40  ;;  %v9194_v3 = vadd.f32 %v3510_v54, %v2475_v37 }
 0x2c6   : > { %11269 = vst [vmem:[#allocation11_spill] sm:$0xff] %v9178_v43  ;;  %v9184_v34 = vadd.f32 %v3491_v19, %v2475_v37 }
 0x2c7   : > { %11277 = vst [vmem:[#allocation62_spill] sm:$0xff] %v9194_v3 }
 0x2c8   : > { %11272 = vst [vmem:[#allocation42_spill] sm:$0xff] %v9184_v34 }
 0x2ce   : > { %v3515_v10 = vpop.f32.mrb[136].mxu0 }
 0x2cf   : > { %v3517_v20 = vpop.f32.mrb[137].mxu0  ;;  %v9201_v49 = vadd.f32 %v3515_v10, %v2475_v37 }
 0x2d0   : > { %v3518_v27 = vpop.f32.mrb[138].mxu0 }
 0x2d1   : > { %v3520_v14 = vpop.f32.mrb[139].mxu0  ;;  %11278 = vst [vmem:[#allocation45_spill] sm:$0xff] %v9201_v49  ;;  %v9203_v23 = vadd.f32 %v3518_v27, %v2475_v37 }
 0x2d3   : > { %11279 = vst [vmem:[#allocation9_spill] sm:$0xff] %v9203_v23 }
 0x2d6   : > { %v3130_v17 = vpop.f32.mrb[60].mxu1  ;;  %v5875_v31 = vpop.f32.mrb[140].mxu0 }
 0x2d7   : > { %v9197_v50 = vadd.f32 %v3130_v17, %v9138_v28  ;;  %v9199_v61 = vadd.f32 %v5875_v31, %v3372_v24  ;;  %v3132_v16 = vpop.f32.mrb[61].mxu1  ;;  %v3556_v19 = vpop.f32.mrb[141].mxu0 }
 0x2d8   : > { %v9206_v15 = vadd.f32 %v3132_v16, %v9150_v7  ;;  %v9208_v48 = vadd.f32 %v3556_v19, %v3364_v52  ;;  %v3134_v39 = vpop.f32.mrb[62].mxu1  ;;  %v5876_v30 = vpop.f32.mrb[142].mxu0 }
 0x2d9   : > { %v3715_v54 = vmul.f32 %v9197_v50, %v9197_v50  ;;  %v3723_v63 = vmul.f32 %v9199_v61, %v9199_v61  ;;  %v9215_v24 = vadd.f32 %v3134_v39, %v9138_v28  ;;  %v9217_v59 = vadd.f32 %v5876_v30, %v3375_v51  ;;  %v3136_v37 = vpop.f32.mrb[63].mxu1  ;;  %v3559_v42 = vpop.f32.mrb[143].mxu0 }
 0x2da   : > { %v3716_v10 = vmul.f32 %v9206_v15, %v9206_v15  ;;  %v3717_v52 = vmul.f32 %v9208_v48, %v9208_v48  ;;  %v9224_v18 = vadd.f32 %v3136_v37, %v9150_v7  ;;  %v9227_v20 = vadd.f32 %v3559_v42, %v9094_v56 }
 0x2db   : > { %v3835_v27 = vmul.f32 %v9197_v50, %v3715_v54  ;;  %v3843_v14 = vmul.f32 %v3723_v63, %v9199_v61  ;;  %v3718_v51 = vmul.f32 %v9215_v24, %v9215_v24  ;;  %v3726_v47 = vmul.f32 %v9217_v59, %v9217_v59 }
 0x2dc   : > { %v3836_v22 = vmul.f32 %v9206_v15, %v3716_v10  ;;  %v3837_v17 = vmul.f32 %v3717_v52, %v9208_v48  ;;  %v3719_v31 = vmul.f32 %v9224_v18, %v9224_v18  ;;  %v3720_v56 = vmul.f32 %v9227_v20, %v9227_v20 }
 0x2dd   : > { %v3955_v16 = vmul.f32 0.044715, %v3835_v27  ;;  %v3963_v19 = vmul.f32 0.044715, %v3843_v14  ;;  %v3838_v39 = vmul.f32 %v9215_v24, %v3718_v51  ;;  %v3846_v30 = vmul.f32 %v3726_v47, %v9217_v59 }
 0x2de   : > { %v3956_v54 = vmul.f32 0.044715, %v3836_v22  ;;  %v3957_v63 = vmul.f32 0.044715, %v3837_v17  ;;  %v3839_v37 = vmul.f32 %v9224_v18, %v3719_v31  ;;  %v3840_v42 = vmul.f32 %v3720_v56, %v9227_v20  ;;  %v3140_v10 = vpop.f32.mrb[64].mxu1 }
 0x2df   : > { %v4075_v52 = vadd.f32 %v9197_v50, %v3955_v16  ;;  %v4083_v3 = vadd.f32 %v3963_v19, %v9199_v61  ;;  %v3958_v23 = vmul.f32 0.044715, %v3838_v39  ;;  %v3966_v40 = vmul.f32 0.044715, %v3846_v30  ;;  %v3142_v49 = vpop.f32.mrb[65].mxu1 }
 0x2e0   : > { %v4076_v27 = vadd.f32 %v9206_v15, %v3956_v54  ;;  %v4077_v14 = vadd.f32 %v3957_v63, %v9208_v48  ;;  %v3959_v51 = vmul.f32 0.044715, %v3839_v37  ;;  %v3960_v47 = vmul.f32 0.044715, %v3840_v42  ;;  %v3144_v22 = vpop.f32.mrb[66].mxu1 }
 0x2e1   : > { %v4195_v17 = vmul.f32 0.7978846, %v4075_v52  ;;  %v4203_v26 = vmul.f32 0.7978846, %v4083_v3  ;;  %v4078_v31 = vadd.f32 %v9215_v24, %v3958_v23  ;;  %v4086_v56 = vadd.f32 %v3966_v40, %v9217_v59  ;;  %v3146_v29 = vpop.f32.mrb[67].mxu1 }
 0x2e2   : > { %v4196_v16 = vmul.f32 0.7978846, %v4076_v27  ;;  %v4197_v34 = vmul.f32 0.7978846, %v4077_v14  ;;  %v4079_v19 = vadd.f32 %v9224_v18, %v3959_v51  ;;  %v4080_v39 = vadd.f32 %v3960_v47, %v9227_v20  ;;  %v5879_v30 = vpop.f32.mrb[144].mxu0 }
 0x2e3   : > { %6544 = vtanh.f32 %v4195_v17  ;;  %v4198_v54 = vmul.f32 0.7978846, %v4078_v31  ;;  %v4206_v63 = vmul.f32 0.7978846, %v4086_v56  ;;  %v9254_v37 = vadd.f32 %v3140_v10, %v9138_v28  ;;  %v3572_v42 = vpop.f32.mrb[145].mxu0 }
 0x2e4   : > { %6546 = vtanh.f32 %v4203_v26  ;;  %v4199_v3 = vmul.f32 0.7978846, %v4079_v19  ;;  %v4200_v23 = vmul.f32 0.7978846, %v4080_v39  ;;  %v9257_v40 = vadd.f32 %v5879_v30, %v9105_v13  ;;  %v5880_v52 = vpop.f32.mrb[146].mxu0 }
 0x2e5   : > { %11280 = vst [vmem:[#allocation15_spill] sm:$0xff] %v9254_v37  ;;  %6548 = vtanh.f32 %v4196_v16  ;;  %v3721_v27 = vmul.f32 %v9254_v37, %v9254_v37  ;;  %v9262_v14 = vadd.f32 %v3142_v49, %v9150_v7  ;;  %v9265_v51 = vadd.f32 %v3572_v42, %v9099_v11  ;;  %v3575_v10 = vpop.f32.mrb[147].mxu0 }
 0x2e6   : > { %11281 = vst [vmem:[#allocation18_spill] sm:$0xff] %v9257_v40  ;;  %6550 = vtanh.f32 %v4197_v34  ;;  %v3735_v26 = vmul.f32 %v9257_v40, %v9257_v40  ;;  %v9270_v47 = vadd.f32 %v3144_v22, %v9138_v28  ;;  %v9273_v13 = vadd.f32 %v5880_v52, %v9108_v45  ;;  %v9275_v17 = vpop.f32.mrb[68].mxu1 }
 0x2e7   : > { %11282 = vst [vmem:[#allocation46_spill] sm:$0xff] %v9262_v14  ;;  %11283 = vst [vmem:[#allocation47_spill] sm:$0xff] %v9265_v51  ;;  %6552 = vtanh.f32 %v4198_v54  ;;  %v3841_v49 = vmul.f32 %v9254_v37, %v3721_v27  ;;  %v3722_v11 = vmul.f32 %v9262_v14, %v9262_v14  ;;  %v3729_v34 = vmul.f32 %v9265_v51, %v9265_v51  ;;  %v9282_v31 = vpop.f32.mrb[69].mxu1 }
 0x2e8   : > { %11284 = vst [vmem:[#allocation20_spill] sm:$0xff] %v9270_v47  ;;  %11285 = vst [vmem:[#allocation48_spill] sm:$0xff] %v9273_v13  ;;  %6554 = vtanh.f32 %v4206_v63  ;;  %v3855_v22 = vmul.f32 %v3735_v26, %v9257_v40  ;;  %v3724_v45 = vmul.f32 %v9270_v47, %v9270_v47  ;;  %v3738_v56 = vmul.f32 %v9273_v13, %v9273_v13  ;;  %v9289_v16 = vpop.f32.mrb[70].mxu1 }
 0x2e9   : > { %6556 = vtanh.f32 %v4199_v3  ;;  %v3961_v19 = vmul.f32 0.044715, %v3841_v49  ;;  %v3842_v39 = vmul.f32 %v9262_v14, %v3722_v11  ;;  %v3849_v30 = vmul.f32 %v3729_v34, %v9265_v51  ;;  %v9293_v54 = vpop.f32.mrb[71].mxu1 }
 0x2ea   : > { %6558 = vtanh.f32 %v4200_v23  ;;  %v3975_v63 = vmul.f32 0.044715, %v3855_v22  ;;  %v3844_v42 = vmul.f32 %v9270_v47, %v3724_v45  ;;  %v3858_v52 = vmul.f32 %v3738_v56, %v9273_v13 }
 0x2eb   : > { %v4081_v27 = vadd.f32 %v9254_v37, %v3961_v19  ;;  %v3962_v26 = vmul.f32 0.044715, %v3842_v39  ;;  %v3969_v57 = vmul.f32 0.044715, %v3849_v30  ;;  %v9299_v43 = vadd.f32 %v3146_v29, %v9150_v7 }
 0x2ec   : > { %v4095_v3 = vadd.f32 %v3975_v63, %v9257_v40  ;;  %v3964_v49 = vmul.f32 0.044715, %v3844_v42  ;;  %v3978_v11 = vmul.f32 0.044715, %v3858_v52  ;;  %v9303_v34 = vadd.f32 %v3575_v10, %v9102_v60  ;;  %v5883_v23 = vpop.f32.mrb[148].mxu0 }
 0x2ed   : > { %11286 = vst [vmem:[#allocation49_spill] sm:$0xff] %v9299_v43  ;;  %v6545_v22 = vpop.eup %6544  ;;  %v4201_v46 = vmul.f32 0.7978846, %v4081_v27  ;;  %v4082_v45 = vadd.f32 %v9262_v14, %v3962_v26  ;;  %v4089_v56 = vadd.f32 %v3969_v57, %v9265_v51  ;;  %v3725_v19 = vmul.f32 %v9299_v43, %v9299_v43  ;;  %v3588_v39 = vpop.f32.mrb[149].mxu0 }
 0x2ee   : > { %11287 = vst [vmem:[#allocation17_spill] sm:$0xff] %v9303_v34  ;;  %v6547_v29 = vpop.eup %6546  ;;  %v4435_v30 = vadd.f32 1.0, %v6545_v22  ;;  %v4215_v4 = vmul.f32 0.7978846, %v4095_v3  ;;  %v4084_v63 = vadd.f32 %v9270_v47, %v3964_v49  ;;  %v4098_v42 = vadd.f32 %v3978_v11, %v9273_v13  ;;  %v9311_v60 = vpop.f32.mrb[150].mxu0 }
 0x2ef   : > { %v9313_v10 = vpop.f32.mrb[72].mxu1  ;;  %v9315_v52 = vpop.eup %6548  ;;  %v4443_v27 = vadd.f32 1.0, %v6547_v29  ;;  %6560 = vtanh.f32 %v4201_v46  ;;  %v4202_v57 = vmul.f32 0.7978846, %v4082_v45  ;;  %v4209_v26 = vmul.f32 0.7978846, %v4089_v56 }
 0x2f0   : > { %v9317_v9 = vpop.f32.mrb[151].mxu0  ;;  %v9319_v58 = vpop.eup %6550  ;;  %v4555_v22 = vmul.f32 0.5, %v4435_v30  ;;  %6562 = vtanh.f32 %v4215_v4  ;;  %v4204_v3 = vmul.f32 0.7978846, %v4084_v63  ;;  %v4218_v49 = vmul.f32 0.7978846, %v4098_v42 }
 0x2f1   : > { %v9321_v2 = vpop.f32.mrb[73].mxu1  ;;  %v6553_v11 = vpop.eup %6552  ;;  %v4563_v13 = vmul.f32 0.5, %v4443_v27  ;;  %6564 = vtanh.f32 %v4202_v57  ;;  %v3845_v12 = vmul.f32 %v9299_v43, %v3725_v19  ;;  %v3732_v46 = vmul.f32 %v9303_v34, %v9303_v34 }
 0x2f2   : > { %v9326_v45 = vpop.f32.mrb[74].mxu1  ;;  %v6555_v56 = vpop.eup %6554  ;;  %v9329_v29 = vmul.f32 %v9197_v50, %v4555_v22  ;;  %v4438_v30 = vadd.f32 1.0, %v6553_v11  ;;  %6566 = vtanh.f32 %v4209_v26  ;;  %v9333_v4 = vadd.f32 %v9275_v17, %v9138_v28 }
 0x2f3   : > { %v9335_v63 = vpop.f32.mrb[75].mxu1  ;;  %v9337_v42 = vpop.eup %6556  ;;  %v9340_v19 = vmul.f32 %v4563_v13, %v9199_v61  ;;  %v4446_v27 = vadd.f32 1.0, %v6555_v56  ;;  %6568 = vtanh.f32 %v4204_v3  ;;  %v3965_v57 = vmul.f32 0.044715, %v3845_v12 }
 0x2f4   : > { %11288 = vst [vmem:[#allocation19_spill] sm:$0xff] %v9333_v4  ;;  %v9342_v40 = vpop.eup %6558  ;;  %v4558_v50 = vmul.f32 0.5, %v4438_v30  ;;  %6570 = vtanh.f32 %v4218_v49  ;;  %v3852_v26 = vmul.f32 %v3732_v46, %v9303_v34  ;;  %v3727_v17 = vmul.f32 %v9333_v4, %v9333_v4 }
 0x2f5   : > { %v4566_v22 = vmul.f32 0.5, %v4446_v27  ;;  %v4085_v11 = vadd.f32 %v9299_v43, %v3965_v57  ;;  %v9349_v47 = vadd.f32 %v5883_v23, %v9117_v0  ;;  %v9353_v61 = vadd.f32 %v9282_v31, %v9150_v7  ;;  %v9355_v12 = vpop.f32.mrb[152].mxu0 }
 0x2f6   : > { %v9358_v13 = vmul.f32 %v9215_v24, %v4558_v50  ;;  %v3972_v3 = vmul.f32 0.044715, %v3852_v26  ;;  %v3847_v49 = vmul.f32 %v9333_v4, %v3727_v17  ;;  %v9362_v46 = vadd.f32 %v3588_v39, %v9111_v44  ;;  %v9364_v56 = vpop.f32.mrb[153].mxu0  ;;  %v9366_v30 = vpop.f32.mrb[76].mxu1 }
 0x2f7   : > { %11289 = vst [vmem:[#allocation50_spill] sm:$0xff] %v9349_v47  ;;  %11290 = vst [vmem:[#allocation8_spill] sm:$0xff] %v9353_v61  ;;  %v9369_v0 = vmul.f32 %v4566_v22, %v9217_v59  ;;  %v4205_v31 = vmul.f32 0.7978846, %v4085_v11  ;;  %v3747_v23 = vmul.f32 %v9349_v47, %v9349_v47  ;;  %v3728_v24 = vmul.f32 %v9353_v61, %v9353_v61  ;;  %v9375_v27 = vpop.f32.mrb[154].mxu0  ;;  %v9377_v57 = vpop.f32.mrb[77].mxu1 }
 0x2f8   : > { %11291 = vst [vmem:[#allocation51_spill] sm:$0xff] %v9362_v46  ;;  %v4092_v39 = vadd.f32 %v3972_v3, %v9303_v34  ;;  %v3967_v50 = vmul.f32 0.044715, %v3847_v49  ;;  %v3741_v59 = vmul.f32 %v9362_v46, %v9362_v46  ;;  %v9384_v26 = vpop.f32.mrb[155].mxu0  ;;  %v9386_v17 = vpop.f32.mrb[78].mxu1  ;;  %v9402_v43 = vadd.f32 %v9289_v16, %v9138_v28 }
 0x2f9   : > { %v9388_v22 = vpop.eup %6560  ;;  %6572 = vtanh.f32 %v4205_v31  ;;  %v3867_v21 = vmul.f32 %v3747_v23, %v9349_v47  ;;  %v3848_v44 = vmul.f32 %v9353_v61, %v3728_v24  ;;  %v9394_v37 = vpop.f32.mrb[79].mxu1  ;;  %v9408_v23 = vadd.f32 %v9311_v60, %v9120_v33 }
 0x2fa   : > { %11292 = vst [vmem:[#allocation52_spill] sm:$0xff] %v9388_v22  ;;  %v9396_v3 = vpop.eup %6562  ;;  %v4212_v49 = vmul.f32 0.7978846, %v4092_v39  ;;  %v4087_v34 = vadd.f32 %v9333_v4, %v3967_v50  ;;  %v3861_v51 = vmul.f32 %v3741_v59, %v9362_v46  ;;  %11294 = vst [vmem:[#allocation10_spill] sm:$0xff] %v9402_v43  ;;  %v9412_v24 = vadd.f32 %v9293_v54, %v9150_v7 }
 0x2fb   : > { %11293 = vst [vmem:[#allocation53_spill] sm:$0xff] %v9396_v3  ;;  %v9404_v22 = vpop.eup %6564  ;;  %v3987_v31 = vmul.f32 0.044715, %v3867_v21  ;;  %v3968_v11 = vmul.f32 0.044715, %v3848_v44  ;;  %11296 = vst [vmem:[#allocation55_spill] sm:$0xff] %v9408_v23  ;;  %v3730_v16 = vmul.f32 %v9402_v43, %v9402_v43  ;;  %v3750_v33 = vmul.f32 %v9408_v23, %v9408_v23 }
 0x2fc   : > { %11295 = vst [vmem:[#allocation54_spill] sm:$0xff] %v9404_v22  ;;  %11297 = vst [vmem:[#allocation57_spill] sm:$0xff] %v9412_v24  ;;  %v9414_v39 = vpop.eup %6566  ;;  %6574 = vtanh.f32 %v4212_v49  ;;  %v4207_v50 = vmul.f32 0.7978846, %v4087_v34  ;;  %v3981_v59 = vmul.f32 0.044715, %v3861_v51  ;;  %v3731_v54 = vmul.f32 %v9412_v24, %v9412_v24 }
 0x2fd   : > { %11298 = vst [vmem:[#allocation58_spill] sm:$0xff] %v9414_v39  ;;  %v9418_v4 = vpop.eup %6568  ;;  %v4107_v21 = vadd.f32 %v3987_v31, %v9349_v47  ;;  %v4088_v44 = vadd.f32 %v9353_v61, %v3968_v11  ;;  %v9426_v60 = vpop.f32.mrb[156].mxu0  ;;  %v3850_v34 = vmul.f32 %v9402_v43, %v3730_v16  ;;  %v9434_v31 = vadd.f32 %v9317_v9, %v9114_v62 }
 0x2fe   : > { %11299 = vst [vmem:[#allocation7_spill] sm:$0xff] %v9418_v4  ;;  %v9428_v49 = vpop.eup %6570  ;;  %6576 = vtanh.f32 %v4207_v50  ;;  %v4101_v51 = vadd.f32 %v3981_v59, %v9362_v46  ;;  %v9436_v11 = vpop.f32.mrb[157].mxu0  ;;  %v3870_v4 = vmul.f32 %v3750_v33, %v9408_v23  ;;  %v3851_v14 = vmul.f32 %v9412_v24, %v3731_v54 }
 0x2ff   : > { %11300 = vst [vmem:[#allocation60_spill] sm:$0xff] %v9428_v49  ;;  %11301 = vst [vmem:[#allocation59_spill] sm:$0xff] %v9434_v31  ;;  %v9438_v47 = vpop.f32.mrb[80].mxu1  ;;  %v4227_v61 = vmul.f32 0.7978846, %v4107_v21  ;;  %v9442_v49 = vpop.f32.mrb[158].mxu0  ;;  %v3744_v62 = vmul.f32 %v9434_v31, %v9434_v31  ;;  %v9450_v9 = vadd.f32 %v9313_v10, %v9138_v28  ;;  %v9458_v54 = vadd.f32 %v9355_v12, %v9129_v5 }
 0x300   : > { %v4208_v3 = vmul.f32 0.7978846, %v4088_v44  ;;  %v9444_v50 = vpop.f32.mrb[81].mxu1  ;;  %v4221_v59 = vmul.f32 0.7978846, %v4101_v51  ;;  %v9452_v46 = vpop.f32.mrb[159].mxu0 }
 0x301   : > { %v3970_v16 = vmul.f32 0.044715, %v3850_v34  ;;  %11302 = vst [vmem:[#allocation61_spill] sm:$0xff] %v9450_v9  ;;  %v9454_v21 = vpop.f32.mrb[82].mxu1  ;;  %6578 = vtanh.f32 %v4227_v61  ;;  %v3990_v44 = vmul.f32 0.044715, %v3870_v4  ;;  %v3864_v39 = vmul.f32 %v3744_v62, %v9434_v31 }
 0x302   : > { %v3971_v33 = vmul.f32 0.044715, %v3851_v14  ;;  %11303 = vst [vmem:[#allocation33_spill] sm:$0xff] %v9458_v54  ;;  %v9460_v51 = vpop.f32.mrb[83].mxu1  ;;  %6580 = vtanh.f32 %v4208_v3  ;;  %v3733_v10 = vmul.f32 %v9450_v9, %v9450_v9  ;;  %v3759_v5 = vmul.f32 %v9458_v54, %v9458_v54 }
 0x303   : > { %v4090_v34 = vadd.f32 %v9402_v43, %v3970_v16  ;;  %v9466_v22 = vpop.eup %6572  ;;  %6582 = vtanh.f32 %v4221_v59  ;;  %v4110_v4 = vadd.f32 %v3990_v44, %v9408_v23  ;;  %v3984_v12 = vmul.f32 0.044715, %v3864_v39 }
 0x304   : > { %11304 = vst [vmem:[#allocation36_spill] sm:$0xff] %v9466_v22  ;;  %v4091_v14 = vadd.f32 %v9412_v24, %v3971_v33  ;;  %v3853_v3 = vmul.f32 %v9450_v9, %v3733_v10  ;;  %v9475_v16 = vadd.f32 %v9321_v2, %v9150_v7  ;;  %v3879_v22 = vmul.f32 %v3759_v5, %v9458_v54 }
 0x305   : > { %v4210_v61 = vmul.f32 0.7978846, %v4090_v34  ;;  %v4230_v62 = vmul.f32 0.7978846, %v4110_v4  ;;  %v9480_v59 = vadd.f32 %v9364_v56, %v9123_v8  ;;  %v9482_v44 = vpop.f32.mrb[160].mxu0  ;;  %v4104_v39 = vadd.f32 %v3984_v12, %v9434_v31 }
 0x306   : > { %11305 = vst [vmem:[#allocation63_spill] sm:$0xff] %v9475_v16  ;;  %v4211_v43 = vmul.f32 0.7978846, %v4091_v14  ;;  %v9484_v33 = vpop.eup %6574  ;;  %v3973_v34 = vmul.f32 0.044715, %v3853_v3  ;;  %v3734_v2 = vmul.f32 %v9475_v16, %v9475_v16  ;;  %v9489_v10 = vpop.f32.mrb[161].mxu0  ;;  %v9497_v56 = vadd.f32 %v9326_v45, %v9138_v28 }
 0x307   : > { %11306 = vst [vmem:[#allocation64_spill] sm:$0xff] %v9480_v59  ;;  %6584 = vtanh.f32 %v4210_v61  ;;  %v9491_v4 = vpop.f32.mrb[84].mxu1  ;;  %v3999_v14 = vmul.f32 0.044715, %v3879_v22  ;;  %v3753_v8 = vmul.f32 %v9480_v59, %v9480_v59  ;;  %v9499_v5 = vpop.f32.mrb[162].mxu0 }
 0x308   : > { %11307 = vst [vmem:[#allocation21_spill] sm:$0xff] %v9491_v4  ;;  %6586 = vtanh.f32 %v4230_v62  ;;  %11308 = vst [vmem:[#allocation22_spill] sm:$0xff] %v9497_v56  ;;  %v9501_v61 = vpop.f32.mrb[85].mxu1  ;;  %v9503_v12 = vpop.eup %6576  ;;  %v4224_v3 = vmul.f32 0.7978846, %v4104_v39  ;;  %v4093_v23 = vadd.f32 %v9450_v9, %v3973_v34  ;;  %v3854_v62 = vmul.f32 %v9475_v16, %v3734_v2 }
 0x309   : > { %11309 = vst [vmem:[#allocation23_spill] sm:$0xff] %v9503_v12  ;;  %6588 = vtanh.f32 %v4211_v43  ;;  %v9507_v22 = vpop.f32.mrb[163].mxu0  ;;  %v9509_v31 = vpop.f32.mrb[86].mxu1  ;;  %v4119_v24 = vadd.f32 %v3999_v14, %v9458_v54  ;;  %v3873_v45 = vmul.f32 %v3753_v8, %v9480_v59  ;;  %v3736_v4 = vmul.f32 %v9497_v56, %v9497_v56 }
 0x30a   : > { %11310 = vst [vmem:[#allocation24_spill] sm:$0xff] %v9509_v31  ;;  %v9517_v12 = vadd.f32 %v9375_v27, %v9132_v6  ;;  %v9519_v43 = vpop.f32.mrb[87].mxu1  ;;  %6590 = vtanh.f32 %v4224_v3  ;;  %v4213_v39 = vmul.f32 0.7978846, %v4093_v23  ;;  %v3974_v34 = vmul.f32 0.044715, %v3854_v62 }
 0x30b   : > { %v9523_v2 = vadd.f32 %v9335_v63, %v9150_v7  ;;  %v9525_v9 = vpop.eup %6578  ;;  %v4239_v14 = vmul.f32 0.7978846, %v4119_v24  ;;  %v3993_v8 = vmul.f32 0.044715, %v3873_v45  ;;  %v3856_v54 = vmul.f32 %v9497_v56, %v3736_v4 }
 0x30c   : > { %11311 = vst [vmem:[#allocation26_spill] sm:$0xff] %v9517_v12  ;;  %11313 = vst [vmem:[#allocation2_spill] sm:$0xff] %v9525_v9  ;;  %v3762_v31 = vmul.f32 %v9517_v12, %v9517_v12  ;;  %v9530_v6 = vpop.eup %6580  ;;  %6592 = vtanh.f32 %v4213_v39  ;;  %v4094_v27 = vadd.f32 %v9475_v16, %v3974_v34  ;;  %v9537_v63 = vadd.f32 %v9384_v26, %v9126_v41 }
 0x30d   : > { %11312 = vst [vmem:[#allocation27_spill] sm:$0xff] %v9523_v2  ;;  %v3737_v23 = vmul.f32 %v9523_v2, %v9523_v2  ;;  %v9539_v3 = vpop.eup %6582  ;;  %6594 = vtanh.f32 %v4239_v14  ;;  %v4113_v24 = vadd.f32 %v3993_v8, %v9480_v59  ;;  %v3976_v4 = vmul.f32 0.044715, %v3856_v54  ;;  %v9543_v45 = vpop.f32.mrb[164].mxu0 }
 0x30e   : > { %11314 = vst [vmem:[#allocation28_spill] sm:$0xff] %v9537_v63  ;;  %11315 = vst [vmem:[#allocation30_spill] sm:$0xff] %v9539_v3  ;;  %v3882_v62 = vmul.f32 %v3762_v31, %v9517_v12  ;;  %v4214_v39 = vmul.f32 0.7978846, %v4094_v27  ;;  %v3756_v16 = vmul.f32 %v9537_v63, %v9537_v63  ;;  %v9550_v41 = vadd.f32 %v9366_v30, %v9138_v28  ;;  %v9552_v26 = vpop.f32.mrb[165].mxu0  ;;  %v9554_v14 = vpop.f32.mrb[88].mxu1 }
 0x30f   : > { %v3857_v34 = vmul.f32 %v9523_v2, %v3737_v23  ;;  %11317 = vst [vmem:[#allocation32_spill] sm:$0xff] %v9554_v14  ;;  %v4233_v8 = vmul.f32 0.7978846, %v4113_v24  ;;  %v4096_v54 = vadd.f32 %v9497_v56, %v3976_v4  ;;  %v9559_v27 = vadd.f32 %v9426_v60, %v9144_v36  ;;  %v9561_v23 = vpop.f32.mrb[166].mxu0  ;;  %v9563_v59 = vpop.f32.mrb[89].mxu1 }
 0x310   : > { %11316 = vst [vmem:[#allocation31_spill] sm:$0xff] %v9550_v41  ;;  %v4002_v31 = vmul.f32 0.044715, %v3882_v62  ;;  %11319 = vst [vmem:[#allocation3_spill] sm:$0xff] %v9563_v59  ;;  %6596 = vtanh.f32 %v4214_v39  ;;  %v3876_v3 = vmul.f32 %v3756_v16, %v9537_v63  ;;  %v3739_v24 = vmul.f32 %v9550_v41, %v9550_v41  ;;  %v9570_v14 = vpop.f32.mrb[167].mxu0  ;;  %v9572_v4 = vpop.f32.mrb[90].mxu1 }
 0x311   : > { %11318 = vst [vmem:[#allocation25_spill] sm:$0xff] %v9559_v27  ;;  %v9565_v9 = vpop.eup %6584  ;;  %v3977_v30 = vmul.f32 0.044715, %v3857_v34  ;;  %11321 = vst [vmem:[#allocation34_spill] sm:$0xff] %v9572_v4  ;;  %6598 = vtanh.f32 %v4233_v8  ;;  %v4216_v36 = vmul.f32 0.7978846, %v4096_v54  ;;  %v3771_v56 = vmul.f32 %v9559_v27, %v9559_v27 }
 0x312   : > { %11320 = vst [vmem:[#allocation29_spill] sm:$0xff] %v9565_v9  ;;  %v9574_v62 = vpop.eup %6586  ;;  %v4122_v60 = vadd.f32 %v4002_v31, %v9517_v12  ;;  %v9579_v39 = vpop.f32.mrb[91].mxu1  ;;  %v3996_v59 = vmul.f32 0.044715, %v3876_v3  ;;  %v3859_v9 = vmul.f32 %v9550_v41, %v3739_v24  ;;  %v9587_v4 = vadd.f32 %v9377_v57, %v9150_v7 }
 0x313   : > { %11322 = vst [vmem:[#allocation35_spill] sm:$0xff] %v9579_v39  ;;  %v9581_v34 = vpop.eup %6588  ;;  %v4097_v16 = vadd.f32 %v9523_v2, %v3977_v30  ;;  %6600 = vtanh.f32 %v4216_v36  ;;  %v3891_v54 = vmul.f32 %v3771_v56, %v9559_v27  ;;  %v9592_v31 = vadd.f32 %v9436_v11, %v9135_v53 }
 0x314   : > { %11323 = vst [vmem:[#allocation37_spill] sm:$0xff] %v9587_v4  ;;  %v4242_v8 = vmul.f32 0.7978846, %v4122_v60  ;;  %v9594_v12 = vpop.eup %6590  ;;  %v4116_v30 = vadd.f32 %v3996_v59, %v9537_v63  ;;  %v3979_v3 = vmul.f32 0.044715, %v3859_v9  ;;  %v3740_v24 = vmul.f32 %v9587_v4, %v9587_v4 }
 0x315   : > { %11324 = vst [vmem:[#allocation38_spill] sm:$0xff] %v9592_v31  ;;  %v4217_v39 = vmul.f32 0.7978846, %v4097_v16  ;;  %v4011_v57 = vmul.f32 0.044715, %v3891_v54  ;;  %v3765_v36 = vmul.f32 %v9592_v31, %v9592_v31  ;;  %v9603_v56 = vadd.f32 %v9386_v17, %v9138_v28  ;;  %v9605_v53 = vpop.f32.mrb[168].mxu0 }
 0x316   : > { %6602 = vtanh.f32 %v4242_v8  ;;  %v9607_v11 = vpop.eup %6592  ;;  %v4236_v60 = vmul.f32 0.7978846, %v4116_v30  ;;  %v4099_v9 = vadd.f32 %v9550_v41, %v3979_v3  ;;  %v3860_v59 = vmul.f32 %v9587_v4, %v3740_v24  ;;  %v9611_v16 = vpop.f32.mrb[169].mxu0 }
 0x317   : > { %11325 = vst [vmem:[#allocation4_spill] sm:$0xff] %v9603_v56  ;;  %11326 = vst [vmem:[#allocation5_spill] sm:$0xff] %v9607_v11  ;;  %6604 = vtanh.f32 %v4217_v39  ;;  %v9613_v8 = vpop.f32.mrb[92].mxu1  ;;  %v9615_v54 = vpop.eup %6594  ;;  %v4131_v63 = vadd.f32 %v4011_v57, %v9559_v27  ;;  %v3885_v17 = vmul.f32 %v3765_v36, %v9592_v31  ;;  %v3742_v2 = vmul.f32 %v9603_v56, %v9603_v56 }
 0x318   : > { %11327 = vst [vmem:[#allocation65_spill] sm:$0xff] %v9613_v8  ;;  %11328 = vst [vmem:[#allocation66_spill] sm:$0xff] %v9615_v54  ;;  %v9623_v39 = vadd.f32 %v9442_v49, %v9147_v1  ;;  %v9625_v30 = vpop.f32.mrb[170].mxu0  ;;  %v9627_v3 = vpop.f32.mrb[93].mxu1  ;;  %6606 = vtanh.f32 %v4236_v60  ;;  %v4219_v24 = vmul.f32 0.7978846, %v4099_v9  ;;  %v9631_v8 = vadd.f32 %v9394_v37, %v9150_v7 }
 0x319   : > { %11330 = vst [vmem:[#allocation68_spill] sm:$0xff] %v9627_v3  ;;  %v3980_v41 = vmul.f32 0.044715, %v3860_v59  ;;  %v9633_v57 = vpop.f32.mrb[171].mxu0  ;;  %v9635_v36 = vpop.f32.mrb[94].mxu1  ;;  %v3862_v1 = vmul.f32 %v9603_v56, %v3742_v2  ;;  %v9649_v59 = vadd.f32 %v9452_v46, %v9141_v25 }
 0x31a   : > { %11329 = vst [vmem:[#allocation67_spill] sm:$0xff] %v9623_v39  ;;  %11331 = vst [vmem:[#allocation69_spill] sm:$0xff] %v9635_v36  ;;  %v4251_v27 = vmul.f32 0.7978846, %v4131_v63  ;;  %v4005_v54 = vmul.f32 0.044715, %v3885_v17  ;;  %v3774_v49 = vmul.f32 %v9623_v39, %v9623_v39  ;;  %v9642_v60 = vpop.eup %6596  ;;  %6608 = vtanh.f32 %v4219_v24 }
 0x31b   : > { %v9640_v11 = vpop.f32.mrb[95].mxu1  ;;  %v4100_v9 = vadd.f32 %v9587_v4, %v3980_v41  ;;  %v3743_v37 = vmul.f32 %v9631_v8, %v9631_v8  ;;  %v9651_v63 = vpop.eup %6598  ;;  %v3982_v17 = vmul.f32 0.044715, %v3862_v1  ;;  %v3768_v41 = vmul.f32 %v9649_v59, %v9649_v59 }
 0x31c   : > { %11332 = vst [vmem:[#allocation70_spill] sm:$0xff] %v9640_v11  ;;  %11333 = vst [vmem:[#allocation71_spill] sm:$0xff] %v9651_v63  ;;  %6610 = vtanh.f32 %v4251_v27  ;;  %v4125_v2 = vadd.f32 %v4005_v54, %v9592_v31  ;;  %v3894_v11 = vmul.f32 %v3774_v49, %v9623_v39  ;;  %v4436_v4 = vadd.f32 1.0, %v9315_v52 }
 0x31d   : > { %v4220_v36 = vmul.f32 0.7978846, %v4100_v9  ;;  %v3863_v24 = vmul.f32 %v9631_v8, %v3743_v37  ;;  %v9659_v3 = vpop.eup %6600  ;;  %v4102_v46 = vadd.f32 %v9603_v56, %v3982_v17  ;;  %v4439_v27 = vadd.f32 1.0, %v9337_v42  ;;  %v9663_v54 = vpop.f32.mrb[172].mxu0 }
 0x31e   : > { %v4245_v25 = vmul.f32 0.7978846, %v4125_v2  ;;  %v4014_v63 = vmul.f32 0.044715, %v3894_v11  ;;  %v3888_v49 = vmul.f32 %v3768_v41, %v9649_v59  ;;  %v4556_v9 = vmul.f32 0.5, %v4436_v4  ;;  %v9666_v37 = vpop.f32.mrb[173].mxu0 }
 0x31f   : > { %6612 = vtanh.f32 %v4220_v36  ;;  %v3983_v1 = vmul.f32 0.044715, %v3863_v24  ;;  %11334 = vst [vmem:[#allocation72_spill] sm:$0xff] %v9666_v37  ;;  %v9668_v31 = vpop.f32.mrb[96].mxu1  ;;  %v4222_v2 = vmul.f32 0.7978846, %v4102_v46 }
 0x320   : > { %11335 = vst [vmem:[#allocation73_spill] sm:$0xff] %v9668_v31  ;;  %v9670_v52 = vpop.eup %6602  ;;  %6614 = vtanh.f32 %v4245_v25  ;;  %v4134_v17 = vadd.f32 %v4014_v63, %v9623_v39  ;;  %v4559_v11 = vmul.f32 0.5, %v4439_v27  ;;  %v9673_v56 = vpop.f32.mrb[174].mxu0  ;;  %v4008_v4 = vmul.f32 0.044715, %v3888_v49 }
 0x321   : > { %v9675_v42 = vpop.f32.mrb[97].mxu1  ;;  %v9677_v36 = vpop.eup %6604  ;;  %v4103_v24 = vadd.f32 %v9631_v8, %v3983_v1  ;;  %v4676_v41 = vmul.f32 %v9206_v15, %v4556_v9  ;;  %v4437_v31 = vadd.f32 1.0, %v9319_v58  ;;  %6616 = vtanh.f32 %v4222_v2 }
 0x322   : > { %11336 = vst [vmem:[#allocation74_spill] sm:$0xff] %v9675_v42  ;;  %v9682_v37 = vpop.f32.mrb[175].mxu0  ;;  %v9684_v25 = vpop.f32.mrb[98].mxu1  ;;  %v4254_v63 = vmul.f32 0.7978846, %v4134_v17  ;;  %v4679_v46 = vmul.f32 %v9224_v18, %v4559_v11  ;;  %v4440_v27 = vadd.f32 1.0, %v9342_v40  ;;  %v4128_v49 = vadd.f32 %v4008_v4, %v9649_v59 }
 0x323   : > { %v9688_v39 = vpop.f32.mrb[99].mxu1  ;;  %v9690_v42 = vpop.eup %6606  ;;  %v4223_v1 = vmul.f32 0.7978846, %v4103_v24  ;;  %v4557_v15 = vmul.f32 0.5, %v4437_v31  ;;  %v9695_v58 = vadd.f32 %v9438_v47, %v9138_v28  ;;  %v9699_v18 = vadd.f32 %v9482_v44, %v9159_v38 }
 0x324   : > { %6618 = vtanh.f32 %v4254_v63  ;;  %v4796_v9 = vpack.c.bf16 %v4679_v46, %v4676_v41  ;;  %v4560_v2 = vmul.f32 0.5, %v4440_v27  ;;  %v9701_v40 = vpop.eup %6608  ;;  %v4248_v17 = vmul.f32 0.7978846, %v4128_v49 }
 0x325   : > { %11337 = vst [vmem:[#allocation75_spill] sm:$0xff] %v9695_v58  ;;  %11338 = vst [vmem:[#allocation76_spill] sm:$0xff] %v9699_v18  ;;  %6620 = vtanh.f32 %v4223_v1  ;;  %v4677_v11 = vmul.f32 %v4557_v15, %v9208_v48  ;;  %v3745_v31 = vmul.f32 %v9695_v58, %v9695_v58  ;;  %v3783_v4 = vmul.f32 %v9699_v18, %v9699_v18  ;;  %v9719_v48 = vpop.f32.mrb[176].mxu0 }
 0x326   : > { %v9706_v24 = vpop.eup %6610  ;;  %5086 = vmatprep.mubr.bf16.mxu0 %v4796_v9  ;;  %v4680_v47 = vmul.f32 %v4560_v2, %v9227_v20  ;;  %v9713_v38 = vadd.f32 %v9444_v50, %v9150_v7  ;;  %v9717_v44 = vadd.f32 %v9489_v10, %v9153_v55  ;;  %6622 = vtanh.f32 %v4248_v17  ;;  %v9733_v46 = vpop.f32.mrb[177].mxu0 }
 0x327   : > { %v11341_v41 = vpack.c.bf16 %v9358_v13, %v9329_v29  ;;  %v3865_v20 = vmul.f32 %v9695_v58, %v3745_v31  ;;  %v9727_v63 = vadd.f32 %v9454_v21, %v9138_v28  ;;  %v9731_v50 = vadd.f32 %v9499_v5, %v9162_v32  ;;  %v9735_v55 = vpop.f32.mrb[100].mxu1  ;;  %v9742_v1 = vpop.f32.mrb[178].mxu0 }
 0x328   : > { %11339 = vst [vmem:[#allocation77_spill] sm:$0xff] %v9713_v38  ;;  %11340 = vst [vmem:[#allocation78_spill] sm:$0xff] %v9717_v44  ;;  %v4797_v10 = vpack.c.bf16 %v4680_v47, %v4677_v11  ;;  %v3903_v27 = vmul.f32 %v3783_v4, %v9699_v18  ;;  %v3746_v29 = vmul.f32 %v9713_v38, %v9713_v38  ;;  %v9744_v21 = vpop.f32.mrb[101].mxu1  ;;  %v9756_v2 = vpop.f32.mrb[179].mxu0 }
 0x329   : > { %5087 = vmatmul.mubr.bf16.vlgmr.msra.gmra.mrb[180].mxu0 %v11341_v41  ;;  %11342 = vst [vmem:[#allocation79_spill] sm:$0xff] %v9727_v63  ;;  %11343 = vst [vmem:[#allocation80_spill] sm:$0xff] %v9731_v50  ;;  %v3777_v13 = vmul.f32 %v9717_v44, %v9717_v44  ;;  %v9746_v49 = vpop.eup %6612  ;;  %v3985_v32 = vmul.f32 0.044715, %v3865_v20  ;;  %v3748_v5 = vmul.f32 %v9727_v63, %v9727_v63  ;;  %v9758_v17 = vpop.f32.mrb[102].mxu1 }
 0x32a   : > { %11344 = vst [vmem:[#allocation81_spill] sm:$0xff] %v9735_v55  ;;  %11345 = vst [vmem:[#allocation82_spill] sm:$0xff] %v9744_v21  ;;  %v3786_v15 = vmul.f32 %v9731_v50, %v9731_v50  ;;  %v9754_v9 = vadd.f32 %v9460_v51, %v9150_v7  ;;  %v9760_v11 = vpop.eup %6614  ;;  %5929 = vmatprep.mubr.bf16.mxu1 %v4797_v10  ;;  %v4023_v31 = vmul.f32 0.044715, %v3903_v27  ;;  %v9768_v20 = vpop.f32.mrb[103].mxu1 }
 0x32b   : > { %11347 = vst [vmem:[#allocation84_spill] sm:$0xff] %v9756_v2  ;;  %11348 = vst [vmem:[#allocation85_spill] sm:$0xff] %v9758_v17  ;;  %v3866_v47 = vmul.f32 %v9713_v38, %v3746_v29  ;;  %v3897_v4 = vmul.f32 %v3777_v13, %v9717_v44  ;;  %v9766_v41 = vadd.f32 %v9507_v22, %v9156_v35  ;;  %v9778_v29 = vpop.eup %6616 }
 0x32c   : > { %11346 = vst [vmem:[#allocation83_spill] sm:$0xff] %v9754_v9  ;;  %11350 = vst [vmem:[#allocation87_spill] sm:$0xff] %v9768_v20  ;;  %v11351_v51 = vpack.c.bf16 %v9369_v0, %v9340_v19  ;;  %v4105_v17 = vadd.f32 %v9695_v58, %v3985_v32  ;;  %v3868_v21 = vmul.f32 %v9727_v63, %v3748_v5 }
 0x32d   : > { %11349 = vst [vmem:[#allocation86_spill] sm:$0xff] %v9766_v41  ;;  %v3906_v10 = vmul.f32 %v3786_v15, %v9731_v50  ;;  %v3749_v27 = vmul.f32 %v9754_v9, %v9754_v9  ;;  %v4143_v35 = vadd.f32 %v4023_v31, %v9699_v18  ;;  %v3986_v22 = vmul.f32 0.044715, %v3866_v47 }
 0x32e   : > { %5930 = vmatmul.mubr.bf16.vlgmr.msra.gmra.mrb[140].mxu1 %v11351_v51  ;;  %v4017_v13 = vmul.f32 0.044715, %v3897_v4  ;;  %v3780_v20 = vmul.f32 %v9766_v41, %v9766_v41  ;;  %v4225_v19 = vmul.f32 0.7978846, %v4105_v17  ;;  %v3988_v0 = vmul.f32 0.044715, %v3868_v21  ;;  %v9784_v5 = vpop.eup %6618 }
 0x32f   : > { %v4026_v51 = vmul.f32 0.044715, %v3906_v10  ;;  %v3869_v32 = vmul.f32 %v9754_v9, %v3749_v27  ;;  %v4263_v15 = vmul.f32 0.7978846, %v4143_v35  ;;  %v4106_v58 = vadd.f32 %v9713_v38, %v3986_v22  ;;  %v9789_v31 = vpop.eup %6620  ;;  %v9793_v4 = vpop.f32.mrb[104].mxu1 }
 0x330   : > { %v4137_v55 = vadd.f32 %v4017_v13, %v9717_v44  ;;  %v3900_v2 = vmul.f32 %v3780_v20, %v9766_v41  ;;  %6624 = vtanh.f32 %v4225_v19  ;;  %v4108_v47 = vadd.f32 %v9727_v63, %v3988_v0  ;;  %11352 = vst [vmem:[#allocation88_spill] sm:$0xff] %v9793_v4  ;;  %v9795_v18 = vpop.eup %6622  ;;  %v11353_v44 = vld [vmem:[#allocation54_spill] sm:$0xff]  ;;  %v9799_v19 = vpop.f32.mrb[105].mxu1 }
 0x331   : > { %v4146_v17 = vadd.f32 %v4026_v51, %v9731_v50  ;;  %v3989_v21 = vmul.f32 0.044715, %v3869_v32  ;;  %6626 = vtanh.f32 %v4263_v15  ;;  %v4226_v10 = vmul.f32 0.7978846, %v4106_v58  ;;  %11354 = vst [vmem:[#allocation54_spill] sm:$0xff] %v9799_v19  ;;  %v11355_v51 = vld [vmem:[#allocation36_spill] sm:$0xff] }
 0x332   : > { %v4257_v27 = vmul.f32 0.7978846, %v4137_v55  ;;  %v4020_v35 = vmul.f32 0.044715, %v3900_v2  ;;  %v4228_v22 = vmul.f32 0.7978846, %v4108_v47 }
 0x333   : > { %v4266_v13 = vmul.f32 0.7978846, %v4146_v17  ;;  %v4109_v20 = vadd.f32 %v9754_v9, %v3989_v21  ;;  %v4442_v38 = vadd.f32 1.0, %v11353_v44  ;;  %6628 = vtanh.f32 %v4226_v10  ;;  %v11356_v4 = vld [vmem:[#allocation58_spill] sm:$0xff]  ;;  %v9804_v58 = vpop.f32.mrb[106].mxu1 }
 0x334   : > { %v4140_v0 = vadd.f32 %v4020_v35, %v9766_v41  ;;  %v4445_v32 = vadd.f32 1.0, %v11355_v51  ;;  %v4449_v15 = vadd.f32 1.0, %v11356_v4  ;;  %11357 = vst [vmem:[#allocation36_spill] sm:$0xff] %v9804_v58  ;;  %6630 = vtanh.f32 %v4257_v27  ;;  %v9807_v17 = vpop.f32.mrb[107].mxu1  ;;  %v11359_v10 = vld [vmem:[#allocation46_spill] sm:$0xff]  ;;  %v11360_v51 = vld [vmem:[#allocation52_spill] sm:$0xff] }
 0x335   : > { %v4229_v55 = vmul.f32 0.7978846, %v4109_v20  ;;  %v4562_v2 = vmul.f32 0.5, %v4442_v38  ;;  %v4452_v47 = vadd.f32 1.0, %v9484_v33  ;;  %11358 = vst [vmem:[#allocation58_spill] sm:$0xff] %v9807_v17  ;;  %6632 = vtanh.f32 %v4228_v22  ;;  %v11361_v4 = vld [vmem:[#allocation49_spill] sm:$0xff] }
 0x336   : > { %v4260_v44 = vmul.f32 0.7978846, %v4140_v0  ;;  %v4565_v21 = vmul.f32 0.5, %v4445_v32  ;;  %v4569_v19 = vmul.f32 0.5, %v4449_v15  ;;  %6634 = vtanh.f32 %v4266_v13  ;;  %v11362_v27 = vld [vmem:[#allocation47_spill] sm:$0xff]  ;;  %v11364_v33 = vld [vmem:[#allocation17_spill] sm:$0xff] }
 0x337   : > { %v4682_v35 = vmul.f32 %v11359_v10, %v4562_v2  ;;  %v4572_v50 = vmul.f32 0.5, %v4452_v47  ;;  %v4441_v63 = vadd.f32 1.0, %v11360_v51  ;;  %6636 = vtanh.f32 %v4229_v55  ;;  %v11363_v38 = vld [vmem:[#allocation7_spill] sm:$0xff]  ;;  %v11365_v0 = vld [vmem:[#allocation53_spill] sm:$0xff]  ;;  %v9816_v15 = vpop.f32.mrb[108].mxu1  ;;  %v11367_v47 = vld [vmem:[#allocation60_spill] sm:$0xff] }
 0x338   : > { %v4685_v58 = vmul.f32 %v11361_v4, %v4565_v21  ;;  %v4689_v20 = vmul.f32 %v4569_v19, %v11362_v27  ;;  %v4444_v41 = vadd.f32 1.0, %v11363_v38  ;;  %6638 = vtanh.f32 %v4260_v44  ;;  %11366 = vst [vmem:[#allocation46_spill] sm:$0xff] %v9816_v15  ;;  %v11368_v55 = vld [vmem:[#allocation21_spill] sm:$0xff]  ;;  %v9823_v21 = vpop.f32.mrb[109].mxu1  ;;  %v11371_v4 = vld [vmem:[#allocation15_spill] sm:$0xff]  ;;  %v11372_v27 = vld [vmem:[#allocation12_spill] sm:$0xff] }
 0x339   : > { %v4692_v17 = vmul.f32 %v4572_v50, %v11364_v33  ;;  %v4561_v22 = vmul.f32 0.5, %v4441_v63  ;;  %v4455_v32 = vadd.f32 1.0, %v11365_v0  ;;  %v4458_v10 = vadd.f32 1.0, %v11367_v47  ;;  %11370 = vst [vmem:[#allocation49_spill] sm:$0xff] %v9823_v21 }
 0x33a   : > { %v4799_v13 = vpack.c.bf16 %v4685_v58, %v4682_v35  ;;  %v4564_v2 = vmul.f32 0.5, %v4444_v41  ;;  %v9821_v51 = vadd.f32 %v11368_v55, %v9138_v28  ;;  %v9825_v19 = vpop.eup %6624  ;;  %v9830_v38 = vadd.f32 %v9543_v45, %v11372_v27  ;;  %v9832_v58 = vpop.f32.mrb[110].mxu1  ;;  %v11376_v35 = vld [vmem:[#allocation20_spill] sm:$0xff]  ;;  %v11378_v45 = vld [vmem:[#allocation18_spill] sm:$0xff] }
 0x33b   : > { %v4803_v44 = vpack.c.bf16 %v4692_v17, %v4689_v20  ;;  %v4681_v50 = vmul.f32 %v11371_v4, %v4561_v22  ;;  %v4575_v63 = vmul.f32 0.5, %v4455_v32  ;;  %11374 = vst [vmem:[#allocation7_spill] sm:$0xff] %v9832_v58  ;;  %v9834_v41 = vpop.eup %6626  ;;  %v4578_v0 = vmul.f32 0.5, %v4458_v10  ;;  %v9843_v20 = vpop.f32.mrb[111].mxu1  ;;  %v11379_v55 = vld [vmem:[#allocation6_spill] sm:$0xff]  ;;  %v11382_v27 = vld [vmem:[#allocation48_spill] sm:$0xff] }
 0x33c   : > { %11369 = vst [vmem:[#allocation52_spill] sm:$0xff] %v9821_v51  ;;  %11373 = vst [vmem:[#allocation47_spill] sm:$0xff] %v9830_v38  ;;  %5094 = vmatprep.mubr.bf16.mxu0 %v4799_v13  ;;  %v4684_v33 = vmul.f32 %v11376_v35, %v4564_v2  ;;  %v3751_v47 = vmul.f32 %v9821_v51, %v9821_v51  ;;  %v9841_v17 = vadd.f32 %v9501_v61, %v9150_v7  ;;  %v11380_v2 = vld [vmem:[#allocation24_spill] sm:$0xff] }
 0x33d   : > { %11375 = vst [vmem:[#allocation17_spill] sm:$0xff] %v9834_v41  ;;  %11377 = vst [vmem:[#allocation53_spill] sm:$0xff] %v9843_v20  ;;  %5933 = vmatprep.mubr.bf16.mxu1 %v4803_v44  ;;  %v4695_v22 = vmul.f32 %v4575_v63, %v11378_v45  ;;  %v3795_v32 = vmul.f32 %v9830_v38, %v9830_v38  ;;  %v9850_v13 = vadd.f32 %v9552_v26, %v11379_v55  ;;  %v9856_v4 = vpop.eup %6628 }
 0x33e   : > { %v9854_v10 = vadd.f32 %v11380_v2, %v9138_v28  ;;  %v4798_v61 = vpack.c.bf16 %v4684_v33, %v4681_v50  ;;  %v4698_v35 = vmul.f32 %v4578_v0, %v11382_v27  ;;  %v3871_v44 = vmul.f32 %v9821_v51, %v3751_v47  ;;  %v9862_v45 = vpop.eup %6630  ;;  %v11383_v2 = vld [vmem:[#allocation39_spill] sm:$0xff] }
 0x33f   : > { %v3752_v63 = vmul.f32 %v9841_v17, %v9841_v17  ;;  %v3915_v20 = vmul.f32 %v3795_v32, %v9830_v38  ;;  %v3789_v26 = vmul.f32 %v9850_v13, %v9850_v13  ;;  %v9871_v50 = vadd.f32 %v9561_v23, %v11383_v2  ;;  %v9873_v33 = vpop.eup %6632  ;;  %v9886_v2 = vpop.f32.mrb[112].mxu1 }
 0x340   : > { %11381 = vst [vmem:[#allocation60_spill] sm:$0xff] %v9854_v10  ;;  %v3754_v55 = vmul.f32 %v9854_v10, %v9854_v10  ;;  %11385 = vst [vmem:[#allocation15_spill] sm:$0xff] %v9873_v33  ;;  %5095 = vmatmul.mubr.bf16.gmra.mrb[184].mxu0 %v4798_v61  ;;  %v4806_v0 = vpack.c.bf16 %v4698_v35, %v4695_v22  ;;  %v3991_v47 = vmul.f32 0.044715, %v3871_v44  ;;  %v9880_v58 = vpop.eup %6634  ;;  %v11388_v44 = vld [vmem:[#allocation40_spill] sm:$0xff] }
 0x341   : > { %11384 = vst [vmem:[#allocation21_spill] sm:$0xff] %v9871_v50  ;;  %v3872_v27 = vmul.f32 %v9841_v17, %v3752_v63  ;;  %v9878_v32 = vadd.f32 %v9519_v43, %v9150_v7  ;;  %11386 = vst [vmem:[#allocation12_spill] sm:$0xff] %v9880_v58  ;;  %v4035_v21 = vmul.f32 0.044715, %v3915_v20  ;;  %v3909_v15 = vmul.f32 %v3789_v26, %v9850_v13  ;;  %v9888_v22 = vpop.eup %6636 }
 0x342   : > { %v3874_v41 = vmul.f32 %v9854_v10, %v3754_v55  ;;  %v3798_v23 = vmul.f32 %v9871_v50, %v9871_v50  ;;  %11387 = vst [vmem:[#allocation20_spill] sm:$0xff] %v9886_v2  ;;  %5934 = vmatmul.mubr.bf16.gmra.mrb[144].mxu1 %v4806_v0  ;;  %v4111_v61 = vadd.f32 %v9821_v51, %v3991_v47  ;;  %v9897_v63 = vpop.eup %6638  ;;  %v9905_v51 = vpop.f32.mrb[113].mxu1 }
 0x343   : > { %v3992_v35 = vmul.f32 0.044715, %v3872_v27  ;;  %v3755_v43 = vmul.f32 %v9878_v32, %v9878_v32  ;;  %v9895_v20 = vadd.f32 %v9570_v14, %v11388_v44  ;;  %v4155_v26 = vadd.f32 %v4035_v21, %v9830_v38  ;;  %11390 = vst [vmem:[#allocation6_spill] sm:$0xff] %v9905_v51 }
 0x344   : > { %v4029_v55 = vmul.f32 0.044715, %v3909_v15  ;;  %v3994_v58 = vmul.f32 0.044715, %v3874_v41  ;;  %v3918_v2 = vmul.f32 %v3798_v23, %v9871_v50  ;;  %v4231_v33 = vmul.f32 0.7978846, %v4111_v61 }
 0x345   : > { %11389 = vst [vmem:[#allocation18_spill] sm:$0xff] %v9895_v20  ;;  %v4112_v0 = vadd.f32 %v9841_v17, %v3992_v35  ;;  %v3875_v47 = vmul.f32 %v9878_v32, %v3755_v43  ;;  %v3792_v27 = vmul.f32 %v9895_v20, %v9895_v20  ;;  %v4275_v14 = vmul.f32 0.7978846, %v4155_v26  ;;  %v9909_v15 = vpop.f32.mrb[114].mxu1 }
 0x346   : > { %v4149_v44 = vadd.f32 %v4029_v55, %v9850_v13  ;;  %v4114_v9 = vadd.f32 %v9854_v10, %v3994_v58  ;;  %v4038_v21 = vmul.f32 0.044715, %v3918_v2  ;;  %11391 = vst [vmem:[#allocation24_spill] sm:$0xff] %v9909_v15  ;;  %6640 = vtanh.f32 %v4231_v33  ;;  %v9912_v35 = vpop.f32.mrb[115].mxu1 }
 0x347   : > { %v4232_v41 = vmul.f32 0.7978846, %v4112_v0  ;;  %v3995_v23 = vmul.f32 0.044715, %v3875_v47  ;;  %v3912_v61 = vmul.f32 %v3792_v27, %v9895_v20  ;;  %11392 = vst [vmem:[#allocation48_spill] sm:$0xff] %v9912_v35  ;;  %6642 = vtanh.f32 %v4275_v14  ;;  %v11393_v0 = vld [vmem:[#allocation30_spill] sm:$0xff] }
 0x348   : > { %v4269_v43 = vmul.f32 0.7978846, %v4149_v44  ;;  %v4234_v38 = vmul.f32 0.7978846, %v4114_v9  ;;  %v4158_v51 = vadd.f32 %v4038_v21, %v9871_v50  ;;  %v4448_v58 = vadd.f32 1.0, %v9530_v6  ;;  %v11396_v35 = vld [vmem:[#allocation57_spill] sm:$0xff] }
 0x349   : > { %6644 = vtanh.f32 %v4232_v41  ;;  %v4115_v26 = vadd.f32 %v9878_v32, %v3995_v23  ;;  %v4032_v55 = vmul.f32 0.044715, %v3912_v61  ;;  %v4451_v33 = vadd.f32 1.0, %v9581_v34  ;;  %v11394_v61 = vld [vmem:[#allocation8_spill] sm:$0xff] }
 0x34a   : > { %6646 = vtanh.f32 %v4269_v43  ;;  %v4278_v2 = vmul.f32 0.7978846, %v4158_v51  ;;  %v4461_v47 = vadd.f32 1.0, %v11393_v0  ;;  %v4568_v44 = vmul.f32 0.5, %v4448_v58  ;;  %v11395_v43 = vld [vmem:[#allocation23_spill] sm:$0xff]  ;;  %v11399_v58 = vld [vmem:[#allocation2_spill] sm:$0xff] }
 0x34b   : > { %6648 = vtanh.f32 %v4234_v38  ;;  %v4235_v27 = vmul.f32 0.7978846, %v4115_v26  ;;  %v4152_v14 = vadd.f32 %v4032_v55, %v9895_v20  ;;  %v4571_v9 = vmul.f32 0.5, %v4451_v33  ;;  %v11397_v0 = vld [vmem:[#allocation51_spill] sm:$0xff]  ;;  %v11398_v26 = vld [vmem:[#allocation29_spill] sm:$0xff]  ;;  %v9928_v33 = vpop.f32.mrb[116].mxu1 }
 0x34c   : > { %6650 = vtanh.f32 %v4278_v2  ;;  %v4464_v21 = vadd.f32 1.0, %v9594_v12  ;;  %v4581_v41 = vmul.f32 0.5, %v4461_v47  ;;  %v4688_v6 = vmul.f32 %v11394_v61, %v4568_v44  ;;  %11400 = vst [vmem:[#allocation39_spill] sm:$0xff] %v9928_v33  ;;  %v11402_v61 = vld [vmem:[#allocation32_spill] sm:$0xff] }
 0x34d   : > { %6652 = vtanh.f32 %v4235_v27  ;;  %v4272_v23 = vmul.f32 0.7978846, %v4152_v14  ;;  %v4447_v51 = vadd.f32 1.0, %v11395_v43  ;;  %v4691_v34 = vmul.f32 %v11396_v35, %v4571_v9  ;;  %v11401_v27 = vld [vmem:[#allocation59_spill] sm:$0xff] }
 0x34e   : > { %v4584_v15 = vmul.f32 0.5, %v4464_v21  ;;  %v4701_v38 = vmul.f32 %v4581_v41, %v11397_v0  ;;  %v4450_v50 = vadd.f32 1.0, %v11398_v26  ;;  %v4467_v2 = vadd.f32 1.0, %v11399_v58  ;;  %v11404_v21 = vld [vmem:[#allocation19_spill] sm:$0xff] }
 0x34f   : > { %6654 = vtanh.f32 %v4272_v23  ;;  %v4567_v55 = vmul.f32 0.5, %v4447_v51  ;;  %v4470_v12 = vadd.f32 1.0, %v9574_v62  ;;  %v4802_v47 = vpack.c.bf16 %v4691_v34, %v4688_v6  ;;  %v11405_v51 = vld [vmem:[#allocation13_spill] sm:$0xff]  ;;  %v11409_v26 = vld [vmem:[#allocation3_spill] sm:$0xff] }
 0x350   : > { %v4704_v14 = vmul.f32 %v4584_v15, %v11401_v27  ;;  %v4570_v44 = vmul.f32 0.5, %v4450_v50  ;;  %v9933_v35 = vadd.f32 %v11402_v61, %v9138_v28  ;;  %v9935_v9 = vpop.eup %6640  ;;  %v4587_v23 = vmul.f32 0.5, %v4467_v2  ;;  %v11408_v15 = vld [vmem:[#allocation10_spill] sm:$0xff]  ;;  %v11411_v27 = vld [vmem:[#allocation55_spill] sm:$0xff] }
 0x351   : > { %v4687_v41 = vmul.f32 %v11404_v21, %v4567_v55  ;;  %v4590_v43 = vmul.f32 0.5, %v4470_v12  ;;  %v9940_v0 = vadd.f32 %v9605_v53, %v11405_v51  ;;  %v9942_v62 = vpop.eup %6642  ;;  %5102 = vmatprep.mubr.bf16.mxu0 %v4802_v47  ;;  %v9949_v58 = vadd.f32 %v11409_v26, %v9150_v7  ;;  %v11410_v2 = vld [vmem:[#allocation50_spill] sm:$0xff]  ;;  %v11412_v47 = vld [vmem:[#allocation56_spill] sm:$0xff] }
 0x352   : > { %11403 = vst [vmem:[#allocation40_spill] sm:$0xff] %v9933_v35  ;;  %11407 = vst [vmem:[#allocation8_spill] sm:$0xff] %v9942_v62  ;;  %v4809_v6 = vpack.c.bf16 %v4704_v14, %v4701_v38  ;;  %v4690_v50 = vmul.f32 %v11408_v15, %v4570_v44  ;;  %v3757_v34 = vmul.f32 %v9933_v35, %v9933_v35 }
 0x353   : > { %11406 = vst [vmem:[#allocation30_spill] sm:$0xff] %v9940_v0  ;;  %v9951_v55 = vpop.eup %6644  ;;  %v4707_v12 = vmul.f32 %v4587_v23, %v11410_v2  ;;  %v4710_v53 = vmul.f32 %v4590_v43, %v11411_v27  ;;  %v3807_v61 = vmul.f32 %v9940_v0, %v9940_v0  ;;  %v9959_v38 = vadd.f32 %v9611_v16, %v11412_v47  ;;  %v11414_v23 = vld [vmem:[#allocation34_spill] sm:$0xff]  ;;  %v9970_v43 = vpop.f32.mrb[117].mxu1 }
 0x354   : > { %v9961_v14 = vpop.eup %6646  ;;  %5937 = vmatprep.mubr.bf16.mxu1 %v4809_v6  ;;  %v4801_v44 = vpack.c.bf16 %v4690_v50, %v4687_v41  ;;  %v3877_v21 = vmul.f32 %v9933_v35, %v3757_v34  ;;  %v3758_v51 = vmul.f32 %v9949_v58, %v9949_v58  ;;  %v9968_v15 = vadd.f32 %v11414_v23, %v9138_v28  ;;  %v11418_v41 = vld [vmem:[#allocation41_spill] sm:$0xff]  ;;  %v9981_v34 = vpop.f32.mrb[118].mxu1 }
 0x355   : > { %11413 = vst [vmem:[#allocation23_spill] sm:$0xff] %v9959_v38  ;;  %11416 = vst [vmem:[#allocation51_spill] sm:$0xff] %v9970_v43  ;;  %v9972_v26 = vpop.eup %6648  ;;  %v4812_v2 = vpack.c.bf16 %v4710_v53, %v4707_v12  ;;  %v3927_v16 = vmul.f32 %v3807_v61, %v9940_v0  ;;  %v3801_v6 = vmul.f32 %v9959_v38, %v9959_v38  ;;  %v11422_v53 = vld [vmem:[#allocation35_spill] sm:$0xff]  ;;  %v9992_v43 = vpop.f32.mrb[119].mxu1 }
 0x356   : > { %11415 = vst [vmem:[#allocation57_spill] sm:$0xff] %v9968_v15  ;;  %11417 = vst [vmem:[#allocation29_spill] sm:$0xff] %v9972_v26  ;;  %v9979_v50 = vadd.f32 %v9625_v30, %v11418_v41  ;;  %v9983_v27 = vpop.eup %6650  ;;  %5103 = vmatmul.mubr.bf16.gmra.mrb[188].mxu0 %v4801_v44  ;;  %v3997_v47 = vmul.f32 0.044715, %v3877_v21  ;;  %v3878_v23 = vmul.f32 %v9949_v58, %v3758_v51  ;;  %v11424_v21 = vld [vmem:[#allocation11_spill] sm:$0xff] }
 0x357   : > { %11420 = vst [vmem:[#allocation59_spill] sm:$0xff] %v9981_v34  ;;  %11421 = vst [vmem:[#allocation32_spill] sm:$0xff] %v9983_v27  ;;  %v3760_v12 = vmul.f32 %v9968_v15, %v9968_v15  ;;  %v9990_v61 = vadd.f32 %v11422_v53, %v9150_v7  ;;  %v9994_v33 = vpop.eup %6652  ;;  %5938 = vmatmul.mubr.bf16.gmra.mrb[148].mxu1 %v4812_v2  ;;  %v4047_v30 = vmul.f32 0.044715, %v3927_v16  ;;  %v10003_v34 = vpop.f32.mrb[120].mxu1 }
 0x358   : > { %11419 = vst [vmem:[#allocation2_spill] sm:$0xff] %v9979_v50  ;;  %11423 = vst [vmem:[#allocation19_spill] sm:$0xff] %v9992_v43  ;;  %v3921_v41 = vmul.f32 %v3801_v6, %v9959_v38  ;;  %v3810_v44 = vmul.f32 %v9979_v50, %v9979_v50  ;;  %v10001_v51 = vadd.f32 %v9633_v57, %v11424_v21  ;;  %v3998_v10 = vmul.f32 0.044715, %v3878_v23 }
 0x359   : > { %11426 = vst [vmem:[#allocation10_spill] sm:$0xff] %v10003_v34  ;;  %v4117_v53 = vadd.f32 %v9933_v35, %v3997_v47  ;;  %v3880_v43 = vmul.f32 %v9968_v15, %v3760_v12  ;;  %v3761_v2 = vmul.f32 %v9990_v61, %v9990_v61  ;;  %v10009_v16 = vpop.eup %6654  ;;  %v4167_v6 = vadd.f32 %v4047_v30, %v9940_v0  ;;  %v10020_v0 = vpop.f32.mrb[121].mxu1 }
 0x35a   : > { %11425 = vst [vmem:[#allocation13_spill] sm:$0xff] %v10001_v51  ;;  %v4041_v27 = vmul.f32 0.044715, %v3921_v41  ;;  %v3930_v62 = vmul.f32 %v3810_v44, %v9979_v50  ;;  %v3804_v57 = vmul.f32 %v10001_v51, %v10001_v51  ;;  %v4118_v34 = vadd.f32 %v9949_v58, %v3998_v10  ;;  %11427 = vst [vmem:[#allocation3_spill] sm:$0xff] %v10020_v0 }
 0x35b   : > { %v4237_v21 = vmul.f32 0.7978846, %v4117_v53  ;;  %v4000_v47 = vmul.f32 0.044715, %v3880_v43  ;;  %v3881_v23 = vmul.f32 %v9990_v61, %v3761_v2  ;;  %v4287_v12 = vmul.f32 0.7978846, %v4167_v6 }
 0x35c   : > { %v4161_v35 = vadd.f32 %v4041_v27, %v9959_v38  ;;  %v4050_v26 = vmul.f32 0.044715, %v3930_v62  ;;  %v3924_v20 = vmul.f32 %v3804_v57, %v10001_v51  ;;  %v4238_v30 = vmul.f32 0.7978846, %v4118_v34 }
 0x35d   : > { %6656 = vtanh.f32 %v4237_v21  ;;  %v4120_v41 = vadd.f32 %v9968_v15, %v4000_v47  ;;  %v4001_v44 = vmul.f32 0.044715, %v3881_v23  ;;  %v4454_v62 = vadd.f32 1.0, %v9642_v60  ;;  %v10027_v21 = vpop.f32.mrb[122].mxu1  ;;  %v11429_v23 = vld [vmem:[#allocation71_spill] sm:$0xff] }
 0x35e   : > { %6658 = vtanh.f32 %v4287_v12  ;;  %v4281_v53 = vmul.f32 0.7978846, %v4161_v35  ;;  %v4170_v10 = vadd.f32 %v4050_v26, %v9979_v50  ;;  %v4044_v43 = vmul.f32 0.044715, %v3924_v20  ;;  %11428 = vst [vmem:[#allocation50_spill] sm:$0xff] %v10027_v21  ;;  %v10030_v20 = vpop.f32.mrb[123].mxu1 }
 0x35f   : > { %6660 = vtanh.f32 %v4238_v30  ;;  %v4240_v2 = vmul.f32 0.7978846, %v4120_v41  ;;  %v4121_v6 = vadd.f32 %v9990_v61, %v4001_v44  ;;  %v4457_v57 = vadd.f32 1.0, %v9677_v36  ;;  %11430 = vst [vmem:[#allocation55_spill] sm:$0xff] %v10030_v20  ;;  %v10033_v41 = vpop.f32.mrb[124].mxu1  ;;  %v11432_v44 = vld [vmem:[#allocation63_spill] sm:$0xff] }
 0x360   : > { %6662 = vtanh.f32 %v4281_v53  ;;  %v4290_v27 = vmul.f32 0.7978846, %v4170_v10  ;;  %v4164_v34 = vadd.f32 %v4044_v43, %v10001_v51  ;;  %v4574_v35 = vmul.f32 0.5, %v4454_v62  ;;  %11431 = vst [vmem:[#allocation56_spill] sm:$0xff] %v10033_v41  ;;  %v11433_v10 = vld [vmem:[#allocation5_spill] sm:$0xff]  ;;  %v11435_v20 = vld [vmem:[#allocation64_spill] sm:$0xff] }
 0x361   : > { %6664 = vtanh.f32 %v4240_v2  ;;  %v4241_v47 = vmul.f32 0.7978846, %v4121_v6  ;;  %v4473_v26 = vadd.f32 1.0, %v11429_v23  ;;  %v4577_v30 = vmul.f32 0.5, %v4457_v57  ;;  %v11434_v2 = vld [vmem:[#allocation27_spill] sm:$0xff]  ;;  %v11436_v57 = vld [vmem:[#allocation66_spill] sm:$0xff] }
 0x362   : > { %6666 = vtanh.f32 %v4290_v27  ;;  %v4284_v12 = vmul.f32 0.7978846, %v4164_v34  ;;  %v4476_v60 = vadd.f32 1.0, %v9690_v42  ;;  %v4694_v53 = vmul.f32 %v11432_v44, %v4574_v35 }
 0x363   : > { %6668 = vtanh.f32 %v4241_v47  ;;  %v4593_v36 = vmul.f32 0.5, %v4473_v26  ;;  %v4453_v43 = vadd.f32 1.0, %v11433_v10  ;;  %v4697_v6 = vmul.f32 %v11434_v2, %v4577_v30  ;;  %v11437_v47 = vld [vmem:[#allocation28_spill] sm:$0xff]  ;;  %v11438_v26 = vld [vmem:[#allocation65_spill] sm:$0xff]  ;;  %v11445_v2 = vld [vmem:[#allocation22_spill] sm:$0xff] }
 0x364   : > { %6670 = vtanh.f32 %v4284_v12  ;;  %v4596_v62 = vmul.f32 0.5, %v4476_v60  ;;  %v4456_v23 = vadd.f32 1.0, %v9659_v3  ;;  %v4479_v21 = vadd.f32 1.0, %v11436_v57  ;;  %v11440_v30 = vld [vmem:[#allocation61_spill] sm:$0xff] }
 0x365   : > { %v4713_v27 = vmul.f32 %v4593_v36, %v11435_v20  ;;  %v4573_v34 = vmul.f32 0.5, %v4453_v43  ;;  %v4482_v42 = vadd.f32 1.0, %v9670_v52  ;;  %v4805_v41 = vpack.c.bf16 %v4697_v6, %v4694_v53  ;;  %v11441_v20 = vld [vmem:[#allocation14_spill] sm:$0xff]  ;;  %v10054_v43 = vpop.f32.mrb[125].mxu1  ;;  %v11447_v57 = vld [vmem:[#allocation33_spill] sm:$0xff] }
 0x366   : > { %v4716_v0 = vmul.f32 %v4596_v62, %v11437_v47  ;;  %v4576_v35 = vmul.f32 0.5, %v4456_v23  ;;  %v10045_v44 = vadd.f32 %v11438_v26, %v9138_v28  ;;  %v4599_v3 = vmul.f32 0.5, %v4479_v21  ;;  %11443 = vst [vmem:[#allocation35_spill] sm:$0xff] %v10054_v43  ;;  %v11446_v23 = vld [vmem:[#allocation68_spill] sm:$0xff] }
 0x367   : > { %v10047_v12 = vpop.eup %6656  ;;  %v4693_v60 = vmul.f32 %v11440_v30, %v4573_v34  ;;  %v4602_v10 = vmul.f32 0.5, %v4482_v42  ;;  %v10052_v36 = vadd.f32 %v9663_v54, %v11441_v20  ;;  %5110 = vmatprep.mubr.bf16.mxu0 %v4805_v41  ;;  %v10063_v34 = vadd.f32 %v11446_v23, %v9150_v7  ;;  %v11448_v42 = vld [vmem:[#allocation26_spill] sm:$0xff] }
 0x368   : > { %11439 = vst [vmem:[#allocation34_spill] sm:$0xff] %v10045_v44  ;;  %v10056_v52 = vpop.eup %6658  ;;  %v4815_v53 = vpack.c.bf16 %v4716_v0, %v4713_v27  ;;  %v4696_v6 = vmul.f32 %v11445_v2, %v4576_v35  ;;  %v3763_v62 = vmul.f32 %v10045_v44, %v10045_v44  ;;  %v4719_v54 = vmul.f32 %v4599_v3, %v11447_v57  ;;  %v11449_v41 = vld [vmem:[#allocation42_spill] sm:$0xff]  ;;  %v11450_v0 = vld [vmem:[#allocation72_spill] sm:$0xff]  ;;  %v11451_v3 = vld [vmem:[#allocation69_spill] sm:$0xff] }
 0x369   : > { %11442 = vst [vmem:[#allocation41_spill] sm:$0xff] %v10052_v36  ;;  %11444 = vst [vmem:[#allocation11_spill] sm:$0xff] %v10056_v52  ;;  %v10065_v21 = vpop.eup %6660  ;;  %v4722_v47 = vmul.f32 %v4602_v10, %v11448_v42  ;;  %v3819_v26 = vmul.f32 %v10052_v36, %v10052_v36  ;;  %v10073_v27 = vadd.f32 %v11450_v0, %v11449_v41  ;;  %v11453_v0 = vld [vmem:[#allocation44_spill] sm:$0xff] }
 0x36a   : > { %v10075_v35 = vpop.eup %6662  ;;  %5941 = vmatprep.mubr.bf16.mxu1 %v4815_v53  ;;  %v4804_v30 = vpack.c.bf16 %v4696_v6, %v4693_v60  ;;  %v3883_v20 = vmul.f32 %v10045_v44, %v3763_v62  ;;  %v3764_v2 = vmul.f32 %v10063_v34, %v10063_v34  ;;  %v10082_v23 = vadd.f32 %v11451_v3, %v9138_v28  ;;  %v10093_v53 = vpop.f32.mrb[126].mxu1 }
 0x36b   : > { %v10084_v10 = vpop.eup %6664  ;;  %v4818_v57 = vpack.c.bf16 %v4722_v47, %v4719_v54  ;;  %v3939_v42 = vmul.f32 %v3819_v26, %v10052_v36  ;;  %v3813_v41 = vmul.f32 %v10073_v27, %v10073_v27  ;;  %v10091_v60 = vadd.f32 %v9673_v56, %v11453_v0  ;;  %11454 = vst [vmem:[#allocation63_spill] sm:$0xff] %v10093_v53  ;;  %v11456_v47 = vld [vmem:[#allocation70_spill] sm:$0xff]  ;;  %v10104_v43 = vpop.f32.mrb[127].mxu1 }
 0x36c   : > { %11452 = vst [vmem:[#allocation71_spill] sm:$0xff] %v10084_v10  ;;  %v10095_v6 = vpop.eup %6666  ;;  %5111 = vmatmul.mubr.bf16.gmra.mrb[192].mxu0 %v4804_v30  ;;  %v4003_v62 = vmul.f32 0.044715, %v3883_v20  ;;  %v3884_v3 = vmul.f32 %v10063_v34, %v3764_v2  ;;  %v3766_v54 = vmul.f32 %v10082_v23, %v10082_v23  ;;  %v10102_v26 = vadd.f32 %v11456_v47, %v9150_v7  ;;  %v11458_v20 = vld [vmem:[#allocation43_spill] sm:$0xff]  ;;  %v10115_v53 = vpop.f32.mrb[128].mxu1 }
 0x36d   : > { %11455 = vst [vmem:[#allocation5_spill] sm:$0xff] %v10095_v6  ;;  %11457 = vst [vmem:[#allocation27_spill] sm:$0xff] %v10104_v43  ;;  %v10106_v50 = vpop.eup %6668  ;;  %5942 = vmatmul.mubr.bf16.gmra.mrb[152].mxu1 %v4818_v57  ;;  %v4059_v56 = vmul.f32 0.044715, %v3939_v42  ;;  %v3933_v0 = vmul.f32 %v3813_v41, %v10073_v27  ;;  %v3822_v30 = vmul.f32 %v10091_v60, %v10091_v60 }
 0x36e   : > { %v10113_v2 = vadd.f32 %v9682_v37, %v11458_v20  ;;  %11459 = vst [vmem:[#allocation64_spill] sm:$0xff] %v10115_v53  ;;  %v10117_v15 = vpop.eup %6670  ;;  %v4123_v47 = vadd.f32 %v10045_v44, %v4003_v62  ;;  %v4004_v43 = vmul.f32 0.044715, %v3884_v3  ;;  %v3886_v6 = vmul.f32 %v10082_v23, %v3766_v54 }
 0x36f   : > { %v3767_v57 = vmul.f32 %v10102_v26, %v10102_v26  ;;  %v4179_v42 = vadd.f32 %v4059_v56, %v10052_v36  ;;  %v4053_v41 = vmul.f32 0.044715, %v3933_v0  ;;  %v3942_v52 = vmul.f32 %v3822_v30, %v10091_v60 }
 0x370   : > { %v3816_v37 = vmul.f32 %v10113_v2, %v10113_v2  ;;  %v4243_v20 = vmul.f32 0.7978846, %v4123_v47  ;;  %v4124_v53 = vadd.f32 %v10063_v34, %v4004_v43  ;;  %v4006_v51 = vmul.f32 0.044715, %v3886_v6  ;;  %v10133_v43 = vpop.f32.mrb[129].mxu1 }
 0x371   : > { %v3887_v62 = vmul.f32 %v10102_v26, %v3767_v57  ;;  %v4299_v3 = vmul.f32 0.7978846, %v4179_v42  ;;  %v4173_v54 = vadd.f32 %v4053_v41, %v10073_v27  ;;  %v4062_v44 = vmul.f32 0.044715, %v3942_v52  ;;  %11460 = vst [vmem:[#allocation66_spill] sm:$0xff] %v10133_v43  ;;  %v10139_v41 = vpop.f32.mrb[130].mxu1 }
 0x372   : > { %v3936_v10 = vmul.f32 %v3816_v37, %v10113_v2  ;;  %6672 = vtanh.f32 %v4243_v20  ;;  %v4244_v56 = vmul.f32 0.7978846, %v4124_v53  ;;  %v4126_v0 = vadd.f32 %v10082_v23, %v4006_v51  ;;  %11461 = vst [vmem:[#allocation28_spill] sm:$0xff] %v10139_v41  ;;  %v10142_v20 = vpop.f32.mrb[131].mxu1 }
 0x373   : > { %v4007_v30 = vmul.f32 0.044715, %v3887_v62  ;;  %6674 = vtanh.f32 %v4299_v3  ;;  %v4293_v36 = vmul.f32 0.7978846, %v4173_v54  ;;  %v4182_v47 = vadd.f32 %v4062_v44, %v10091_v60  ;;  %11462 = vst [vmem:[#allocation65_spill] sm:$0xff] %v10142_v20 }
 0x374   : > { %v4056_v38 = vmul.f32 0.044715, %v3936_v10  ;;  %6676 = vtanh.f32 %v4244_v56  ;;  %v4246_v6 = vmul.f32 0.7978846, %v4126_v0  ;;  %v4460_v52 = vadd.f32 1.0, %v9746_v49 }
 0x375   : > { %v4127_v57 = vadd.f32 %v10102_v26, %v4007_v30  ;;  %6678 = vtanh.f32 %v4293_v36  ;;  %v4302_v42 = vmul.f32 0.7978846, %v4182_v47  ;;  %v4463_v51 = vadd.f32 1.0, %v9789_v31  ;;  %v10145_v36 = vpop.f32.mrb[132].mxu1  ;;  %v11465_v47 = vld [vmem:[#allocation38_spill] sm:$0xff] }
 0x376   : > { %v4176_v53 = vadd.f32 %v4056_v38, %v10113_v2  ;;  %6680 = vtanh.f32 %v4246_v6  ;;  %v4580_v44 = vmul.f32 0.5, %v4460_v52  ;;  %v4485_v10 = vadd.f32 1.0, %v9760_v11  ;;  %11463 = vst [vmem:[#allocation61_spill] sm:$0xff] %v10145_v36  ;;  %v11464_v38 = vld [vmem:[#allocation37_spill] sm:$0xff] }
 0x377   : > { %v4247_v37 = vmul.f32 0.7978846, %v4127_v57  ;;  %6682 = vtanh.f32 %v4302_v42  ;;  %v4583_v3 = vmul.f32 0.5, %v4463_v51  ;;  %v4488_v49 = vadd.f32 1.0, %v9795_v18 }
 0x378   : > { %v4296_v62 = vmul.f32 0.7978846, %v4176_v53  ;;  %v4700_v54 = vmul.f32 %v11464_v38, %v4580_v44  ;;  %v4605_v31 = vmul.f32 0.5, %v4485_v10  ;;  %v4459_v56 = vadd.f32 1.0, %v9701_v40 }
 0x379   : > { %6684 = vtanh.f32 %v4247_v37  ;;  %v4703_v0 = vmul.f32 %v9631_v8, %v4583_v3  ;;  %v4608_v30 = vmul.f32 0.5, %v4488_v49  ;;  %v4462_v11 = vadd.f32 1.0, %v9778_v29  ;;  %v11466_v37 = vld [vmem:[#allocation73_spill] sm:$0xff]  ;;  %v11467_v8 = vld [vmem:[#allocation31_spill] sm:$0xff] }
 0x37a   : > { %6686 = vtanh.f32 %v4296_v62  ;;  %v4725_v6 = vmul.f32 %v4605_v31, %v11465_v47  ;;  %v4579_v57 = vmul.f32 0.5, %v4459_v56  ;;  %v4491_v52 = vadd.f32 1.0, %v9706_v24  ;;  %v11468_v3 = vld [vmem:[#allocation45_spill] sm:$0xff]  ;;  %v11471_v31 = vld [vmem:[#allocation74_spill] sm:$0xff]  ;;  %v11473_v47 = vld [vmem:[#allocation67_spill] sm:$0xff] }
 0x37b   : > { %v4494_v18 = vadd.f32 1.0, %v9784_v5  ;;  %v4808_v42 = vpack.c.bf16 %v4703_v0, %v4700_v54  ;;  %v4728_v53 = vmul.f32 %v4608_v30, %v9649_v59  ;;  %v4582_v51 = vmul.f32 0.5, %v4462_v11  ;;  %v11470_v59 = vld [vmem:[#allocation4_spill] sm:$0xff]  ;;  %v11472_v30 = vld [vmem:[#allocation25_spill] sm:$0xff] }
 0x37c   : > { %v10157_v40 = vadd.f32 %v11466_v37, %v9138_v28  ;;  %v10159_v44 = vpop.eup %6672  ;;  %v4699_v10 = vmul.f32 %v11467_v8, %v4579_v57  ;;  %v4611_v29 = vmul.f32 0.5, %v4491_v52  ;;  %v10164_v49 = vadd.f32 %v9719_v48, %v11468_v3  ;;  %v11474_v52 = vld [vmem:[#allocation16_spill] sm:$0xff] }
 0x37d   : > { %v4614_v62 = vmul.f32 0.5, %v4494_v18  ;;  %v10166_v24 = vpop.eup %6674  ;;  %5118 = vmatprep.mubr.bf16.mxu0 %v4808_v42  ;;  %v4821_v5 = vpack.c.bf16 %v4728_v53, %v4725_v6  ;;  %v4702_v38 = vmul.f32 %v11470_v59, %v4582_v51  ;;  %v10173_v56 = vadd.f32 %v11471_v31, %v9150_v7  ;;  %v10185_v18 = vpop.f32.mrb[133].mxu1  ;;  %v11477_v59 = vld [vmem:[#allocation9_spill] sm:$0xff] }
 0x37e   : > { %11469 = vst [vmem:[#allocation14_spill] sm:$0xff] %v10164_v49  ;;  %v3769_v54 = vmul.f32 %v10157_v40, %v10157_v40  ;;  %v10175_v0 = vpop.eup %6676  ;;  %v4731_v11 = vmul.f32 %v4611_v29, %v11472_v30  ;;  %v3831_v57 = vmul.f32 %v10164_v49, %v10164_v49  ;;  %v10183_v6 = vadd.f32 %v9733_v46, %v11474_v52  ;;  %v11481_v52 = vld [vmem:[#allocation62_spill] sm:$0xff] }
 0x37f   : > { %v4734_v48 = vmul.f32 %v4614_v62, %v11473_v47  ;;  %11475 = vst [vmem:[#allocation22_spill] sm:$0xff] %v10185_v18  ;;  %v10187_v42 = vpop.eup %6678  ;;  %5945 = vmatprep.mubr.bf16.mxu1 %v4821_v5  ;;  %v4807_v53 = vpack.c.bf16 %v4702_v38, %v4699_v10  ;;  %v3770_v37 = vmul.f32 %v10173_v56, %v10173_v56  ;;  %v10205_v5 = vpop.f32.mrb[134].mxu1 }
 0x380   : > { %v3889_v51 = vmul.f32 %v10157_v40, %v3769_v54  ;;  %v10194_v8 = vadd.f32 %v9684_v25, %v9138_v28  ;;  %v10196_v29 = vpop.eup %6680  ;;  %v3951_v46 = vmul.f32 %v3831_v57, %v10164_v49  ;;  %v3825_v3 = vmul.f32 %v10183_v6, %v10183_v6  ;;  %11479 = vst [vmem:[#allocation26_spill] sm:$0xff] %v10205_v5 }
 0x381   : > { %v4824_v62 = vpack.c.bf16 %v4734_v48, %v4731_v11  ;;  %v10203_v10 = vadd.f32 %v9742_v1, %v11477_v59  ;;  %v10207_v38 = vpop.eup %6682  ;;  %5119 = vmatmul.mubr.bf16.gmra.mrb[196].mxu0 %v4807_v53  ;;  %v3890_v25 = vmul.f32 %v10173_v56, %v3770_v37  ;;  %v10214_v30 = vadd.f32 %v9688_v39, %v9150_v7  ;;  %v10216_v11 = vpop.f32.mrb[135].mxu1  ;;  %v11482_v53 = vld [vmem:[#allocation84_spill] sm:$0xff] }
 0x382   : > { %11476 = vst [vmem:[#allocation68_spill] sm:$0xff] %v10194_v8  ;;  %v4009_v54 = vmul.f32 0.044715, %v3889_v51  ;;  %v3772_v31 = vmul.f32 %v10194_v8, %v10194_v8  ;;  %11480 = vst [vmem:[#allocation42_spill] sm:$0xff] %v10216_v11  ;;  %v4071_v1 = vmul.f32 0.044715, %v3951_v46  ;;  %v3945_v48 = vmul.f32 %v3825_v3, %v10183_v6 }
 0x383   : > { %11478 = vst [vmem:[#allocation33_spill] sm:$0xff] %v10203_v10  ;;  %v10218_v47 = vpop.eup %6684  ;;  %5946 = vmatmul.mubr.bf16.gmra.mrb[156].mxu1 %v4824_v62  ;;  %v3834_v57 = vmul.f32 %v10203_v10, %v10203_v10  ;;  %v10225_v51 = vadd.f32 %v11482_v53, %v11481_v52  ;;  %v10227_v37 = vpop.f32.mrb[136].mxu1  ;;  %v4010_v11 = vmul.f32 0.044715, %v3890_v25  ;;  %v3773_v62 = vmul.f32 %v10214_v30, %v10214_v30 }
 0x384   : > { %11483 = vst [vmem:[#allocation72_spill] sm:$0xff] %v10227_v37  ;;  %v10229_v59 = vpop.eup %6686  ;;  %v4129_v39 = vadd.f32 %v10157_v40, %v4009_v54  ;;  %v3892_v5 = vmul.f32 %v10194_v8, %v3772_v31  ;;  %v4191_v46 = vadd.f32 %v4071_v1, %v10164_v49  ;;  %v4065_v3 = vmul.f32 0.044715, %v3945_v48 }
 0x385   : > { %v3954_v18 = vmul.f32 %v3834_v57, %v10203_v10  ;;  %v3828_v52 = vmul.f32 %v10225_v51, %v10225_v51  ;;  %v4130_v37 = vadd.f32 %v10173_v56, %v4010_v11  ;;  %v3893_v54 = vmul.f32 %v10214_v30, %v3773_v62 }
 0x386   : > { %v4249_v53 = vmul.f32 0.7978846, %v4129_v39  ;;  %v4012_v36 = vmul.f32 0.044715, %v3892_v5  ;;  %v4311_v25 = vmul.f32 0.7978846, %v4191_v46  ;;  %v4185_v31 = vadd.f32 %v4065_v3, %v10183_v6 }
 0x387   : > { %v4074_v20 = vmul.f32 0.044715, %v3954_v18  ;;  %v3948_v41 = vmul.f32 %v3828_v52, %v10225_v51  ;;  %v4250_v1 = vmul.f32 0.7978846, %v4130_v37  ;;  %v4013_v57 = vmul.f32 0.044715, %v3893_v54 }
 0x388   : > { %6688 = vtanh.f32 %v4249_v53  ;;  %v4132_v48 = vadd.f32 %v10194_v8, %v4012_v36  ;;  %v4305_v43 = vmul.f32 0.7978846, %v4185_v31  ;;  %v4466_v62 = vadd.f32 1.0, %v9856_v4  ;;  %v10247_v46 = vpop.f32.mrb[137].mxu1 }
 0x389   : > { %6690 = vtanh.f32 %v4311_v25  ;;  %v4194_v39 = vadd.f32 %v4074_v20, %v10203_v10  ;;  %v4068_v49 = vmul.f32 0.044715, %v3948_v41  ;;  %v4133_v11 = vadd.f32 %v10214_v30, %v4013_v57  ;;  %11484 = vst [vmem:[#allocation69_spill] sm:$0xff] %v10247_v46  ;;  %v10251_v3 = vpop.f32.mrb[138].mxu1 }
 0x38a   : > { %6692 = vtanh.f32 %v4250_v1  ;;  %v4252_v5 = vmul.f32 0.7978846, %v4132_v48  ;;  %v4469_v36 = vadd.f32 1.0, %v9888_v22  ;;  %11485 = vst [vmem:[#allocation44_spill] sm:$0xff] %v10251_v3  ;;  %v4586_v20 = vmul.f32 0.5, %v4466_v62  ;;  %v10254_v53 = vpop.f32.mrb[139].mxu1 }
 0x38b   : > { %6694 = vtanh.f32 %v4305_v43  ;;  %v4314_v18 = vmul.f32 0.7978846, %v4194_v39  ;;  %v4188_v37 = vadd.f32 %v4068_v49, %v10225_v51  ;;  %v4253_v52 = vmul.f32 0.7978846, %v4133_v11  ;;  %11486 = vst [vmem:[#allocation70_spill] sm:$0xff] %v10254_v53  ;;  %v11487_v43 = vld [vmem:[#allocation77_spill] sm:$0xff] }
 0x38c   : > { %6696 = vtanh.f32 %v4252_v5  ;;  %v4497_v41 = vadd.f32 1.0, %v9862_v45  ;;  %v4589_v4 = vmul.f32 0.5, %v4469_v36  ;;  %v4500_v25 = vadd.f32 1.0, %v9897_v63  ;;  %v11488_v1 = vld [vmem:[#allocation83_spill] sm:$0xff]  ;;  %v11490_v45 = vld [vmem:[#allocation78_spill] sm:$0xff]  ;;  %v11492_v36 = vld [vmem:[#allocation12_spill] sm:$0xff] }
 0x38d   : > { %6698 = vtanh.f32 %v4314_v18  ;;  %v4308_v54 = vmul.f32 0.7978846, %v4188_v37  ;;  %v4706_v31 = vmul.f32 %v11487_v43, %v4586_v20  ;;  %v4465_v22 = vadd.f32 1.0, %v9825_v19  ;;  %v11489_v39 = vld [vmem:[#allocation15_spill] sm:$0xff]  ;;  %v11491_v18 = vld [vmem:[#allocation17_spill] sm:$0xff] }
 0x38e   : > { %6700 = vtanh.f32 %v4253_v52  ;;  %v4617_v49 = vmul.f32 0.5, %v4497_v41  ;;  %v4709_v48 = vmul.f32 %v11488_v1, %v4589_v4  ;;  %v4620_v57 = vmul.f32 0.5, %v4500_v25  ;;  %v11493_v52 = vld [vmem:[#allocation86_spill] sm:$0xff]  ;;  %v11494_v41 = vld [vmem:[#allocation81_spill] sm:$0xff]  ;;  %v11496_v4 = vld [vmem:[#allocation75_spill] sm:$0xff] }
 0x38f   : > { %6702 = vtanh.f32 %v4308_v54  ;;  %v4468_v5 = vadd.f32 1.0, %v11489_v39  ;;  %v4585_v62 = vmul.f32 0.5, %v4465_v22  ;;  %v4503_v37 = vadd.f32 1.0, %v11491_v18 }
 0x390   : > { %v4737_v11 = vmul.f32 %v4617_v49, %v11490_v45  ;;  %v4506_v53 = vadd.f32 1.0, %v11492_v36  ;;  %v4811_v63 = vpack.c.bf16 %v4709_v48, %v4706_v31  ;;  %v4740_v3 = vmul.f32 %v4620_v57, %v11493_v52  ;;  %v11497_v49 = vld [vmem:[#allocation82_spill] sm:$0xff]  ;;  %v11498_v48 = vld [vmem:[#allocation79_spill] sm:$0xff]  ;;  %v11499_v45 = vld [vmem:[#allocation85_spill] sm:$0xff] }
 0x391   : > { %v4588_v20 = vmul.f32 0.5, %v4468_v5  ;;  %v10267_v19 = vadd.f32 %v11494_v41, %v9138_v28  ;;  %v4705_v25 = vmul.f32 %v11496_v4, %v4585_v62  ;;  %v4623_v43 = vmul.f32 0.5, %v4503_v37  ;;  %v11501_v36 = vld [vmem:[#allocation80_spill] sm:$0xff] }
 0x392   : > { %v10269_v54 = vpop.eup %6688  ;;  %v4626_v1 = vmul.f32 0.5, %v4506_v53  ;;  %v10274_v22 = vadd.f32 %v11497_v49, %v9150_v7  ;;  %5126 = vmatprep.mubr.bf16.mxu0 %v4811_v63  ;;  %v4827_v31 = vpack.c.bf16 %v4740_v3, %v4737_v11  ;;  %v10283_v18 = vadd.f32 %v11499_v45, %v9138_v28  ;;  %v11500_v53 = vld [vmem:[#allocation76_spill] sm:$0xff]  ;;  %v11502_v3 = vld [vmem:[#allocation87_spill] sm:$0xff] }
 0x393   : > { %11495 = vst [vmem:[#allocation43_spill] sm:$0xff] %v10267_v19  ;;  %v10276_v39 = vpop.eup %6690  ;;  %v4708_v57 = vmul.f32 %v11498_v48, %v4588_v20  ;;  %v3775_v5 = vmul.f32 %v10267_v19, %v10267_v19  ;;  %v4743_v37 = vmul.f32 %v4623_v43, %v11500_v53  ;;  %v10293_v11 = vadd.f32 %v11502_v3, %v9150_v7 }
 0x394   : > { %v10285_v62 = vpop.eup %6692  ;;  %v4746_v52 = vmul.f32 %v4626_v1, %v11501_v36  ;;  %v3776_v41 = vmul.f32 %v10274_v22, %v10274_v22  ;;  %5949 = vmatprep.mubr.bf16.mxu1 %v4827_v31  ;;  %v3778_v49 = vmul.f32 %v10283_v18, %v10283_v18  ;;  %v4472_v43 = vadd.f32 1.0, %v9951_v55 }
 0x395   : > { %v10295_v63 = vpop.eup %6694  ;;  %v4810_v20 = vpack.c.bf16 %v4708_v57, %v4705_v25  ;;  %v3895_v4 = vmul.f32 %v10267_v19, %v3775_v5  ;;  %v3779_v53 = vmul.f32 %v10293_v11, %v10293_v11  ;;  %v4475_v36 = vadd.f32 1.0, %v9994_v33 }
 0x396   : > { %v10301_v48 = vpop.eup %6696  ;;  %v4830_v1 = vpack.c.bf16 %v4746_v52, %v4743_v37  ;;  %v3896_v45 = vmul.f32 %v10274_v22, %v3776_v41  ;;  %v3898_v31 = vmul.f32 %v10283_v18, %v3778_v49  ;;  %v4592_v57 = vmul.f32 0.5, %v4472_v43 }
 0x397   : > { %v10307_v3 = vpop.eup %6698  ;;  %5127 = vmatmul.mubr.bf16.gmra.mrb[200].mxu0 %v4810_v20  ;;  %v4015_v25 = vmul.f32 0.044715, %v3895_v4  ;;  %v4509_v5 = vadd.f32 1.0, %v9961_v14  ;;  %v3899_v52 = vmul.f32 %v10293_v11, %v3779_v53  ;;  %v4595_v41 = vmul.f32 0.5, %v4475_v36 }
 0x398   : > { %11503 = vst [vmem:[#allocation37_spill] sm:$0xff] %v10307_v3  ;;  %v10311_v55 = vpop.eup %6700  ;;  %5950 = vmatmul.mubr.bf16.gmra.mrb[160].mxu1 %v4830_v1  ;;  %v4016_v37 = vmul.f32 0.044715, %v3896_v45  ;;  %v4512_v46 = vadd.f32 1.0, %v10009_v16  ;;  %v4018_v20 = vmul.f32 0.044715, %v3898_v31  ;;  %v4712_v4 = vmul.f32 %v9841_v17, %v4592_v57 }
 0x399   : > { %v10315_v10 = vpop.eup %6702  ;;  %v4135_v33 = vadd.f32 %v10267_v19, %v4015_v25  ;;  %v4629_v49 = vmul.f32 0.5, %v4509_v5  ;;  %v4019_v14 = vmul.f32 0.044715, %v3899_v52  ;;  %v4715_v8 = vmul.f32 %v9878_v32, %v4595_v41  ;;  %v11504_v19 = vld [vmem:[#allocation18_spill] sm:$0xff]  ;;  %v11505_v5 = vld [vmem:[#allocation29_spill] sm:$0xff]  ;;  %v11506_v41 = vld [vmem:[#allocation8_spill] sm:$0xff] }
 0x39a   : > { %v4136_v43 = vadd.f32 %v10274_v22, %v4016_v37  ;;  %v4632_v1 = vmul.f32 0.5, %v4512_v46  ;;  %v4138_v53 = vadd.f32 %v10283_v18, %v4018_v20  ;;  %v4471_v16 = vadd.f32 1.0, %v9935_v9  ;;  %v11507_v9 = vld [vmem:[#allocation52_spill] sm:$0xff] }
 0x39b   : > { %v4255_v45 = vmul.f32 0.7978846, %v4135_v33  ;;  %v4749_v36 = vmul.f32 %v4629_v49, %v9850_v13  ;;  %v4139_v25 = vadd.f32 %v10293_v11, %v4019_v14  ;;  %v4814_v31 = vpack.c.bf16 %v4715_v8, %v4712_v4  ;;  %v11508_v49 = vld [vmem:[#allocation32_spill] sm:$0xff] }
 0x39c   : > { %v4256_v3 = vmul.f32 0.7978846, %v4136_v43  ;;  %v4752_v17 = vmul.f32 %v4632_v1, %v11504_v19  ;;  %v4258_v57 = vmul.f32 0.7978846, %v4138_v53  ;;  %v4474_v37 = vadd.f32 1.0, %v11505_v5  ;;  %v11509_v19 = vld [vmem:[#allocation88_spill] sm:$0xff] }
 0x39d   : > { %6704 = vtanh.f32 %v4255_v45  ;;  %v4591_v52 = vmul.f32 0.5, %v4471_v16  ;;  %v4259_v32 = vmul.f32 0.7978846, %v4139_v25  ;;  %5134 = vmatprep.mubr.bf16.mxu0 %v4814_v31  ;;  %v4515_v33 = vadd.f32 1.0, %v11506_v41  ;;  %v11511_v1 = vld [vmem:[#allocation60_spill] sm:$0xff]  ;;  %v11514_v25 = vld [vmem:[#allocation58_spill] sm:$0xff] }
 0x39e   : > { %6706 = vtanh.f32 %v4256_v3  ;;  %v4833_v46 = vpack.c.bf16 %v4752_v17, %v4749_v36  ;;  %v4594_v13 = vmul.f32 0.5, %v4474_v37  ;;  %v4518_v43 = vadd.f32 1.0, %v11508_v49  ;;  %v11510_v3 = vld [vmem:[#allocation54_spill] sm:$0xff]  ;;  %v11512_v36 = vld [vmem:[#allocation36_spill] sm:$0xff]  ;;  %v11515_v17 = vld [vmem:[#allocation47_spill] sm:$0xff] }
 0x39f   : > { %6708 = vtanh.f32 %v4258_v57  ;;  %v4711_v20 = vmul.f32 %v11507_v9, %v4591_v52  ;;  %v4635_v8 = vmul.f32 0.5, %v4515_v33  ;;  %v10332_v4 = vadd.f32 %v11509_v19, %v9138_v28 }
 0x3a0   : > { %6710 = vtanh.f32 %v4259_v32  ;;  %5953 = vmatprep.mubr.bf16.mxu1 %v4833_v46  ;;  %v10336_v14 = vadd.f32 %v11510_v3, %v9150_v7  ;;  %v4714_v45 = vmul.f32 %v11511_v1, %v4594_v13  ;;  %v4638_v53 = vmul.f32 0.5, %v4518_v43  ;;  %v11516_v46 = vld [vmem:[#allocation21_spill] sm:$0xff] }
 0x3a1   : > { %v10341_v16 = vadd.f32 %v11512_v36, %v9138_v28  ;;  %v10345_v31 = vadd.f32 %v11514_v25, %v9150_v7  ;;  %v4755_v57 = vmul.f32 %v4635_v8, %v11515_v17  ;;  %v3781_v5 = vmul.f32 %v10332_v4, %v10332_v4 }
 0x3a2   : > { %v3782_v37 = vmul.f32 %v10336_v14, %v10336_v14  ;;  %v4478_v52 = vadd.f32 1.0, %v10065_v21  ;;  %v4813_v32 = vpack.c.bf16 %v4714_v45, %v4711_v20  ;;  %v4758_v41 = vmul.f32 %v4638_v53, %v11516_v46 }
 0x3a3   : > { %11513 = vst [vmem:[#allocation38_spill] sm:$0xff] %v10341_v16  ;;  %v3784_v33 = vmul.f32 %v10341_v16, %v10341_v16  ;;  %v3785_v13 = vmul.f32 %v10345_v31, %v10345_v31  ;;  %v3901_v9 = vmul.f32 %v10332_v4, %v3781_v5  ;;  %v4481_v43 = vadd.f32 1.0, %v10106_v50 }
 0x3a4   : > { %v3902_v49 = vmul.f32 %v10336_v14, %v3782_v37  ;;  %v4598_v8 = vmul.f32 0.5, %v4478_v52  ;;  %5135 = vmatmul.mubr.bf16.gmra.mrb[204].mxu0 %v4813_v32  ;;  %v4836_v19 = vpack.c.bf16 %v4758_v41, %v4755_v57  ;;  %v4521_v3 = vadd.f32 1.0, %v10075_v35 }
 0x3a5   : > { %v3904_v21 = vmul.f32 %v10341_v16, %v3784_v33  ;;  %v3905_v20 = vmul.f32 %v10345_v31, %v3785_v13  ;;  %v4021_v1 = vmul.f32 0.044715, %v3901_v9  ;;  %v4601_v53 = vmul.f32 0.5, %v4481_v43  ;;  %v11517_v9 = vld [vmem:[#allocation23_spill] sm:$0xff] }
 0x3a6   : > { %v4022_v45 = vmul.f32 0.044715, %v3902_v49  ;;  %v4718_v36 = vmul.f32 %v9949_v58, %v4598_v8  ;;  %5954 = vmatmul.mubr.bf16.gmra.mrb[164].mxu1 %v4836_v19  ;;  %v4524_v50 = vadd.f32 1.0, %v10117_v15  ;;  %v4641_v37 = vmul.f32 0.5, %v4521_v3 }
 0x3a7   : > { %v10365_v25 = vpop.eup %6704  ;;  %v4024_v17 = vmul.f32 0.044715, %v3904_v21  ;;  %v4025_v5 = vmul.f32 0.044715, %v3905_v20  ;;  %v4141_v52 = vadd.f32 %v10332_v4, %v4021_v1  ;;  %v4721_v35 = vmul.f32 %v9990_v61, %v4601_v53  ;;  %v11518_v21 = vld [vmem:[#allocation71_spill] sm:$0xff]  ;;  %v11519_v1 = vld [vmem:[#allocation13_spill] sm:$0xff] }
 0x3a8   : > { %v10368_v57 = vpop.eup %6706  ;;  %v4142_v32 = vadd.f32 %v10336_v14, %v4022_v45  ;;  %v4477_v46 = vadd.f32 1.0, %v10047_v12  ;;  %v4644_v13 = vmul.f32 0.5, %v4524_v50  ;;  %v4761_v15 = vmul.f32 %v4641_v37, %v11517_v9  ;;  %v11521_v50 = vld [vmem:[#allocation5_spill] sm:$0xff]  ;;  %v11522_v9 = vld [vmem:[#allocation40_spill] sm:$0xff] }
 0x3a9   : > { %v10374_v41 = vpop.eup %6708  ;;  %v4144_v58 = vadd.f32 %v10341_v16, %v4024_v17  ;;  %v4145_v33 = vadd.f32 %v10345_v31, %v4025_v5  ;;  %v4261_v43 = vmul.f32 0.7978846, %v4141_v52  ;;  %v4817_v19 = vpack.c.bf16 %v4721_v35, %v4718_v36  ;;  %v11520_v17 = vld [vmem:[#allocation11_spill] sm:$0xff]  ;;  %v11523_v36 = vld [vmem:[#allocation46_spill] sm:$0xff]  ;;  %v11524_v35 = vld [vmem:[#allocation57_spill] sm:$0xff] }
 0x3aa   : > { %v10379_v49 = vpop.eup %6710  ;;  %v4262_v8 = vmul.f32 0.7978846, %v4142_v32  ;;  %v4480_v20 = vadd.f32 1.0, %v11518_v21  ;;  %v4764_v12 = vmul.f32 %v4644_v13, %v11519_v1  ;;  %v4597_v45 = vmul.f32 0.5, %v4477_v46  ;;  %v11528_v1 = vld [vmem:[#allocation2_spill] sm:$0xff] }
 0x3ab   : > { %v4264_v3 = vmul.f32 0.7978846, %v4144_v58  ;;  %v4265_v61 = vmul.f32 0.7978846, %v4145_v33  ;;  %6712 = vtanh.f32 %v4261_v43  ;;  %5142 = vmatprep.mubr.bf16.mxu0 %v4817_v19  ;;  %v4527_v5 = vadd.f32 1.0, %v11520_v17  ;;  %v11525_v43 = vld [vmem:[#allocation49_spill] sm:$0xff] }
 0x3ac   : > { %v4600_v53 = vmul.f32 0.5, %v4480_v20  ;;  %v4530_v16 = vadd.f32 1.0, %v11521_v50  ;;  %6714 = vtanh.f32 %v4262_v8  ;;  %v4839_v37 = vpack.c.bf16 %v4764_v12, %v4761_v15  ;;  %v11526_v15 = vld [vmem:[#allocation7_spill] sm:$0xff]  ;;  %v11527_v20 = vld [vmem:[#allocation30_spill] sm:$0xff] }
 0x3ad   : > { %v4717_v52 = vmul.f32 %v11522_v9, %v4597_v45  ;;  %v10388_v32 = vadd.f32 %v11523_v36, %v9138_v28  ;;  %6716 = vtanh.f32 %v4264_v3  ;;  %v4647_v33 = vmul.f32 0.5, %v4527_v5 }
 0x3ae   : > { %v4720_v58 = vmul.f32 %v11524_v35, %v4600_v53  ;;  %v4650_v46 = vmul.f32 0.5, %v4530_v16  ;;  %6718 = vtanh.f32 %v4265_v61  ;;  %5957 = vmatprep.mubr.bf16.mxu1 %v4839_v37  ;;  %v10395_v8 = vadd.f32 %v11525_v43, %v9150_v7  ;;  %v11529_v16 = vld [vmem:[#allocation53_spill] sm:$0xff] }
 0x3af   : > { %v3787_v13 = vmul.f32 %v10388_v32, %v10388_v32  ;;  %v10399_v19 = vadd.f32 %v11526_v15, %v9138_v28  ;;  %v4767_v3 = vmul.f32 %v4647_v33, %v11527_v20  ;;  %v10405_v61 = vadd.f32 %v11529_v16, %v9150_v7 }
 0x3b0   : > { %v4816_v21 = vpack.c.bf16 %v4720_v58, %v4717_v52  ;;  %v4770_v12 = vmul.f32 %v4650_v46, %v11528_v1  ;;  %v3788_v53 = vmul.f32 %v10395_v8, %v10395_v8  ;;  %v4484_v5 = vadd.f32 1.0, %v10175_v0 }
 0x3b1   : > { %v3907_v45 = vmul.f32 %v10388_v32, %v3787_v13  ;;  %v3790_v17 = vmul.f32 %v10399_v19, %v10399_v19  ;;  %v3791_v37 = vmul.f32 %v10405_v61, %v10405_v61  ;;  %v4487_v9 = vadd.f32 1.0, %v10218_v47 }
 0x3b2   : > { %5143 = vmatmul.mubr.bf16.gmra.mrb[208].mxu0 %v4816_v21  ;;  %v4842_v50 = vpack.c.bf16 %v4770_v12, %v4767_v3  ;;  %v4533_v52 = vadd.f32 1.0, %v10187_v42  ;;  %v3908_v35 = vmul.f32 %v10395_v8, %v3788_v53  ;;  %v4604_v33 = vmul.f32 0.5, %v4484_v5 }
 0x3b3   : > { %v4027_v36 = vmul.f32 0.044715, %v3907_v45  ;;  %v3910_v58 = vmul.f32 %v10399_v19, %v3790_v17  ;;  %v3911_v46 = vmul.f32 %v10405_v61, %v3791_v37  ;;  %v4607_v13 = vmul.f32 0.5, %v4487_v9 }
 0x3b4   : > { %5958 = vmatmul.mubr.bf16.gmra.mrb[168].mxu1 %v4842_v50  ;;  %v4536_v0 = vadd.f32 1.0, %v10229_v59  ;;  %v4653_v43 = vmul.f32 0.5, %v4533_v52  ;;  %v4028_v21 = vmul.f32 0.044715, %v3908_v35  ;;  %v4724_v47 = vmul.f32 %v10063_v34, %v4604_v33 }
 0x3b5   : > { %v4147_v15 = vadd.f32 %v10388_v32, %v4027_v36  ;;  %v4030_v20 = vmul.f32 0.044715, %v3910_v58  ;;  %v10423_v42 = vpop.eup %6712  ;;  %v4031_v3 = vmul.f32 0.044715, %v3911_v46  ;;  %v4727_v1 = vmul.f32 %v10102_v26, %v4607_v13  ;;  %v11530_v13 = vld [vmem:[#allocation34_spill] sm:$0xff] }
 0x3b6   : > { %v4656_v12 = vmul.f32 0.5, %v4536_v0  ;;  %v4773_v16 = vmul.f32 %v4653_v43, %v10073_v27  ;;  %v10427_v45 = vpop.eup %6714  ;;  %v4148_v59 = vadd.f32 %v10395_v8, %v4028_v21  ;;  %v4483_v5 = vadd.f32 1.0, %v10159_v44 }
 0x3b7   : > { %v4267_v53 = vmul.f32 0.7978846, %v4147_v15  ;;  %v4150_v17 = vadd.f32 %v10399_v19, %v4030_v20  ;;  %v10432_v50 = vpop.eup %6716  ;;  %v4151_v34 = vadd.f32 %v10405_v61, %v4031_v3  ;;  %v4820_v37 = vpack.c.bf16 %v4727_v1, %v4724_v47  ;;  %v11532_v20 = vld [vmem:[#allocation6_spill] sm:$0xff] }
 0x3b8   : > { %v4776_v9 = vmul.f32 %v4656_v12, %v10113_v2  ;;  %v4486_v26 = vadd.f32 1.0, %v10196_v29  ;;  %v10437_v52 = vpop.eup %6718  ;;  %v4268_v27 = vmul.f32 0.7978846, %v4148_v59  ;;  %v4603_v35 = vmul.f32 0.5, %v4483_v5  ;;  %v11531_v2 = vld [vmem:[#allocation20_spill] sm:$0xff] }
 0x3b9   : > { %6720 = vtanh.f32 %v4267_v53  ;;  %v4270_v36 = vmul.f32 0.7978846, %v4150_v17  ;;  %v4271_v58 = vmul.f32 0.7978846, %v4151_v34  ;;  %5150 = vmatprep.mubr.bf16.mxu0 %v4820_v37  ;;  %v4539_v44 = vadd.f32 1.0, %v10166_v24  ;;  %v11535_v59 = vld [vmem:[#allocation48_spill] sm:$0xff] }
 0x3ba   : > { %v4845_v33 = vpack.c.bf16 %v4776_v9, %v4773_v16  ;;  %v4606_v46 = vmul.f32 0.5, %v4486_v26  ;;  %6722 = vtanh.f32 %v4268_v27  ;;  %v4723_v0 = vmul.f32 %v11530_v13, %v4603_v35  ;;  %v11534_v16 = vld [vmem:[#allocation41_spill] sm:$0xff] }
 0x3bb   : > { %v4542_v43 = vadd.f32 1.0, %v10207_v38  ;;  %v10444_v29 = vadd.f32 %v11531_v2, %v9138_v28  ;;  %6724 = vtanh.f32 %v4270_v36  ;;  %v4659_v21 = vmul.f32 0.5, %v4539_v44  ;;  %v11533_v38 = vld [vmem:[#allocation24_spill] sm:$0xff] }
 0x3bc   : > { %5961 = vmatprep.mubr.bf16.mxu1 %v4845_v33  ;;  %v4726_v15 = vmul.f32 %v10082_v23, %v4606_v46  ;;  %v10449_v47 = vadd.f32 %v11532_v20, %v9150_v7  ;;  %6726 = vtanh.f32 %v4271_v58  ;;  %v10455_v1 = vadd.f32 %v11533_v38, %v9138_v28 }
 0x3bd   : > { %v4662_v24 = vmul.f32 0.5, %v4542_v43  ;;  %v3793_v3 = vmul.f32 %v10444_v29, %v10444_v29  ;;  %v4779_v53 = vmul.f32 %v4659_v21, %v11534_v16  ;;  %v10462_v17 = vadd.f32 %v11535_v59, %v9150_v7 }
 0x3be   : > { %v4819_v12 = vpack.c.bf16 %v4726_v15, %v4723_v0  ;;  %v3794_v23 = vmul.f32 %v10449_v47, %v10449_v47  ;;  %v3796_v37 = vmul.f32 %v10455_v1, %v10455_v1  ;;  %v4490_v9 = vadd.f32 1.0, %v10285_v62 }
 0x3bf   : > { %v4782_v5 = vmul.f32 %v4662_v24, %v10091_v60  ;;  %v3913_v34 = vmul.f32 %v10444_v29, %v3793_v3  ;;  %v3797_v27 = vmul.f32 %v10462_v17, %v10462_v17  ;;  %v4493_v36 = vadd.f32 1.0, %v10311_v55 }
 0x3c0   : > { %5151 = vmatmul.mubr.bf16.gmra.mrb[212].mxu0 %v4819_v12  ;;  %v3914_v26 = vmul.f32 %v10449_v47, %v3794_v23  ;;  %v4545_v35 = vadd.f32 1.0, %v10295_v63  ;;  %v3916_v60 = vmul.f32 %v10455_v1, %v3796_v37  ;;  %v4610_v46 = vmul.f32 0.5, %v4490_v9 }
 0x3c1   : > { %v4848_v58 = vpack.c.bf16 %v4782_v5, %v4779_v53  ;;  %v4033_v33 = vmul.f32 0.044715, %v3913_v34  ;;  %v3917_v13 = vmul.f32 %v10462_v17, %v3797_v27  ;;  %v4613_v0 = vmul.f32 0.5, %v4493_v36 }
 0x3c2   : > { %v4034_v44 = vmul.f32 0.044715, %v3914_v26  ;;  %v4548_v62 = vadd.f32 1.0, %v10315_v10  ;;  %v4036_v15 = vmul.f32 0.044715, %v3916_v60  ;;  %v4730_v55 = vmul.f32 %v10173_v56, %v4610_v46  ;;  %v11537_v60 = vld [vmem:[#allocation39_spill] sm:$0xff] }
 0x3c3   : > { %v10477_v43 = vpop.eup %6720  ;;  %5962 = vmatmul.mubr.bf16.gmra.mrb[172].mxu1 %v4848_v58  ;;  %v4153_v2 = vadd.f32 %v10444_v29, %v4033_v33  ;;  %v4665_v63 = vmul.f32 0.5, %v4545_v35  ;;  %v4037_v20 = vmul.f32 0.044715, %v3917_v13  ;;  %v4733_v24 = vmul.f32 %v10214_v30, %v4613_v0  ;;  %v11536_v58 = vld [vmem:[#allocation37_spill] sm:$0xff]  ;;  %v11539_v13 = vld [vmem:[#allocation68_spill] sm:$0xff] }
 0x3c4   : > { %v4154_v21 = vadd.f32 %v10449_v47, %v4034_v44  ;;  %v4668_v3 = vmul.f32 0.5, %v4548_v62  ;;  %v10483_v38 = vpop.eup %6722  ;;  %v4156_v10 = vadd.f32 %v10455_v1, %v4036_v15  ;;  %v4489_v53 = vadd.f32 1.0, %v10269_v54  ;;  %v11540_v62 = vld [vmem:[#allocation59_spill] sm:$0xff] }
 0x3c5   : > { %v4273_v12 = vmul.f32 0.7978846, %v4153_v2  ;;  %v4785_v16 = vmul.f32 %v4665_v63, %v10183_v6  ;;  %v10488_v23 = vpop.eup %6724  ;;  %v4157_v56 = vadd.f32 %v10462_v17, %v4037_v20  ;;  %v4823_v5 = vpack.c.bf16 %v4733_v24, %v4730_v55  ;;  %v11542_v55 = vld [vmem:[#allocation14_spill] sm:$0xff] }
 0x3c6   : > { %v4274_v59 = vmul.f32 0.7978846, %v4154_v21  ;;  %v4788_v34 = vmul.f32 %v4668_v3, %v10225_v51  ;;  %v10492_v37 = vpop.eup %6726  ;;  %v4276_v30 = vmul.f32 0.7978846, %v4156_v10  ;;  %v4492_v9 = vadd.f32 1.0, %v10301_v48  ;;  %v11538_v48 = vld [vmem:[#allocation51_spill] sm:$0xff] }
 0x3c7   : > { %6728 = vtanh.f32 %v4273_v12  ;;  %v4609_v26 = vmul.f32 0.5, %v4489_v53  ;;  %v4277_v27 = vmul.f32 0.7978846, %v4157_v56  ;;  %5158 = vmatprep.mubr.bf16.mxu0 %v4823_v5  ;;  %v4551_v54 = vadd.f32 1.0, %v10276_v39  ;;  %v11543_v12 = vld [vmem:[#allocation33_spill] sm:$0xff] }
 0x3c8   : > { %6730 = vtanh.f32 %v4274_v59  ;;  %v4851_v6 = vpack.c.bf16 %v4788_v34, %v4785_v16  ;;  %v4612_v36 = vmul.f32 0.5, %v4492_v9  ;;  %v4554_v33 = vadd.f32 1.0, %v11536_v58 }
 0x3c9   : > { %6732 = vtanh.f32 %v4276_v30  ;;  %v4729_v35 = vmul.f32 %v10157_v40, %v4609_v26  ;;  %v4671_v51 = vmul.f32 0.5, %v4551_v54  ;;  %v10500_v46 = vadd.f32 %v11537_v60, %v9138_v28  ;;  %v11541_v40 = vld [vmem:[#allocation19_spill] sm:$0xff] }
 0x3ca   : > { %6734 = vtanh.f32 %v4277_v27  ;;  %5965 = vmatprep.mubr.bf16.mxu1 %v4851_v6  ;;  %v10504_v44 = vadd.f32 %v11538_v48, %v9150_v7  ;;  %v4732_v0 = vmul.f32 %v11539_v13, %v4612_v36  ;;  %v4674_v39 = vmul.f32 0.5, %v4554_v33 }
 0x3cb   : > { %v10509_v2 = vadd.f32 %v11540_v62, %v9138_v28  ;;  %v10513_v15 = vadd.f32 %v11541_v40, %v9150_v7  ;;  %v4791_v63 = vmul.f32 %v4671_v51, %v11542_v55  ;;  %v3799_v21 = vmul.f32 %v10500_v46, %v10500_v46  ;;  %v11545_v55 = vld [vmem:[#allocation43_spill] sm:$0xff] }
 0x3cc   : > { %v3800_v20 = vmul.f32 %v10504_v44, %v10504_v44  ;;  %v4496_v24 = vadd.f32 1.0, %v10368_v57  ;;  %v4822_v3 = vpack.c.bf16 %v4732_v0, %v4729_v35  ;;  %v4794_v10 = vmul.f32 %v4674_v39, %v11543_v12  ;;  %v11544_v0 = vld [vmem:[#allocation10_spill] sm:$0xff] }
 0x3cd   : > { %v3802_v16 = vmul.f32 %v10509_v2, %v10509_v2  ;;  %v3803_v53 = vmul.f32 %v10513_v15, %v10513_v15  ;;  %v3919_v59 = vmul.f32 %v10500_v46, %v3799_v21  ;;  %v4499_v5 = vadd.f32 1.0, %v10379_v49 }
 0x3ce   : > { %v3920_v56 = vmul.f32 %v10504_v44, %v3800_v20  ;;  %v4616_v34 = vmul.f32 0.5, %v4496_v24  ;;  %5159 = vmatmul.mubr.bf16.gmra.mrb[216].mxu0 %v4822_v3  ;;  %v4854_v30 = vpack.c.bf16 %v4794_v10, %v4791_v63  ;;  %v4495_v26 = vadd.f32 1.0, %v10365_v25 }
 0x3cf   : > { %v3922_v57 = vmul.f32 %v10509_v2, %v3802_v16  ;;  %v3923_v9 = vmul.f32 %v10513_v15, %v3803_v53  ;;  %v4039_v27 = vmul.f32 0.044715, %v3919_v59  ;;  %v4619_v54 = vmul.f32 0.5, %v4499_v5  ;;  %v11546_v53 = vld [vmem:[#allocation3_spill] sm:$0xff]  ;;  %v11547_v5 = vld [vmem:[#allocation50_spill] sm:$0xff] }
 0x3d0   : > { %v4040_v6 = vmul.f32 0.044715, %v3920_v56  ;;  %v4736_v36 = vmul.f32 %v10274_v22, %v4616_v34  ;;  %5966 = vmatmul.mubr.bf16.gmra.mrb[176].mxu1 %v4854_v30  ;;  %v4498_v49 = vadd.f32 1.0, %v10374_v41  ;;  %v4615_v51 = vmul.f32 0.5, %v4495_v26  ;;  %v11548_v30 = vld [vmem:[#allocation55_spill] sm:$0xff] }
 0x3d1   : > { %v10533_v35 = vpop.eup %6728  ;;  %v4042_v58 = vmul.f32 0.044715, %v3922_v57  ;;  %v4043_v33 = vmul.f32 0.044715, %v3923_v9  ;;  %v4159_v48 = vadd.f32 %v10500_v46, %v4039_v27  ;;  %v4739_v25 = vmul.f32 %v10293_v11, %v4619_v54 }
 0x3d2   : > { %v10536_v60 = vpop.eup %6730  ;;  %v4160_v13 = vadd.f32 %v10504_v44, %v4040_v6  ;;  %v10543_v39 = vadd.f32 %v11544_v0, %v9138_v28  ;;  %v4618_v41 = vmul.f32 0.5, %v4498_v49  ;;  %v4735_v63 = vmul.f32 %v11545_v55, %v4615_v51 }
 0x3d3   : > { %v10545_v22 = vpop.eup %6732  ;;  %v4162_v62 = vadd.f32 %v10509_v2, %v4042_v58  ;;  %v4163_v40 = vadd.f32 %v10513_v15, %v4043_v33  ;;  %v4279_v20 = vmul.f32 0.7978846, %v4159_v48  ;;  %v4826_v3 = vpack.c.bf16 %v4739_v25, %v4736_v36 }
 0x3d4   : > { %v10550_v21 = vpop.eup %6734  ;;  %v4280_v24 = vmul.f32 0.7978846, %v4160_v13  ;;  %v3805_v11 = vmul.f32 %v10543_v39, %v10543_v39  ;;  %v4738_v16 = vmul.f32 %v10283_v18, %v4618_v41  ;;  %v10557_v59 = vadd.f32 %v11546_v53, %v9150_v7  ;;  %v11550_v53 = vld [vmem:[#allocation38_spill] sm:$0xff] }
 0x3d5   : > { %v4282_v12 = vmul.f32 0.7978846, %v4162_v62  ;;  %v4283_v10 = vmul.f32 0.7978846, %v4163_v40  ;;  %6736 = vtanh.f32 %v4279_v20  ;;  %5166 = vmatprep.mubr.bf16.mxu0 %v4826_v3  ;;  %v10562_v34 = vadd.f32 %v11547_v5, %v9138_v28 }
 0x3d6   : > { %v3925_v56 = vmul.f32 %v10543_v39, %v3805_v11  ;;  %v10566_v57 = vadd.f32 %v11548_v30, %v9150_v7  ;;  %6738 = vtanh.f32 %v4280_v24  ;;  %v4825_v9 = vpack.c.bf16 %v4738_v16, %v4735_v63 }
 0x3d7   : > { %v3806_v18 = vmul.f32 %v10557_v59, %v10557_v59  ;;  %v4502_v26 = vadd.f32 1.0, %v10427_v45  ;;  %6740 = vtanh.f32 %v4282_v12  ;;  %v3808_v6 = vmul.f32 %v10562_v34, %v10562_v34 }
 0x3d8   : > { %v4045_v27 = vmul.f32 0.044715, %v3925_v56  ;;  %v3809_v54 = vmul.f32 %v10566_v57, %v10566_v57  ;;  %6742 = vtanh.f32 %v4283_v10  ;;  %5167 = vmatmul.mubr.bf16.gmra.mrb[220].mxu0 %v4825_v9  ;;  %v4505_v58 = vadd.f32 1.0, %v10437_v52  ;;  %v11549_v52 = vld [vmem:[#allocation56_spill] sm:$0xff] }
 0x3d9   : > { %v3926_v36 = vmul.f32 %v10557_v59, %v3806_v18  ;;  %v4622_v33 = vmul.f32 0.5, %v4502_v26  ;;  %v3928_v51 = vmul.f32 %v10562_v34, %v3808_v6  ;;  %v4501_v48 = vadd.f32 1.0, %v10423_v42  ;;  %v11551_v18 = vld [vmem:[#allocation35_spill] sm:$0xff] }
 0x3da   : > { %v4165_v49 = vadd.f32 %v10543_v39, %v4045_v27  ;;  %v3929_v45 = vmul.f32 %v10566_v57, %v3809_v54  ;;  %v4625_v25 = vmul.f32 0.5, %v4505_v58  ;;  %v4504_v62 = vadd.f32 1.0, %v10432_v50  ;;  %v11552_v54 = vld [vmem:[#allocation63_spill] sm:$0xff] }
 0x3db   : > { %v4046_v13 = vmul.f32 0.044715, %v3926_v36  ;;  %v4742_v0 = vmul.f32 %v10336_v14, %v4622_v33  ;;  %v4048_v41 = vmul.f32 0.044715, %v3928_v51  ;;  %v10585_v63 = vadd.f32 %v11549_v52, %v9138_v28  ;;  %v11553_v36 = vld [vmem:[#allocation27_spill] sm:$0xff] }
 0x3dc   : > { %v4285_v40 = vmul.f32 0.7978846, %v4165_v49  ;;  %v4049_v55 = vmul.f32 0.044715, %v3929_v45  ;;  %v4745_v24 = vmul.f32 %v10345_v31, %v4625_v25  ;;  %v4621_v3 = vmul.f32 0.5, %v4501_v48 }
 0x3dd   : > { %v4166_v20 = vadd.f32 %v10557_v59, %v4046_v13  ;;  %v4624_v11 = vmul.f32 0.5, %v4504_v62  ;;  %v4168_v42 = vadd.f32 %v10562_v34, %v4048_v41  ;;  %v3811_v50 = vmul.f32 %v10585_v63, %v10585_v63 }
 0x3de   : > { %6744 = vtanh.f32 %v4285_v40  ;;  %v4169_v14 = vadd.f32 %v10566_v57, %v4049_v55  ;;  %v4829_v10 = vpack.c.bf16 %v4745_v24, %v4742_v0  ;;  %v4741_v16 = vmul.f32 %v10332_v4, %v4621_v3 }
 0x3df   : > { %v4286_v12 = vmul.f32 0.7978846, %v4166_v20  ;;  %v4744_v56 = vmul.f32 %v11550_v53, %v4624_v11  ;;  %v10595_v5 = vpop.eup %6736  ;;  %v4288_v30 = vmul.f32 0.7978846, %v4168_v42  ;;  %v3931_v9 = vmul.f32 %v10585_v63, %v3811_v50 }
 0x3e0   : > { %v4289_v31 = vmul.f32 0.7978846, %v4169_v14  ;;  %v10600_v26 = vadd.f32 %v11551_v18, %v9150_v7  ;;  %v10602_v27 = vpop.eup %6738  ;;  %5174 = vmatprep.mubr.bf16.mxu0 %v4829_v10  ;;  %v10606_v4 = vadd.f32 %v11552_v54, %v9138_v28  ;;  %v10610_v58 = vadd.f32 %v11553_v36, %v9150_v7 }
 0x3e1   : > { %6746 = vtanh.f32 %v4286_v12  ;;  %v4828_v6 = vpack.c.bf16 %v4744_v56, %v4741_v16  ;;  %v10612_v33 = vpop.eup %6740  ;;  %v4051_v49 = vmul.f32 0.044715, %v3931_v9  ;;  %v4508_v45 = vadd.f32 1.0, %v10483_v38  ;;  %v11554_v56 = vld [vmem:[#allocation64_spill] sm:$0xff] }
 0x3e2   : > { %6748 = vtanh.f32 %v4288_v30  ;;  %v3812_v51 = vmul.f32 %v10600_v26, %v10600_v26  ;;  %v10617_v48 = vpop.eup %6742  ;;  %v3814_v13 = vmul.f32 %v10606_v4, %v10606_v4  ;;  %v3815_v25 = vmul.f32 %v10610_v58, %v10610_v58 }
 0x3e3   : > { %6750 = vtanh.f32 %v4289_v31  ;;  %5175 = vmatmul.mubr.bf16.gmra.mrb[224].mxu0 %v4828_v6  ;;  %v4511_v0 = vadd.f32 1.0, %v10492_v37  ;;  %v4171_v62 = vadd.f32 %v10585_v63, %v4051_v49  ;;  %v4628_v41 = vmul.f32 0.5, %v4508_v45  ;;  %v11555_v6 = vld [vmem:[#allocation66_spill] sm:$0xff] }
 0x3e4   : > { %v3932_v40 = vmul.f32 %v10600_v26, %v3812_v51  ;;  %v4507_v55 = vadd.f32 1.0, %v10477_v43  ;;  %v3934_v38 = vmul.f32 %v10606_v4, %v3814_v13  ;;  %v3935_v52 = vmul.f32 %v10610_v58, %v3815_v25 }
 0x3e5   : > { %v4631_v20 = vmul.f32 0.5, %v4511_v0  ;;  %v4510_v24 = vadd.f32 1.0, %v10488_v23  ;;  %v4291_v3 = vmul.f32 0.7978846, %v4171_v62  ;;  %v4748_v42 = vmul.f32 %v10395_v8, %v4628_v41 }
 0x3e6   : > { %v4052_v11 = vmul.f32 0.044715, %v3932_v40  ;;  %v4627_v14 = vmul.f32 0.5, %v4507_v55  ;;  %v4054_v37 = vmul.f32 0.044715, %v3934_v38  ;;  %v10638_v23 = vadd.f32 %v11554_v56, %v9138_v28 }
 0x3e7   : > { %v4055_v50 = vmul.f32 0.044715, %v3935_v52  ;;  %v4751_v12 = vmul.f32 %v10405_v61, %v4631_v20  ;;  %v4630_v10 = vmul.f32 0.5, %v4510_v24  ;;  %6752 = vtanh.f32 %v4291_v3 }
 0x3e8   : > { %v10632_v16 = vpop.eup %6744  ;;  %v4172_v43 = vadd.f32 %v10600_v26, %v4052_v11  ;;  %v4747_v53 = vmul.f32 %v10388_v32, %v4627_v14  ;;  %v4174_v30 = vadd.f32 %v10606_v4, %v4054_v37  ;;  %v3817_v18 = vmul.f32 %v10638_v23, %v10638_v23  ;;  %v11556_v32 = vld [vmem:[#allocation28_spill] sm:$0xff] }
 0x3e9   : > { %v4175_v8 = vadd.f32 %v10610_v58, %v4055_v50  ;;  %v4832_v31 = vpack.c.bf16 %v4751_v12, %v4748_v42  ;;  %v4750_v9 = vmul.f32 %v10399_v19, %v4630_v10  ;;  %v10647_v54 = vadd.f32 %v11555_v6, %v9150_v7  ;;  %v11557_v19 = vld [vmem:[#allocation65_spill] sm:$0xff] }
 0x3ea   : > { %v4292_v61 = vmul.f32 0.7978846, %v4172_v43  ;;  %v10651_v36 = vadd.f32 %v11556_v32, %v9138_v28  ;;  %v4294_v51 = vmul.f32 0.7978846, %v4174_v30  ;;  %v10657_v25 = vadd.f32 %v11557_v19, %v9150_v7 }
 0x3eb   : > { %v10653_v49 = vpop.eup %6746  ;;  %v4295_v45 = vmul.f32 0.7978846, %v4175_v8  ;;  %5182 = vmatprep.mubr.bf16.mxu0 %v4832_v31  ;;  %v4831_v13 = vpack.c.bf16 %v4750_v9, %v4747_v53  ;;  %v3937_v62 = vmul.f32 %v10638_v23, %v3817_v18  ;;  %v3818_v40 = vmul.f32 %v10647_v54, %v10647_v54 }
 0x3ec   : > { %v10659_v0 = vpop.eup %6748  ;;  %6754 = vtanh.f32 %v4292_v61  ;;  %v3820_v41 = vmul.f32 %v10651_v36, %v10651_v36  ;;  %v3821_v38 = vmul.f32 %v10657_v25, %v10657_v25  ;;  %v4514_v52 = vadd.f32 1.0, %v10536_v60 }
 0x3ed   : > { %v10666_v55 = vpop.eup %6750  ;;  %6756 = vtanh.f32 %v4294_v51  ;;  %5183 = vmatmul.mubr.bf16.gmra.mrb[228].mxu0 %v4831_v13  ;;  %v4517_v20 = vadd.f32 1.0, %v10550_v21  ;;  %v4057_v24 = vmul.f32 0.044715, %v3937_v62  ;;  %v3938_v3 = vmul.f32 %v10647_v54, %v3818_v40  ;;  %v11559_v62 = vld [vmem:[#allocation22_spill] sm:$0xff] }
 0x3ee   : > { %6758 = vtanh.f32 %v4295_v45  ;;  %v3940_v11 = vmul.f32 %v10651_v36, %v3820_v41  ;;  %v3941_v42 = vmul.f32 %v10657_v25, %v3821_v38  ;;  %v4634_v14 = vmul.f32 0.5, %v4514_v52 }
 0x3ef   : > { %v4637_v37 = vmul.f32 0.5, %v4517_v20  ;;  %v4513_v50 = vadd.f32 1.0, %v10533_v35  ;;  %v4177_v12 = vadd.f32 %v10638_v23, %v4057_v24  ;;  %v4058_v10 = vmul.f32 0.044715, %v3938_v3  ;;  %v11561_v20 = vld [vmem:[#allocation42_spill] sm:$0xff] }
 0x3f0   : > { %v4060_v43 = vmul.f32 0.044715, %v3940_v11  ;;  %v4516_v60 = vadd.f32 1.0, %v10545_v22  ;;  %v4061_v53 = vmul.f32 0.044715, %v3941_v42  ;;  %v4754_v21 = vmul.f32 %v10449_v47, %v4634_v14  ;;  %v11558_v22 = vld [vmem:[#allocation61_spill] sm:$0xff] }
 0x3f1   : > { %v4757_v56 = vmul.f32 %v10462_v17, %v4637_v37  ;;  %v4633_v30 = vmul.f32 0.5, %v4513_v50  ;;  %v10680_v8 = vpop.eup %6752  ;;  %v4297_v31 = vmul.f32 0.7978846, %v4177_v12  ;;  %v4178_v9 = vadd.f32 %v10647_v54, %v4058_v10 }
 0x3f2   : > { %v4180_v61 = vadd.f32 %v10651_v36, %v4060_v43  ;;  %v4636_v35 = vmul.f32 0.5, %v4516_v60  ;;  %v4181_v18 = vadd.f32 %v10657_v25, %v4061_v53  ;;  %v10688_v51 = vadd.f32 %v11558_v22, %v9138_v28  ;;  %v11562_v22 = vld [vmem:[#allocation72_spill] sm:$0xff] }
 0x3f3   : > { %v4835_v6 = vpack.c.bf16 %v4757_v56, %v4754_v21  ;;  %v4753_v32 = vmul.f32 %v10444_v29, %v4633_v30  ;;  %6760 = vtanh.f32 %v4297_v31  ;;  %v4298_v47 = vmul.f32 0.7978846, %v4178_v9  ;;  %v11560_v29 = vld [vmem:[#allocation26_spill] sm:$0xff] }
 0x3f4   : > { %v4300_v17 = vmul.f32 0.7978846, %v4180_v61  ;;  %v4756_v45 = vmul.f32 %v10455_v1, %v4636_v35  ;;  %v4301_v13 = vmul.f32 0.7978846, %v4181_v18  ;;  %v3823_v19 = vmul.f32 %v10688_v51, %v10688_v51 }
 0x3f5   : > { %5190 = vmatprep.mubr.bf16.mxu0 %v4835_v6  ;;  %v10695_v40 = vadd.f32 %v11559_v62, %v9150_v7  ;;  %v10699_v41 = vadd.f32 %v11560_v29, %v9138_v28  ;;  %6762 = vtanh.f32 %v4298_v47  ;;  %v10705_v1 = vadd.f32 %v11561_v20, %v9150_v7  ;;  %v11563_v20 = vld [vmem:[#allocation69_spill] sm:$0xff] }
 0x3f6   : > { %v10701_v38 = vpop.eup %6754  ;;  %v4834_v52 = vpack.c.bf16 %v4756_v45, %v4753_v32  ;;  %v4520_v24 = vadd.f32 1.0, %v10602_v27  ;;  %6764 = vtanh.f32 %v4300_v17  ;;  %v3943_v11 = vmul.f32 %v10688_v51, %v3823_v19 }
 0x3f7   : > { %v10708_v3 = vpop.eup %6756  ;;  %v3824_v42 = vmul.f32 %v10695_v40, %v10695_v40  ;;  %v3826_v14 = vmul.f32 %v10699_v41, %v10699_v41  ;;  %6766 = vtanh.f32 %v4301_v13  ;;  %v3827_v50 = vmul.f32 %v10705_v1, %v10705_v1 }
 0x3f8   : > { %v10715_v37 = vpop.eup %6758  ;;  %5191 = vmatmul.mubr.bf16.gmra.mrb[232].mxu0 %v4834_v52  ;;  %v4523_v27 = vadd.f32 1.0, %v10617_v48  ;;  %v4640_v12 = vmul.f32 0.5, %v4520_v24  ;;  %v4063_v10 = vmul.f32 0.044715, %v3943_v11  ;;  %v4519_v53 = vadd.f32 1.0, %v10595_v5 }
 0x3f9   : > { %v3944_v43 = vmul.f32 %v10695_v40, %v3824_v42  ;;  %v3946_v60 = vmul.f32 %v10699_v41, %v3826_v14  ;;  %v3947_v21 = vmul.f32 %v10705_v1, %v3827_v50  ;;  %v4522_v31 = vadd.f32 1.0, %v10612_v33 }
 0x3fa   : > { %v4643_v56 = vmul.f32 0.5, %v4523_v27  ;;  %v4760_v30 = vmul.f32 %v10504_v44, %v4640_v12  ;;  %v4183_v9 = vadd.f32 %v10688_v51, %v4063_v10  ;;  %v4639_v48 = vmul.f32 0.5, %v4519_v53 }
 0x3fb   : > { %v4064_v61 = vmul.f32 0.044715, %v3944_v43  ;;  %v4066_v35 = vmul.f32 0.044715, %v3946_v60  ;;  %v4067_v18 = vmul.f32 0.044715, %v3947_v21  ;;  %v10730_v47 = vadd.f32 %v11562_v22, %v9138_v28 }
 0x3fc   : > { %v4763_v6 = vmul.f32 %v10513_v15, %v4643_v56  ;;  %v4642_v32 = vmul.f32 0.5, %v4522_v31  ;;  %v4303_v5 = vmul.f32 0.7978846, %v4183_v9  ;;  %v4759_v33 = vmul.f32 %v10500_v46, %v4639_v48  ;;  %v10745_v11 = vpop.f32.mrb[180].mxu0  ;;  %v11565_v60 = vld [vmem:[#allocation70_spill] sm:$0xff] }
 0x3fd   : > { %v4184_v17 = vadd.f32 %v10695_v40, %v4064_v61  ;;  %v4186_v44 = vadd.f32 %v10699_v41, %v4066_v35  ;;  %v10735_v45 = vpop.eup %6760  ;;  %v4187_v13 = vadd.f32 %v10705_v1, %v4067_v18  ;;  %v3829_v15 = vmul.f32 %v10730_v47, %v10730_v47  ;;  %v5090_v12 = vpop.f32.mrb[181].mxu0 }
 0x3fe   : > { %v4838_v19 = vpack.c.bf16 %v4763_v6, %v4760_v30  ;;  %v4762_v62 = vmul.f32 %v10509_v2, %v4642_v32  ;;  %6768 = vtanh.f32 %v4303_v5  ;;  %v10743_v24 = vadd.f32 %v11563_v20, %v9150_v7  ;;  %v11564_v2 = vld [vmem:[#allocation44_spill] sm:$0xff]  ;;  %v10763_v56 = vpop.f32.mrb[182].mxu0 }
 0x3ff   : > { %v4304_v29 = vmul.f32 0.7978846, %v4184_v17  ;;  %v4306_v52 = vmul.f32 0.7978846, %v4186_v44  ;;  %v10747_v46 = vpop.eup %6762  ;;  %v4307_v42 = vmul.f32 0.7978846, %v4187_v13  ;;  %v3949_v50 = vmul.f32 %v10730_v47, %v3829_v15 }
 0x400   : > { %5198 = vmatprep.mubr.bf16.mxu0 %v4838_v19  ;;  %v4837_v14 = vpack.c.bf16 %v4762_v62, %v4759_v33  ;;  %v10752_v27 = vadd.f32 %v11564_v2, %v9138_v28  ;;  %v10754_v10 = vpop.eup %6764  ;;  %v3830_v43 = vmul.f32 %v10743_v24, %v10743_v24  ;;  %v10760_v53 = vadd.f32 %v11565_v60, %v9150_v7  ;;  %v5093_v61 = vpop.f32.mrb[183].mxu0 }
 0x401   : > { %6770 = vtanh.f32 %v4304_v29  ;;  %v4526_v21 = vadd.f32 1.0, %v10653_v49  ;;  %v6767_v30 = vpop.eup %6766  ;;  %v4069_v28 = vmul.f32 0.044715, %v3949_v50  ;;  %v4529_v9 = vadd.f32 1.0, %v10666_v55  ;;  %v10771_v49 = vpop.f32.mrb[140].mxu1 }
 0x402   : > { %6772 = vtanh.f32 %v4306_v52  ;;  %5199 = vmatmul.mubr.bf16.gmra.mrb[236].mxu0 %v4837_v14  ;;  %v3832_v31 = vmul.f32 %v10752_v27, %v10752_v27  ;;  %v3950_v35 = vmul.f32 %v10743_v24, %v3830_v43  ;;  %v3833_v7 = vmul.f32 %v10760_v53, %v10760_v53  ;;  %v10776_v5 = vpop.f32.mrb[141].mxu1 }
 0x403   : > { %6774 = vtanh.f32 %v4307_v42  ;;  %v4646_v48 = vmul.f32 0.5, %v4526_v21  ;;  %v4189_v18 = vadd.f32 %v10730_v47, %v4069_v28  ;;  %v4649_v32 = vmul.f32 0.5, %v4529_v9  ;;  %v10781_v13 = vpop.f32.mrb[142].mxu1 }
 0x404   : > { %v3952_v6 = vmul.f32 %v10752_v27, %v3832_v31  ;;  %v4525_v22 = vadd.f32 1.0, %v10632_v16  ;;  %v4070_v55 = vmul.f32 0.044715, %v3950_v35  ;;  %v3953_v17 = vmul.f32 %v10760_v53, %v3833_v7  ;;  %v10784_v52 = vpop.f32.mrb[143].mxu1 }
 0x405   : > { %v4766_v44 = vmul.f32 %v10557_v59, %v4646_v48  ;;  %v4528_v33 = vadd.f32 1.0, %v10659_v0  ;;  %v4309_v19 = vmul.f32 0.7978846, %v4189_v18  ;;  %v4769_v15 = vmul.f32 %v10566_v57, %v4649_v32 }
 0x406   : > { %v4072_v62 = vmul.f32 0.044715, %v3952_v6  ;;  %v4645_v29 = vmul.f32 0.5, %v4525_v22  ;;  %v4190_v16 = vadd.f32 %v10743_v24, %v4070_v55  ;;  %v4073_v20 = vmul.f32 0.044715, %v3953_v17 }
 0x407   : > { %v4648_v42 = vmul.f32 0.5, %v4528_v33  ;;  %v4532_v14 = vadd.f32 1.0, %v10701_v38  ;;  %6776 = vtanh.f32 %v4309_v19  ;;  %v4841_v50 = vpack.c.bf16 %v4769_v15, %v4766_v44 }
 0x408   : > { %v4192_v59 = vadd.f32 %v10752_v27, %v4072_v62  ;;  %v4765_v0 = vmul.f32 %v10543_v39, %v4645_v29  ;;  %v6769_v2 = vpop.eup %6768  ;;  %v4310_v12 = vmul.f32 0.7978846, %v4190_v16  ;;  %v4193_v43 = vadd.f32 %v10760_v53, %v4073_v20 }
 0x409   : > { %v4768_v57 = vmul.f32 %v10562_v34, %v4648_v42  ;;  %v4535_v60 = vadd.f32 1.0, %v10715_v37  ;;  %5206 = vmatprep.mubr.bf16.mxu0 %v4841_v50  ;;  %v4652_v28 = vmul.f32 0.5, %v4532_v14  ;;  %v4531_v31 = vadd.f32 1.0, %v10680_v8 }
 0x40a   : > { %v4312_v21 = vmul.f32 0.7978846, %v4192_v59  ;;  %v4534_v38 = vadd.f32 1.0, %v10708_v3  ;;  %6778 = vtanh.f32 %v4310_v12  ;;  %v4313_v61 = vmul.f32 0.7978846, %v4193_v43 }
 0x40b   : > { %v6771_v9 = vpop.eup %6770  ;;  %v4840_v35 = vpack.c.bf16 %v4768_v57, %v4765_v0  ;;  %v4655_v39 = vmul.f32 0.5, %v4535_v60  ;;  %v4772_v48 = vmul.f32 %v10600_v26, %v4652_v28  ;;  %v4651_v18 = vmul.f32 0.5, %v4531_v31 }
 0x40c   : > { %v6773_v7 = vpop.eup %6772  ;;  %6780 = vtanh.f32 %v4312_v21  ;;  %v4654_v34 = vmul.f32 0.5, %v4534_v38  ;;  %v4538_v8 = vadd.f32 1.0, %v10747_v46  ;;  %v4541_v32 = vadd.f32 1.0, %v6767_v30 }
 0x40d   : > { %v6775_v6 = vpop.eup %6774  ;;  %6782 = vtanh.f32 %v4313_v61  ;;  %5207 = vmatmul.mubr.bf16.gmra.mrb[240].mxu0 %v4840_v35  ;;  %v4775_v37 = vmul.f32 %v10610_v58, %v4655_v39  ;;  %v4771_v3 = vmul.f32 %v10585_v63, %v4651_v18  ;;  %v4537_v55 = vadd.f32 1.0, %v10735_v45  ;;  %v10807_v45 = vld [vmem:[%s10986_s6] ss:$0 sm:$0xff] }
 0x40e   : > { %v4774_v22 = vmul.f32 %v10606_v4, %v4654_v34  ;;  %v4540_v17 = vadd.f32 1.0, %v10754_v10  ;;  %v4658_v26 = vmul.f32 0.5, %v4538_v8  ;;  %v4661_v33 = vmul.f32 0.5, %v4541_v32 }
 0x40f   : > { %v4844_v44 = vpack.c.bf16 %v4775_v37, %v4772_v48  ;;  %v4544_v19 = vadd.f32 1.0, %v6771_v9  ;;  %v4657_v15 = vmul.f32 0.5, %v4537_v55  ;;  %v4547_v58 = vadd.f32 1.0, %v6775_v6 }
 0x410   : > { %v4843_v62 = vpack.c.bf16 %v4774_v22, %v4771_v3  ;;  %v4660_v29 = vmul.f32 0.5, %v4540_v17  ;;  %v4778_v46 = vmul.f32 %v10647_v54, %v4658_v26  ;;  %v4781_v63 = vmul.f32 %v10657_v25, %v4661_v33 }
 0x411   : > { %5214 = vmatprep.mubr.bf16.mxu0 %v4844_v44  ;;  %v4664_v30 = vmul.f32 0.5, %v4544_v19  ;;  %v4543_v4 = vadd.f32 1.0, %v6769_v2  ;;  %v6777_v10 = vpop.eup %6776  ;;  %v4777_v16 = vmul.f32 %v10638_v23, %v4657_v15  ;;  %v4667_v42 = vmul.f32 0.5, %v4547_v58 }
 0x412   : > { %v4780_v20 = vmul.f32 %v10651_v36, %v4660_v29  ;;  %v4546_v14 = vadd.f32 1.0, %v6773_v7  ;;  %v4549_v59 = vadd.f32 1.0, %v6777_v10  ;;  %v4847_v50 = vpack.c.bf16 %v4781_v63, %v4778_v46 }
 0x413   : > { %v4784_v54 = vmul.f32 %v10695_v40, %v4664_v30  ;;  %v4663_v25 = vmul.f32 0.5, %v4543_v4  ;;  %v4787_v2 = vmul.f32 %v10705_v1, %v4667_v42  ;;  %v5089_v43 = vadd.f32 %v10807_v45, %v10745_v11  ;;  %v5096_v28 = vpop.f32.mrb[184].mxu0 }
 0x414   : > { %v4846_v0 = vpack.c.bf16 %v4780_v20, %v4777_v16  ;;  %v4666_v12 = vmul.f32 0.5, %v4546_v14  ;;  %v6779_v57 = vpop.eup %6778  ;;  %v5092_v36 = vadd.f32 %v10807_v45, %v10763_v56  ;;  %v4669_v31 = vmul.f32 0.5, %v4549_v59  ;;  %v5098_v35 = vpop.f32.mrb[185].mxu0 }
 0x415   : > { %5215 = vmatmul.mubr.bf16.gmra.mrb[244].mxu0 %v4843_v62  ;;  %v4783_v23 = vmul.f32 %v10688_v51, %v4663_v25  ;;  %v4850_v1 = vpack.c.bf16 %v4787_v2, %v4784_v54  ;;  %v4550_v21 = vadd.f32 1.0, %v6779_v57  ;;  %v5282_v11 = vadd.f32 %v10776_v5, %v5089_v43  ;;  %v5935_v48 = vpop.f32.mrb[144].mxu1 }
 0x416   : > { %v6781_v40 = vpop.eup %6780  ;;  %5222 = vmatprep.mubr.bf16.mxu0 %v4847_v50  ;;  %v4786_v60 = vmul.f32 %v10699_v41, %v4666_v12  ;;  %v5285_v9 = vadd.f32 %v10784_v52, %v5092_v36  ;;  %v5097_v61 = vadd.f32 %v10807_v45, %v5096_v28  ;;  %v5099_v41 = vpop.f32.mrb[186].mxu0  ;;  %v4789_v32 = vmul.f32 %v10730_v47, %v4669_v31 }
 0x417   : > { %v6783_v51 = vpop.eup %6782  ;;  %v4552_v38 = vadd.f32 1.0, %v6781_v40  ;;  %v4670_v7 = vmul.f32 0.5, %v4550_v21  ;;  %5440 = vst [vmem:[%s10820_s28] sm:$0xff] %v5282_v11  ;;  %v5297_v34 = vpop.f32.mrb[145].mxu1  ;;  %v5100_v6 = vadd.f32 %v10807_v45, %v5099_v41 }
 0x418   : > { %v4849_v56 = vpack.c.bf16 %v4786_v60, %v4783_v23  ;;  %v4553_v39 = vadd.f32 1.0, %v6783_v51  ;;  %5441 = vst [vmem:[%s10820_s28 + $0x8] sm:$0xff] %v5285_v9  ;;  %v5290_v5 = vadd.f32 %v10771_v49, %v5097_v61  ;;  %v5101_v37 = vpop.f32.mrb[187].mxu0  ;;  %v5936_v8 = vpop.f32.mrb[146].mxu1 }
 0x419   : > { %v4672_v18 = vmul.f32 0.5, %v4552_v38  ;;  %v5293_v22 = vadd.f32 %v10781_v13, %v5100_v6  ;;  %v5300_v55 = vpop.f32.mrb[147].mxu1  ;;  %v4790_v17 = vmul.f32 %v10743_v24, %v4670_v7 }
 0x41a   : > { %v4673_v52 = vmul.f32 0.5, %v4553_v39  ;;  %5442 = vst [vmem:[%s10820_s28 + $0x10] sm:$0xff] %v5290_v5 }
 0x41b   : > { %v4792_v3 = vmul.f32 %v10752_v27, %v4672_v18  ;;  %5443 = vst [vmem:[%s10820_s28 + $0x18] sm:$0xff] %v5293_v22 }
 0x41c   : > { %v4793_v44 = vmul.f32 %v10760_v53, %v4673_v52 }
 0x41d   : > { %v4852_v26 = vpack.c.bf16 %v4792_v3, %v4789_v32  ;;  %5223 = vmatmul.mubr.bf16.gmra.mrb[248].mxu0 %v4846_v0 }
 0x41e   : > { %5230 = vmatprep.mubr.bf16.mxu0 %v4850_v1  ;;  %v4853_v49 = vpack.c.bf16 %v4793_v44, %v4790_v17 }
 0x425   : > { %5231 = vmatmul.mubr.bf16.gmra.mrb[252].mxu0 %v4849_v56 }
 0x426   : > { %5238 = vmatprep.mubr.bf16.mxu0 %v4853_v49 }
 0x429   : > { %v5104_v47 = vpop.f32.mrb[188].mxu0 }
 0x42a   : > { %v5105_v27 = vadd.f32 %v10807_v45, %v5104_v47  ;;  %v5939_v33 = vpop.f32.mrb[148].mxu1  ;;  %v5106_v19 = vpop.f32.mrb[189].mxu0 }
 0x42b   : > { %v5313_v13 = vpop.f32.mrb[149].mxu1  ;;  %v5107_v62 = vpop.f32.mrb[190].mxu0 }
 0x42c   : > { %v5298_v24 = vadd.f32 %v5297_v34, %v5105_v27  ;;  %v5108_v53 = vadd.f32 %v10807_v45, %v5107_v62  ;;  %v5940_v15 = vpop.f32.mrb[150].mxu1  ;;  %v5109_v29 = vpop.f32.mrb[191].mxu0 }
 0x42d   : > { %5239 = vmatmul.mubr.bf16.gmra.mrb[0].mxu0 %v4852_v26  ;;  %v5316_v58 = vpop.f32.mrb[151].mxu1 }
 0x42e   : > { %5444 = vst [vmem:[%s10820_s28 + $0x20] sm:$0xff] %v5298_v24  ;;  %v5301_v46 = vadd.f32 %v5300_v55, %v5108_v53 }
 0x430   : > { %5445 = vst [vmem:[%s10820_s28 + $0x28] sm:$0xff] %v5301_v46 }
 0x43f   : > { %v5112_v63 = vpop.f32.mrb[192].mxu0 }
 0x440   : > { %v5113_v30 = vadd.f32 %v10807_v45, %v5112_v63  ;;  %v5943_v4 = vpop.f32.mrb[152].mxu1  ;;  %v5114_v10 = vpop.f32.mrb[193].mxu0 }
 0x441   : > { %v5329_v16 = vpop.f32.mrb[153].mxu1  ;;  %v5115_v20 = vpop.f32.mrb[194].mxu0 }
 0x442   : > { %v5306_v42 = vadd.f32 %v5935_v48, %v5113_v30  ;;  %v5116_v14 = vadd.f32 %v10807_v45, %v5115_v20  ;;  %v5944_v59 = vpop.f32.mrb[154].mxu1  ;;  %v5117_v50 = vpop.f32.mrb[195].mxu0 }
 0x443   : > { %v5332_v54 = vpop.f32.mrb[155].mxu1 }
 0x444   : > { %5446 = vst [vmem:[%s10820_s28 + $0x30] sm:$0xff] %v5306_v42  ;;  %v5309_v25 = vadd.f32 %v5936_v8, %v5116_v14 }
 0x446   : > { %5447 = vst [vmem:[%s10820_s28 + $0x38] sm:$0xff] %v5309_v25 }
 0x454   : > { %v5120_v0 = vpop.f32.mrb[196].mxu0 }
 0x455   : > { %v5121_v2 = vadd.f32 %v10807_v45, %v5120_v0  ;;  %v5122_v43 = vpop.f32.mrb[197].mxu0 }
 0x456   : > { %v10848_v12 = vpop.f32.mrb[156].mxu1  ;;  %v5123_v23 = vpop.f32.mrb[198].mxu0 }
 0x457   : > { %v5345_v57 = vpop.f32.mrb[157].mxu1  ;;  %v5314_v36 = vadd.f32 %v5313_v13, %v5121_v2  ;;  %v5124_v40 = vadd.f32 %v10807_v45, %v5123_v23  ;;  %v5125_v60 = vpop.f32.mrb[199].mxu0 }
 0x458   : > { %v10851_v1 = vpop.f32.mrb[158].mxu1 }
 0x459   : > { %v5348_v21 = vpop.f32.mrb[159].mxu1  ;;  %5448 = vst [vmem:[%s10820_s28 + $0x40] sm:$0xff] %v5314_v36  ;;  %v5317_v11 = vadd.f32 %v5316_v58, %v5124_v40 }
 0x45b   : > { %5449 = vst [vmem:[%s10820_s28 + $0x48] sm:$0xff] %v5317_v11 }
 0x46a   : > { %v5128_v28 = vpop.f32.mrb[200].mxu0 }
 0x46b   : > { %v5129_v51 = vadd.f32 %v10807_v45, %v5128_v28  ;;  %v10856_v31 = vpop.f32.mrb[160].mxu1  ;;  %v5130_v38 = vpop.f32.mrb[201].mxu0 }
 0x46c   : > { %v10858_v9 = vpop.f32.mrb[161].mxu1  ;;  %v5131_v61 = vpop.f32.mrb[202].mxu0 }
 0x46d   : > { %v5322_v35 = vadd.f32 %v5939_v33, %v5129_v51  ;;  %v5132_v56 = vadd.f32 %v10807_v45, %v5131_v61  ;;  %v10861_v39 = vpop.f32.mrb[162].mxu1  ;;  %v5133_v7 = vpop.f32.mrb[203].mxu0 }
 0x46e   : > { %v10863_v48 = vpop.f32.mrb[163].mxu1 }
 0x46f   : > { %5450 = vst [vmem:[%s10820_s28 + $0x50] sm:$0xff] %v5322_v35  ;;  %v5325_v41 = vadd.f32 %v5940_v15, %v5132_v56 }
 0x471   : > { %5451 = vst [vmem:[%s10820_s28 + $0x58] sm:$0xff] %v5325_v41 }
 0x477   : > { %v5136_v18 = vpop.f32.mrb[204].mxu0 }
 0x478   : > { %v5137_v5 = vadd.f32 %v10807_v45, %v5136_v18  ;;  %v5138_v34 = vpop.f32.mrb[205].mxu0 }
 0x479   : > { %v10868_v6 = vpop.f32.mrb[164].mxu1  ;;  %v5139_v37 = vpop.f32.mrb[206].mxu0 }
 0x47a   : > { %v5330_v52 = vadd.f32 %v5329_v16, %v5137_v5  ;;  %v10870_v8 = vpop.f32.mrb[165].mxu1  ;;  %v5140_v32 = vadd.f32 %v10807_v45, %v5139_v37  ;;  %v5141_v3 = vpop.f32.mrb[207].mxu0 }
 0x47b   : > { %v10873_v22 = vpop.f32.mrb[166].mxu1 }
 0x47c   : > { %5452 = vst [vmem:[%s10820_s28 + $0x60] sm:$0xff] %v5330_v52  ;;  %v5333_v55 = vadd.f32 %v5332_v54, %v5140_v32  ;;  %v10876_v17 = vpop.f32.mrb[167].mxu1 }
 0x47e   : > { %5453 = vst [vmem:[%s10820_s28 + $0x68] sm:$0xff] %v5333_v55 }
 0x485   : > { %v5144_v44 = vpop.f32.mrb[208].mxu0 }
 0x486   : > { %v5145_v26 = vadd.f32 %v10807_v45, %v5144_v44  ;;  %v5146_v49 = vpop.f32.mrb[209].mxu0 }
 0x487   : > { %v10880_v47 = vpop.f32.mrb[168].mxu1  ;;  %v5147_v27 = vpop.f32.mrb[210].mxu0 }
 0x488   : > { %v5338_v33 = vadd.f32 %v5943_v4, %v5145_v26  ;;  %v10882_v19 = vpop.f32.mrb[169].mxu1  ;;  %v5148_v13 = vadd.f32 %v10807_v45, %v5147_v27  ;;  %v5149_v62 = vpop.f32.mrb[211].mxu0 }
 0x489   : > { %v10885_v24 = vpop.f32.mrb[170].mxu1 }
 0x48a   : > { %5454 = vst [vmem:[%s10820_s28 + $0x70] sm:$0xff] %v5338_v33  ;;  %v5341_v53 = vadd.f32 %v5944_v59, %v5148_v13  ;;  %v10888_v15 = vpop.f32.mrb[171].mxu1 }
 0x48c   : > { %5455 = vst [vmem:[%s10820_s28 + $0x78] sm:$0xff] %v5341_v53 }
 0x493   : > { %v5152_v29 = vpop.f32.mrb[212].mxu0 }
 0x494   : > { %v5153_v58 = vadd.f32 %v10807_v45, %v5152_v29  ;;  %v5154_v46 = vpop.f32.mrb[213].mxu0 }
 0x495   : > { %v5155_v63 = vpop.f32.mrb[214].mxu0 }
 0x496   : > { %v5346_v30 = vadd.f32 %v5345_v57, %v5153_v58  ;;  %v10892_v4 = vpop.f32.mrb[172].mxu1  ;;  %v5156_v10 = vadd.f32 %v10807_v45, %v5155_v63  ;;  %v5157_v16 = vpop.f32.mrb[215].mxu0 }
 0x497   : > { %v10895_v20 = vpop.f32.mrb[173].mxu1 }
 0x498   : > { %5456 = vst [vmem:[%s10820_s28 + $0x80] sm:$0xff] %v5346_v30  ;;  %v5349_v42 = vadd.f32 %v5348_v21, %v5156_v10  ;;  %v10898_v14 = vpop.f32.mrb[174].mxu1 }
 0x499   : > { %v10900_v59 = vpop.f32.mrb[175].mxu1 }
 0x49a   : > { %5457 = vst [vmem:[%s10820_s28 + $0x88] sm:$0xff] %v5349_v42 }
 0x4a1   : > { %v5160_v50 = vpop.f32.mrb[216].mxu0 }
 0x4a2   : > { %v5161_v54 = vadd.f32 %v10807_v45, %v5160_v50  ;;  %v5162_v25 = vpop.f32.mrb[217].mxu0 }
 0x4a3   : > { %v10904_v0 = vpop.f32.mrb[176].mxu1  ;;  %v5163_v2 = vpop.f32.mrb[218].mxu0 }
 0x4a4   : > { %v5354_v43 = vadd.f32 %v10848_v12, %v5161_v54  ;;  %v10907_v57 = vpop.f32.mrb[177].mxu1  ;;  %v5164_v23 = vadd.f32 %v10807_v45, %v5163_v2  ;;  %v5165_v36 = vpop.f32.mrb[219].mxu0 }
 0x4a5   : > { %v10910_v40 = vpop.f32.mrb[178].mxu1 }
 0x4a6   : > { %5458 = vst [vmem:[%s10820_s28 + $0x90] sm:$0xff] %v5354_v43  ;;  %v5357_v60 = vadd.f32 %v10851_v1, %v5164_v23  ;;  %v10914_v21 = vpop.f32.mrb[179].mxu1 }
 0x4a8   : > { %5459 = vst [vmem:[%s10820_s28 + $0x98] sm:$0xff] %v5357_v60 }
 0x4ab   : > { %v5168_v11 = vpop.f32.mrb[220].mxu0 }
 0x4ac   : > { %v5169_v28 = vadd.f32 %v10807_v45, %v5168_v11  ;;  %v5170_v12 = vpop.f32.mrb[221].mxu0 }
 0x4ad   : > { %v5171_v51 = vpop.f32.mrb[222].mxu0 }
 0x4ae   : > { %v5362_v38 = vadd.f32 %v10858_v9, %v5169_v28  ;;  %v5172_v61 = vadd.f32 %v10807_v45, %v5171_v51  ;;  %v5173_v35 = vpop.f32.mrb[223].mxu0 }
 0x4b0   : > { %5460 = vst [vmem:[%s10820_s28 + $0xa0] sm:$0xff] %v5362_v38  ;;  %v5365_v56 = vadd.f32 %v10863_v48, %v5172_v61 }
 0x4b2   : > { %5461 = vst [vmem:[%s10820_s28 + $0xa8] sm:$0xff] %v5365_v56 }
 0x4b6   : > { %v5176_v1 = vpop.f32.mrb[224].mxu0 }
 0x4b7   : > { %v5177_v7 = vadd.f32 %v10807_v45, %v5176_v1  ;;  %v5178_v41 = vpop.f32.mrb[225].mxu0 }
 0x4b8   : > { %v5179_v18 = vpop.f32.mrb[226].mxu0 }
 0x4b9   : > { %v5370_v5 = vadd.f32 %v10856_v31, %v5177_v7  ;;  %v5180_v34 = vadd.f32 %v10807_v45, %v5179_v18  ;;  %v5181_v37 = vpop.f32.mrb[227].mxu0 }
 0x4bb   : > { %5462 = vst [vmem:[%s10820_s28 + $0xb0] sm:$0xff] %v5370_v5  ;;  %v5373_v9 = vadd.f32 %v10861_v39, %v5180_v34 }
 0x4bd   : > { %5463 = vst [vmem:[%s10820_s28 + $0xb8] sm:$0xff] %v5373_v9 }
 0x4c0   : > { %v5184_v52 = vpop.f32.mrb[228].mxu0 }
 0x4c1   : > { %v5185_v48 = vadd.f32 %v10807_v45, %v5184_v52  ;;  %v5186_v32 = vpop.f32.mrb[229].mxu0 }
 0x4c2   : > { %v5187_v3 = vpop.f32.mrb[230].mxu0 }
 0x4c3   : > { %v5378_v55 = vadd.f32 %v10870_v8, %v5185_v48  ;;  %v5188_v44 = vadd.f32 %v10807_v45, %v5187_v3  ;;  %v5189_v26 = vpop.f32.mrb[231].mxu0 }
 0x4c5   : > { %5464 = vst [vmem:[%s10820_s28 + $0xc0] sm:$0xff] %v5378_v55  ;;  %v5381_v31 = vadd.f32 %v10876_v17, %v5188_v44 }
 0x4c7   : > { %5465 = vst [vmem:[%s10820_s28 + $0xc8] sm:$0xff] %v5381_v31 }
 0x4cb   : > { %v5192_v49 = vpop.f32.mrb[232].mxu0 }
 0x4cc   : > { %v5193_v39 = vadd.f32 %v10807_v45, %v5192_v49  ;;  %v5194_v27 = vpop.f32.mrb[233].mxu0 }
 0x4cd   : > { %v5195_v33 = vpop.f32.mrb[234].mxu0 }
 0x4ce   : > { %v5386_v13 = vadd.f32 %v10868_v6, %v5193_v39  ;;  %v5196_v62 = vadd.f32 %v10807_v45, %v5195_v33  ;;  %v5197_v53 = vpop.f32.mrb[235].mxu0 }
 0x4d0   : > { %5466 = vst [vmem:[%s10820_s28 + $0xd0] sm:$0xff] %v5386_v13  ;;  %v5389_v8 = vadd.f32 %v10873_v22, %v5196_v62 }
 0x4d2   : > { %5467 = vst [vmem:[%s10820_s28 + $0xd8] sm:$0xff] %v5389_v8 }
 0x4d5   : > { %v5200_v29 = vpop.f32.mrb[236].mxu0 }
 0x4d6   : > { %v5201_v17 = vadd.f32 %v10807_v45, %v5200_v29  ;;  %v5202_v58 = vpop.f32.mrb[237].mxu0 }
 0x4d7   : > { %v5203_v46 = vpop.f32.mrb[238].mxu0 }
 0x4d8   : > { %v5394_v63 = vadd.f32 %v10882_v19, %v5201_v17  ;;  %v5204_v30 = vadd.f32 %v10807_v45, %v5203_v46  ;;  %v5205_v10 = vpop.f32.mrb[239].mxu0 }
 0x4da   : > { %5468 = vst [vmem:[%s10820_s28 + $0xe0] sm:$0xff] %v5394_v63  ;;  %v5397_v6 = vadd.f32 %v10888_v15, %v5204_v30 }
 0x4dc   : > { %5469 = vst [vmem:[%s10820_s28 + $0xe8] sm:$0xff] %v5397_v6 }
 0x4e0   : > { %v5208_v16 = vpop.f32.mrb[240].mxu0 }
 0x4e1   : > { %v5209_v22 = vadd.f32 %v10807_v45, %v5208_v16  ;;  %v5210_v42 = vpop.f32.mrb[241].mxu0 }
 0x4e2   : > { %v5211_v50 = vpop.f32.mrb[242].mxu0 }
 0x4e3   : > { %v5402_v54 = vadd.f32 %v10880_v47, %v5209_v22  ;;  %v5212_v25 = vadd.f32 %v10807_v45, %v5211_v50  ;;  %v5213_v2 = vpop.f32.mrb[243].mxu0 }
 0x4e5   : > { %5470 = vst [vmem:[%s10820_s28 + $0xf0] sm:$0xff] %v5402_v54  ;;  %v5405_v19 = vadd.f32 %v10885_v24, %v5212_v25 }
 0x4e7   : > { %5471 = vst [vmem:[%s10820_s28 + $0xf8] sm:$0xff] %v5405_v19 }
 0x4e8   : > { %v5216_v43 = vpop.f32.mrb[244].mxu0 }
 0x4e9   : > { %v5217_v15 = vadd.f32 %v10807_v45, %v5216_v43  ;;  %v5218_v23 = vpop.f32.mrb[245].mxu0 }
 0x4ea   : > { %v5219_v36 = vpop.f32.mrb[246].mxu0 }
 0x4eb   : > { %v5410_v60 = vadd.f32 %v10895_v20, %v5217_v15  ;;  %v5220_v11 = vadd.f32 %v10807_v45, %v5219_v36  ;;  %v5221_v28 = vpop.f32.mrb[247].mxu0 }
 0x4ed   : > { %5472 = vst [vmem:[%s10820_s28 + $0x100] sm:$0xff] %v5410_v60  ;;  %v5413_v47 = vadd.f32 %v10900_v59, %v5220_v11 }
 0x4ef   : > { %5473 = vst [vmem:[%s10820_s28 + $0x108] sm:$0xff] %v5413_v47 }
 0x4f0   : > { %v5224_v12 = vpop.f32.mrb[248].mxu0 }
 0x4f1   : > { %v5225_v24 = vadd.f32 %v10807_v45, %v5224_v12  ;;  %v5226_v51 = vpop.f32.mrb[249].mxu0 }
 0x4f2   : > { %v5227_v38 = vpop.f32.mrb[250].mxu0 }
 0x4f3   : > { %v5418_v61 = vadd.f32 %v10892_v4, %v5225_v24  ;;  %v5228_v35 = vadd.f32 %v10807_v45, %v5227_v38  ;;  %v5229_v56 = vpop.f32.mrb[251].mxu0 }
 0x4f5   : > { %5474 = vst [vmem:[%s10820_s28 + $0x110] sm:$0xff] %v5418_v61  ;;  %v5421_v20 = vadd.f32 %v10898_v14, %v5228_v35 }
 0x4f7   : > { %5475 = vst [vmem:[%s10820_s28 + $0x118] sm:$0xff] %v5421_v20 }
 0x4f8   : > { %v5232_v1 = vpop.f32.mrb[252].mxu0 }
 0x4f9   : > { %v5233_v59 = vadd.f32 %v10807_v45, %v5232_v1  ;;  %v5234_v7 = vpop.f32.mrb[253].mxu0 }
 0x4fa   : > { %v5235_v41 = vpop.f32.mrb[254].mxu0 }
 0x4fb   : > { %v5426_v18 = vadd.f32 %v10907_v57, %v5233_v59  ;;  %v5236_v5 = vadd.f32 %v10807_v45, %v5235_v41  ;;  %v5237_v34 = vpop.f32.mrb[255].mxu0 }
 0x4fd   : > { %5476 = vst [vmem:[%s10820_s28 + $0x120] sm:$0xff] %v5426_v18  ;;  %v5429_v4 = vadd.f32 %v10914_v21, %v5236_v5 }
 0x4ff   : > { %5477 = vst [vmem:[%s10820_s28 + $0x128] sm:$0xff] %v5429_v4 }
 0x500   : > { %v5240_v37 = vpop.f32.mrb[0].mxu0 }
 0x501   : > { %v5241_v14 = vadd.f32 %v10807_v45, %v5240_v37  ;;  %v5242_v9 = vpop.f32.mrb[1].mxu0 }
 0x502   : > { %v5243_v52 = vpop.f32.mrb[2].mxu0 }
 0x503   : > { %v5434_v48 = vadd.f32 %v10904_v0, %v5241_v14  ;;  %v5244_v32 = vadd.f32 %v10807_v45, %v5243_v52  ;;  %v5245_v3 = vpop.f32.mrb[3].mxu0 }
 0x505   : > { %5478 = vst [vmem:[%s10820_s28 + $0x130] sm:$0xff] %v5434_v48  ;;  %v5437_v57 = vadd.f32 %v10910_v40, %v5244_v32 }
 0x507   : > { %5479 = vst [vmem:[%s10820_s28 + $0x138] sm:$0xff] %v5437_v57 }
 0x508 PF: > { %s17_s24 = sadd.s32 1, %s6790_s24  }
 0x509   : > { %p14_p5 = scmp.ge.s32.totalorder %s17_s24, 4  }
 0x50b   :  { %16 = sbr.rel (!%p14_p5) target bundleno = 1 (0x1), region = 81 }

</bundles_post_ra>
